<compile_context>
chip_gen: v7x
topology: tpu7x:2x2x1
jax: 0.10.0
libtpu: 0.0.40
codegen_flags: <defaults>
</compile_context>

<pallas_src>
import functools
import math

import jax
import jax.numpy as jnp
from jax import lax
from jax.experimental import pallas as pl
from jax.experimental.pallas import tpu as pltpu


_LANE_TARGET = 128  # pack narrow channel dims up to a full vreg lane width


# ----------------------------------------------------------------------------
# Small helpers
# ----------------------------------------------------------------------------
def _round_up(x, m):
    return ((x + m - 1) // m) * m


def _pack_factor(width):
    if width < _LANE_TARGET and _LANE_TARGET % width == 0:
        return _LANE_TARGET // width
    return 1


def _pick_rows_tile(total, max_rows, min_steps=2):
    # Multiple-of-8 row tile giving >= min_steps grid steps (v7x megacore) and
    # <= max_rows rows per step.  Non-dividing tails are handled by masked
    # edge blocks (no jnp.pad of the activation).
    steps = max(min_steps, pl.cdiv(total, max_rows))
    tile = _round_up(pl.cdiv(total, steps), 8)
    return min(tile, _round_up(total, 8))


def _pick_lead_tile(total, max_tile, min_steps=2):
    steps = max(min_steps, pl.cdiv(total, max_tile))
    return max(1, pl.cdiv(total, steps))


def _erf(x):
    # Abramowitz & Stegun 7.1.26 rational approximation (|abs err| < 1.5e-7,
    # ~f32 eps) -> matches torch.nn.functional.gelu's erf semantics at f32
    # tolerance using only ops that lower in Mosaic.
    a1, a2, a3, a4, a5 = (0.254829592, -0.284496736, 1.421413741,
                          -1.453152027, 1.061405429)
    p = 0.3275911
    s = jnp.where(x >= 0.0, 1.0, -1.0)
    ax = jnp.abs(x)
    t = 1.0 / (1.0 + p * ax)
    poly = ((((a5 * t + a4) * t + a3) * t + a2) * t + a1) * t
    return s * (1.0 - poly * jnp.exp(-ax * ax))


def _gelu(x):
    return 0.5 * x * (1.0 + _erf(x * 0.7071067811865476))


# ----------------------------------------------------------------------------
# Pallas kernels
# ----------------------------------------------------------------------------
def _fc0_kernel(x_ref, g_ref, w_ref, b_ref, o_ref):
    # Tiny-K lift (K = steps*in_dim + 2): broadcast FMAs on the VPU instead of
    # a lane-sparse MXU matmul; grid channels are consumed directly so the
    # concatenated input is never materialized in HBM.
    x = x_ref[...]
    g = g_ref[...]
    w = w_ref[...]
    kx = x.shape[-1]
    acc = jnp.broadcast_to(b_ref[...], (x.shape[0], w.shape[-1]))
    acc = acc.astype(jnp.float32)
    for k in range(kx):
        acc = acc + x[:, k:k + 1] * w[k:k + 1, :]
    for j in range(g.shape[-1]):
        acc = acc + g[:, j:j + 1] * w[kx + j:kx + j + 1, :]
    o_ref[...] = acc


def _conv_res_gelu_kernel(x_ref, w_ref, b_ref, r_ref, o_ref):
    # Lane-dense packed 1x1 conv fused with residual add + GELU.
    y = jnp.dot(x_ref[...], w_ref[...], preferred_element_type=jnp.float32)
    o_ref[...] = _gelu(y + b_ref[...] + r_ref[...])


def _fc12_kernel(x_ref, w1_ref, b1_ref, w2_ref, b2_ref, o_ref):
    # fc1 + GELU + fc2 fused: the (rows, p*128) intermediate stays on-chip.
    h = jnp.dot(x_ref[...], w1_ref[...], preferred_element_type=jnp.float32)
    h = _gelu(h + b1_ref[...])
    o_ref[...] = jnp.dot(h, w2_ref[...],
                         preferred_element_type=jnp.float32) + b2_ref[...]


def _spec_mix_kernel(x_ref, wr_ref, wi_ref, yr_ref, yi_ref):
    # x_ref: (tm, 2B, C) with the real parts on rows 0..B-1 and the imaginary
    # parts on rows B..2B-1.  wr / wi are each streamed from HBM exactly once
    # (no 2x2 duplication) and pushed to the MXU once per mode.
    x = x_ref[...]
    p = jnp.einsum("mbi,mio->mbo", x, wr_ref[...],
                   preferred_element_type=jnp.float32)
    q = jnp.einsum("mbi,mio->mbo", x, wi_ref[...],
                   preferred_element_type=jnp.float32)
    b = x.shape[1] // 2
    yr_ref[...] = p[:, :b, :] - q[:, b:, :]   # xr@wr - xi@wi
    yi_ref[...] = q[:, :b, :] + p[:, b:, :]   # xr@wi + xi@wr


# ----------------------------------------------------------------------------
# Pallas wrappers
# ----------------------------------------------------------------------------
def _call_rows(kernel, args, n_rows, out_cols, max_rows=2048):
    """Row-tiled pallas_call.  `args` is a list of (array, row_tiled).

    Row-tiled 2-D arrays are tiled along axis 0; the rest get a constant
    full-size block (fetched once, VMEM-resident across grid steps).  The grid
    uses pl.cdiv, so ragged row counts are handled by masked edge blocks
    instead of padding/copying the activation.
    """
    tn = _pick_rows_tile(n_rows, max_rows)
    grid = (pl.cdiv(n_rows, tn),)
    arrays, in_specs = [], []
    for a, row_tiled in args:
        arrays.append(a)
        if row_tiled:
            in_specs.append(pl.BlockSpec((tn, a.shape[1]), lambda i: (i, 0)))
        else:
            in_specs.append(pl.BlockSpec(a.shape, lambda i: (0, 0)))
    return pl.pallas_call(
        kernel,
        out_shape=jax.ShapeDtypeStruct((n_rows, out_cols), jnp.float32),
        grid=grid,
        in_specs=in_specs,
        out_specs=pl.BlockSpec((tn, out_cols), lambda i: (i, 0)),
        compiler_params=pltpu.CompilerParams(
            dimension_semantics=("parallel",)),
    )(*arrays)


def _pack_rows(a, p):
    # (n, c) -> (n//p, p*c): p consecutive rows share one lane-dense row.
    n, c = a.shape
    return a.reshape(n // p, p * c)


def _maybe_pad_rows(a, p):
    n = a.shape[0]
    if n % p == 0:
        return a, n
    n_pad = _round_up(n, p)  # worst case p-1 extra rows
    return jnp.pad(a, ((0, n_pad - n), (0, 0))), n_pad


def fc0_lift(x, grid, w, b, max_rows=2048):
    lead = x.shape[:-1]
    n = int(math.prod(lead))
    x2 = x.reshape(n, x.shape[-1]).astype(jnp.float32)
    g2 = grid.reshape(n, grid.shape[-1]).astype(jnp.float32)
    out = _call_rows(_fc0_kernel,
                     [(x2, True), (g2, True), (w, False), (b, False)],
                     n, w.shape[-1], max_rows)
    return out.reshape(lead + (w.shape[-1],))


def conv1x1_residual_gelu(h, x1, w_packed, b_packed, pack, max_rows=2048):
    """gelu( h @ W + b + x1 ) with channels lane-packed by factor `pack`."""
    lead = h.shape[:-1]
    cin, cout = h.shape[-1], x1.shape[-1]
    n = int(math.prod(lead))
    h2, n_eff = _maybe_pad_rows(h.reshape(n, cin), pack)
    r2, _ = _maybe_pad_rows(x1.reshape(n, cout), pack)
    out = _call_rows(_conv_res_gelu_kernel,
                     [(_pack_rows(h2, pack), True), (w_packed, False),
                      (b_packed, False), (_pack_rows(r2, pack), True)],
                     n_eff // pack, pack * cout, max_rows)
    return out.reshape(n_eff, cout)[:n].reshape(lead + (cout,))


def fc1_fc2(h, w1p, b1p, w2p, b2p, pack, max_rows=2048):
    """Fused fc1 + GELU + fc2, lane-packed by factor `pack`."""
    lead = h.shape[:-1]
    cin = h.shape[-1]
    out_dim = w2p.shape[-1] // pack
    n = int(math.prod(lead))
    h2, n_eff = _maybe_pad_rows(h.reshape(n, cin), pack)
    out = _call_rows(_fc12_kernel,
                     [(_pack_rows(h2, pack), True), (w1p, False), (b1p, False),
                      (w2p, False), (b2p, False)],
                     n_eff // pack, pack * out_dim, max_rows)
    return out.reshape(n_eff, out_dim)[:n].reshape(lead + (out_dim,))


def spectral_mix(x_stack, wr, wi, max_modes=32):
    """Per-mode complex channel mixing.

    x_stack: (M, 2B, C) real array, rows 0..B-1 = Re, rows B..2B-1 = Im.
    wr, wi:  (M, C, C) real / imaginary parts of the spectral weight.
    returns (yr, yi), each (M, B, C).
    """
    m, b2, c = x_stack.shape
    bsz = b2 // 2
    co = wr.shape[-1]
    tm = _pick_lead_tile(m, max_modes)
    return pl.pallas_call(
        _spec_mix_kernel,
        out_shape=(jax.ShapeDtypeStruct((m, bsz, co), jnp.float32),
                   jax.ShapeDtypeStruct((m, bsz, co), jnp.float32)),
        grid=(pl.cdiv(m, tm),),
        in_specs=[pl.BlockSpec((tm, b2, c), lambda i: (i, 0, 0)),
                  pl.BlockSpec((tm, c, co), lambda i: (i, 0, 0)),
                  pl.BlockSpec((tm, c, co), lambda i: (i, 0, 0))],
        out_specs=(pl.BlockSpec((tm, bsz, co), lambda i: (i, 0, 0)),
                   pl.BlockSpec((tm, bsz, co), lambda i: (i, 0, 0))),
        compiler_params=pltpu.CompilerParams(
            dimension_semantics=("parallel",)),
    )(x_stack, wr, wi)


# ----------------------------------------------------------------------------
# FNO2d forward
# ----------------------------------------------------------------------------
def spectral_conv2d(h, layer, modes, pack):
    """One FNO layer: gelu( irfft2(R * rfft2(h)) + Conv1x1(h) )."""
    bsz, hp_, wp_, c = h.shape
    m1, m2 = modes
    wr_len = wp_ // 2 + 1
    m_total = 2 * m1 * m2

    # TODO(synk): FFT has no Pallas TPU primitive; rfft2/irfft2 stay as jnp.fft.
    x_ft = jnp.fft.rfft2(h, axes=(1, 2))                       # (B, Hp, Wr, C)
    xm = jnp.concatenate([x_ft[:, :m1, :m2, :],
                          x_ft[:, hp_ - m1:, :m2, :]], axis=1)  # (B, 2m1, m2, C)
    xm = xm.reshape(bsz, m_total, c)
    # Stack real/imag on the (tiny) matmul M dim: wr/wi are each pushed to the
    # MXU once per mode and never duplicated in HBM.
    x_stack = jnp.transpose(
        jnp.concatenate([jnp.real(xm), jnp.imag(xm)], axis=0),
        (1, 0, 2)).astype(jnp.float32)                          # (M, 2B, C)

    yr, yi = spectral_mix(x_stack, layer["spec_wr"], layer["spec_wi"])
    yc = (yr + 1j * yi).astype(jnp.complex64)                   # (M, B, C)
    yc = jnp.transpose(yc, (1, 0, 2)).reshape(bsz, 2 * m1, m2, c)

    out_ft = jnp.zeros((bsz, hp_, wr_len, c), dtype=jnp.complex64)
    out_ft = lax.dynamic_update_slice(out_ft, yc[:, :m1], (0, 0, 0, 0))
    out_ft = lax.dynamic_update_slice(out_ft, yc[:, m1:], (0, hp_ - m1, 0, 0))
    x1 = jnp.fft.irfft2(out_ft, s=(hp_, wp_), axes=(1, 2))      # (B, Hp, Wp, C)

    # 1x1 conv + residual add + GELU, fused and lane-dense packed.
    return conv1x1_residual_gelu(h, x1, layer["w_wp"], layer["w_bp"], pack)


def fno2d_forward(params, x, grid, *, modes, padding):
    width = params["fc0_b"].shape[-1]
    pack = _pack_factor(width)
    h = fc0_lift(x, grid, params["fc0_w"], params["fc0_b"])             # lift
    h0, w0 = h.shape[1], h.shape[2]
    if padding > 0:
        # F.pad(x, [0, p, 0, p]) on NCHW == pad W right / H bottom by p.
        h = jnp.pad(h, ((0, 0), (0, padding), (0, padding), (0, 0)))
    for layer in params["convs"]:
        h = spectral_conv2d(h, layer, modes, pack)
    if padding > 0:
        h = h[:, :h0, :w0, :]
    return fc1_fc2(h, params["fc1_wp"], params["fc1_bp"],
                   params["fc2_wp"], params["fc2_bp"], pack)


# ----------------------------------------------------------------------------
# Deterministic parameter init (shapes follow FNO2d.__init__)
# ----------------------------------------------------------------------------
def init_params(key, in_dim, out_dim, modes, width, depth, steps):
    m1, m2 = modes
    pack = _pack_factor(width)
    eye = jnp.eye(pack, dtype=jnp.float32)

    def lin(k, fan_in, fan_out):
        kw, kb = jax.random.split(k)
        bound = 1.0 / math.sqrt(fan_in)
        w = jax.random.uniform(kw, (fan_in, fan_out), jnp.float32, -bound, bound)
        b = jax.random.uniform(kb, (1, fan_out), jnp.float32, -bound, bound)
        return w, b

    keys = jax.random.split(key, 3 + depth)
    params = {}
    params["fc0_w"], params["fc0_b"] = lin(keys[0], steps * in_dim + 2, width)
    fc1_w, fc1_b = lin(keys[1], width, 128)
    fc2_w, fc2_b = lin(keys[2], 128, out_dim)
    # Lane-dense block-diagonal packing: `pack` original rows share one
    # 128-lane packed row, so the weight is replicated on the block diagonal.
    params["fc1_wp"] = jnp.kron(eye, fc1_w)           # (pack*width, pack*128)
    params["fc1_bp"] = jnp.tile(fc1_b, (1, pack))
    params["fc2_wp"] = jnp.kron(eye, fc2_w)           # (pack*128, pack*out_dim)
    params["fc2_bp"] = jnp.tile(fc2_b, (1, pack))

    scale = 1.0 / (width * width)

    def to_mco(w):  # (Cin, Cout, m1, m2) -> (m1*m2, Cin, Cout)
        return jnp.transpose(w, (2, 3, 0, 1)).reshape(m1 * m2, width, width)

    convs = []
    for i in range(depth):
        k1, k2, k3 = jax.random.split(keys[3 + i], 3)
        w1r = scale * jax.random.uniform(k1, (width, width, m1, m2), jnp.float32)
        w1i = scale * jax.random.uniform(jax.random.fold_in(k1, 1),
                                         (width, width, m1, m2), jnp.float32)
        w2r = scale * jax.random.uniform(k2, (width, width, m1, m2), jnp.float32)
        w2i = scale * jax.random.uniform(jax.random.fold_in(k2, 1),
                                         (width, width, m1, m2), jnp.float32)
        ww, wb = lin(k3, width, width)                 # the 1x1 Conv2d "w"
        convs.append(dict(
            spec_wr=jnp.concatenate([to_mco(w1r), to_mco(w2r)], axis=0),
            spec_wi=jnp.concatenate([to_mco(w1i), to_mco(w2i)], axis=0),
            w_wp=jnp.kron(eye, ww),                    # (pack*C, pack*C)
            w_bp=jnp.tile(wb, (1, pack)),
        ))
    params["convs"] = convs
    return params


# ----------------------------------------------------------------------------
# Demo
# ----------------------------------------------------------------------------
if __name__ == "__main__":
    B, H, W = 2, 16, 16
    in_dim, out_dim, steps = 1, 1, 1
    modes, width, depth, padding = (8, 8), 32, 4, 2

    key = jax.random.PRNGKey(0)
    kx, kp = jax.random.split(key, 2)
    x = jax.random.normal(kx, (B, H, W, steps * in_dim), jnp.float32)

    gx = jnp.linspace(0.0, 1.0, H)
    gy = jnp.linspace(0.0, 1.0, W)
    gxx, gyy = jnp.meshgrid(gx, gy, indexing="ij")
    grid = jnp.broadcast_to(jnp.stack([gxx, gyy], axis=-1)[None],
                            (B, H, W, 2)).astype(jnp.float32)

    params = init_params(kp, in_dim, out_dim, modes, width, depth, steps)

    forward = jax.jit(functools.partial(fno2d_forward,
                                        modes=modes, padding=padding))
    out = forward(params, x, grid)
    out = jax.block_until_ready(out)
    assert out.shape == (B, H, W, out_dim), out.shape
    assert bool(jnp.all(jnp.isfinite(out)))
    print("KERNEL_OK")
</pallas_src>

<mosaic_0001>
module attributes {stable_mosaic.version = 11 : i64} {
  func.func @_fc0_kernel(%arg0: i32, %arg1: memref<256x1xf32, #tpu.memory_space<vmem>>, %arg2: memref<256x2xf32, #tpu.memory_space<vmem>>, %arg3: memref<3x32xf32, #tpu.memory_space<vmem>>, %arg4: memref<1x32xf32, #tpu.memory_space<vmem>>, %arg5: memref<256x32xf32, #tpu.memory_space<vmem>>) attributes {dimension_semantics = [#tpu.dimension_semantics<parallel>], iteration_bounds = array<i64: 2>, scalar_prefetch = 0 : i64, scratch_operands = 0 : i64, tpu.core_type = #tpu.core_type<tc>, window_params = [{transform_indices = @transform_0, window_bounds = array<i64: 256, 1>}, {transform_indices = @transform_1, window_bounds = array<i64: 256, 2>}, {pipeline_mode = #tpu.pipeline_mode<synchronous>, transform_indices = @transform_2, window_bounds = array<i64: 3, 32>}, {pipeline_mode = #tpu.pipeline_mode<synchronous>, transform_indices = @transform_3, window_bounds = array<i64: 1, 32>}, {transform_indices = @transform_4, window_bounds = array<i64: 256, 32>}]} {
    %c0 = arith.constant 0 : index
    %c0_0 = arith.constant 0 : index
    %0 = vector.load %arg1[%c0, %c0_0] : memref<256x1xf32, #tpu.memory_space<vmem>>, vector<256x1xf32>
    %c0_1 = arith.constant 0 : index
    %c0_2 = arith.constant 0 : index
    %1 = vector.load %arg2[%c0_1, %c0_2] : memref<256x2xf32, #tpu.memory_space<vmem>>, vector<256x2xf32>
    %c0_3 = arith.constant 0 : index
    %c0_4 = arith.constant 0 : index
    %2 = vector.load %arg3[%c0_3, %c0_4] : memref<3x32xf32, #tpu.memory_space<vmem>>, vector<3x32xf32>
    %c0_5 = arith.constant 0 : index
    %c0_6 = arith.constant 0 : index
    %3 = vector.load %arg4[%c0_5, %c0_6] : memref<1x32xf32, #tpu.memory_space<vmem>>, vector<1x32xf32>
    %4 = vector.shape_cast %3 : vector<1x32xf32> to vector<1x32xf32>
    %5 = vector.broadcast %4 : vector<1x32xf32> to vector<256x32xf32>
    %6 = vector.extract_strided_slice %2 {offsets = [0, 0], sizes = [1, 32], strides = [1, 1]} : vector<3x32xf32> to vector<1x32xf32>
    %7 = vector.broadcast %0 : vector<256x1xf32> to vector<256x32xf32>
    %8 = vector.broadcast %6 : vector<1x32xf32> to vector<256x32xf32>
    %9 = arith.mulf %7, %8 : vector<256x32xf32>
    %10 = arith.addf %5, %9 : vector<256x32xf32>
    %11 = vector.extract_strided_slice %1 {offsets = [0, 0], sizes = [256, 1], strides = [1, 1]} : vector<256x2xf32> to vector<256x1xf32>
    %12 = vector.extract_strided_slice %2 {offsets = [1, 0], sizes = [1, 32], strides = [1, 1]} : vector<3x32xf32> to vector<1x32xf32>
    %13 = vector.broadcast %11 : vector<256x1xf32> to vector<256x32xf32>
    %14 = vector.broadcast %12 : vector<1x32xf32> to vector<256x32xf32>
    %15 = arith.mulf %13, %14 : vector<256x32xf32>
    %16 = arith.addf %10, %15 : vector<256x32xf32>
    %17 = vector.extract_strided_slice %1 {offsets = [0, 1], sizes = [256, 1], strides = [1, 1]} : vector<256x2xf32> to vector<256x1xf32>
    %18 = vector.extract_strided_slice %2 {offsets = [2, 0], sizes = [1, 32], strides = [1, 1]} : vector<3x32xf32> to vector<1x32xf32>
    %19 = vector.broadcast %17 : vector<256x1xf32> to vector<256x32xf32>
    %20 = vector.broadcast %18 : vector<1x32xf32> to vector<256x32xf32>
    %21 = arith.mulf %19, %20 : vector<256x32xf32>
    %22 = arith.addf %16, %21 : vector<256x32xf32>
    %c0_7 = arith.constant 0 : index
    %c0_8 = arith.constant 0 : index
    %23 = vector.load %arg5[%c0_7, %c0_8] : memref<256x32xf32, #tpu.memory_space<vmem>>, vector<256x32xf32>
    tpu.vector_store %arg5[%c0_7, %c0_8], %22 {strides = array<i32>} : memref<256x32xf32, #tpu.memory_space<vmem>>, vector<256x32xf32>,
    return
  }
  func.func @transform_0(%arg0: i32) -> (i32, i32) {
    %c0_i32 = arith.constant 0 : i32
    %c0_i32_0 = arith.constant 0 : i32
    return %arg0, %c0_i32 : i32, i32
  }
  func.func @transform_1(%arg0: i32) -> (i32, i32) {
    %c0_i32 = arith.constant 0 : i32
    %c0_i32_0 = arith.constant 0 : i32
    return %arg0, %c0_i32 : i32, i32
  }
  func.func @transform_2(%arg0: i32) -> (i32, i32) {
    %c0_i32 = arith.constant 0 : i32
    %c0_i32_0 = arith.constant 0 : i32
    %c0_i32_1 = arith.constant 0 : i32
    return %c0_i32, %c0_i32_0 : i32, i32
  }
  func.func @transform_3(%arg0: i32) -> (i32, i32) {
    %c0_i32 = arith.constant 0 : i32
    %c0_i32_0 = arith.constant 0 : i32
    %c0_i32_1 = arith.constant 0 : i32
    return %c0_i32, %c0_i32_0 : i32, i32
  }
  func.func @transform_4(%arg0: i32) -> (i32, i32) {
    %c0_i32 = arith.constant 0 : i32
    %c0_i32_0 = arith.constant 0 : i32
    return %arg0, %c0_i32 : i32, i32
  }
}

module attributes {stable_mosaic.version = 11 : i64} {
  func.func @_spec_mix_kernel(%arg0: i32, %arg1: memref<32x4x32xf32, #tpu.memory_space<vmem>>, %arg2: memref<32x32x32xf32, #tpu.memory_space<vmem>>, %arg3: memref<32x32x32xf32, #tpu.memory_space<vmem>>, %arg4: memref<32x2x32xf32, #tpu.memory_space<vmem>>, %arg5: memref<32x2x32xf32, #tpu.memory_space<vmem>>) attributes {dimension_semantics = [#tpu.dimension_semantics<parallel>], iteration_bounds = array<i64: 4>, scalar_prefetch = 0 : i64, scratch_operands = 0 : i64, tpu.core_type = #tpu.core_type<tc>, window_params = [{transform_indices = @transform_0, window_bounds = array<i64: 32, 4, 32>}, {transform_indices = @transform_1, window_bounds = array<i64: 32, 32, 32>}, {transform_indices = @transform_2, window_bounds = array<i64: 32, 32, 32>}, {transform_indices = @transform_3, window_bounds = array<i64: 32, 2, 32>}, {transform_indices = @transform_4, window_bounds = array<i64: 32, 2, 32>}]} {
    %c0 = arith.constant 0 : index
    %c0_0 = arith.constant 0 : index
    %c0_1 = arith.constant 0 : index
    %0 = vector.load %arg1[%c0, %c0_0, %c0_1] : memref<32x4x32xf32, #tpu.memory_space<vmem>>, vector<32x4x32xf32>
    %c0_2 = arith.constant 0 : index
    %c0_3 = arith.constant 0 : index
    %c0_4 = arith.constant 0 : index
    %1 = vector.load %arg2[%c0_2, %c0_3, %c0_4] : memref<32x32x32xf32, #tpu.memory_space<vmem>>, vector<32x32x32xf32>
    "tpu.trace_start"() <{level = 10 : i32, message = "mbi,mio->mbo"}> : () -> ()
    %cst = arith.constant dense<0.000000e+00> : vector<32x4x32xf32>
    %2 = tpu.matmul %0, %1, %cst {dimension_numbers = #tpu.dot_dimension_numbers<[2], [1], [1], [2], [0, 0, 0, 1, 1, 2], [0], [0]>} : vector<32x4x32xf32>, vector<32x32x32xf32>, vector<32x4x32xf32> -> vector<32x4x32xf32>
    "tpu.trace_stop"() : () -> ()
    %c0_5 = arith.constant 0 : index
    %c0_6 = arith.constant 0 : index
    %c0_7 = arith.constant 0 : index
    %3 = vector.load %arg3[%c0_5, %c0_6, %c0_7] : memref<32x32x32xf32, #tpu.memory_space<vmem>>, vector<32x32x32xf32>
    "tpu.trace_start"() <{level = 10 : i32, message = "mbi,mio->mbo"}> : () -> ()
    %cst_8 = arith.constant dense<0.000000e+00> : vector<32x4x32xf32>
    %4 = tpu.matmul %0, %3, %cst_8 {dimension_numbers = #tpu.dot_dimension_numbers<[2], [1], [1], [2], [0, 0, 0, 1, 1, 2], [0], [0]>} : vector<32x4x32xf32>, vector<32x32x32xf32>, vector<32x4x32xf32> -> vector<32x4x32xf32>
    "tpu.trace_stop"() : () -> ()
    %5 = vector.extract_strided_slice %2 {offsets = [0, 0, 0], sizes = [32, 2, 32], strides = [1, 1, 1]} : vector<32x4x32xf32> to vector<32x2x32xf32>
    %6 = vector.extract_strided_slice %4 {offsets = [0, 2, 0], sizes = [32, 2, 32], strides = [1, 1, 1]} : vector<32x4x32xf32> to vector<32x2x32xf32>
    %7 = arith.subf %5, %6 : vector<32x2x32xf32>
    %c0_9 = arith.constant 0 : index
    %c0_10 = arith.constant 0 : index
    %c0_11 = arith.constant 0 : index
    %8 = vector.load %arg4[%c0_9, %c0_10, %c0_11] : memref<32x2x32xf32, #tpu.memory_space<vmem>>, vector<32x2x32xf32>
    tpu.vector_store %arg4[%c0_9, %c0_10, %c0_11], %7 {strides = array<i32>} : memref<32x2x32xf32, #tpu.memory_space<vmem>>, vector<32x2x32xf32>,
    %9 = vector.extract_strided_slice %4 {offsets = [0, 0, 0], sizes = [32, 2, 32], strides = [1, 1, 1]} : vector<32x4x32xf32> to vector<32x2x32xf32>
    %10 = vector.extract_strided_slice %2 {offsets = [0, 2, 0], sizes = [32, 2, 32], strides = [1, 1, 1]} : vector<32x4x32xf32> to vector<32x2x32xf32>
    %11 = arith.addf %9, %10 : vector<32x2x32xf32>
    %c0_12 = arith.constant 0 : index
    %c0_13 = arith.constant 0 : index
    %c0_14 = arith.constant 0 : index
    %12 = vector.load %arg5[%c0_12, %c0_13, %c0_14] : memref<32x2x32xf32, #tpu.memory_space<vmem>>, vector<32x2x32xf32>
    tpu.vector_store %arg5[%c0_12, %c0_13, %c0_14], %11 {strides = array<i32>} : memref<32x2x32xf32, #tpu.memory_space<vmem>>, vector<32x2x32xf32>,
    return
  }
  func.func @transform_0(%arg0: i32) -> (i32, i32, i32) {
    %c0_i32 = arith.constant 0 : i32
    %c0_i32_0 = arith.constant 0 : i32
    %c0_i32_1 = arith.constant 0 : i32
    return %arg0, %c0_i32, %c0_i32_0 : i32, i32, i32
  }
  func.func @transform_1(%arg0: i32) -> (i32, i32, i32) {
    %c0_i32 = arith.constant 0 : i32
    %c0_i32_0 = arith.constant 0 : i32
    %c0_i32_1 = arith.constant 0 : i32
    return %arg0, %c0_i32, %c0_i32_0 : i32, i32, i32
  }
  func.func @transform_2(%arg0: i32) -> (i32, i32, i32) {
    %c0_i32 = arith.constant 0 : i32
    %c0_i32_0 = arith.constant 0 : i32
    %c0_i32_1 = arith.constant 0 : i32
    return %arg0, %c0_i32, %c0_i32_0 : i32, i32, i32
  }
  func.func @transform_3(%arg0: i32) -> (i32, i32, i32) {
    %c0_i32 = arith.constant 0 : i32
    %c0_i32_0 = arith.constant 0 : i32
    %c0_i32_1 = arith.constant 0 : i32
    return %arg0, %c0_i32, %c0_i32_0 : i32, i32, i32
  }
  func.func @transform_4(%arg0: i32) -> (i32, i32, i32) {
    %c0_i32 = arith.constant 0 : i32
    %c0_i32_0 = arith.constant 0 : i32
    %c0_i32_1 = arith.constant 0 : i32
    return %arg0, %c0_i32, %c0_i32_0 : i32, i32, i32
  }
}

module attributes {stable_mosaic.version = 11 : i64} {
  func.func @_conv_res_gelu_kernel(%arg0: i32, %arg1: memref<88x128xf32, #tpu.memory_space<vmem>>, %arg2: memref<128x128xf32, #tpu.memory_space<vmem>>, %arg3: memref<1x128xf32, #tpu.memory_space<vmem>>, %arg4: memref<88x128xf32, #tpu.memory_space<vmem>>, %arg5: memref<88x128xf32, #tpu.memory_space<vmem>>) attributes {dimension_semantics = [#tpu.dimension_semantics<parallel>], iteration_bounds = array<i64: 2>, scalar_prefetch = 0 : i64, scratch_operands = 0 : i64, tpu.core_type = #tpu.core_type<tc>, window_params = [{transform_indices = @transform_0, window_bounds = array<i64: 88, 128>}, {pipeline_mode = #tpu.pipeline_mode<synchronous>, transform_indices = @transform_1, window_bounds = array<i64: 128, 128>}, {pipeline_mode = #tpu.pipeline_mode<synchronous>, transform_indices = @transform_2, window_bounds = array<i64: 1, 128>}, {transform_indices = @transform_3, window_bounds = array<i64: 88, 128>}, {transform_indices = @transform_4, window_bounds = array<i64: 88, 128>}]} {
    %c0 = arith.constant 0 : index
    %c0_0 = arith.constant 0 : index
    %0 = vector.load %arg1[%c0, %c0_0] : memref<88x128xf32, #tpu.memory_space<vmem>>, vector<88x128xf32>
    %c0_1 = arith.constant 0 : index
    %c0_2 = arith.constant 0 : index
    %1 = vector.load %arg2[%c0_1, %c0_2] : memref<128x128xf32, #tpu.memory_space<vmem>>, vector<128x128xf32>
    %cst = arith.constant dense<0.000000e+00> : vector<88x128xf32>
    %2 = tpu.matmul %0, %1, %cst {dimension_numbers = #tpu.dot_dimension_numbers<[1], [0], [0], [1], [0, 0, 1, 1], [], []>} : vector<88x128xf32>, vector<128x128xf32>, vector<88x128xf32> -> vector<88x128xf32>
    %c0_3 = arith.constant 0 : index
    %c0_4 = arith.constant 0 : index
    %3 = vector.load %arg3[%c0_3, %c0_4] : memref<1x128xf32, #tpu.memory_space<vmem>>, vector<1x128xf32>
    %4 = vector.broadcast %3 : vector<1x128xf32> to vector<88x128xf32>
    %5 = arith.addf %2, %4 : vector<88x128xf32>
    %c0_5 = arith.constant 0 : index
    %c0_6 = arith.constant 0 : index
    %6 = vector.load %arg4[%c0_5, %c0_6] : memref<88x128xf32, #tpu.memory_space<vmem>>, vector<88x128xf32>
    %7 = arith.addf %5, %6 : vector<88x128xf32>
    %cst_7 = arith.constant 5.000000e-01 : f32
    %8 = vector.broadcast %cst_7 : f32 to vector<88x128xf32>
    %9 = arith.mulf %8, %7 : vector<88x128xf32>
    %cst_8 = arith.constant 0.707106769 : f32
    %10 = vector.broadcast %cst_8 : f32 to vector<88x128xf32>
    %11 = arith.mulf %7, %10 : vector<88x128xf32>
    %cst_9 = arith.constant 0.000000e+00 : f32
    %12 = vector.broadcast %cst_9 : f32 to vector<88x128xf32>
    %13 = arith.cmpf oge, %11, %12 : vector<88x128xf32>
    %cst_10 = arith.constant 1.000000e+00 : f32
    %cst_11 = arith.constant -1.000000e+00 : f32
    %14 = vector.broadcast %cst_10 : f32 to vector<88x128xf32>
    %15 = vector.broadcast %cst_11 : f32 to vector<88x128xf32>
    %16 = arith.select %13, %14, %15 : vector<88x128xi1>, vector<88x128xf32>
    %17 = math.absf %11 : vector<88x128xf32>
    %cst_12 = arith.constant 0.327591091 : f32
    %18 = vector.broadcast %cst_12 : f32 to vector<88x128xf32>
    %19 = arith.mulf %18, %17 : vector<88x128xf32>
    %cst_13 = arith.constant 1.000000e+00 : f32
    %20 = vector.broadcast %cst_13 : f32 to vector<88x128xf32>
    %21 = arith.addf %20, %19 : vector<88x128xf32>
    %cst_14 = arith.constant 1.000000e+00 : f32
    %22 = vector.broadcast %cst_14 : f32 to vector<88x128xf32>
    %23 = arith.divf %22, %21 : vector<88x128xf32>
    %cst_15 = arith.constant 1.06140542 : f32
    %24 = vector.broadcast %cst_15 : f32 to vector<88x128xf32>
    %25 = arith.mulf %24, %23 : vector<88x128xf32>
    %cst_16 = arith.constant -1.45315206 : f32
    %26 = vector.broadcast %cst_16 : f32 to vector<88x128xf32>
    %27 = arith.addf %25, %26 : vector<88x128xf32>
    %28 = arith.mulf %27, %23 : vector<88x128xf32>
    %cst_17 = arith.constant 1.42141378 : f32
    %29 = vector.broadcast %cst_17 : f32 to vector<88x128xf32>
    %30 = arith.addf %28, %29 : vector<88x128xf32>
    %31 = arith.mulf %30, %23 : vector<88x128xf32>
    %cst_18 = arith.constant -0.284496725 : f32
    %32 = vector.broadcast %cst_18 : f32 to vector<88x128xf32>
    %33 = arith.addf %31, %32 : vector<88x128xf32>
    %34 = arith.mulf %33, %23 : vector<88x128xf32>
    %cst_19 = arith.constant 0.254829586 : f32
    %35 = vector.broadcast %cst_19 : f32 to vector<88x128xf32>
    %36 = arith.addf %34, %35 : vector<88x128xf32>
    %37 = arith.mulf %36, %23 : vector<88x128xf32>
    %cst_20 = arith.constant 0.000000e+00 : f32
    %38 = vector.broadcast %cst_20 : f32 to vector<88x128xf32>
    %39 = arith.subf %38, %17 : vector<88x128xf32>
    %40 = arith.mulf %39, %17 : vector<88x128xf32>
    %41 = math.exp %40 : vector<88x128xf32>
    %42 = arith.mulf %37, %41 : vector<88x128xf32>
    %cst_21 = arith.constant 1.000000e+00 : f32
    %43 = vector.broadcast %cst_21 : f32 to vector<88x128xf32>
    %44 = arith.subf %43, %42 : vector<88x128xf32>
    %45 = arith.mulf %16, %44 : vector<88x128xf32>
    %cst_22 = arith.constant 1.000000e+00 : f32
    %46 = vector.broadcast %cst_22 : f32 to vector<88x128xf32>
    %47 = arith.addf %46, %45 : vector<88x128xf32>
    %48 = arith.mulf %9, %47 : vector<88x128xf32>
    %c0_23 = arith.constant 0 : index
    %c0_24 = arith.constant 0 : index
    %49 = vector.load %arg5[%c0_23, %c0_24] : memref<88x128xf32, #tpu.memory_space<vmem>>, vector<88x128xf32>
    tpu.vector_store %arg5[%c0_23, %c0_24], %48 {strides = array<i32>} : memref<88x128xf32, #tpu.memory_space<vmem>>, vector<88x128xf32>,
    return
  }
  func.func @transform_0(%arg0: i32) -> (i32, i32) {
    %c0_i32 = arith.constant 0 : i32
    %c0_i32_0 = arith.constant 0 : i32
    return %arg0, %c0_i32 : i32, i32
  }
  func.func @transform_1(%arg0: i32) -> (i32, i32) {
    %c0_i32 = arith.constant 0 : i32
    %c0_i32_0 = arith.constant 0 : i32
    %c0_i32_1 = arith.constant 0 : i32
    return %c0_i32, %c0_i32_0 : i32, i32
  }
  func.func @transform_2(%arg0: i32) -> (i32, i32) {
    %c0_i32 = arith.constant 0 : i32
    %c0_i32_0 = arith.constant 0 : i32
    %c0_i32_1 = arith.constant 0 : i32
    return %c0_i32, %c0_i32_0 : i32, i32
  }
  func.func @transform_3(%arg0: i32) -> (i32, i32) {
    %c0_i32 = arith.constant 0 : i32
    %c0_i32_0 = arith.constant 0 : i32
    return %arg0, %c0_i32 : i32, i32
  }
  func.func @transform_4(%arg0: i32) -> (i32, i32) {
    %c0_i32 = arith.constant 0 : i32
    %c0_i32_0 = arith.constant 0 : i32
    return %arg0, %c0_i32 : i32, i32
  }
}

module attributes {stable_mosaic.version = 11 : i64} {
  func.func @_fc12_kernel(%arg0: i32, %arg1: memref<64x128xf32, #tpu.memory_space<vmem>>, %arg2: memref<128x512xf32, #tpu.memory_space<vmem>>, %arg3: memref<1x512xf32, #tpu.memory_space<vmem>>, %arg4: memref<512x4xf32, #tpu.memory_space<vmem>>, %arg5: memref<1x4xf32, #tpu.memory_space<vmem>>, %arg6: memref<64x4xf32, #tpu.memory_space<vmem>>) attributes {dimension_semantics = [#tpu.dimension_semantics<parallel>], iteration_bounds = array<i64: 2>, scalar_prefetch = 0 : i64, scratch_operands = 0 : i64, tpu.core_type = #tpu.core_type<tc>, window_params = [{transform_indices = @transform_0, window_bounds = array<i64: 64, 128>}, {pipeline_mode = #tpu.pipeline_mode<synchronous>, transform_indices = @transform_1, window_bounds = array<i64: 128, 512>}, {pipeline_mode = #tpu.pipeline_mode<synchronous>, transform_indices = @transform_2, window_bounds = array<i64: 1, 512>}, {pipeline_mode = #tpu.pipeline_mode<synchronous>, transform_indices = @transform_3, window_bounds = array<i64: 512, 4>}, {pipeline_mode = #tpu.pipeline_mode<synchronous>, transform_indices = @transform_4, window_bounds = array<i64: 1, 4>}, {transform_indices = @transform_5, window_bounds = array<i64: 64, 4>}]} {
    %c0 = arith.constant 0 : index
    %c0_0 = arith.constant 0 : index
    %0 = vector.load %arg1[%c0, %c0_0] : memref<64x128xf32, #tpu.memory_space<vmem>>, vector<64x128xf32>
    %c0_1 = arith.constant 0 : index
    %c0_2 = arith.constant 0 : index
    %1 = vector.load %arg2[%c0_1, %c0_2] : memref<128x512xf32, #tpu.memory_space<vmem>>, vector<128x512xf32>
    %cst = arith.constant dense<0.000000e+00> : vector<64x512xf32>
    %2 = tpu.matmul %0, %1, %cst {dimension_numbers = #tpu.dot_dimension_numbers<[1], [0], [0], [1], [0, 0, 1, 1], [], []>} : vector<64x128xf32>, vector<128x512xf32>, vector<64x512xf32> -> vector<64x512xf32>
    %c0_3 = arith.constant 0 : index
    %c0_4 = arith.constant 0 : index
    %3 = vector.load %arg3[%c0_3, %c0_4] : memref<1x512xf32, #tpu.memory_space<vmem>>, vector<1x512xf32>
    %4 = vector.broadcast %3 : vector<1x512xf32> to vector<64x512xf32>
    %5 = arith.addf %2, %4 : vector<64x512xf32>
    %cst_5 = arith.constant 5.000000e-01 : f32
    %6 = vector.broadcast %cst_5 : f32 to vector<64x512xf32>
    %7 = arith.mulf %6, %5 : vector<64x512xf32>
    %cst_6 = arith.constant 0.707106769 : f32
    %8 = vector.broadcast %cst_6 : f32 to vector<64x512xf32>
    %9 = arith.mulf %5, %8 : vector<64x512xf32>
    %cst_7 = arith.constant 0.000000e+00 : f32
    %10 = vector.broadcast %cst_7 : f32 to vector<64x512xf32>
    %11 = arith.cmpf oge, %9, %10 : vector<64x512xf32>
    %cst_8 = arith.constant 1.000000e+00 : f32
    %cst_9 = arith.constant -1.000000e+00 : f32
    %12 = vector.broadcast %cst_8 : f32 to vector<64x512xf32>
    %13 = vector.broadcast %cst_9 : f32 to vector<64x512xf32>
    %14 = arith.select %11, %12, %13 : vector<64x512xi1>, vector<64x512xf32>
    %15 = math.absf %9 : vector<64x512xf32>
    %cst_10 = arith.constant 0.327591091 : f32
    %16 = vector.broadcast %cst_10 : f32 to vector<64x512xf32>
    %17 = arith.mulf %16, %15 : vector<64x512xf32>
    %cst_11 = arith.constant 1.000000e+00 : f32
    %18 = vector.broadcast %cst_11 : f32 to vector<64x512xf32>
    %19 = arith.addf %18, %17 : vector<64x512xf32>
    %cst_12 = arith.constant 1.000000e+00 : f32
    %20 = vector.broadcast %cst_12 : f32 to vector<64x512xf32>
    %21 = arith.divf %20, %19 : vector<64x512xf32>
    %cst_13 = arith.constant 1.06140542 : f32
    %22 = vector.broadcast %cst_13 : f32 to vector<64x512xf32>
    %23 = arith.mulf %22, %21 : vector<64x512xf32>
    %cst_14 = arith.constant -1.45315206 : f32
    %24 = vector.broadcast %cst_14 : f32 to vector<64x512xf32>
    %25 = arith.addf %23, %24 : vector<64x512xf32>
    %26 = arith.mulf %25, %21 : vector<64x512xf32>
    %cst_15 = arith.constant 1.42141378 : f32
    %27 = vector.broadcast %cst_15 : f32 to vector<64x512xf32>
    %28 = arith.addf %26, %27 : vector<64x512xf32>
    %29 = arith.mulf %28, %21 : vector<64x512xf32>
    %cst_16 = arith.constant -0.284496725 : f32
    %30 = vector.broadcast %cst_16 : f32 to vector<64x512xf32>
    %31 = arith.addf %29, %30 : vector<64x512xf32>
    %32 = arith.mulf %31, %21 : vector<64x512xf32>
    %cst_17 = arith.constant 0.254829586 : f32
    %33 = vector.broadcast %cst_17 : f32 to vector<64x512xf32>
    %34 = arith.addf %32, %33 : vector<64x512xf32>
    %35 = arith.mulf %34, %21 : vector<64x512xf32>
    %cst_18 = arith.constant 0.000000e+00 : f32
    %36 = vector.broadcast %cst_18 : f32 to vector<64x512xf32>
    %37 = arith.subf %36, %15 : vector<64x512xf32>
    %38 = arith.mulf %37, %15 : vector<64x512xf32>
    %39 = math.exp %38 : vector<64x512xf32>
    %40 = arith.mulf %35, %39 : vector<64x512xf32>
    %cst_19 = arith.constant 1.000000e+00 : f32
    %41 = vector.broadcast %cst_19 : f32 to vector<64x512xf32>
    %42 = arith.subf %41, %40 : vector<64x512xf32>
    %43 = arith.mulf %14, %42 : vector<64x512xf32>
    %cst_20 = arith.constant 1.000000e+00 : f32
    %44 = vector.broadcast %cst_20 : f32 to vector<64x512xf32>
    %45 = arith.addf %44, %43 : vector<64x512xf32>
    %46 = arith.mulf %7, %45 : vector<64x512xf32>
    %c0_21 = arith.constant 0 : index
    %c0_22 = arith.constant 0 : index
    %47 = vector.load %arg4[%c0_21, %c0_22] : memref<512x4xf32, #tpu.memory_space<vmem>>, vector<512x4xf32>
    %cst_23 = arith.constant dense<0.000000e+00> : vector<64x4xf32>
    %48 = tpu.matmul %46, %47, %cst_23 {dimension_numbers = #tpu.dot_dimension_numbers<[1], [0], [0], [1], [0, 0, 1, 1], [], []>} : vector<64x512xf32>, vector<512x4xf32>, vector<64x4xf32> -> vector<64x4xf32>
    %c0_24 = arith.constant 0 : index
    %c0_25 = arith.constant 0 : index
    %49 = vector.load %arg5[%c0_24, %c0_25] : memref<1x4xf32, #tpu.memory_space<vmem>>, vector<1x4xf32>
    %50 = vector.broadcast %49 : vector<1x4xf32> to vector<64x4xf32>
    %51 = arith.addf %48, %50 : vector<64x4xf32>
    %c0_26 = arith.constant 0 : index
    %c0_27 = arith.constant 0 : index
    %52 = vector.load %arg6[%c0_26, %c0_27] : memref<64x4xf32, #tpu.memory_space<vmem>>, vector<64x4xf32>
    tpu.vector_store %arg6[%c0_26, %c0_27], %51 {strides = array<i32>} : memref<64x4xf32, #tpu.memory_space<vmem>>, vector<64x4xf32>,
    return
  }
  func.func @transform_0(%arg0: i32) -> (i32, i32) {
    %c0_i32 = arith.constant 0 : i32
    %c0_i32_0 = arith.constant 0 : i32
    return %arg0, %c0_i32 : i32, i32
  }
  func.func @transform_1(%arg0: i32) -> (i32, i32) {
    %c0_i32 = arith.constant 0 : i32
    %c0_i32_0 = arith.constant 0 : i32
    %c0_i32_1 = arith.constant 0 : i32
    return %c0_i32, %c0_i32_0 : i32, i32
  }
  func.func @transform_2(%arg0: i32) -> (i32, i32) {
    %c0_i32 = arith.constant 0 : i32
    %c0_i32_0 = arith.constant 0 : i32
    %c0_i32_1 = arith.constant 0 : i32
    return %c0_i32, %c0_i32_0 : i32, i32
  }
  func.func @transform_3(%arg0: i32) -> (i32, i32) {
    %c0_i32 = arith.constant 0 : i32
    %c0_i32_0 = arith.constant 0 : i32
    %c0_i32_1 = arith.constant 0 : i32
    return %c0_i32, %c0_i32_0 : i32, i32
  }
  func.func @transform_4(%arg0: i32) -> (i32, i32) {
    %c0_i32 = arith.constant 0 : i32
    %c0_i32_0 = arith.constant 0 : i32
    %c0_i32_1 = arith.constant 0 : i32
    return %c0_i32, %c0_i32_0 : i32, i32
  }
  func.func @transform_5(%arg0: i32) -> (i32, i32) {
    %c0_i32 = arith.constant 0 : i32
    %c0_i32_0 = arith.constant 0 : i32
    return %arg0, %c0_i32 : i32, i32
  }
}

</mosaic_0001>

<bundles_post_ra>
// kernel: fno2d_forward.10
= control target key start
LH: loop header
LB: loop body
LE: loop exit
PB: predicated region body
PF: predicated region fallthrough
CT: control target
= control target key end

     0   :  { %9 = vsyncpa [#allocation3], 0  ;;  %s1927_s0 = inlined_call_operand.vmem [shape: f32[512,1], index: 0, kind: input, shape index: {}]   ;;  %s1928_s1 = inlined_call_operand.vmem [shape: f32[512,2], index: 1, kind: input, shape index: {}]   ;;  %s1929_s2 = inlined_call_operand.hbm [shape: f32[3,32], index: 2, kind: input, shape index: {}]   ;;  %s1930_s3 = inlined_call_operand.hbm [shape: f32[1,32], index: 3, kind: input, shape index: {}]   ;;  %s1931_s4 = inlined_call_operand.vmem [shape: f32[512,32], index: 4, kind: output, shape index: {}]  }
   0x1   :  { %10 = vsyncpa [#allocation5], 0  ;;  %s1250_s15 = smov 0  }
   0x2 LB: > { %s1096_s16 = sadd.s32 4294967295, %s1219_s15   ;;  %p1098_p0 = scmp.ge.s32.totalorder %s1219_s15, 1  ;;  %s1219_s15 = sphi %s1250_s15, %s16_s15  }
   0x3   : > { %p141_p1 = scmp.lt.s32.totalorder %s1219_s15, 3  ;;  %p1260_p2 = scmp.eq.s32.totalorder %s1096_s16, 0 }
   0x4   : > { %s1221_s19 = smov [#allocation2]   ;;  %s1222_s21 = smov [#allocation4]  }
   0x5   : > { %s1935_s17 = scalar_select %p1260_p2, 1, 0 }
   0x6   : > { %p1264_p3 = pnand %p1098_p0, %p141_p1  ;;  %s154_s20 = sshll.u32 %s1221_s19, 4  ;;  %s155_s20 = int_to_ptr.vmem [resolvable:$true] %s154_s20 }
   0x7   : > { %s165_s22 = sshll.u32 %s1222_s21, 4  ;;  %s1149_s26 = scalar_lea.hbm %s1929_s2, 64  ;;  %s1276_s22 = int_to_ptr.vmem [resolvable:$true] %s165_s22 }
   0x8   : > { %s1936_s18 = scalar_select %p1264_p3, 1, 0 }
   0x9   : > { %p1122_p4 = pneg %p1264_p3  ;;  %p1150_p6 = scmp.ne.s32.totalorder %s1929_s2, %s1149_s26 }
   0xa   : > { %p1156_p10 = scmp.lt.u32.totalorder %s1149_s26, %s1929_s2 }
   0xb   : > { %p1272_p5 = pnand %p1260_p2, %p1122_p4 }
   0xd   : > { %p1151_p7 = pneg %p1272_p5 }
   0xf   : > { %p1152_p8 = pnand %p1151_p7, %p1150_p6 }
  0x11   : > { %p1153_p9 = pneg %p1152_p8 }
  0x13   : > { %p1158_p11 = pnand %p1156_p10, %p1153_p9 }
  0x15   : > { %1161 = shalt.err (!%p1158_p11)
}
  0x16   : > { %s1162_s5 = scalar_lea.vmem %s155_s20, 64  ;;  %p1170_p1 = scmp.lt.s32.totalorder %s155_s20, %s155_s20 }
  0x17   : > { %p1163_p12 = scmp.ne.s32.totalorder %s155_s20, %s1162_s5  ;;  %p1171_p4 = scmp.lt.s32.totalorder %s1162_s5, %s1162_s5 }
  0x19   : > { %p1165_p13 = pnand %p1163_p12, %p1151_p7  ;;  %p1172_p2 = por %p1171_p4, %p1170_p1 }
  0x1b   : > { %p1166_p0 = pneg %p1165_p13 }
  0x1d   : > { %p1173_p3 = pnand %p1172_p2, %p1166_p0 }
  0x1f   : > { %1176 = shalt.err (!%p1173_p3)
}
  0x20   : > { %1125 = dma.hbm_to_vmem [thread:$0]  (!%p1272_p5), %s1929_s2, 64, %s155_s20, [#allocation3]  }
  0x21   : > { %s1177_s10 = scalar_lea.hbm %s1930_s3, 16 }
  0x22   : > { %p1178_p6 = scmp.ne.s32.totalorder %s1930_s3, %s1177_s10  ;;  %p1184_p3 = scmp.lt.u32.totalorder %s1177_s10, %s1930_s3 }
  0x24   : > { %p1180_p8 = pnand %p1178_p6, %p1151_p7 }
  0x26   : > { %p1181_p2 = pneg %p1180_p8 }
  0x28   : > { %p1186_p9 = pnand %p1184_p3, %p1181_p2 }
  0x2a   : > { %1189 = shalt.err (!%p1186_p9)
}
  0x2b   : > { %s1190_s19 = scalar_lea.vmem %s1276_s22, 16  ;;  %s1197_s20 = scalar_lea.vmem %s1276_s22, 32 }
  0x2c   : > { %p1191_p10 = scmp.ne.s32.totalorder %s1276_s22, %s1190_s19  ;;  %p1198_p13 = scmp.lt.s32.totalorder %s1276_s22, %s1276_s22 }
  0x2d   : > { %p1199_p0 = scmp.lt.s32.totalorder %s1197_s20, %s1190_s19 }
  0x2e   : > { %p1193_p11 = pnand %p1191_p10, %p1151_p7 }
  0x2f   : > { %p1200_p1 = por %p1199_p0, %p1198_p13 }
  0x30   : > { %p1194_p12 = pneg %p1193_p11 }
  0x32   : > { %p1201_p4 = pnand %p1200_p1, %p1194_p12 }
  0x34   : > { %1204 = shalt.err (!%p1201_p4)
}
  0x35   : > { %1128 = dma.hbm_to_vmem [thread:$0]  (!%p1272_p5), %s1930_s3, 16, %s1276_s22, [#allocation5]  }
  0x36   : > { %p1938_p6 = scmp.ne.s32.totalorder %s1936_s18, 0 }
  0x38   : > { %196 = sbr.rel (%p1938_p6) target bundleno = 397 (0x18d), region = 36 }
  0x3f   : > { %p1939_p7 = scmp.ne.s32.totalorder %s1935_s17, 0 }
  0x41   : > { %1210 = dma.done.wait (%p1939_p7), [#allocation3], 64  }
  0x42   : > { %1212 = vsyncadd (%p1939_p7), [#allocation3], 4294967232 }
  0x43   : > { %1214 = dma.done.wait (%p1939_p7), [#allocation5], 16  }
  0x44   : > { %1216 = vsyncadd (%p1939_p7), [#allocation5], 4294967280  ;;  %s1105_s23 = sshll.u32 %s1096_s16, 5  ;;  %v1223_v0 = vmov 0   ;;  %vm973_vm0 = vcmask 261120  }
  0x45   : > { %1146 = vset.pattern.permute.xlu1 %v1223_v0  ;;  %1145 = vset.pattern.permute.xlu0 %v1223_v0  ;;  %p232_p5 = scmp.lt.s32.totalorder %s1105_s23, 63 }
  0x47   : > { %s1973_s23 = smov (!%p232_p5, %s1105_s23), 63 }
  0x48   : > { %s1338_s18 = sshll.u32 %s1973_s23, 3 }
  0x49   : > { %s1344_s26 = scalar_lea.vmem %s1927_s0, %s1338_s18  ;;  %s1382_s27 = scalar_lea.vmem %s1928_s1, %s1338_s18 }
  0x4a   : > { %v251_v1 = vld [vmem:[%s1344_s26 + $0x10] sm:$0xff]  ;;  %v249_v2 = vld [vmem:[%s1344_s26] sm:$0xff]  ;;  %v252_v3 = vld [vmem:[%s1344_s26 + $0x18] sm:$0xff]  ;;  %s1692_s30 = scalar_lea.vmem %s1931_s4, %s1338_s18 }
  0x4b   : > { %333 = vperm.xlu1 %1146, %v251_v1   ;;  %323 = vperm.xlu0 %1145, %v249_v2   ;;  %v250_v4 = vld [vmem:[%s1344_s26 + $0x8] sm:$0xff]  ;;  %v253_v6 = vld [vmem:[%s1344_s26 + $0x20] sm:$0xff]  ;;  %v256_v7 = vld [vmem:[%s1344_s26 + $0x38] sm:$0xff] }
  0x4c   : > { %v254_v5 = vld [vmem:[%s1344_s26 + $0x28] sm:$0xff]  ;;  %v255_v8 = vld [vmem:[%s1344_s26 + $0x30] sm:$0xff]  ;;  %v257_v10 = vld [vmem:[%s1344_s26 + $0x40] sm:$0xff] }
  0x4d   : > { %v258_v9 = vld [vmem:[%s1344_s26 + $0x48] sm:$0xff]  ;;  %v260_v11 = vld [vmem:[%s1344_s26 + $0x58] sm:$0xff]  ;;  %v259_v12 = vld [vmem:[%s1344_s26 + $0x50] sm:$0xff] }
  0x4e   : > { %v262_v13 = vld [vmem:[%s1344_s26 + $0x68] sm:$0xff]  ;;  %v261_v14 = vld [vmem:[%s1344_s26 + $0x60] sm:$0xff]  ;;  %v264_v15 = vld [vmem:[%s1344_s26 + $0x78] sm:$0xff] }
  0x4f   : > { %338 = vperm.xlu1 %1146, %v252_v3   ;;  %328 = vperm.xlu0 %1145, %v250_v4   ;;  %v263_v16 = vld [vmem:[%s1344_s26 + $0x70] sm:$0xff]  ;;  %v266_v17 = vld [vmem:[%s1344_s26 + $0x88] sm:$0xff]  ;;  %v265_v18 = vld [vmem:[%s1344_s26 + $0x80] sm:$0xff]  ;;  %v1224_v3 = vmov 1  }
  0x50   : > { %v268_v19 = vld [vmem:[%s1344_s26 + $0x98] sm:$0xff]  ;;  %v267_v20 = vld [vmem:[%s1344_s26 + $0x90] sm:$0xff]  ;;  %v270_v21 = vld [vmem:[%s1344_s26 + $0xa8] sm:$0xff] }
  0x51   : > { %v269_v22 = vld [vmem:[%s1344_s26 + $0xa0] sm:$0xff]  ;;  %v272_v23 = vld [vmem:[%s1344_s26 + $0xb8] sm:$0xff]  ;;  %v271_v24 = vld [vmem:[%s1344_s26 + $0xb0] sm:$0xff] }
  0x52   : > { %v274_v25 = vld [vmem:[%s1344_s26 + $0xc8] sm:$0xff]  ;;  %v273_v26 = vld [vmem:[%s1344_s26 + $0xc0] sm:$0xff]  ;;  %v276_v27 = vld [vmem:[%s1344_s26 + $0xd8] sm:$0xff] }
  0x53   : > { %348 = vperm.xlu1 %1146, %v254_v5   ;;  %343 = vperm.xlu0 %1145, %v253_v6   ;;  %v275_v28 = vld [vmem:[%s1344_s26 + $0xd0] sm:$0xff]  ;;  %v278_v29 = vld [vmem:[%s1344_s26 + $0xe8] sm:$0xff]  ;;  %v277_v30 = vld [vmem:[%s1344_s26 + $0xe0] sm:$0xff] }
  0x54   : > { %v280_v31 = vld [vmem:[%s1344_s26 + $0xf8] sm:$0xff]  ;;  %v279_v32 = vld [vmem:[%s1344_s26 + $0xf0] sm:$0xff]  ;;  %v1385_v33 = vld [vmem:[%s1382_s27 + $0x8] sm:$0xff] }
  0x55   : > { %v1388_v34 = vld [vmem:[%s1382_s27] sm:$0xff]  ;;  %v1393_v35 = vld [vmem:[%s1382_s27 + $0x18] sm:$0xff]  ;;  %v1396_v36 = vld [vmem:[%s1382_s27 + $0x10] sm:$0xff] }
  0x56   : > { %v1401_v37 = vld [vmem:[%s1382_s27 + $0x28] sm:$0xff]  ;;  %v1404_v38 = vld [vmem:[%s1382_s27 + $0x20] sm:$0xff]  ;;  %v1409_v39 = vld [vmem:[%s1382_s27 + $0x38] sm:$0xff] }
  0x57   : > { %358 = vperm.xlu1 %1146, %v256_v7   ;;  %353 = vperm.xlu0 %1145, %v255_v8   ;;  %v1412_v40 = vld [vmem:[%s1382_s27 + $0x30] sm:$0xff]  ;;  %v1417_v41 = vld [vmem:[%s1382_s27 + $0x48] sm:$0xff]  ;;  %v1420_v42 = vld [vmem:[%s1382_s27 + $0x40] sm:$0xff] }
  0x58   : > { %v1425_v43 = vld [vmem:[%s1382_s27 + $0x58] sm:$0xff]  ;;  %v1428_v44 = vld [vmem:[%s1382_s27 + $0x50] sm:$0xff]  ;;  %v1433_v45 = vld [vmem:[%s1382_s27 + $0x68] sm:$0xff] }
  0x59   : > { %v1436_v46 = vld [vmem:[%s1382_s27 + $0x60] sm:$0xff]  ;;  %v1441_v47 = vld [vmem:[%s1382_s27 + $0x78] sm:$0xff]  ;;  %v1444_v48 = vld [vmem:[%s1382_s27 + $0x70] sm:$0xff] }
  0x5a   : > { %v1449_v49 = vld [vmem:[%s1382_s27 + $0x88] sm:$0xff]  ;;  %v1452_v50 = vld [vmem:[%s1382_s27 + $0x80] sm:$0xff]  ;;  %v1457_v51 = vld [vmem:[%s1382_s27 + $0x98] sm:$0xff] }
  0x5b   : > { %368 = vperm.xlu1 %1146, %v258_v9   ;;  %363 = vperm.xlu0 %1145, %v257_v10   ;;  %v1460_v52 = vld [vmem:[%s1382_s27 + $0x90] sm:$0xff]  ;;  %v1465_v53 = vld [vmem:[%s1382_s27 + $0xa8] sm:$0xff]  ;;  %v1468_v54 = vld [vmem:[%s1382_s27 + $0xa0] sm:$0xff] }
  0x5c   : > { %v1473_v55 = vld [vmem:[%s1382_s27 + $0xb8] sm:$0xff]  ;;  %v1476_v56 = vld [vmem:[%s1382_s27 + $0xb0] sm:$0xff]  ;;  %v1481_v57 = vld [vmem:[%s1382_s27 + $0xc8] sm:$0xff] }
  0x5d   : > { %v1484_v58 = vld [vmem:[%s1382_s27 + $0xc0] sm:$0xff]  ;;  %v1489_v59 = vld [vmem:[%s1382_s27 + $0xd8] sm:$0xff]  ;;  %v1492_v60 = vld [vmem:[%s1382_s27 + $0xd0] sm:$0xff] }
  0x5e   : > { %v1497_v61 = vld [vmem:[%s1382_s27 + $0xe8] sm:$0xff]  ;;  %v1500_v62 = vld [vmem:[%s1382_s27 + $0xe0] sm:$0xff]  ;;  %v1505_v63 = vld [vmem:[%s1382_s27 + $0xf8] sm:$0xff] }
  0x5f   : > { %378 = vperm.xlu1 %1146, %v260_v11   ;;  %373 = vperm.xlu0 %1145, %v259_v12   ;;  %v1508_v0 = vld [vmem:[%s1382_s27 + $0xf0] sm:$0xff] }
  0x63   : > { %388 = vperm.xlu1 %1146, %v262_v13   ;;  %383 = vperm.xlu0 %1145, %v261_v14  }
  0x67   : > { %398 = vperm.xlu1 %1146, %v264_v15   ;;  %393 = vperm.xlu0 %1145, %v263_v16  }
  0x6b   : > { %408 = vperm.xlu1 %1146, %v266_v17   ;;  %403 = vperm.xlu0 %1145, %v265_v18  }
  0x6f   : > { %418 = vperm.xlu1 %1146, %v268_v19   ;;  %413 = vperm.xlu0 %1145, %v267_v20  }
  0x73   : > { %428 = vperm.xlu1 %1146, %v270_v21   ;;  %423 = vperm.xlu0 %1145, %v269_v22  }
  0x77   : > { %438 = vperm.xlu1 %1146, %v272_v23   ;;  %433 = vperm.xlu0 %1145, %v271_v24  }
  0x7b   : > { %448 = vperm.xlu1 %1146, %v274_v25   ;;  %443 = vperm.xlu0 %1145, %v273_v26  }
  0x7f   : > { %458 = vperm.xlu1 %1146, %v276_v27   ;;  %453 = vperm.xlu0 %1145, %v275_v28  }
  0x83   : > { %468 = vperm.xlu1 %1146, %v278_v29   ;;  %463 = vperm.xlu0 %1145, %v277_v30  }
  0x87   : > { %478 = vperm.xlu1 %1146, %v280_v31   ;;  %473 = vperm.xlu0 %1145, %v279_v32  }
  0x8b   : > { %556 = vperm.xlu1 %1146, %v1385_v33   ;;  %551 = vperm.xlu0 %1145, %v1388_v34  }
  0x8f   : > { %566 = vperm.xlu1 %1146, %v1393_v35   ;;  %561 = vperm.xlu0 %1145, %v1396_v36  }
  0x93   : > { %576 = vperm.xlu1 %1146, %v1401_v37   ;;  %571 = vperm.xlu0 %1145, %v1404_v38  }
  0x97   : > { %586 = vperm.xlu1 %1146, %v1409_v39   ;;  %581 = vperm.xlu0 %1145, %v1412_v40  }
  0x9b   : > { %596 = vperm.xlu1 %1146, %v1417_v41   ;;  %591 = vperm.xlu0 %1145, %v1420_v42  }
  0x9f   : > { %606 = vperm.xlu1 %1146, %v1425_v43   ;;  %601 = vperm.xlu0 %1145, %v1428_v44  }
  0xa3   : > { %616 = vperm.xlu1 %1146, %v1433_v45   ;;  %611 = vperm.xlu0 %1145, %v1436_v46  }
  0xa7   : > { %626 = vperm.xlu1 %1146, %v1441_v47   ;;  %621 = vperm.xlu0 %1145, %v1444_v48  }
  0xab   : > { %636 = vperm.xlu1 %1146, %v1449_v49   ;;  %631 = vperm.xlu0 %1145, %v1452_v50  }
  0xaf   : > { %646 = vperm.xlu1 %1146, %v1457_v51   ;;  %641 = vperm.xlu0 %1145, %v1460_v52  }
  0xb3   : > { %656 = vperm.xlu1 %1146, %v1465_v53   ;;  %651 = vperm.xlu0 %1145, %v1468_v54  }
  0xb7   : > { %666 = vperm.xlu1 %1146, %v1473_v55   ;;  %661 = vperm.xlu0 %1145, %v1476_v56  }
  0xbb   : > { %676 = vperm.xlu1 %1146, %v1481_v57   ;;  %671 = vperm.xlu0 %1145, %v1484_v58  }
  0xbf   : > { %686 = vperm.xlu1 %1146, %v1489_v59   ;;  %681 = vperm.xlu0 %1145, %v1492_v60  }
  0xc3   : > { %696 = vperm.xlu1 %1146, %v1497_v61   ;;  %691 = vperm.xlu0 %1145, %v1500_v62  }
  0xc7   : > { %706 = vperm.xlu1 %1146, %v1505_v63   ;;  %701 = vperm.xlu0 %1145, %v1508_v0  }
  0xca   : > { %v1512_v1 = vpop.permute.xlu1 %333  ;;  %v1514_v2 = vpop.permute.xlu0 %323 }
  0xcb   : > { %1148 = vset.pattern.permute.xlu1 %v1224_v3  ;;  %1147 = vset.pattern.permute.xlu0 %v1224_v3 }
  0xcc   : > { %782 = vperm.xlu1 %1148, %v1385_v33   ;;  %778 = vperm.xlu0 %1147, %v1388_v34  }
  0xce   : > { %v1518_v4 = vpop.permute.xlu1 %338  ;;  %v1520_v5 = vpop.permute.xlu0 %328 }
  0xd0   : > { %786 = vperm.xlu1 %1148, %v1396_v36   ;;  %790 = vperm.xlu0 %1147, %v1393_v35  }
  0xd2   : > { %v1524_v6 = vpop.permute.xlu1 %348  ;;  %v1526_v7 = vpop.permute.xlu0 %343 }
  0xd4   : > { %794 = vperm.xlu1 %1148, %v1404_v38   ;;  %798 = vperm.xlu0 %1147, %v1401_v37  }
  0xd6   : > { %v1530_v8 = vpop.permute.xlu1 %358  ;;  %v1532_v9 = vpop.permute.xlu0 %353 }
  0xd8   : > { %802 = vperm.xlu1 %1148, %v1412_v40   ;;  %806 = vperm.xlu0 %1147, %v1409_v39  }
  0xda   : > { %v1536_v10 = vpop.permute.xlu1 %368  ;;  %v1538_v11 = vpop.permute.xlu0 %363 }
  0xdc   : > { %810 = vperm.xlu1 %1148, %v1420_v42   ;;  %814 = vperm.xlu0 %1147, %v1417_v41  }
  0xde   : > { %v1542_v12 = vpop.permute.xlu1 %378  ;;  %v1544_v13 = vpop.permute.xlu0 %373 }
  0xe0   : > { %818 = vperm.xlu1 %1148, %v1428_v44   ;;  %822 = vperm.xlu0 %1147, %v1425_v43  }
  0xe2   : > { %v1548_v14 = vpop.permute.xlu1 %388  ;;  %v1550_v15 = vpop.permute.xlu0 %383 }
  0xe4   : > { %826 = vperm.xlu1 %1148, %v1436_v46   ;;  %830 = vperm.xlu0 %1147, %v1433_v45  }
  0xe6   : > { %v1554_v16 = vpop.permute.xlu1 %398  ;;  %v1556_v17 = vpop.permute.xlu0 %393 }
  0xe8   : > { %834 = vperm.xlu1 %1148, %v1444_v48   ;;  %838 = vperm.xlu0 %1147, %v1441_v47  }
  0xea   : > { %v1560_v18 = vpop.permute.xlu1 %408  ;;  %v1562_v19 = vpop.permute.xlu0 %403 }
  0xec   : > { %842 = vperm.xlu1 %1148, %v1452_v50   ;;  %846 = vperm.xlu0 %1147, %v1449_v49  }
  0xee   : > { %v1566_v20 = vpop.permute.xlu1 %418  ;;  %v1568_v21 = vpop.permute.xlu0 %413 }
  0xf0   : > { %850 = vperm.xlu1 %1148, %v1460_v52   ;;  %854 = vperm.xlu0 %1147, %v1457_v51  }
  0xf2   : > { %v1572_v22 = vpop.permute.xlu1 %428  ;;  %v1574_v23 = vpop.permute.xlu0 %423 }
  0xf4   : > { %858 = vperm.xlu1 %1148, %v1468_v54   ;;  %862 = vperm.xlu0 %1147, %v1465_v53  }
  0xf6   : > { %v1578_v24 = vpop.permute.xlu1 %438  ;;  %v1580_v25 = vpop.permute.xlu0 %433 }
  0xf8   : > { %866 = vperm.xlu1 %1148, %v1476_v56   ;;  %870 = vperm.xlu0 %1147, %v1473_v55   ;;  %v481_v56 = vlaneseq }
  0xfa   : > { %v1584_v26 = vpop.permute.xlu1 %448  ;;  %v1586_v27 = vpop.permute.xlu0 %443 }
  0xfb   : > { %1940 = vst [vmem:[#allocation8_spill] sm:$0xff] %v1584_v26  ;;  %1941 = vst [vmem:[#allocation9_spill] sm:$0xff] %v1586_v27 }
  0xfc   : > { %874 = vperm.xlu1 %1148, %v1484_v58   ;;  %878 = vperm.xlu0 %1147, %v1481_v57  }
  0xfe   : > { %v1590_v28 = vpop.permute.xlu1 %458  ;;  %v1592_v29 = vpop.permute.xlu0 %453 }
  0xff   : > { %1942 = vst [vmem:[#allocation10_spill] sm:$0xff] %v1590_v28  ;;  %1943 = vst [vmem:[#allocation11_spill] sm:$0xff] %v1592_v29 }
 0x100   : > { %882 = vperm.xlu1 %1148, %v1492_v60   ;;  %886 = vperm.xlu0 %1147, %v1489_v59   ;;  %v482_v59 = vshrl.u32 %v481_v56, 7 }
 0x102   : > { %v1596_v30 = vpop.permute.xlu1 %468  ;;  %v1598_v31 = vpop.permute.xlu0 %463  ;;  %v907_v56 = vsub.s32 2, %v482_v59 }
 0x103   : > { %1944 = vst [vmem:[#allocation12_spill] sm:$0xff] %v1596_v30  ;;  %1945 = vst [vmem:[#allocation13_spill] sm:$0xff] %v1598_v31 }
 0x104   : > { %890 = vperm.xlu1 %1148, %v1500_v62   ;;  %894 = vperm.xlu0 %1147, %v1497_v61   ;;  %v483_v62 = vsub.s32 0, %v482_v59 }
 0x106   : > { %v1602_v32 = vpop.permute.xlu1 %478  ;;  %v1604_v33 = vpop.permute.xlu0 %473 }
 0x107   : > { %1946 = vst [vmem:[#allocation14_spill] sm:$0xff] %v1602_v32  ;;  %1947 = vst [vmem:[#allocation15_spill] sm:$0xff] %v1604_v33  ;;  %v711_v33 = vsub.s32 1, %v482_v59 }
 0x108   : > { %898 = vperm.xlu1 %1148, %v1508_v0   ;;  %902 = vperm.xlu0 %1147, %v1505_v63   ;;  %v313_v63 = vld [vmem:[#allocation2] sm:$0x7] }
 0x109   : > { %v1652_v32 = vrot.slane %v313_v63, %v483_v62  ;;  %v1658_v29 = vrot.slane %v313_v63, %v711_v33  ;;  %v1672_v33 = vrot.slane %v313_v63, %v907_v56 }
 0x10a   : > { %v557_v34 = vpop.permute.xlu1 %556  ;;  %v552_v35 = vpop.permute.xlu0 %551 }
 0x10b   : > { %v485_v28 = vmul.f32 %v1652_v32, %v1514_v2  ;;  %v714_v62 = vmul.f32 %v1658_v29, %v557_v34 }
 0x10e   : > { %v567_v36 = vpop.permute.xlu1 %566  ;;  %v562_v37 = vpop.permute.xlu0 %561 }
 0x10f   : > { %v716_v34 = vmul.f32 %v1658_v29, %v567_v36 }
 0x112   : > { %v577_v38 = vpop.permute.xlu1 %576  ;;  %v572_v39 = vpop.permute.xlu0 %571 }
 0x116   : > { %v1608_v40 = vpop.permute.xlu1 %586  ;;  %v1610_v41 = vpop.permute.xlu0 %581 }
 0x11a   : > { %v1612_v42 = vpop.permute.xlu1 %596  ;;  %v1614_v43 = vpop.permute.xlu0 %591 }
 0x11e   : > { %v1616_v44 = vpop.permute.xlu1 %606  ;;  %v1618_v45 = vpop.permute.xlu0 %601 }
 0x122   : > { %v1620_v46 = vpop.permute.xlu1 %616  ;;  %v1622_v47 = vpop.permute.xlu0 %611 }
 0x126   : > { %v1624_v48 = vpop.permute.xlu1 %626  ;;  %v1626_v49 = vpop.permute.xlu0 %621 }
 0x12a   : > { %v1628_v50 = vpop.permute.xlu1 %636  ;;  %v1630_v51 = vpop.permute.xlu0 %631 }
 0x12e   : > { %v1632_v52 = vpop.permute.xlu1 %646  ;;  %v1634_v53 = vpop.permute.xlu0 %641 }
 0x132   : > { %v1636_v54 = vpop.permute.xlu1 %656  ;;  %v1638_v55 = vpop.permute.xlu0 %651 }
 0x136   : > { %v1640_v57 = vpop.permute.xlu1 %666  ;;  %v1642_v58 = vpop.permute.xlu0 %661 }
 0x13a   : > { %v1644_v60 = vpop.permute.xlu1 %676  ;;  %v1646_v61 = vpop.permute.xlu0 %671 }
 0x13b   : > { %1948 = vst [vmem:[#allocation16_spill] sm:$0xff] %v1644_v60  ;;  %1949 = vst [vmem:[#allocation17_spill] sm:$0xff] %v1646_v61  ;;  %v486_v61 = vmul.f32 %v1652_v32, %v1520_v5  ;;  %v1664_v60 = vld [vmem:[#allocation4] ss:$0 sm:$0xff]  ;;  %v487_v5 = vmul.f32 %v1652_v32, %v1512_v1  ;;  %v489_v1 = vmul.f32 %v1652_v32, %v1526_v7 }
 0x13c   : > { %v517_v59 = vadd.f32 %v1664_v60, %v485_v28 }
 0x13d   : > { %v518_v2 = vadd.f32 %v1664_v60, %v486_v61  ;;  %v490_v61 = vmul.f32 %v1652_v32, %v1524_v6  ;;  %v717_v6 = vmul.f32 %v1658_v29, %v572_v39  ;;  %v492_v39 = vmul.f32 %v1652_v32, %v1530_v8 }
 0x13e   : > { %v1648_v0 = vpop.permute.xlu1 %686  ;;  %v1650_v3 = vpop.permute.xlu0 %681 }
 0x13f   : > { %1950 = vst [vmem:[#allocation18_spill] sm:$0xff] %v1648_v0  ;;  %1951 = vst [vmem:[#allocation19_spill] sm:$0xff] %v1650_v3 }
 0x142   : > { %v1654_v31 = vpop.permute.xlu1 %696  ;;  %v1656_v30 = vpop.permute.xlu0 %691 }
 0x143   : > { %1952 = vst [vmem:[#allocation20_spill] sm:$0xff] %v1654_v31  ;;  %1953 = vst [vmem:[#allocation21_spill] sm:$0xff] %v1656_v30  ;;  %v713_v31 = vmul.f32 %v1658_v29, %v552_v35  ;;  %v488_v30 = vmul.f32 %v1652_v32, %v1518_v4  ;;  %v715_v35 = vmul.f32 %v1658_v29, %v562_v37 }
 0x144   : > { %v519_v4 = vadd.f32 %v1664_v60, %v487_v5  ;;  %v718_v37 = vmul.f32 %v1658_v29, %v577_v38  ;;  %v521_v38 = vadd.f32 %v1664_v60, %v489_v1  ;;  %v494_v1 = vmul.f32 %v1652_v32, %v1536_v10 }
 0x145   : > { %v745_v27 = vadd.f32 %v713_v31, %v517_v59  ;;  %v520_v31 = vadd.f32 %v1664_v60, %v488_v30 }
 0x146   : > { %v1666_v0 = vpop.permute.xlu1 %706  ;;  %v1668_v3 = vpop.permute.xlu0 %701 }
 0x147   : > { %1954 = vst [vmem:[#allocation22_spill] sm:$0xff] %v1666_v0  ;;  %1955 = vst [vmem:[#allocation23_spill] sm:$0xff] %v1668_v3  ;;  %v746_v0 = vadd.f32 %v714_v62, %v518_v2  ;;  %v748_v56 = vadd.f32 %v716_v34, %v520_v31  ;;  %v747_v62 = vadd.f32 %v715_v35, %v519_v4 }
 0x148   : > { %v749_v35 = vadd.f32 %v717_v6, %v521_v38  ;;  %v720_v4 = vmul.f32 %v1658_v29, %v1608_v40  ;;  %v493_v31 = vmul.f32 %v1652_v32, %v1538_v11  ;;  %v524_v40 = vadd.f32 %v1664_v60, %v492_v39 }
 0x149   : > { %v721_v6 = vmul.f32 %v1658_v29, %v1614_v43  ;;  %v496_v43 = vmul.f32 %v1652_v32, %v1542_v12 }
 0x14b   : > { %v783_v3 = vpop.permute.xlu1 %782  ;;  %v779_v26 = vpop.permute.xlu0 %778 }
 0x14c   : > { %v910_v63 = vmul.f32 %v1672_v33, %v783_v3  ;;  %v909_v28 = vmul.f32 %v1672_v33, %v779_v26 }
 0x14e   : > { %v942_v36 = vadd.f32 %v910_v63, %v746_v0  ;;  %v941_v26 = vadd.f32 %v909_v28, %v745_v27  ;;  %v522_v27 = vadd.f32 %v1664_v60, %v490_v61  ;;  %v491_v0 = vmul.f32 %v1652_v32, %v1532_v9 }
 0x14f   : > { %v787_v3 = vpop.permute.xlu1 %786  ;;  %v791_v7 = vpop.permute.xlu0 %790  ;;  %v719_v61 = vmul.f32 %v1658_v29, %v1610_v41 }
 0x150   : > { %975 = vst.msk [vmem:[%s1692_s30 + $0x8] sm:$0xff] %vm973_vm0, %v942_v36  ;;  %974 = vst.msk [vmem:[%s1692_s30] sm:$0xff] %vm973_vm0, %v941_v26  ;;  %v911_v59 = vmul.f32 %v1672_v33, %v787_v3  ;;  %v912_v30 = vmul.f32 %v1672_v33, %v791_v7  ;;  %v750_v34 = vadd.f32 %v718_v37, %v522_v27 }
 0x151   : > { %v523_v41 = vadd.f32 %v1664_v60, %v491_v0  ;;  %v722_v37 = vmul.f32 %v1658_v29, %v1612_v42  ;;  %v525_v42 = vadd.f32 %v1664_v60, %v493_v31 }
 0x152   : > { %v943_v2 = vadd.f32 %v911_v59, %v747_v62  ;;  %v944_v5 = vadd.f32 %v912_v30, %v748_v56  ;;  %v752_v56 = vadd.f32 %v720_v4, %v524_v40  ;;  %v526_v59 = vadd.f32 %v1664_v60, %v494_v1 }
 0x153   : > { %v795_v63 = vpop.permute.xlu1 %794  ;;  %v799_v28 = vpop.permute.xlu0 %798  ;;  %v751_v62 = vadd.f32 %v719_v61, %v523_v41  ;;  %v495_v30 = vmul.f32 %v1652_v32, %v1544_v13  ;;  %v753_v0 = vadd.f32 %v721_v6, %v525_v42  ;;  %v501_v42 = vmul.f32 %v1652_v32, %v1562_v19 }
 0x154   : > { %976 = vst.msk [vmem:[%s1692_s30 + $0x10] sm:$0xff] %vm973_vm0, %v943_v2  ;;  %977 = vst.msk [vmem:[%s1692_s30 + $0x18] sm:$0xff] %vm973_vm0, %v944_v5  ;;  %v913_v8 = vmul.f32 %v1672_v33, %v795_v63  ;;  %v914_v9 = vmul.f32 %v1672_v33, %v799_v28  ;;  %v754_v39 = vadd.f32 %v722_v37, %v526_v59 }
 0x155   : > { %v498_v63 = vmul.f32 %v1652_v32, %v1548_v14  ;;  %v497_v28 = vmul.f32 %v1652_v32, %v1550_v15  ;;  %v502_v59 = vmul.f32 %v1652_v32, %v1560_v18 }
 0x156   : > { %v945_v36 = vadd.f32 %v913_v8, %v749_v35  ;;  %v946_v26 = vadd.f32 %v914_v9, %v750_v34  ;;  %v724_v34 = vmul.f32 %v1658_v29, %v1616_v44  ;;  %v723_v35 = vmul.f32 %v1658_v29, %v1618_v45 }
 0x157   : > { %v803_v3 = vpop.permute.xlu1 %802  ;;  %v807_v7 = vpop.permute.xlu0 %806  ;;  %v528_v44 = vadd.f32 %v1664_v60, %v496_v43  ;;  %v527_v45 = vadd.f32 %v1664_v60, %v495_v30  ;;  %v726_v8 = vmul.f32 %v1658_v29, %v1620_v46  ;;  %v725_v9 = vmul.f32 %v1658_v29, %v1622_v47 }
 0x158   : > { %978 = vst.msk [vmem:[%s1692_s30 + $0x20] sm:$0xff] %vm973_vm0, %v945_v36  ;;  %979 = vst.msk [vmem:[%s1692_s30 + $0x28] sm:$0xff] %vm973_vm0, %v946_v26  ;;  %v915_v10 = vmul.f32 %v1672_v33, %v803_v3  ;;  %v916_v11 = vmul.f32 %v1672_v33, %v807_v7  ;;  %v530_v36 = vadd.f32 %v1664_v60, %v498_v63 }
 0x159   : > { %v756_v40 = vadd.f32 %v724_v34, %v528_v44  ;;  %v755_v41 = vadd.f32 %v723_v35, %v527_v45  ;;  %v529_v46 = vadd.f32 %v1664_v60, %v497_v28  ;;  %v500_v47 = vmul.f32 %v1652_v32, %v1554_v16 }
 0x15a   : > { %v947_v27 = vadd.f32 %v915_v10, %v751_v62  ;;  %v948_v38 = vadd.f32 %v916_v11, %v752_v56  ;;  %v499_v26 = vmul.f32 %v1652_v32, %v1556_v17  ;;  %v758_v3 = vadd.f32 %v726_v8, %v530_v36 }
 0x15b   : > { %v811_v2 = vpop.permute.xlu1 %810  ;;  %v815_v5 = vpop.permute.xlu0 %814  ;;  %v757_v7 = vadd.f32 %v725_v9, %v529_v46  ;;  %v728_v10 = vmul.f32 %v1658_v29, %v1624_v48  ;;  %v727_v11 = vmul.f32 %v1658_v29, %v1626_v49  ;;  %v532_v48 = vadd.f32 %v1664_v60, %v500_v47 }
 0x15c   : > { %980 = vst.msk [vmem:[%s1692_s30 + $0x30] sm:$0xff] %vm973_vm0, %v947_v27  ;;  %981 = vst.msk [vmem:[%s1692_s30 + $0x38] sm:$0xff] %vm973_vm0, %v948_v38  ;;  %v917_v12 = vmul.f32 %v1672_v33, %v811_v2  ;;  %v918_v13 = vmul.f32 %v1672_v33, %v815_v5  ;;  %v531_v49 = vadd.f32 %v1664_v60, %v499_v26 }
 0x15d   : > { %v730_v27 = vmul.f32 %v1658_v29, %v1628_v50  ;;  %v729_v38 = vmul.f32 %v1658_v29, %v1630_v51  ;;  %v760_v2 = vadd.f32 %v728_v10, %v532_v48  ;;  %v534_v34 = vadd.f32 %v1664_v60, %v502_v59  ;;  %v1957_v59 = vld [vmem:[#allocation9_spill] sm:$0xff] }
 0x15e   : > { %v949_v4 = vadd.f32 %v917_v12, %v753_v0  ;;  %v950_v61 = vadd.f32 %v918_v13, %v754_v39  ;;  %v759_v5 = vadd.f32 %v727_v11, %v531_v49  ;;  %v533_v50 = vadd.f32 %v1664_v60, %v501_v42 }
 0x15f   : > { %v819_v1 = vpop.permute.xlu1 %818  ;;  %v823_v31 = vpop.permute.xlu0 %822  ;;  %v504_v51 = vmul.f32 %v1652_v32, %v1566_v20  ;;  %v503_v35 = vmul.f32 %v1652_v32, %v1568_v21  ;;  %v762_v63 = vadd.f32 %v730_v27, %v534_v34  ;;  %v506_v8 = vmul.f32 %v1652_v32, %v1572_v22  ;;  %v1959_v27 = vld [vmem:[#allocation17_spill] sm:$0xff] }
 0x160   : > { %982 = vst.msk [vmem:[%s1692_s30 + $0x40] sm:$0xff] %vm973_vm0, %v949_v4  ;;  %983 = vst.msk [vmem:[%s1692_s30 + $0x48] sm:$0xff] %vm973_vm0, %v950_v61  ;;  %v919_v14 = vmul.f32 %v1672_v33, %v819_v1  ;;  %v920_v15 = vmul.f32 %v1672_v33, %v823_v31  ;;  %v761_v28 = vadd.f32 %v729_v38, %v533_v50 }
 0x161   : > { %v732_v4 = vmul.f32 %v1658_v29, %v1632_v52  ;;  %v731_v61 = vmul.f32 %v1658_v29, %v1634_v53  ;;  %v505_v9 = vmul.f32 %v1652_v32, %v1574_v23  ;;  %v536_v52 = vadd.f32 %v1664_v60, %v504_v51  ;;  %v1960_v51 = vld [vmem:[#allocation10_spill] sm:$0xff] }
 0x162   : > { %v951_v37 = vadd.f32 %v919_v14, %v755_v41  ;;  %v952_v6 = vadd.f32 %v920_v15, %v756_v40  ;;  %v535_v53 = vadd.f32 %v1664_v60, %v503_v35  ;;  %v734_v40 = vmul.f32 %v1658_v29, %v1636_v54 }
 0x163   : > { %v827_v56 = vpop.permute.xlu1 %826  ;;  %v831_v62 = vpop.permute.xlu0 %830  ;;  %v733_v41 = vmul.f32 %v1658_v29, %v1638_v55  ;;  %v764_v36 = vadd.f32 %v732_v4, %v536_v52  ;;  %v538_v47 = vadd.f32 %v1664_v60, %v506_v8  ;;  %v537_v54 = vadd.f32 %v1664_v60, %v505_v9  ;;  %v1963_v8 = vld [vmem:[#allocation19_spill] sm:$0xff] }
 0x164   : > { %984 = vst.msk [vmem:[%s1692_s30 + $0x50] sm:$0xff] %vm973_vm0, %v951_v37  ;;  %985 = vst.msk [vmem:[%s1692_s30 + $0x58] sm:$0xff] %vm973_vm0, %v952_v6  ;;  %v921_v16 = vmul.f32 %v1672_v33, %v827_v56  ;;  %v922_v17 = vmul.f32 %v1672_v33, %v831_v62  ;;  %v763_v46 = vadd.f32 %v731_v61, %v535_v53 }
 0x165   : > { %v508_v55 = vmul.f32 %v1652_v32, %v1578_v24  ;;  %v507_v26 = vmul.f32 %v1652_v32, %v1580_v25  ;;  %v736_v10 = vmul.f32 %v1658_v29, %v1640_v57  ;;  %v735_v11 = vmul.f32 %v1658_v29, %v1642_v58 }
 0x166   : > { %v953_v43 = vadd.f32 %v921_v16, %v757_v7  ;;  %v954_v30 = vadd.f32 %v922_v17, %v758_v3  ;;  %v766_v3 = vadd.f32 %v734_v40, %v538_v47  ;;  %v765_v7 = vadd.f32 %v733_v41, %v537_v54  ;;  %v1956_v16 = vld [vmem:[#allocation8_spill] sm:$0xff]  ;;  %v1965_v40 = vld [vmem:[#allocation13_spill] sm:$0xff] }
 0x167   : > { %v835_v39 = vpop.permute.xlu1 %834  ;;  %v839_v0 = vpop.permute.xlu0 %838  ;;  %v510_v17 = vmul.f32 %v1652_v32, %v1956_v16  ;;  %v509_v42 = vmul.f32 %v1652_v32, %v1957_v59  ;;  %v540_v57 = vadd.f32 %v1664_v60, %v508_v55  ;;  %v539_v58 = vadd.f32 %v1664_v60, %v507_v26  ;;  %v1967_v47 = vld [vmem:[#allocation21_spill] sm:$0xff] }
 0x168   : > { %986 = vst.msk [vmem:[%s1692_s30 + $0x60] sm:$0xff] %vm973_vm0, %v953_v43  ;;  %987 = vst.msk [vmem:[%s1692_s30 + $0x68] sm:$0xff] %vm973_vm0, %v954_v30  ;;  %v923_v18 = vmul.f32 %v1672_v33, %v835_v39  ;;  %v924_v19 = vmul.f32 %v1672_v33, %v839_v0  ;;  %v1958_v43 = vld [vmem:[#allocation16_spill] sm:$0xff]  ;;  %v737_v38 = vmul.f32 %v1658_v29, %v1959_v27 }
 0x169   : > { %v738_v30 = vmul.f32 %v1658_v29, %v1958_v43  ;;  %v542_v34 = vadd.f32 %v1664_v60, %v510_v17  ;;  %v541_v50 = vadd.f32 %v1664_v60, %v509_v42  ;;  %v512_v35 = vmul.f32 %v1652_v32, %v1960_v51  ;;  %v1971_v43 = vld [vmem:[#allocation23_spill] sm:$0xff] }
 0x16a   : > { %v955_v12 = vadd.f32 %v923_v18, %v759_v5  ;;  %v956_v13 = vadd.f32 %v924_v19, %v760_v2  ;;  %v768_v2 = vadd.f32 %v736_v10, %v540_v57  ;;  %v767_v5 = vadd.f32 %v735_v11, %v539_v58  ;;  %v1968_v10 = vld [vmem:[#allocation14_spill] sm:$0xff] }
 0x16b   : > { %v843_v44 = vpop.permute.xlu1 %842  ;;  %v847_v45 = vpop.permute.xlu0 %846  ;;  %v739_v9 = vmul.f32 %v1658_v29, %v1963_v8  ;;  %v513_v41 = vmul.f32 %v1652_v32, %v1965_v40  ;;  %v741_v54 = vmul.f32 %v1658_v29, %v1967_v47  ;;  %v516_v11 = vmul.f32 %v1652_v32, %v1968_v10 }
 0x16c   : > { %988 = vst.msk [vmem:[%s1692_s30 + $0x70] sm:$0xff] %vm973_vm0, %v955_v12  ;;  %989 = vst.msk [vmem:[%s1692_s30 + $0x78] sm:$0xff] %vm973_vm0, %v956_v13  ;;  %v925_v20 = vmul.f32 %v1672_v33, %v843_v44  ;;  %v926_v21 = vmul.f32 %v1672_v33, %v847_v45  ;;  %v1961_v12 = vld [vmem:[#allocation11_spill] sm:$0xff]  ;;  %v770_v44 = vadd.f32 %v738_v30, %v542_v34 }
 0x16d   : > { %v511_v13 = vmul.f32 %v1652_v32, %v1961_v12  ;;  %v769_v45 = vadd.f32 %v737_v38, %v541_v50  ;;  %v743_v30 = vmul.f32 %v1658_v29, %v1971_v43  ;;  %v548_v38 = vadd.f32 %v1664_v60, %v516_v11 }
 0x16e   : > { %v957_v1 = vadd.f32 %v925_v20, %v761_v28  ;;  %v958_v31 = vadd.f32 %v926_v21, %v762_v63  ;;  %v1962_v20 = vld [vmem:[#allocation18_spill] sm:$0xff] }
 0x16f   : > { %v851_v14 = vpop.permute.xlu1 %850  ;;  %v855_v15 = vpop.permute.xlu0 %854  ;;  %v740_v21 = vmul.f32 %v1658_v29, %v1962_v20 }
 0x170   : > { %990 = vst.msk [vmem:[%s1692_s30 + $0x80] sm:$0xff] %vm973_vm0, %v957_v1  ;;  %991 = vst.msk [vmem:[%s1692_s30 + $0x88] sm:$0xff] %vm973_vm0, %v958_v31  ;;  %v927_v22 = vmul.f32 %v1672_v33, %v851_v14  ;;  %v928_v23 = vmul.f32 %v1672_v33, %v855_v15  ;;  %v1964_v1 = vld [vmem:[#allocation12_spill] sm:$0xff]  ;;  %v544_v14 = vadd.f32 %v1664_v60, %v512_v35 }
 0x171   : > { %v514_v31 = vmul.f32 %v1652_v32, %v1964_v1  ;;  %v543_v15 = vadd.f32 %v1664_v60, %v511_v13 }
 0x172   : > { %v959_v37 = vadd.f32 %v927_v22, %v763_v46  ;;  %v960_v6 = vadd.f32 %v928_v23, %v764_v36  ;;  %v1966_v22 = vld [vmem:[#allocation20_spill] sm:$0xff] }
 0x173   : > { %v859_v56 = vpop.permute.xlu1 %858  ;;  %v863_v62 = vpop.permute.xlu0 %862  ;;  %v742_v23 = vmul.f32 %v1658_v29, %v1966_v22 }
 0x174   : > { %992 = vst.msk [vmem:[%s1692_s30 + $0x90] sm:$0xff] %vm973_vm0, %v959_v37  ;;  %993 = vst.msk [vmem:[%s1692_s30 + $0x98] sm:$0xff] %vm973_vm0, %v960_v6  ;;  %v929_v24 = vmul.f32 %v1672_v33, %v859_v56  ;;  %v930_v25 = vmul.f32 %v1672_v33, %v863_v62  ;;  %v772_v37 = vadd.f32 %v740_v21, %v544_v14 }
 0x175   : > { %v771_v6 = vadd.f32 %v739_v9, %v543_v15  ;;  %v546_v56 = vadd.f32 %v1664_v60, %v514_v31  ;;  %v545_v62 = vadd.f32 %v1664_v60, %v513_v41 }
 0x176   : > { %v961_v48 = vadd.f32 %v929_v24, %v765_v7  ;;  %v962_v49 = vadd.f32 %v930_v25, %v766_v3  ;;  %v1969_v24 = vld [vmem:[#allocation15_spill] sm:$0xff] }
 0x177   : > { %v867_v39 = vpop.permute.xlu1 %866  ;;  %v871_v0 = vpop.permute.xlu0 %870  ;;  %v515_v25 = vmul.f32 %v1652_v32, %v1969_v24  ;;  %v774_v59 = vadd.f32 %v742_v23, %v546_v56  ;;  %v773_v42 = vadd.f32 %v741_v54, %v545_v62 }
 0x178   : > { %994 = vst.msk [vmem:[%s1692_s30 + $0xa0] sm:$0xff] %vm973_vm0, %v961_v48  ;;  %995 = vst.msk [vmem:[%s1692_s30 + $0xa8] sm:$0xff] %vm973_vm0, %v962_v49  ;;  %v931_v18 = vmul.f32 %v1672_v33, %v867_v39  ;;  %v932_v19 = vmul.f32 %v1672_v33, %v871_v0  ;;  %v1970_v48 = vld [vmem:[#allocation22_spill] sm:$0xff] }
 0x179   : > { %v744_v49 = vmul.f32 %v1658_v29, %v1970_v48  ;;  %v547_v39 = vadd.f32 %v1664_v60, %v515_v25 }
 0x17a   : > { %v963_v63 = vadd.f32 %v931_v18, %v767_v5  ;;  %v964_v28 = vadd.f32 %v932_v19, %v768_v2 }
 0x17b   : > { %v875_v4 = vpop.permute.xlu1 %874  ;;  %v879_v61 = vpop.permute.xlu0 %878  ;;  %v776_v19 = vadd.f32 %v744_v49, %v548_v38  ;;  %v775_v29 = vadd.f32 %v743_v30, %v547_v39 }
 0x17c   : > { %996 = vst.msk [vmem:[%s1692_s30 + $0xb0] sm:$0xff] %vm973_vm0, %v963_v63  ;;  %997 = vst.msk [vmem:[%s1692_s30 + $0xb8] sm:$0xff] %vm973_vm0, %v964_v28  ;;  %v933_v52 = vmul.f32 %v1672_v33, %v875_v4  ;;  %v934_v53 = vmul.f32 %v1672_v33, %v879_v61 }
 0x17e   : > { %v965_v36 = vadd.f32 %v933_v52, %v769_v45  ;;  %v966_v46 = vadd.f32 %v934_v53, %v770_v44 }
 0x17f   : > { %v883_v55 = vpop.permute.xlu1 %882  ;;  %v887_v26 = vpop.permute.xlu0 %886 }
 0x180   : > { %998 = vst.msk [vmem:[%s1692_s30 + $0xc0] sm:$0xff] %vm973_vm0, %v965_v36  ;;  %999 = vst.msk [vmem:[%s1692_s30 + $0xc8] sm:$0xff] %vm973_vm0, %v966_v46  ;;  %v935_v3 = vmul.f32 %v1672_v33, %v883_v55  ;;  %v936_v7 = vmul.f32 %v1672_v33, %v887_v26 }
 0x182   : > { %v967_v16 = vadd.f32 %v935_v3, %v771_v6  ;;  %v968_v17 = vadd.f32 %v936_v7, %v772_v37 }
 0x183   : > { %v891_v57 = vpop.permute.xlu1 %890  ;;  %v895_v58 = vpop.permute.xlu0 %894 }
 0x184   : > { %1000 = vst.msk [vmem:[%s1692_s30 + $0xd0] sm:$0xff] %vm973_vm0, %v967_v16  ;;  %1001 = vst.msk [vmem:[%s1692_s30 + $0xd8] sm:$0xff] %vm973_vm0, %v968_v17  ;;  %v937_v32 = vmul.f32 %v1672_v33, %v891_v57  ;;  %v938_v27 = vmul.f32 %v1672_v33, %v895_v58 }
 0x186   : > { %v969_v0 = vadd.f32 %v937_v32, %v773_v42  ;;  %v970_v2 = vadd.f32 %v938_v27, %v774_v59 }
 0x187   : > { %v899_v5 = vpop.permute.xlu1 %898  ;;  %v903_v18 = vpop.permute.xlu0 %902 }
 0x188   : > { %1002 = vst.msk [vmem:[%s1692_s30 + $0xe0] sm:$0xff] %vm973_vm0, %v969_v0  ;;  %1003 = vst.msk [vmem:[%s1692_s30 + $0xe8] sm:$0xff] %vm973_vm0, %v970_v2  ;;  %v939_v34 = vmul.f32 %v1672_v33, %v899_v5  ;;  %v940_v50 = vmul.f32 %v1672_v33, %v903_v18 }
 0x18a   : > { %v971_v51 = vadd.f32 %v939_v34, %v775_v29  ;;  %v972_v35 = vadd.f32 %v940_v50, %v776_v19 }
 0x18c   : > { %1004 = vst.msk [vmem:[%s1692_s30 + $0xf0] sm:$0xff] %vm973_vm0, %v971_v51  ;;  %1005 = vst.msk [vmem:[%s1692_s30 + $0xf8] sm:$0xff] %vm973_vm0, %v972_v35 }
 0x18d PF: > { %s16_s15 = sadd.s32 1, %s1219_s15  }
 0x18e   : > { %p13_p8 = scmp.ge.s32.totalorder %s16_s15, 4  }
 0x190   :  { %15 = sbr.rel (!%p13_p8) target bundleno = 2 (0x2), region = 78 }
 0x197   :  { %1028 = vsyncpa [#allocation3], 1 }
 0x198   :  { %1030 = vsyncpa [#allocation3 + $0x1], 1 }
 0x199   :  { %1031 = vsyncpa [#allocation5], 1 }

// kernel: fno2d_forward.11
= control target key start
LH: loop header
LB: loop body
LE: loop exit
PB: predicated region body
PF: predicated region fallthrough
CT: control target
= control target key end

     0   :  { %s7105_s15 = smov 0   ;;  %s8142_s0 = inlined_call_operand.vmem [shape: f32[128,4,32], index: 0, kind: input, shape index: {}]   ;;  %s8143_s1 = inlined_call_operand.vmem [shape: f32[128,32,32], index: 1, kind: input, shape index: {}]   ;;  %s8144_s2 = inlined_call_operand.vmem [shape: f32[128,32,32], index: 2, kind: input, shape index: {}]   ;;  %s8145_s3 = inlined_call_operand.vmem [shape: f32[128,2,32], index: 3, kind: output, shape index: {0}]   ;;  %s8146_s4 = inlined_call_operand.vmem [shape: f32[128,2,32], index: 4, kind: output, shape index: {1}]  }
   0x1 LB: > { %s5565_s16 = sadd.s32 4294967295, %s7075_s15   ;;  %p5569_p0 = scmp.ge.s32.totalorder %s7075_s15, 1  ;;  %s7075_s15 = sphi %s7105_s15, %s15_s15  }
   0x2   : > { %p190_p1 = scmp.lt.s32.totalorder %s7075_s15, 5 }
   0x4   : > { %p191_p2 = pnand %p5569_p0, %p190_p1 }
   0x5   : > { %s5570_s17 = sshll.u32 (!%p191_p2), %s5565_s16, 5  ;;  %v7077_v0 = vmov (!%p191_p2), 0.0|0.0   ;;  %vm7078_vm0 = vmmov (!%p191_p2), 0   ;;  %v7079_v1 = vmov (!%p191_p2), 0.0   ;;  %vm425_vm1 = vcmask (!%p191_p2), 261120  }
   0x6   : > { %194 = sbr.rel (%p191_p2) target bundleno = 492 (0x1ec), region = 32  ;;  %6674 = vmatprep.subr.bf16.mxu0 (!%p191_p2), %v7077_v0  ;;  %6680 = vmatprep.subr.bf16.mxu1 (!%p191_p2), %v7077_v0  ;;  %p234_p3 = scmp.lt.s32.totalorder (!%p191_p2), %s5570_s17, 127  ;;  %vm5258_vm2 = vcmask (!%p191_p2), 254976  }
   0x7   : > { %5978 = vmatprep.mubr.msk.f32.mxu0 (!%p191_p2), %vm7078_vm0, %v7079_v1  ;;  %5989 = vmatprep.mubr.msk.f32.mxu1 (!%p191_p2), %vm7078_vm0, %v7079_v1 }
   0xd   : > { %s8148_s17 = smov (!%p234_p3, %s5570_s17), 127 }
   0xe   : > { %s5648_s18 = sshll.u32 %s8148_s17, 5  ;;  %s5571_s22 = sshll.u32 %s8148_s17, 2 }
   0xf   : > { %s7127_s21 = scalar_lea.vmem %s8143_s1, %s5648_s18  ;;  %s7142_s25 = scalar_lea.vmem %s8142_s0, %s5571_s22 }
  0x10   : > { %v297_v2 = vld [vmem:[%s7127_s21] sm:$0xff]  ;;  %v298_v3 = vld [vmem:[%s7127_s21 + $0x8] sm:$0xff]  ;;  %v299_v7 = vld [vmem:[%s7127_s21 + $0x10] sm:$0xff]  ;;  %s7527_s28 = scalar_lea.vmem %s8144_s2, %s5648_s18  ;;  %s5579_s29 = sshll.u32 %s8148_s17, 1 }
  0x11   : > { %v301_v4 = vld [vmem:[%s7127_s21 + $0x20] sm:$0xff]  ;;  %v6675_v5 = vpack.c.bf16 %v298_v3, %v297_v2  ;;  %v302_v6 = vld [vmem:[%s7127_s21 + $0x28] sm:$0xff]  ;;  %v300_v8 = vld [vmem:[%s7127_s21 + $0x18] sm:$0xff]  ;;  %s7942_s6 = scalar_lea.vmem %s8146_s4, %s5579_s29  ;;  %s7947_s9 = scalar_lea.vmem %s8145_s3, %s5579_s29 }
  0x12   : > { %v6681_v9 = vpack.c.bf16 %v302_v6, %v301_v4  ;;  %v303_v10 = vld [vmem:[%s7127_s21 + $0x30] sm:$0xff]  ;;  %v304_v11 = vld [vmem:[%s7127_s21 + $0x38] sm:$0xff]  ;;  %v6678_v12 = vpack.c.bf16 %v300_v8, %v299_v7  ;;  %v305_v14 = vld [vmem:[%s7127_s21 + $0x40] sm:$0xff] }
  0x13   : > { %6676 = vmatpush3.bf16.msra.mxu0 %v6675_v5  ;;  %v6684_v13 = vpack.c.bf16 %v304_v11, %v303_v10  ;;  %v306_v15 = vld [vmem:[%s7127_s21 + $0x48] sm:$0xff]  ;;  %v309_v16 = vld [vmem:[%s7127_s21 + $0x60] sm:$0xff]  ;;  %v307_v22 = vld [vmem:[%s7127_s21 + $0x50] sm:$0xff] }
  0x14   : > { %6682 = vmatpush3.bf16.msra.mxu1 %v6681_v9  ;;  %6677 = vmatprep.subr.bf16.mxu0 %v7077_v0  ;;  %v310_v17 = vld [vmem:[%s7127_s21 + $0x68] sm:$0xff]  ;;  %v7150_v18 = vld [vmem:[%s7142_s25] sm:$0xf]  ;;  %v6687_v19 = vpack.c.bf16 %v306_v15, %v305_v14  ;;  %v7153_v20 = vld [vmem:[%s7142_s25 + $0x4] sm:$0xf] }
  0x15   : > { %6683 = vmatprep.subr.bf16.mxu1 %v7077_v0  ;;  %v6693_v21 = vpack.c.bf16 %v310_v17, %v309_v16  ;;  %v308_v23 = vld [vmem:[%s7127_s21 + $0x58] sm:$0xff]  ;;  %v311_v24 = vld [vmem:[%s7127_s21 + $0x70] sm:$0xff]  ;;  %v313_v28 = vld [vmem:[%s7127_s21 + $0x80] sm:$0xff] }
  0x16   : > { %v312_v25 = vld [vmem:[%s7127_s21 + $0x78] sm:$0xff]  ;;  %v6690_v26 = vpack.c.bf16 %v308_v23, %v307_v22  ;;  %v314_v29 = vld [vmem:[%s7127_s21 + $0x88] sm:$0xff]  ;;  %v317_v30 = vld [vmem:[%s7127_s21 + $0xa0] sm:$0xff] }
  0x17   : > { %6679 = vmatpush3.bf16.msra.mxu0 %v6678_v12  ;;  %v6696_v27 = vpack.c.bf16 %v312_v25, %v311_v24  ;;  %v318_v31 = vld [vmem:[%s7127_s21 + $0xa8] sm:$0xff]  ;;  %v6699_v33 = vpack.c.bf16 %v314_v29, %v313_v28  ;;  %v315_v36 = vld [vmem:[%s7127_s21 + $0x90] sm:$0xff]  ;;  %v316_v37 = vld [vmem:[%s7127_s21 + $0x98] sm:$0xff] }
  0x18   : > { %6685 = vmatpush3.bf16.msra.mxu1 %v6684_v13  ;;  %6686 = vmatprep.subr.bf16.mxu0 %v7077_v0  ;;  %v7176_v32 = vld [vmem:[%s7142_s25 + $0x8] sm:$0xf]  ;;  %v7179_v34 = vld [vmem:[%s7142_s25 + $0xc] sm:$0xf]  ;;  %v6705_v35 = vpack.c.bf16 %v318_v31, %v317_v30  ;;  %v319_v38 = vld [vmem:[%s7127_s21 + $0xb0] sm:$0xff]  ;;  %v6702_v40 = vpack.c.bf16 %v316_v37, %v315_v36 }
  0x19   : > { %6692 = vmatprep.subr.bf16.mxu1 %v7077_v0  ;;  %v320_v39 = vld [vmem:[%s7127_s21 + $0xb8] sm:$0xff]  ;;  %v321_v42 = vld [vmem:[%s7127_s21 + $0xc0] sm:$0xff]  ;;  %v322_v43 = vld [vmem:[%s7127_s21 + $0xc8] sm:$0xff] }
  0x1a   : > { %5979 = vmatmul.mubr.msk.f32.vlgmr.msra.gmra.mrb[0].mxu0 %vm425_vm1, %v7150_v18  ;;  %v6708_v41 = vpack.c.bf16 %v320_v39, %v319_v38  ;;  %v325_v44 = vld [vmem:[%s7127_s21 + $0xe0] sm:$0xff]  ;;  %v326_v45 = vld [vmem:[%s7127_s21 + $0xe8] sm:$0xff]  ;;  %v7202_v46 = vld [vmem:[%s7142_s25 + $0x10] sm:$0xf]  ;;  %v6711_v47 = vpack.c.bf16 %v322_v43, %v321_v42 }
  0x1b   : > { %5990 = vmatmul.mubr.msk.f32.vlgmr.msra.gmra.mrb[0].mxu1 %vm425_vm1, %v7153_v20  ;;  %6688 = vmatpush3.bf16.msra.mxu0 %v6687_v19  ;;  %v7205_v48 = vld [vmem:[%s7142_s25 + $0x14] sm:$0xf]  ;;  %v6717_v49 = vpack.c.bf16 %v326_v45, %v325_v44  ;;  %v324_v51 = vld [vmem:[%s7127_s21 + $0xd8] sm:$0xff]  ;;  %v329_v56 = vld [vmem:[%s7127_s21 + $0x100] sm:$0xff] }
  0x1c   : > { %6694 = vmatpush3.bf16.msra.mxu1 %v6693_v21  ;;  %6689 = vmatprep.subr.bf16.mxu0 %v7077_v0  ;;  %v323_v50 = vld [vmem:[%s7127_s21 + $0xd0] sm:$0xff]  ;;  %v328_v53 = vld [vmem:[%s7127_s21 + $0xf8] sm:$0xff]  ;;  %v330_v57 = vld [vmem:[%s7127_s21 + $0x108] sm:$0xff] }
  0x1d   : > { %6695 = vmatprep.subr.bf16.mxu1 %v7077_v0  ;;  %6000 = vmatprep.mubr.msk.f32.mxu0 %vm7078_vm0, %v7079_v1  ;;  %v327_v52 = vld [vmem:[%s7127_s21 + $0xf0] sm:$0xff]  ;;  %v6714_v54 = vpack.c.bf16 %v324_v51, %v323_v50  ;;  %v333_v58 = vld [vmem:[%s7127_s21 + $0x120] sm:$0xff]  ;;  %v334_v59 = vld [vmem:[%s7127_s21 + $0x128] sm:$0xff]  ;;  %v6723_v61 = vpack.c.bf16 %v330_v57, %v329_v56 }
  0x1e   : > { %6011 = vmatprep.mubr.msk.f32.mxu1 %vm7078_vm0, %v7079_v1  ;;  %v6720_v55 = vpack.c.bf16 %v328_v53, %v327_v52  ;;  %v7228_v60 = vld [vmem:[%s7142_s25 + $0x18] sm:$0xf]  ;;  %v7231_v62 = vld [vmem:[%s7142_s25 + $0x1c] sm:$0xf]  ;;  %v6729_v63 = vpack.c.bf16 %v334_v59, %v333_v58  ;;  %v331_v2 = vld [vmem:[%s7127_s21 + $0x110] sm:$0xff] }
  0x1f   : > { %6691 = vmatpush3.bf16.msra.mxu0 %v6690_v26  ;;  %v332_v3 = vld [vmem:[%s7127_s21 + $0x118] sm:$0xff]  ;;  %v335_v4 = vld [vmem:[%s7127_s21 + $0x130] sm:$0xff]  ;;  %v337_v8 = vld [vmem:[%s7127_s21 + $0x140] sm:$0xff] }
  0x20   : > { %6697 = vmatpush3.bf16.msra.mxu1 %v6696_v27  ;;  %6698 = vmatprep.subr.bf16.mxu0 %v7077_v0  ;;  %v336_v5 = vld [vmem:[%s7127_s21 + $0x138] sm:$0xff]  ;;  %v6726_v6 = vpack.c.bf16 %v332_v3, %v331_v2  ;;  %v338_v9 = vld [vmem:[%s7127_s21 + $0x148] sm:$0xff]  ;;  %v341_v10 = vld [vmem:[%s7127_s21 + $0x160] sm:$0xff] }
  0x21   : > { %6704 = vmatprep.subr.bf16.mxu1 %v7077_v0  ;;  %v6732_v7 = vpack.c.bf16 %v336_v5, %v335_v4  ;;  %v342_v11 = vld [vmem:[%s7127_s21 + $0x168] sm:$0xff]  ;;  %v7254_v12 = vld [vmem:[%s7142_s25 + $0x20] sm:$0xf]  ;;  %v6735_v13 = vpack.c.bf16 %v338_v9, %v337_v8  ;;  %v7257_v14 = vld [vmem:[%s7142_s25 + $0x24] sm:$0xf] }
  0x22   : > { %6001 = vmatmul.mubr.msk.f32.vlgmr.msra.gmra.mrb[2].mxu0 %vm425_vm1, %v7176_v32  ;;  %v6741_v15 = vpack.c.bf16 %v342_v11, %v341_v10  ;;  %v339_v16 = vld [vmem:[%s7127_s21 + $0x150] sm:$0xff]  ;;  %v340_v17 = vld [vmem:[%s7127_s21 + $0x158] sm:$0xff]  ;;  %v345_v24 = vld [vmem:[%s7127_s21 + $0x180] sm:$0xff] }
  0x23   : > { %6012 = vmatmul.mubr.msk.f32.vlgmr.msra.gmra.mrb[2].mxu1 %vm425_vm1, %v7179_v34  ;;  %6700 = vmatpush3.bf16.msra.mxu0 %v6699_v33  ;;  %v343_v19 = vld [vmem:[%s7127_s21 + $0x170] sm:$0xff]  ;;  %v344_v21 = vld [vmem:[%s7127_s21 + $0x178] sm:$0xff]  ;;  %v6738_v22 = vpack.c.bf16 %v340_v17, %v339_v16  ;;  %v346_v25 = vld [vmem:[%s7127_s21 + $0x188] sm:$0xff] }
  0x24   : > { %6706 = vmatpush3.bf16.msra.mxu1 %v6705_v35  ;;  %6701 = vmatprep.subr.bf16.mxu0 %v7077_v0  ;;  %v6744_v23 = vpack.c.bf16 %v344_v21, %v343_v19  ;;  %v349_v26 = vld [vmem:[%s7127_s21 + $0x1a0] sm:$0xff]  ;;  %v350_v27 = vld [vmem:[%s7127_s21 + $0x1a8] sm:$0xff]  ;;  %v6747_v29 = vpack.c.bf16 %v346_v25, %v345_v24  ;;  %v347_v33 = vld [vmem:[%s7127_s21 + $0x190] sm:$0xff] }
  0x25   : > { %6707 = vmatprep.subr.bf16.mxu1 %v7077_v0  ;;  %6022 = vmatprep.mubr.msk.f32.mxu0 %vm7078_vm0, %v7079_v1  ;;  %v7280_v28 = vld [vmem:[%s7142_s25 + $0x28] sm:$0xf]  ;;  %v7283_v30 = vld [vmem:[%s7142_s25 + $0x2c] sm:$0xf]  ;;  %v6753_v31 = vpack.c.bf16 %v350_v27, %v349_v26  ;;  %v348_v35 = vld [vmem:[%s7127_s21 + $0x198] sm:$0xff] }
  0x26   : > { %6033 = vmatprep.mubr.msk.f32.mxu1 %vm7078_vm0, %v7079_v1  ;;  %v351_v36 = vld [vmem:[%s7127_s21 + $0x1b0] sm:$0xff]  ;;  %v352_v37 = vld [vmem:[%s7127_s21 + $0x1b8] sm:$0xff]  ;;  %v6750_v38 = vpack.c.bf16 %v348_v35, %v347_v33  ;;  %v357_v42 = vld [vmem:[%s7127_s21 + $0x1e0] sm:$0xff] }
  0x27   : > { %6703 = vmatpush3.bf16.msra.mxu0 %v6702_v40  ;;  %v6756_v39 = vpack.c.bf16 %v352_v37, %v351_v36  ;;  %v353_v40 = vld [vmem:[%s7127_s21 + $0x1c0] sm:$0xff]  ;;  %v358_v43 = vld [vmem:[%s7127_s21 + $0x1e8] sm:$0xff]  ;;  %v7306_v44 = vld [vmem:[%s7142_s25 + $0x30] sm:$0xf] }
  0x28   : > { %6709 = vmatpush3.bf16.msra.mxu1 %v6708_v41  ;;  %6710 = vmatprep.subr.bf16.mxu0 %v7077_v0  ;;  %v354_v41 = vld [vmem:[%s7127_s21 + $0x1c8] sm:$0xff]  ;;  %v355_v50 = vld [vmem:[%s7127_s21 + $0x1d0] sm:$0xff]  ;;  %v356_v51 = vld [vmem:[%s7127_s21 + $0x1d8] sm:$0xff] }
  0x29   : > { %6716 = vmatprep.subr.bf16.mxu1 %v7077_v0  ;;  %v6759_v45 = vpack.c.bf16 %v354_v41, %v353_v40  ;;  %v359_v52 = vld [vmem:[%s7127_s21 + $0x1f0] sm:$0xff]  ;;  %v360_v53 = vld [vmem:[%s7127_s21 + $0x1f8] sm:$0xff]  ;;  %v361_v56 = vld [vmem:[%s7127_s21 + $0x200] sm:$0xff] }
  0x2a   : > { %6023 = vmatmul.mubr.msk.f32.vlgmr.msra.gmra.mrb[4].mxu0 %vm425_vm1, %v7202_v46  ;;  %v362_v57 = vld [vmem:[%s7127_s21 + $0x208] sm:$0xff]  ;;  %v365_v58 = vld [vmem:[%s7127_s21 + $0x220] sm:$0xff]  ;;  %v7335_v2 = vld [vmem:[%s7142_s25 + $0x3c] sm:$0xf] }
  0x2b   : > { %6034 = vmatmul.mubr.msk.f32.vlgmr.msra.gmra.mrb[4].mxu1 %vm425_vm1, %v7205_v48  ;;  %6712 = vmatpush3.bf16.msra.mxu0 %v6711_v47  ;;  %v7309_v47 = vld [vmem:[%s7142_s25 + $0x34] sm:$0xf]  ;;  %v366_v59 = vld [vmem:[%s7127_s21 + $0x228] sm:$0xff]  ;;  %v364_v5 = vld [vmem:[%s7127_s21 + $0x218] sm:$0xff] }
  0x2c   : > { %6718 = vmatpush3.bf16.msra.mxu1 %v6717_v49  ;;  %6713 = vmatprep.subr.bf16.mxu0 %v7077_v0  ;;  %v6765_v49 = vpack.c.bf16 %v358_v43, %v357_v42  ;;  %v6777_v3 = vpack.c.bf16 %v366_v59, %v365_v58  ;;  %v363_v4 = vld [vmem:[%s7127_s21 + $0x210] sm:$0xff]  ;;  %v369_v10 = vld [vmem:[%s7127_s21 + $0x240] sm:$0xff]  ;;  %v370_v11 = vld [vmem:[%s7127_s21 + $0x248] sm:$0xff] }
  0x2d   : > { %6719 = vmatprep.subr.bf16.mxu1 %v7077_v0  ;;  %6044 = vmatprep.mubr.msk.f32.mxu0 %vm7078_vm0, %v7079_v1  ;;  %v6774_v8 = vpack.c.bf16 %v364_v5, %v363_v4  ;;  %v7358_v16 = vld [vmem:[%s7142_s25 + $0x40] sm:$0xf]  ;;  %v6783_v17 = vpack.c.bf16 %v370_v11, %v369_v10  ;;  %v7361_v19 = vld [vmem:[%s7142_s25 + $0x44] sm:$0xf]  ;;  %v375_v24 = vld [vmem:[%s7127_s21 + $0x270] sm:$0xff] }
  0x2e   : > { %6055 = vmatprep.mubr.msk.f32.mxu1 %vm7078_vm0, %v7079_v1  ;;  %v376_v25 = vld [vmem:[%s7127_s21 + $0x278] sm:$0xff]  ;;  %v381_v33 = vld [vmem:[%s7127_s21 + $0x2a0] sm:$0xff]  ;;  %v382_v35 = vld [vmem:[%s7127_s21 + $0x2a8] sm:$0xff] }
  0x2f   : > { %6715 = vmatpush3.bf16.msra.mxu0 %v6714_v54  ;;  %v6762_v54 = vpack.c.bf16 %v356_v51, %v355_v50  ;;  %v6792_v27 = vpack.c.bf16 %v376_v25, %v375_v24  ;;  %v7384_v36 = vld [vmem:[%s7142_s25 + $0x48] sm:$0xf]  ;;  %v379_v40 = vld [vmem:[%s7127_s21 + $0x290] sm:$0xff]  ;;  %v380_v41 = vld [vmem:[%s7127_s21 + $0x298] sm:$0xff] }
  0x30   : > { %6721 = vmatpush3.bf16.msra.mxu1 %v6720_v55  ;;  %6722 = vmatprep.subr.bf16.mxu0 %v7077_v0  ;;  %v6768_v55 = vpack.c.bf16 %v360_v53, %v359_v52  ;;  %v383_v42 = vld [vmem:[%s7127_s21 + $0x2b0] sm:$0xff]  ;;  %v384_v43 = vld [vmem:[%s7127_s21 + $0x2b8] sm:$0xff]  ;;  %v385_v50 = vld [vmem:[%s7127_s21 + $0x2c0] sm:$0xff] }
  0x31   : > { %6728 = vmatprep.subr.bf16.mxu1 %v7077_v0  ;;  %v386_v51 = vld [vmem:[%s7127_s21 + $0x2c8] sm:$0xff]  ;;  %v389_v52 = vld [vmem:[%s7127_s21 + $0x2e0] sm:$0xff]  ;;  %v387_v58 = vld [vmem:[%s7127_s21 + $0x2d0] sm:$0xff] }
  0x32   : > { %6045 = vmatmul.mubr.msk.f32.vlgmr.msra.gmra.mrb[6].mxu0 %vm425_vm1, %v7228_v60  ;;  %v390_v53 = vld [vmem:[%s7127_s21 + $0x2e8] sm:$0xff]  ;;  %v388_v59 = vld [vmem:[%s7127_s21 + $0x2d8] sm:$0xff] }
  0x33   : > { %6056 = vmatmul.mubr.msk.f32.vlgmr.msra.gmra.mrb[6].mxu1 %vm425_vm1, %v7231_v62  ;;  %6724 = vmatpush3.bf16.msra.mxu0 %v6723_v61  ;;  %v7332_v61 = vld [vmem:[%s7142_s25 + $0x38] sm:$0xf]  ;;  %v6810_v4 = vpack.c.bf16 %v388_v59, %v387_v58  ;;  %v7491_v58 = vld [vmem:[%s7142_s25 + $0x6c] sm:$0xf] }
  0x34   : > { %6730 = vmatpush3.bf16.msra.mxu1 %v6729_v63  ;;  %6725 = vmatprep.subr.bf16.mxu0 %v7077_v0  ;;  %v6771_v63 = vpack.c.bf16 %v362_v57, %v361_v56  ;;  %v7413_v56 = vld [vmem:[%s7142_s25 + $0x54] sm:$0xf]  ;;  %v6813_v57 = vpack.c.bf16 %v390_v53, %v389_v52  ;;  %v7436_v10 = vld [vmem:[%s7142_s25 + $0x58] sm:$0xf]  ;;  %v413_v52 = vld [vmem:[%s7127_s21 + $0x3a0] sm:$0xff] }
  0x35   : > { %6731 = vmatprep.subr.bf16.mxu1 %v7077_v0  ;;  %6066 = vmatprep.mubr.msk.f32.mxu0 %vm7078_vm0, %v7079_v1  ;;  %v414_v53 = vld [vmem:[%s7127_s21 + $0x3a8] sm:$0xff] }
  0x36   : > { %6077 = vmatprep.mubr.msk.f32.mxu1 %vm7078_vm0, %v7079_v1  ;;  %v6849_v59 = vpack.c.bf16 %v414_v53, %v413_v52  ;;  %v2768_v52 = vld [vmem:[%s7527_s28 + $0x30] sm:$0xff]  ;;  %v2769_v53 = vld [vmem:[%s7527_s28 + $0x38] sm:$0xff] }
  0x37   : > { %6727 = vmatpush3.bf16.msra.mxu0 %v6726_v6  ;;  %v367_v6 = vld [vmem:[%s7127_s21 + $0x230] sm:$0xff] }
  0x38   : > { %6733 = vmatpush3.bf16.msra.mxu1 %v6732_v7  ;;  %6734 = vmatprep.subr.bf16.mxu0 %v7077_v0  ;;  %v368_v7 = vld [vmem:[%s7127_s21 + $0x238] sm:$0xff] }
  0x39   : > { %6740 = vmatprep.subr.bf16.mxu1 %v7077_v0  ;;  %v6780_v9 = vpack.c.bf16 %v368_v7, %v367_v6  ;;  %v393_v6 = vld [vmem:[%s7127_s21 + $0x300] sm:$0xff]  ;;  %v394_v7 = vld [vmem:[%s7127_s21 + $0x308] sm:$0xff] }
  0x3a   : > { %6067 = vmatmul.mubr.msk.f32.vlgmr.msra.gmra.mrb[8].mxu0 %vm425_vm1, %v7254_v12  ;;  %v6819_v11 = vpack.c.bf16 %v394_v7, %v393_v6 }
  0x3b   : > { %6078 = vmatmul.mubr.msk.f32.vlgmr.msra.gmra.mrb[8].mxu1 %vm425_vm1, %v7257_v14  ;;  %6736 = vmatpush3.bf16.msra.mxu0 %v6735_v13  ;;  %v373_v13 = vld [vmem:[%s7127_s21 + $0x260] sm:$0xff] }
  0x3c   : > { %6742 = vmatpush3.bf16.msra.mxu1 %v6741_v15  ;;  %6737 = vmatprep.subr.bf16.mxu0 %v7077_v0  ;;  %v374_v15 = vld [vmem:[%s7127_s21 + $0x268] sm:$0xff] }
  0x3d   : > { %6743 = vmatprep.subr.bf16.mxu1 %v7077_v0  ;;  %6088 = vmatprep.mubr.msk.f32.mxu0 %vm7078_vm0, %v7079_v1  ;;  %v6789_v21 = vpack.c.bf16 %v374_v15, %v373_v13  ;;  %v7439_v13 = vld [vmem:[%s7142_s25 + $0x5c] sm:$0xf] }
  0x3e   : > { %6099 = vmatprep.mubr.msk.f32.mxu1 %vm7078_vm0, %v7079_v1 }
  0x3f   : > { %6739 = vmatpush3.bf16.msra.mxu0 %v6738_v22  ;;  %v371_v22 = vld [vmem:[%s7127_s21 + $0x250] sm:$0xff] }
  0x40   : > { %6745 = vmatpush3.bf16.msra.mxu1 %v6744_v23  ;;  %6746 = vmatprep.subr.bf16.mxu0 %v7077_v0  ;;  %v372_v23 = vld [vmem:[%s7127_s21 + $0x258] sm:$0xff] }
  0x41   : > { %6752 = vmatprep.subr.bf16.mxu1 %v7077_v0  ;;  %v6786_v26 = vpack.c.bf16 %v372_v23, %v371_v22  ;;  %v399_v22 = vld [vmem:[%s7127_s21 + $0x330] sm:$0xff]  ;;  %v400_v23 = vld [vmem:[%s7127_s21 + $0x338] sm:$0xff] }
  0x42   : > { %6089 = vmatmul.mubr.msk.f32.vlgmr.msra.gmra.mrb[10].mxu0 %vm425_vm1, %v7280_v28  ;;  %v6828_v25 = vpack.c.bf16 %v400_v23, %v399_v22  ;;  %v7517_v22 = vld [vmem:[%s7142_s25 + $0x74] sm:$0xf] }
  0x43   : > { %6100 = vmatmul.mubr.msk.f32.vlgmr.msra.gmra.mrb[10].mxu1 %vm425_vm1, %v7283_v30  ;;  %6748 = vmatpush3.bf16.msra.mxu0 %v6747_v29  ;;  %v377_v29 = vld [vmem:[%s7127_s21 + $0x280] sm:$0xff] }
  0x44   : > { %6754 = vmatpush3.bf16.msra.mxu1 %v6753_v31  ;;  %6749 = vmatprep.subr.bf16.mxu0 %v7077_v0  ;;  %v378_v31 = vld [vmem:[%s7127_s21 + $0x288] sm:$0xff] }
  0x45   : > { %6755 = vmatprep.subr.bf16.mxu1 %v7077_v0  ;;  %6110 = vmatprep.mubr.msk.f32.mxu0 %vm7078_vm0, %v7079_v1  ;;  %v6795_v37 = vpack.c.bf16 %v378_v31, %v377_v29  ;;  %v405_v29 = vld [vmem:[%s7127_s21 + $0x360] sm:$0xff]  ;;  %v406_v31 = vld [vmem:[%s7127_s21 + $0x368] sm:$0xff] }
  0x46   : > { %6121 = vmatprep.mubr.msk.f32.mxu1 %vm7078_vm0, %v7079_v1 }
  0x47   : > { %6751 = vmatpush3.bf16.msra.mxu0 %v6750_v38  ;;  %v7387_v38 = vld [vmem:[%s7142_s25 + $0x4c] sm:$0xf] }
  0x48   : > { %6757 = vmatpush3.bf16.msra.mxu1 %v6756_v39  ;;  %6758 = vmatprep.subr.bf16.mxu0 %v7077_v0  ;;  %v6801_v39 = vpack.c.bf16 %v382_v35, %v381_v33  ;;  %v7462_v33 = vld [vmem:[%s7142_s25 + $0x60] sm:$0xf] }
  0x49   : > { %6764 = vmatprep.subr.bf16.mxu1 %v7077_v0 }
  0x4a   : > { %6111 = vmatmul.mubr.msk.f32.vlgmr.msra.gmra.mrb[12].mxu0 %vm425_vm1, %v7306_v44 }
  0x4b   : > { %6122 = vmatmul.mubr.msk.f32.vlgmr.msra.gmra.mrb[12].mxu1 %vm425_vm1, %v7309_v47  ;;  %6760 = vmatpush3.bf16.msra.mxu0 %v6759_v45  ;;  %v6798_v45 = vpack.c.bf16 %v380_v41, %v379_v40  ;;  %v403_v40 = vld [vmem:[%s7127_s21 + $0x350] sm:$0xff]  ;;  %v404_v41 = vld [vmem:[%s7127_s21 + $0x358] sm:$0xff] }
  0x4c   : > { %6766 = vmatpush3.bf16.msra.mxu1 %v6765_v49  ;;  %6761 = vmatprep.subr.bf16.mxu0 %v7077_v0  ;;  %v6804_v49 = vpack.c.bf16 %v384_v43, %v383_v42  ;;  %v407_v42 = vld [vmem:[%s7127_s21 + $0x370] sm:$0xff]  ;;  %v408_v43 = vld [vmem:[%s7127_s21 + $0x378] sm:$0xff] }
  0x4d   : > { %6767 = vmatprep.subr.bf16.mxu1 %v7077_v0  ;;  %6132 = vmatprep.mubr.msk.f32.mxu0 %vm7078_vm0, %v7079_v1 }
  0x4e   : > { %6143 = vmatprep.mubr.msk.f32.mxu1 %vm7078_vm0, %v7079_v1 }
  0x4f   : > { %6763 = vmatpush3.bf16.msra.mxu0 %v6762_v54  ;;  %v7410_v54 = vld [vmem:[%s7142_s25 + $0x50] sm:$0xf] }
  0x50   : > { %6769 = vmatpush3.bf16.msra.mxu1 %v6768_v55  ;;  %6770 = vmatprep.subr.bf16.mxu0 %v7077_v0  ;;  %v6807_v55 = vpack.c.bf16 %v386_v51, %v385_v50  ;;  %v409_v50 = vld [vmem:[%s7127_s21 + $0x380] sm:$0xff]  ;;  %v410_v51 = vld [vmem:[%s7127_s21 + $0x388] sm:$0xff] }
  0x51   : > { %6776 = vmatprep.subr.bf16.mxu1 %v7077_v0 }
  0x52   : > { %6133 = vmatmul.mubr.msk.f32.vlgmr.msra.gmra.mrb[14].mxu0 %vm425_vm1, %v7332_v61 }
  0x53   : > { %6144 = vmatmul.mubr.msk.f32.vlgmr.msra.gmra.mrb[14].mxu1 %vm425_vm1, %v7335_v2  ;;  %6772 = vmatpush3.bf16.msra.mxu0 %v6771_v63  ;;  %v391_v63 = vld [vmem:[%s7127_s21 + $0x2f0] sm:$0xff] }
  0x54   : > { %6778 = vmatpush3.bf16.msra.mxu1 %v6777_v3  ;;  %6773 = vmatprep.subr.bf16.mxu0 %v7077_v0  ;;  %v392_v3 = vld [vmem:[%s7127_s21 + $0x2f8] sm:$0xff] }
  0x55   : > { %6779 = vmatprep.subr.bf16.mxu1 %v7077_v0  ;;  %6154 = vmatprep.mubr.msk.f32.mxu0 %vm7078_vm0, %v7079_v1  ;;  %v6816_v5 = vpack.c.bf16 %v392_v3, %v391_v63  ;;  %v411_v63 = vld [vmem:[%s7127_s21 + $0x390] sm:$0xff]  ;;  %v412_v3 = vld [vmem:[%s7127_s21 + $0x398] sm:$0xff] }
  0x56   : > { %6165 = vmatprep.mubr.msk.f32.mxu1 %vm7078_vm0, %v7079_v1  ;;  %v6846_v6 = vpack.c.bf16 %v412_v3, %v411_v63  ;;  %v2770_v63 = vld [vmem:[%s7527_s28 + $0x40] sm:$0xff]  ;;  %v2771_v3 = vld [vmem:[%s7527_s28 + $0x48] sm:$0xff] }
  0x57   : > { %6775 = vmatpush3.bf16.msra.mxu0 %v6774_v8  ;;  %v397_v8 = vld [vmem:[%s7127_s21 + $0x320] sm:$0xff] }
  0x58   : > { %6781 = vmatpush3.bf16.msra.mxu1 %v6780_v9  ;;  %6782 = vmatprep.subr.bf16.mxu0 %v7077_v0  ;;  %v398_v9 = vld [vmem:[%s7127_s21 + $0x328] sm:$0xff] }
  0x59   : > { %6788 = vmatprep.subr.bf16.mxu1 %v7077_v0  ;;  %v6825_v15 = vpack.c.bf16 %v398_v9, %v397_v8  ;;  %v417_v8 = vld [vmem:[%s7127_s21 + $0x3c0] sm:$0xff]  ;;  %v418_v9 = vld [vmem:[%s7127_s21 + $0x3c8] sm:$0xff] }
  0x5a   : > { %6155 = vmatmul.mubr.msk.f32.vlgmr.msra.gmra.mrb[16].mxu0 %vm425_vm1, %v7358_v16 }
  0x5b   : > { %6166 = vmatmul.mubr.msk.f32.vlgmr.msra.gmra.mrb[16].mxu1 %vm425_vm1, %v7361_v19  ;;  %6784 = vmatpush3.bf16.msra.mxu0 %v6783_v17  ;;  %v395_v17 = vld [vmem:[%s7127_s21 + $0x310] sm:$0xff] }
  0x5c   : > { %6790 = vmatpush3.bf16.msra.mxu1 %v6789_v21  ;;  %6785 = vmatprep.subr.bf16.mxu0 %v7077_v0  ;;  %v396_v21 = vld [vmem:[%s7127_s21 + $0x318] sm:$0xff] }
  0x5d   : > { %6791 = vmatprep.subr.bf16.mxu1 %v7077_v0  ;;  %6176 = vmatprep.mubr.msk.f32.mxu0 %vm7078_vm0, %v7079_v1  ;;  %v6822_v24 = vpack.c.bf16 %v396_v21, %v395_v17  ;;  %v7514_v17 = vld [vmem:[%s7142_s25 + $0x70] sm:$0xf]  ;;  %v6855_v21 = vpack.c.bf16 %v418_v9, %v417_v8  ;;  %v2773_v9 = vld [vmem:[%s7527_s28 + $0x58] sm:$0xff] }
  0x5e   : > { %6187 = vmatprep.mubr.msk.f32.mxu1 %vm7078_vm0, %v7079_v1  ;;  %v2772_v8 = vld [vmem:[%s7527_s28 + $0x50] sm:$0xff] }
  0x5f   : > { %6787 = vmatpush3.bf16.msra.mxu0 %v6786_v26  ;;  %v401_v26 = vld [vmem:[%s7127_s21 + $0x340] sm:$0xff] }
  0x60   : > { %6793 = vmatpush3.bf16.msra.mxu1 %v6792_v27  ;;  %6794 = vmatprep.subr.bf16.mxu0 %v7077_v0  ;;  %v402_v27 = vld [vmem:[%s7127_s21 + $0x348] sm:$0xff] }
  0x61   : > { %6800 = vmatprep.subr.bf16.mxu1 %v7077_v0  ;;  %v6831_v35 = vpack.c.bf16 %v402_v27, %v401_v26  ;;  %v423_v26 = vld [vmem:[%s7127_s21 + $0x3f0] sm:$0xff]  ;;  %v424_v27 = vld [vmem:[%s7127_s21 + $0x3f8] sm:$0xff] }
  0x62   : > { %6177 = vmatmul.mubr.msk.f32.vlgmr.msra.gmra.mrb[18].mxu0 %vm425_vm1, %v7384_v36 }
  0x63   : > { %6188 = vmatmul.mubr.msk.f32.vlgmr.msra.gmra.mrb[18].mxu1 %vm425_vm1, %v7387_v38  ;;  %6796 = vmatpush3.bf16.msra.mxu0 %v6795_v37  ;;  %v7465_v37 = vld [vmem:[%s7142_s25 + $0x64] sm:$0xf] }
  0x64   : > { %6802 = vmatpush3.bf16.msra.mxu1 %v6801_v39  ;;  %6797 = vmatprep.subr.bf16.mxu0 %v7077_v0  ;;  %v6837_v39 = vpack.c.bf16 %v406_v31, %v405_v29  ;;  %v6864_v31 = vpack.c.bf16 %v424_v27, %v423_v26  ;;  %v2783_v26 = vld [vmem:[%s7527_s28 + $0xa8] sm:$0xff] }
  0x65   : > { %6803 = vmatprep.subr.bf16.mxu1 %v7077_v0  ;;  %6198 = vmatprep.mubr.msk.f32.mxu0 %vm7078_vm0, %v7079_v1 }
  0x66   : > { %6209 = vmatprep.mubr.msk.f32.mxu1 %vm7078_vm0, %v7079_v1 }
  0x67   : > { %6799 = vmatpush3.bf16.msra.mxu0 %v6798_v45  ;;  %v6834_v45 = vpack.c.bf16 %v404_v41, %v403_v40  ;;  %v2766_v40 = vld [vmem:[%s7527_s28 + $0x20] sm:$0xff]  ;;  %v2767_v41 = vld [vmem:[%s7527_s28 + $0x28] sm:$0xff] }
  0x68   : > { %6805 = vmatpush3.bf16.msra.mxu1 %v6804_v49  ;;  %6806 = vmatprep.subr.bf16.mxu0 %v7077_v0  ;;  %v6840_v49 = vpack.c.bf16 %v408_v43, %v407_v42  ;;  %v7547_v42 = vld [vmem:[%s7142_s25 + $0x78] sm:$0xf] }
  0x69   : > { %6812 = vmatprep.subr.bf16.mxu1 %v7077_v0 }
  0x6a   : > { %6199 = vmatmul.mubr.msk.f32.vlgmr.msra.gmra.mrb[20].mxu0 %vm425_vm1, %v7410_v54 }
  0x6b   : > { %6210 = vmatmul.mubr.msk.f32.vlgmr.msra.gmra.mrb[20].mxu1 %vm425_vm1, %v7413_v56  ;;  %6808 = vmatpush3.bf16.msra.mxu0 %v6807_v55  ;;  %v7488_v55 = vld [vmem:[%s7142_s25 + $0x68] sm:$0xf] }
  0x6c   : > { %6814 = vmatpush3.bf16.msra.mxu1 %v6813_v57  ;;  %6809 = vmatprep.subr.bf16.mxu0 %v7077_v0  ;;  %v6843_v57 = vpack.c.bf16 %v410_v51, %v409_v50  ;;  %v2764_v50 = vld [vmem:[%s7527_s28 + $0x10] sm:$0xff]  ;;  %v2765_v51 = vld [vmem:[%s7527_s28 + $0x18] sm:$0xff] }
  0x6d   : > { %6815 = vmatprep.subr.bf16.mxu1 %v7077_v0  ;;  %6220 = vmatprep.mubr.msk.f32.mxu0 %vm7078_vm0, %v7079_v1 }
  0x6e   : > { %6231 = vmatprep.mubr.msk.f32.mxu1 %vm7078_vm0, %v7079_v1 }
  0x6f   : > { %6811 = vmatpush3.bf16.msra.mxu0 %v6810_v4  ;;  %v415_v4 = vld [vmem:[%s7127_s21 + $0x3b0] sm:$0xff] }
  0x70   : > { %6817 = vmatpush3.bf16.msra.mxu1 %v6816_v5  ;;  %6818 = vmatprep.subr.bf16.mxu0 %v7077_v0  ;;  %v416_v5 = vld [vmem:[%s7127_s21 + $0x3b8] sm:$0xff] }
  0x71   : > { %6824 = vmatprep.subr.bf16.mxu1 %v7077_v0  ;;  %v6852_v7 = vpack.c.bf16 %v416_v5, %v415_v4  ;;  %v2774_v4 = vld [vmem:[%s7527_s28 + $0x60] sm:$0xff]  ;;  %v2775_v5 = vld [vmem:[%s7527_s28 + $0x68] sm:$0xff] }
  0x72   : > { %6221 = vmatmul.mubr.msk.f32.vlgmr.msra.gmra.mrb[22].mxu0 %vm425_vm1, %v7436_v10 }
  0x73   : > { %6232 = vmatmul.mubr.msk.f32.vlgmr.msra.gmra.mrb[22].mxu1 %vm425_vm1, %v7439_v13  ;;  %6820 = vmatpush3.bf16.msra.mxu0 %v6819_v11  ;;  %v421_v11 = vld [vmem:[%s7127_s21 + $0x3e0] sm:$0xff] }
  0x74   : > { %6826 = vmatpush3.bf16.msra.mxu1 %v6825_v15  ;;  %6821 = vmatprep.subr.bf16.mxu0 %v7077_v0  ;;  %v422_v15 = vld [vmem:[%s7127_s21 + $0x3e8] sm:$0xff] }
  0x75   : > { %6827 = vmatprep.subr.bf16.mxu1 %v7077_v0  ;;  %6242 = vmatprep.mubr.msk.f32.mxu0 %vm7078_vm0, %v7079_v1  ;;  %v6861_v23 = vpack.c.bf16 %v422_v15, %v421_v11  ;;  %v2776_v11 = vld [vmem:[%s7527_s28 + $0x70] sm:$0xff]  ;;  %v2777_v15 = vld [vmem:[%s7527_s28 + $0x78] sm:$0xff] }
  0x76   : > { %6253 = vmatprep.mubr.msk.f32.mxu1 %vm7078_vm0, %v7079_v1 }
  0x77   : > { %6823 = vmatpush3.bf16.msra.mxu0 %v6822_v24  ;;  %v419_v24 = vld [vmem:[%s7127_s21 + $0x3d0] sm:$0xff] }
  0x78   : > { %6829 = vmatpush3.bf16.msra.mxu1 %v6828_v25  ;;  %6830 = vmatprep.subr.bf16.mxu0 %v7077_v0  ;;  %v420_v25 = vld [vmem:[%s7127_s21 + $0x3d8] sm:$0xff] }
  0x79   : > { %6836 = vmatprep.subr.bf16.mxu1 %v7077_v0  ;;  %v6858_v29 = vpack.c.bf16 %v420_v25, %v419_v24  ;;  %v2778_v24 = vld [vmem:[%s7527_s28 + $0x80] sm:$0xff]  ;;  %v2779_v25 = vld [vmem:[%s7527_s28 + $0x88] sm:$0xff] }
  0x7a   : > { %6243 = vmatmul.mubr.msk.f32.vlgmr.msra.gmra.mrb[24].mxu0 %vm425_vm1, %v7462_v33 }
  0x7b   : > { %6254 = vmatmul.mubr.msk.f32.vlgmr.msra.gmra.mrb[24].mxu1 %vm425_vm1, %v7465_v37  ;;  %6832 = vmatpush3.bf16.msra.mxu0 %v6831_v35  ;;  %v2762_v35 = vld [vmem:[%s7527_s28] sm:$0xff] }
  0x7c   : > { %6838 = vmatpush3.bf16.msra.mxu1 %v6837_v39  ;;  %6833 = vmatprep.subr.bf16.mxu0 %v7077_v0  ;;  %v2763_v39 = vld [vmem:[%s7527_s28 + $0x8] sm:$0xff] }
  0x7d   : > { %6839 = vmatprep.subr.bf16.mxu1 %v7077_v0  ;;  %6264 = vmatprep.mubr.msk.f32.mxu0 %vm7078_vm0, %v7079_v1  ;;  %v6867_v43 = vpack.c.bf16 %v2763_v39, %v2762_v35  ;;  %v2784_v35 = vld [vmem:[%s7527_s28 + $0xb0] sm:$0xff]  ;;  %v2785_v39 = vld [vmem:[%s7527_s28 + $0xb8] sm:$0xff] }
  0x7e   : > { %6275 = vmatprep.mubr.msk.f32.mxu1 %vm7078_vm0, %v7079_v1 }
  0x7f   : > { %6835 = vmatpush3.bf16.msra.mxu0 %v6834_v45  ;;  %v7550_v45 = vld [vmem:[%s7142_s25 + $0x7c] sm:$0xf] }
  0x80   : > { %6841 = vmatpush3.bf16.msra.mxu1 %v6840_v49  ;;  %6842 = vmatprep.subr.bf16.mxu0 %v7077_v0  ;;  %v6873_v49 = vpack.c.bf16 %v2767_v41, %v2766_v40  ;;  %v6900_v41 = vpack.c.bf16 %v2785_v39, %v2784_v35 }
  0x81   : > { %6848 = vmatprep.subr.bf16.mxu1 %v7077_v0 }
  0x82   : > { %6265 = vmatmul.mubr.msk.f32.vlgmr.msra.gmra.mrb[26].mxu0 %vm425_vm1, %v7488_v55 }
  0x83   : > { %6276 = vmatmul.mubr.msk.f32.vlgmr.msra.gmra.mrb[26].mxu1 %vm425_vm1, %v7491_v58  ;;  %6844 = vmatpush3.bf16.msra.mxu0 %v6843_v57  ;;  %v6870_v57 = vpack.c.bf16 %v2765_v51, %v2764_v50  ;;  %v2791_v50 = vld [vmem:[%s7527_s28 + $0xe8] sm:$0xff] }
  0x84   : > { %6850 = vmatpush3.bf16.msra.mxu1 %v6849_v59  ;;  %6845 = vmatprep.subr.bf16.mxu0 %v7077_v0  ;;  %v6876_v59 = vpack.c.bf16 %v2769_v53, %v2768_v52  ;;  %v2788_v52 = vld [vmem:[%s7527_s28 + $0xd0] sm:$0xff]  ;;  %v2789_v53 = vld [vmem:[%s7527_s28 + $0xd8] sm:$0xff] }
  0x85   : > { %6851 = vmatprep.subr.bf16.mxu1 %v7077_v0  ;;  %6286 = vmatprep.mubr.msk.f32.mxu0 %vm7078_vm0, %v7079_v1 }
  0x86   : > { %6297 = vmatprep.mubr.msk.f32.mxu1 %vm7078_vm0, %v7079_v1 }
  0x87   : > { %6847 = vmatpush3.bf16.msra.mxu0 %v6846_v6  ;;  %v6879_v6 = vpack.c.bf16 %v2771_v3, %v2770_v63  ;;  %v6906_v63 = vpack.c.bf16 %v2789_v53, %v2788_v52 }
  0x88   : > { %6853 = vmatpush3.bf16.msra.mxu1 %v6852_v7  ;;  %6854 = vmatprep.subr.bf16.mxu0 %v7077_v0  ;;  %v6885_v7 = vpack.c.bf16 %v2775_v5, %v2774_v4  ;;  %v2794_v4 = vld [vmem:[%s7527_s28 + $0x100] sm:$0xff]  ;;  %v2795_v5 = vld [vmem:[%s7527_s28 + $0x108] sm:$0xff] }
  0x89   : > { %6860 = vmatprep.subr.bf16.mxu1 %v7077_v0 }
  0x8a   : > { %6287 = vmatmul.mubr.msk.f32.vlgmr.msra.gmra.mrb[28].mxu0 %vm425_vm1, %v7514_v17 }
  0x8b   : > { %6298 = vmatmul.mubr.msk.f32.vlgmr.msra.gmra.mrb[28].mxu1 %vm425_vm1, %v7517_v22  ;;  %6856 = vmatpush3.bf16.msra.mxu0 %v6855_v21  ;;  %v6882_v21 = vpack.c.bf16 %v2773_v9, %v2772_v8  ;;  %v2796_v8 = vld [vmem:[%s7527_s28 + $0x110] sm:$0xff]  ;;  %v2797_v9 = vld [vmem:[%s7527_s28 + $0x118] sm:$0xff] }
  0x8c   : > { %6862 = vmatpush3.bf16.msra.mxu1 %v6861_v23  ;;  %6857 = vmatprep.subr.bf16.mxu0 %v7077_v0  ;;  %v6888_v23 = vpack.c.bf16 %v2777_v15, %v2776_v11  ;;  %v2800_v11 = vld [vmem:[%s7527_s28 + $0x130] sm:$0xff]  ;;  %v2801_v15 = vld [vmem:[%s7527_s28 + $0x138] sm:$0xff] }
  0x8d   : > { %6863 = vmatprep.subr.bf16.mxu1 %v7077_v0  ;;  %6308 = vmatprep.mubr.msk.f32.mxu0 %vm7078_vm0, %v7079_v1 }
  0x8e   : > { %6319 = vmatprep.mubr.msk.f32.mxu1 %vm7078_vm0, %v7079_v1 }
  0x8f   : > { %6859 = vmatpush3.bf16.msra.mxu0 %v6858_v29  ;;  %v2780_v29 = vld [vmem:[%s7527_s28 + $0x90] sm:$0xff] }
  0x90   : > { %6865 = vmatpush3.bf16.msra.mxu1 %v6864_v31  ;;  %6866 = vmatprep.subr.bf16.mxu0 %v7077_v0  ;;  %v2781_v31 = vld [vmem:[%s7527_s28 + $0x98] sm:$0xff] }
  0x91   : > { %6872 = vmatprep.subr.bf16.mxu1 %v7077_v0  ;;  %v6894_v40 = vpack.c.bf16 %v2781_v31, %v2780_v29  ;;  %v2808_v29 = vld [vmem:[%s7527_s28 + $0x170] sm:$0xff]  ;;  %v2809_v31 = vld [vmem:[%s7527_s28 + $0x178] sm:$0xff] }
  0x92   : > { %6309 = vmatmul.mubr.msk.f32.vlgmr.msra.gmra.mrb[30].mxu0 %vm425_vm1, %v7547_v42  ;;  %v6936_v39 = vpack.c.bf16 %v2809_v31, %v2808_v29  ;;  %v2836_v29 = vld [vmem:[%s7527_s28 + $0x250] sm:$0xff]  ;;  %v2837_v31 = vld [vmem:[%s7527_s28 + $0x258] sm:$0xff] }
  0x93   : > { %6320 = vmatmul.mubr.msk.f32.vlgmr.msra.gmra.mrb[30].mxu1 %vm425_vm1, %v7550_v45  ;;  %6868 = vmatpush3.bf16.msra.mxu0 %v6867_v43  ;;  %v2786_v43 = vld [vmem:[%s7527_s28 + $0xc0] sm:$0xff] }
  0x94   : > { %6874 = vmatpush3.bf16.msra.mxu1 %v6873_v49  ;;  %6869 = vmatprep.subr.bf16.mxu0 %v7077_v0  ;;  %v2787_v49 = vld [vmem:[%s7527_s28 + $0xc8] sm:$0xff] }
  0x95   : > { %6875 = vmatprep.subr.bf16.mxu1 %v7077_v0  ;;  %6330 = vmatprep.mubr.msk.f32.mxu0 %vm7078_vm0, %v7079_v1 }
  0x96   : > { %6341 = vmatprep.mubr.msk.f32.mxu1 %vm7078_vm0, %v7079_v1 }
  0x97   : > { %6871 = vmatpush3.bf16.msra.mxu0 %v6870_v57  ;;  %v2792_v57 = vld [vmem:[%s7527_s28 + $0xf0] sm:$0xff] }
  0x98   : > { %6877 = vmatpush3.bf16.msra.mxu1 %v6876_v59  ;;  %6878 = vmatprep.subr.bf16.mxu0 %v7077_v0  ;;  %v2793_v59 = vld [vmem:[%s7527_s28 + $0xf8] sm:$0xff] }
  0x99   : > { %6884 = vmatprep.subr.bf16.mxu1 %v7077_v0  ;;  %v6912_v3 = vpack.c.bf16 %v2793_v59, %v2792_v57  ;;  %v2818_v57 = vld [vmem:[%s7527_s28 + $0x1c0] sm:$0xff]  ;;  %v2819_v59 = vld [vmem:[%s7527_s28 + $0x1c8] sm:$0xff] }
  0x9a   : > { %6331 = vmatmul.mubr.msk.f32.vlgmr.msra.gmra.mrb[32].mxu0 %vm425_vm1, %v7150_v18  ;;  %v2782_v18 = vld [vmem:[%s7527_s28 + $0xa0] sm:$0xff] }
  0x9b   : > { %6342 = vmatmul.mubr.msk.f32.vlgmr.msra.gmra.mrb[32].mxu1 %vm425_vm1, %v7153_v20  ;;  %6880 = vmatpush3.bf16.msra.mxu0 %v6879_v6  ;;  %v6891_v20 = vpack.c.bf16 %v2779_v25, %v2778_v24  ;;  %v6897_v27 = vpack.c.bf16 %v2783_v26, %v2782_v18  ;;  %v2799_v6 = vld [vmem:[%s7527_s28 + $0x128] sm:$0xff]  ;;  %v2802_v24 = vld [vmem:[%s7527_s28 + $0x140] sm:$0xff] }
  0x9c   : > { %6886 = vmatpush3.bf16.msra.mxu1 %v6885_v7  ;;  %6881 = vmatprep.subr.bf16.mxu0 %v7077_v0  ;;  %v2803_v25 = vld [vmem:[%s7527_s28 + $0x148] sm:$0xff] }
  0x9d   : > { %6887 = vmatprep.subr.bf16.mxu1 %v7077_v0  ;;  %6352 = vmatprep.mubr.msk.f32.mxu0 %vm7078_vm0, %v7079_v1  ;;  %v2807_v18 = vld [vmem:[%s7527_s28 + $0x168] sm:$0xff] }
  0x9e   : > { %6363 = vmatprep.mubr.msk.f32.mxu1 %vm7078_vm0, %v7079_v1 }
  0x9f   : > { %6883 = vmatpush3.bf16.msra.mxu0 %v6882_v21  ;;  %v6918_v21 = vpack.c.bf16 %v2797_v9, %v2796_v8  ;;  %v2826_v8 = vld [vmem:[%s7527_s28 + $0x200] sm:$0xff]  ;;  %v2827_v9 = vld [vmem:[%s7527_s28 + $0x208] sm:$0xff] }
  0xa0   : > { %6889 = vmatpush3.bf16.msra.mxu1 %v6888_v23  ;;  %6890 = vmatprep.subr.bf16.mxu0 %v7077_v0  ;;  %v6924_v23 = vpack.c.bf16 %v2801_v15, %v2800_v11  ;;  %v2831_v11 = vld [vmem:[%s7527_s28 + $0x228] sm:$0xff] }
  0xa1   : > { %6896 = vmatprep.subr.bf16.mxu1 %v7077_v0 }
  0xa2   : > { %6353 = vmatmul.mubr.msk.f32.vlgmr.msra.gmra.mrb[34].mxu0 %vm425_vm1, %v7176_v32  ;;  %v2790_v32 = vld [vmem:[%s7527_s28 + $0xe0] sm:$0xff] }
  0xa3   : > { %6364 = vmatmul.mubr.msk.f32.vlgmr.msra.gmra.mrb[34].mxu1 %vm425_vm1, %v7179_v34  ;;  %6892 = vmatpush3.bf16.msra.mxu0 %v6891_v20  ;;  %v6903_v34 = vpack.c.bf16 %v2787_v49, %v2786_v43  ;;  %v6909_v51 = vpack.c.bf16 %v2791_v50, %v2790_v32  ;;  %v2804_v20 = vld [vmem:[%s7527_s28 + $0x150] sm:$0xff]  ;;  %v2815_v43 = vld [vmem:[%s7527_s28 + $0x1a8] sm:$0xff]  ;;  %v2813_v50 = vld [vmem:[%s7527_s28 + $0x198] sm:$0xff] }
  0xa4   : > { %6898 = vmatpush3.bf16.msra.mxu1 %v6897_v27  ;;  %6893 = vmatprep.subr.bf16.mxu0 %v7077_v0  ;;  %v2805_v27 = vld [vmem:[%s7527_s28 + $0x158] sm:$0xff]  ;;  %v2812_v32 = vld [vmem:[%s7527_s28 + $0x190] sm:$0xff] }
  0xa5   : > { %6899 = vmatprep.subr.bf16.mxu1 %v7077_v0  ;;  %6374 = vmatprep.mubr.msk.f32.mxu0 %vm7078_vm0, %v7079_v1  ;;  %v6930_v35 = vpack.c.bf16 %v2805_v27, %v2804_v20  ;;  %v6942_v52 = vpack.c.bf16 %v2813_v50, %v2812_v32  ;;  %v2839_v20 = vld [vmem:[%s7527_s28 + $0x268] sm:$0xff]  ;;  %v2844_v32 = vld [vmem:[%s7527_s28 + $0x290] sm:$0xff]  ;;  %v2845_v50 = vld [vmem:[%s7527_s28 + $0x298] sm:$0xff] }
  0xa6   : > { %6385 = vmatprep.mubr.msk.f32.mxu1 %vm7078_vm0, %v7079_v1 }
  0xa7   : > { %6895 = vmatpush3.bf16.msra.mxu0 %v6894_v40  ;;  %v2810_v40 = vld [vmem:[%s7527_s28 + $0x180] sm:$0xff] }
  0xa8   : > { %6901 = vmatpush3.bf16.msra.mxu1 %v6900_v41  ;;  %6902 = vmatprep.subr.bf16.mxu0 %v7077_v0  ;;  %v2811_v41 = vld [vmem:[%s7527_s28 + $0x188] sm:$0xff] }
  0xa9   : > { %6908 = vmatprep.subr.bf16.mxu1 %v7077_v0 }
  0xaa   : > { %6375 = vmatmul.mubr.msk.f32.vlgmr.msra.gmra.mrb[36].mxu0 %vm425_vm1, %v7202_v46  ;;  %v2798_v46 = vld [vmem:[%s7527_s28 + $0x120] sm:$0xff] }
  0xab   : > { %6386 = vmatmul.mubr.msk.f32.vlgmr.msra.gmra.mrb[36].mxu1 %vm425_vm1, %v7205_v48  ;;  %6904 = vmatpush3.bf16.msra.mxu0 %v6903_v34  ;;  %v6915_v48 = vpack.c.bf16 %v2795_v5, %v2794_v4  ;;  %v6921_v7 = vpack.c.bf16 %v2799_v6, %v2798_v46  ;;  %v2816_v34 = vld [vmem:[%s7527_s28 + $0x1b0] sm:$0xff]  ;;  %v2821_v5 = vld [vmem:[%s7527_s28 + $0x1d8] sm:$0xff] }
  0xac   : > { %6910 = vmatpush3.bf16.msra.mxu1 %v6909_v51  ;;  %6905 = vmatprep.subr.bf16.mxu0 %v7077_v0  ;;  %v2817_v51 = vld [vmem:[%s7527_s28 + $0x1b8] sm:$0xff]  ;;  %v2820_v4 = vld [vmem:[%s7527_s28 + $0x1d0] sm:$0xff] }
  0xad   : > { %6911 = vmatprep.subr.bf16.mxu1 %v7077_v0  ;;  %6396 = vmatprep.mubr.msk.f32.mxu0 %vm7078_vm0, %v7079_v1  ;;  %v6948_v53 = vpack.c.bf16 %v2817_v51, %v2816_v34  ;;  %v2824_v46 = vld [vmem:[%s7527_s28 + $0x1f0] sm:$0xff]  ;;  %v2825_v6 = vld [vmem:[%s7527_s28 + $0x1f8] sm:$0xff] }
  0xae   : > { %6407 = vmatprep.mubr.msk.f32.mxu1 %vm7078_vm0, %v7079_v1  ;;  %v2848_v34 = vld [vmem:[%s7527_s28 + $0x2b0] sm:$0xff]  ;;  %v2849_v51 = vld [vmem:[%s7527_s28 + $0x2b8] sm:$0xff] }
  0xaf   : > { %6907 = vmatpush3.bf16.msra.mxu0 %v6906_v63  ;;  %v2823_v63 = vld [vmem:[%s7527_s28 + $0x1e8] sm:$0xff] }
  0xb0   : > { %6913 = vmatpush3.bf16.msra.mxu1 %v6912_v3  ;;  %6914 = vmatprep.subr.bf16.mxu0 %v7077_v0 }
  0xb1   : > { %6920 = vmatprep.subr.bf16.mxu1 %v7077_v0 }
  0xb2   : > { %6397 = vmatmul.mubr.msk.f32.vlgmr.msra.gmra.mrb[38].mxu0 %vm425_vm1, %v7228_v60  ;;  %v2806_v60 = vld [vmem:[%s7527_s28 + $0x160] sm:$0xff] }
  0xb3   : > { %6408 = vmatmul.mubr.msk.f32.vlgmr.msra.gmra.mrb[38].mxu1 %vm425_vm1, %v7231_v62  ;;  %6916 = vmatpush3.bf16.msra.mxu0 %v6915_v48  ;;  %v6927_v62 = vpack.c.bf16 %v2803_v25, %v2802_v24  ;;  %v6933_v26 = vpack.c.bf16 %v2807_v18, %v2806_v60  ;;  %v6954_v48 = vpack.c.bf16 %v2821_v5, %v2820_v4  ;;  %v2832_v24 = vld [vmem:[%s7527_s28 + $0x230] sm:$0xff]  ;;  %v2833_v25 = vld [vmem:[%s7527_s28 + $0x238] sm:$0xff] }
  0xb4   : > { %6922 = vmatpush3.bf16.msra.mxu1 %v6921_v7  ;;  %6917 = vmatprep.subr.bf16.mxu0 %v7077_v0  ;;  %v6960_v7 = vpack.c.bf16 %v2825_v6, %v2824_v46  ;;  %v6972_v18 = vpack.c.bf16 %v2833_v25, %v2832_v24  ;;  %v2856_v4 = vld [vmem:[%s7527_s28 + $0x2f0] sm:$0xff]  ;;  %v2857_v5 = vld [vmem:[%s7527_s28 + $0x2f8] sm:$0xff] }
  0xb5   : > { %6923 = vmatprep.subr.bf16.mxu1 %v7077_v0  ;;  %6418 = vmatprep.mubr.msk.f32.mxu0 %vm7078_vm0, %v7079_v1  ;;  %v7008_v6 = vpack.c.bf16 %v2857_v5, %v2856_v4  ;;  %v2864_v24 = vld [vmem:[%s7527_s28 + $0x330] sm:$0xff]  ;;  %v2865_v25 = vld [vmem:[%s7527_s28 + $0x338] sm:$0xff] }
  0xb6   : > { %6429 = vmatprep.mubr.msk.f32.mxu1 %vm7078_vm0, %v7079_v1 }
  0xb7   : > { %6919 = vmatpush3.bf16.msra.mxu0 %v6918_v21  ;;  %v2828_v21 = vld [vmem:[%s7527_s28 + $0x210] sm:$0xff] }
  0xb8   : > { %6925 = vmatpush3.bf16.msra.mxu1 %v6924_v23  ;;  %6926 = vmatprep.subr.bf16.mxu0 %v7077_v0  ;;  %v2829_v23 = vld [vmem:[%s7527_s28 + $0x218] sm:$0xff] }
  0xb9   : > { %6932 = vmatprep.subr.bf16.mxu1 %v7077_v0  ;;  %v6966_v60 = vpack.c.bf16 %v2829_v23, %v2828_v21  ;;  %v2860_v21 = vld [vmem:[%s7527_s28 + $0x310] sm:$0xff]  ;;  %v2861_v23 = vld [vmem:[%s7527_s28 + $0x318] sm:$0xff] }
  0xba   : > { %6419 = vmatmul.mubr.msk.f32.vlgmr.msra.gmra.mrb[40].mxu0 %vm425_vm1, %v7254_v12  ;;  %v2814_v12 = vld [vmem:[%s7527_s28 + $0x1a0] sm:$0xff] }
  0xbb   : > { %6430 = vmatmul.mubr.msk.f32.vlgmr.msra.gmra.mrb[40].mxu1 %vm425_vm1, %v7257_v14  ;;  %6928 = vmatpush3.bf16.msra.mxu0 %v6927_v62  ;;  %v6939_v14 = vpack.c.bf16 %v2811_v41, %v2810_v40  ;;  %v6945_v49 = vpack.c.bf16 %v2815_v43, %v2814_v12  ;;  %v2834_v62 = vld [vmem:[%s7527_s28 + $0x240] sm:$0xff]  ;;  %v6978_v40 = vpack.c.bf16 %v2837_v31, %v2836_v29  ;;  %v2843_v43 = vld [vmem:[%s7527_s28 + $0x288] sm:$0xff] }
  0xbc   : > { %6934 = vmatpush3.bf16.msra.mxu1 %v6933_v26  ;;  %6929 = vmatprep.subr.bf16.mxu0 %v7077_v0  ;;  %v2835_v26 = vld [vmem:[%s7527_s28 + $0x248] sm:$0xff]  ;;  %v2842_v12 = vld [vmem:[%s7527_s28 + $0x280] sm:$0xff] }
  0xbd   : > { %6935 = vmatprep.subr.bf16.mxu1 %v7077_v0  ;;  %6440 = vmatprep.mubr.msk.f32.mxu0 %vm7078_vm0, %v7079_v1 }
  0xbe   : > { %6451 = vmatprep.mubr.msk.f32.mxu1 %vm7078_vm0, %v7079_v1 }
  0xbf   : > { %6931 = vmatpush3.bf16.msra.mxu0 %v6930_v35  ;;  %v2840_v35 = vld [vmem:[%s7527_s28 + $0x270] sm:$0xff] }
  0xc0   : > { %6937 = vmatpush3.bf16.msra.mxu1 %v6936_v39  ;;  %6938 = vmatprep.subr.bf16.mxu0 %v7077_v0  ;;  %v2841_v39 = vld [vmem:[%s7527_s28 + $0x278] sm:$0xff] }
  0xc1   : > { %6944 = vmatprep.subr.bf16.mxu1 %v7077_v0  ;;  %v6984_v41 = vpack.c.bf16 %v2841_v39, %v2840_v35  ;;  %v2868_v35 = vld [vmem:[%s7527_s28 + $0x350] sm:$0xff]  ;;  %v2869_v39 = vld [vmem:[%s7527_s28 + $0x358] sm:$0xff] }
  0xc2   : > { %6441 = vmatmul.mubr.msk.f32.vlgmr.msra.gmra.mrb[42].mxu0 %vm425_vm1, %v7280_v28  ;;  %v2822_v28 = vld [vmem:[%s7527_s28 + $0x1e0] sm:$0xff] }
  0xc3   : > { %6452 = vmatmul.mubr.msk.f32.vlgmr.msra.gmra.mrb[42].mxu1 %vm425_vm1, %v7283_v30  ;;  %6940 = vmatpush3.bf16.msra.mxu0 %v6939_v14  ;;  %v6951_v30 = vpack.c.bf16 %v2819_v59, %v2818_v57  ;;  %v6957_v3 = vpack.c.bf16 %v2823_v63, %v2822_v28  ;;  %v2847_v14 = vld [vmem:[%s7527_s28 + $0x2a8] sm:$0xff]  ;;  %v2850_v57 = vld [vmem:[%s7527_s28 + $0x2c0] sm:$0xff] }
  0xc4   : > { %6946 = vmatpush3.bf16.msra.mxu1 %v6945_v49  ;;  %6941 = vmatprep.subr.bf16.mxu0 %v7077_v0  ;;  %v2851_v59 = vld [vmem:[%s7527_s28 + $0x2c8] sm:$0xff] }
  0xc5   : > { %6947 = vmatprep.subr.bf16.mxu1 %v7077_v0  ;;  %6462 = vmatprep.mubr.msk.f32.mxu0 %vm7078_vm0, %v7079_v1  ;;  %v2855_v28 = vld [vmem:[%s7527_s28 + $0x2e8] sm:$0xff] }
  0xc6   : > { %6473 = vmatprep.mubr.msk.f32.mxu1 %vm7078_vm0, %v7079_v1 }
  0xc7   : > { %6943 = vmatpush3.bf16.msra.mxu0 %v6942_v52  ;;  %v6990_v52 = vpack.c.bf16 %v2845_v50, %v2844_v32 }
  0xc8   : > { %6949 = vmatpush3.bf16.msra.mxu1 %v6948_v53  ;;  %6950 = vmatprep.subr.bf16.mxu0 %v7077_v0  ;;  %v6996_v53 = vpack.c.bf16 %v2849_v51, %v2848_v34 }
  0xc9   : > { %6956 = vmatprep.subr.bf16.mxu1 %v7077_v0 }
  0xca   : > { %6463 = vmatmul.mubr.msk.f32.vlgmr.msra.gmra.mrb[44].mxu0 %vm425_vm1, %v7306_v44  ;;  %v2830_v44 = vld [vmem:[%s7527_s28 + $0x220] sm:$0xff] }
  0xcb   : > { %6474 = vmatmul.mubr.msk.f32.vlgmr.msra.gmra.mrb[44].mxu1 %vm425_vm1, %v7309_v47  ;;  %6952 = vmatpush3.bf16.msra.mxu0 %v6951_v30  ;;  %v6963_v47 = vpack.c.bf16 %v2827_v9, %v2826_v8  ;;  %v6969_v15 = vpack.c.bf16 %v2831_v11, %v2830_v44  ;;  %v2852_v30 = vld [vmem:[%s7527_s28 + $0x2d0] sm:$0xff] }
  0xcc   : > { %6958 = vmatpush3.bf16.msra.mxu1 %v6957_v3  ;;  %6953 = vmatprep.subr.bf16.mxu0 %v7077_v0  ;;  %v2853_v3 = vld [vmem:[%s7527_s28 + $0x2d8] sm:$0xff] }
  0xcd   : > { %6959 = vmatprep.subr.bf16.mxu1 %v7077_v0  ;;  %6484 = vmatprep.mubr.msk.f32.mxu0 %vm7078_vm0, %v7079_v1  ;;  %v7002_v46 = vpack.c.bf16 %v2853_v3, %v2852_v30 }
  0xce   : > { %6495 = vmatprep.mubr.msk.f32.mxu1 %vm7078_vm0, %v7079_v1 }
  0xcf   : > { %6955 = vmatpush3.bf16.msra.mxu0 %v6954_v48  ;;  %v2858_v48 = vld [vmem:[%s7527_s28 + $0x300] sm:$0xff] }
  0xd0   : > { %6961 = vmatpush3.bf16.msra.mxu1 %v6960_v7  ;;  %6962 = vmatprep.subr.bf16.mxu0 %v7077_v0  ;;  %v2859_v7 = vld [vmem:[%s7527_s28 + $0x308] sm:$0xff] }
  0xd1   : > { %6968 = vmatprep.subr.bf16.mxu1 %v7077_v0 }
  0xd2   : > { %6485 = vmatmul.mubr.msk.f32.vlgmr.msra.gmra.mrb[46].mxu0 %vm425_vm1, %v7332_v61  ;;  %v2838_v61 = vld [vmem:[%s7527_s28 + $0x260] sm:$0xff] }
  0xd3   : > { %6496 = vmatmul.mubr.msk.f32.vlgmr.msra.gmra.mrb[46].mxu1 %vm425_vm1, %v7335_v2  ;;  %6964 = vmatpush3.bf16.msra.mxu0 %v6963_v47  ;;  %v6975_v2 = vpack.c.bf16 %v2835_v26, %v2834_v62  ;;  %v6981_v27 = vpack.c.bf16 %v2839_v20, %v2838_v61  ;;  %v7011_v47 = vpack.c.bf16 %v2859_v7, %v2858_v48  ;;  %v2866_v62 = vld [vmem:[%s7527_s28 + $0x340] sm:$0xff]  ;;  %v2867_v26 = vld [vmem:[%s7527_s28 + $0x348] sm:$0xff]  ;;  %v2884_v48 = vld [vmem:[%s7527_s28 + $0x3d0] sm:$0xff] }
  0xd4   : > { %6970 = vmatpush3.bf16.msra.mxu1 %v6969_v15  ;;  %6965 = vmatprep.subr.bf16.mxu0 %v7077_v0  ;;  %v7023_v29 = vpack.c.bf16 %v2867_v26, %v2866_v62  ;;  %v2885_v7 = vld [vmem:[%s7527_s28 + $0x3d8] sm:$0xff] }
  0xd5   : > { %6971 = vmatprep.subr.bf16.mxu1 %v7077_v0  ;;  %6506 = vmatprep.mubr.msk.f32.mxu0 %vm7078_vm0, %v7079_v1 }
  0xd6   : > { %6517 = vmatprep.mubr.msk.f32.mxu1 %vm7078_vm0, %v7079_v1 }
  0xd7   : > { %6967 = vmatpush3.bf16.msra.mxu0 %v6966_v60  ;;  %v7014_v60 = vpack.c.bf16 %v2861_v23, %v2860_v21 }
  0xd8   : > { %6973 = vmatpush3.bf16.msra.mxu1 %v6972_v18  ;;  %6974 = vmatprep.subr.bf16.mxu0 %v7077_v0  ;;  %v7020_v18 = vpack.c.bf16 %v2865_v25, %v2864_v24 }
  0xd9   : > { %6980 = vmatprep.subr.bf16.mxu1 %v7077_v0 }
  0xda   : > { %6507 = vmatmul.mubr.msk.f32.vlgmr.msra.gmra.mrb[48].mxu0 %vm425_vm1, %v7358_v16  ;;  %v2846_v16 = vld [vmem:[%s7527_s28 + $0x2a0] sm:$0xff] }
  0xdb   : > { %6518 = vmatmul.mubr.msk.f32.vlgmr.msra.gmra.mrb[48].mxu1 %vm425_vm1, %v7361_v19  ;;  %6976 = vmatpush3.bf16.msra.mxu0 %v6975_v2  ;;  %v6987_v19 = vpack.c.bf16 %v2843_v43, %v2842_v12  ;;  %v6993_v49 = vpack.c.bf16 %v2847_v14, %v2846_v16  ;;  %v7026_v12 = vpack.c.bf16 %v2869_v39, %v2868_v35  ;;  %v2874_v16 = vld [vmem:[%s7527_s28 + $0x380] sm:$0xff]  ;;  %v2875_v14 = vld [vmem:[%s7527_s28 + $0x388] sm:$0xff] }
  0xdc   : > { %6982 = vmatpush3.bf16.msra.mxu1 %v6981_v27  ;;  %6977 = vmatprep.subr.bf16.mxu0 %v7077_v0  ;;  %v7035_v34 = vpack.c.bf16 %v2875_v14, %v2874_v16 }
  0xdd   : > { %6983 = vmatprep.subr.bf16.mxu1 %v7077_v0  ;;  %6528 = vmatprep.mubr.msk.f32.mxu0 %vm7078_vm0, %v7079_v1 }
  0xde   : > { %6539 = vmatprep.mubr.msk.f32.mxu1 %vm7078_vm0, %v7079_v1 }
  0xdf   : > { %6979 = vmatpush3.bf16.msra.mxu0 %v6978_v40  ;;  %v2872_v40 = vld [vmem:[%s7527_s28 + $0x370] sm:$0xff] }
  0xe0   : > { %6985 = vmatpush3.bf16.msra.mxu1 %v6984_v41  ;;  %6986 = vmatprep.subr.bf16.mxu0 %v7077_v0  ;;  %v2873_v41 = vld [vmem:[%s7527_s28 + $0x378] sm:$0xff] }
  0xe1   : > { %6992 = vmatprep.subr.bf16.mxu1 %v7077_v0  ;;  %v7032_v43 = vpack.c.bf16 %v2873_v41, %v2872_v40 }
  0xe2   : > { %6529 = vmatmul.mubr.msk.f32.vlgmr.msra.gmra.mrb[50].mxu0 %vm425_vm1, %v7384_v36  ;;  %v2854_v36 = vld [vmem:[%s7527_s28 + $0x2e0] sm:$0xff] }
  0xe3   : > { %6540 = vmatmul.mubr.msk.f32.vlgmr.msra.gmra.mrb[50].mxu1 %vm425_vm1, %v7387_v38  ;;  %6988 = vmatpush3.bf16.msra.mxu0 %v6987_v19  ;;  %v6999_v38 = vpack.c.bf16 %v2851_v59, %v2850_v57  ;;  %v7005_v63 = vpack.c.bf16 %v2855_v28, %v2854_v36  ;;  %v2880_v57 = vld [vmem:[%s7527_s28 + $0x3b0] sm:$0xff]  ;;  %v2881_v59 = vld [vmem:[%s7527_s28 + $0x3b8] sm:$0xff] }
  0xe4   : > { %6994 = vmatpush3.bf16.msra.mxu1 %v6993_v49  ;;  %6989 = vmatprep.subr.bf16.mxu0 %v7077_v0  ;;  %v7044_v28 = vpack.c.bf16 %v2881_v59, %v2880_v57 }
  0xe5   : > { %6995 = vmatprep.subr.bf16.mxu1 %v7077_v0  ;;  %6550 = vmatprep.mubr.msk.f32.mxu0 %vm7078_vm0, %v7079_v1 }
  0xe6   : > { %6561 = vmatprep.mubr.msk.f32.mxu1 %vm7078_vm0, %v7079_v1 }
  0xe7   : > { %6991 = vmatpush3.bf16.msra.mxu0 %v6990_v52  ;;  %v2876_v52 = vld [vmem:[%s7527_s28 + $0x390] sm:$0xff] }
  0xe8   : > { %6997 = vmatpush3.bf16.msra.mxu1 %v6996_v53  ;;  %6998 = vmatprep.subr.bf16.mxu0 %v7077_v0  ;;  %v2877_v53 = vld [vmem:[%s7527_s28 + $0x398] sm:$0xff] }
  0xe9   : > { %7004 = vmatprep.subr.bf16.mxu1 %v7077_v0  ;;  %v7038_v36 = vpack.c.bf16 %v2877_v53, %v2876_v52 }
  0xea   : > { %6551 = vmatmul.mubr.msk.f32.vlgmr.msra.gmra.mrb[52].mxu0 %vm425_vm1, %v7410_v54  ;;  %v2862_v54 = vld [vmem:[%s7527_s28 + $0x320] sm:$0xff] }
  0xeb   : > { %6562 = vmatmul.mubr.msk.f32.vlgmr.msra.gmra.mrb[52].mxu1 %vm425_vm1, %v7413_v56  ;;  %7000 = vmatpush3.bf16.msra.mxu0 %v6999_v38  ;;  %v2863_v56 = vld [vmem:[%s7527_s28 + $0x328] sm:$0xff]  ;;  %v2882_v38 = vld [vmem:[%s7527_s28 + $0x3c0] sm:$0xff] }
  0xec   : > { %7006 = vmatpush3.bf16.msra.mxu1 %v7005_v63  ;;  %7001 = vmatprep.subr.bf16.mxu0 %v7077_v0  ;;  %v7017_v15 = vpack.c.bf16 %v2863_v56, %v2862_v54  ;;  %v2883_v63 = vld [vmem:[%s7527_s28 + $0x3c8] sm:$0xff]  ;;  %v2888_v54 = vld [vmem:[%s7527_s28 + $0x3f0] sm:$0xff]  ;;  %v2889_v56 = vld [vmem:[%s7527_s28 + $0x3f8] sm:$0xff] }
  0xed   : > { %v7785_v8 = vpop.f32.mrb[0].mxu0  ;;  %7007 = vmatprep.subr.bf16.mxu1 %v7077_v0  ;;  %6572 = vmatprep.mubr.msk.f32.mxu0 %vm7078_vm0, %v7079_v1 }
  0xee   : > { %v7792_v9 = vpop.f32.mrb[0].mxu1  ;;  %v5980_v44 = vpop.f32.mrb[1].mxu0  ;;  %6583 = vmatprep.mubr.msk.f32.mxu1 %vm7078_vm0, %v7079_v1 }
  0xef   : > { %v5991_v11 = vpop.f32.mrb[1].mxu1  ;;  %7003 = vmatpush3.bf16.msra.mxu0 %v7002_v46  ;;  %v7047_v46 = vpack.c.bf16 %v2883_v63, %v2882_v38  ;;  %v7050_v44 = vpack.c.bf16 %v2885_v7, %v2884_v48 }
  0xf0   : > { %7009 = vmatpush3.bf16.msra.mxu1 %v7008_v6  ;;  %7010 = vmatprep.subr.bf16.mxu0 %v7077_v0  ;;  %v7056_v11 = vpack.c.bf16 %v2889_v56, %v2888_v54 }
  0xf1   : > { %7016 = vmatprep.subr.bf16.mxu1 %v7077_v0 }
  0xf2   : > { %6573 = vmatmul.mubr.msk.f32.vlgmr.msra.gmra.mrb[54].mxu0 %vm425_vm1, %v7436_v10  ;;  %v2870_v10 = vld [vmem:[%s7527_s28 + $0x360] sm:$0xff] }
  0xf3   : > { %6584 = vmatmul.mubr.msk.f32.vlgmr.msra.gmra.mrb[54].mxu1 %vm425_vm1, %v7439_v13  ;;  %7012 = vmatpush3.bf16.msra.mxu0 %v7011_v47  ;;  %v2871_v13 = vld [vmem:[%s7527_s28 + $0x368] sm:$0xff] }
  0xf4   : > { %7018 = vmatpush3.bf16.msra.mxu1 %v7017_v15  ;;  %7013 = vmatprep.subr.bf16.mxu0 %v7077_v0  ;;  %v7029_v31 = vpack.c.bf16 %v2871_v13, %v2870_v10 }
  0xf5   : > { %v7809_v61 = vpop.f32.mrb[2].mxu0  ;;  %7019 = vmatprep.subr.bf16.mxu1 %v7077_v0  ;;  %6594 = vmatprep.mubr.msk.f32.mxu0 %vm7078_vm0, %v7079_v1 }
  0xf6   : > { %v7816_v20 = vpop.f32.mrb[2].mxu1  ;;  %v6002_v2 = vpop.f32.mrb[3].mxu0  ;;  %6605 = vmatprep.mubr.msk.f32.mxu1 %vm7078_vm0, %v7079_v1 }
  0xf7   : > { %v6013_v27 = vpop.f32.mrb[3].mxu1  ;;  %7015 = vmatpush3.bf16.msra.mxu0 %v7014_v60 }
  0xf8   : > { %7021 = vmatpush3.bf16.msra.mxu1 %v7020_v18  ;;  %7022 = vmatprep.subr.bf16.mxu0 %v7077_v0 }
  0xf9   : > { %7028 = vmatprep.subr.bf16.mxu1 %v7077_v0 }
  0xfa   : > { %6595 = vmatmul.mubr.msk.f32.vlgmr.msra.gmra.mrb[56].mxu0 %vm425_vm1, %v7462_v33  ;;  %v2878_v33 = vld [vmem:[%s7527_s28 + $0x3a0] sm:$0xff] }
  0xfb   : > { %6606 = vmatmul.mubr.msk.f32.vlgmr.msra.gmra.mrb[56].mxu1 %vm425_vm1, %v7465_v37  ;;  %7024 = vmatpush3.bf16.msra.mxu0 %v7023_v29  ;;  %v2879_v37 = vld [vmem:[%s7527_s28 + $0x3a8] sm:$0xff] }
  0xfc   : > { %7030 = vmatpush3.bf16.msra.mxu1 %v7029_v31  ;;  %7025 = vmatprep.subr.bf16.mxu0 %v7077_v0  ;;  %v7041_v51 = vpack.c.bf16 %v2879_v37, %v2878_v33 }
  0xfd   : > { %v7833_v19 = vpop.f32.mrb[4].mxu0  ;;  %7031 = vmatprep.subr.bf16.mxu1 %v7077_v0  ;;  %6616 = vmatprep.mubr.msk.f32.mxu0 %vm7078_vm0, %v7079_v1 }
  0xfe   : > { %v7840_v49 = vpop.f32.mrb[4].mxu1  ;;  %v6024_v32 = vpop.f32.mrb[5].mxu0  ;;  %6627 = vmatprep.mubr.msk.f32.mxu1 %vm7078_vm0, %v7079_v1 }
  0xff   : > { %v6035_v50 = vpop.f32.mrb[5].mxu1  ;;  %7027 = vmatpush3.bf16.msra.mxu0 %v7026_v12 }
 0x100   : > { %7033 = vmatpush3.bf16.msra.mxu1 %v7032_v43  ;;  %7034 = vmatprep.subr.bf16.mxu0 %v7077_v0 }
 0x101   : > { %7040 = vmatprep.subr.bf16.mxu1 %v7077_v0 }
 0x102   : > { %6617 = vmatmul.mubr.msk.f32.vlgmr.msra.gmra.mrb[58].mxu0 %vm425_vm1, %v7488_v55  ;;  %v2886_v55 = vld [vmem:[%s7527_s28 + $0x3e0] sm:$0xff] }
 0x103   : > { %6628 = vmatmul.mubr.msk.f32.vlgmr.msra.gmra.mrb[58].mxu1 %vm425_vm1, %v7491_v58  ;;  %7036 = vmatpush3.bf16.msra.mxu0 %v7035_v34  ;;  %v2887_v58 = vld [vmem:[%s7527_s28 + $0x3e8] sm:$0xff] }
 0x104   : > { %7042 = vmatpush3.bf16.msra.mxu1 %v7041_v51  ;;  %7037 = vmatprep.subr.bf16.mxu0 %v7077_v0  ;;  %v7053_v6 = vpack.c.bf16 %v2887_v58, %v2886_v55 }
 0x105   : > { %v7857_v30 = vpop.f32.mrb[6].mxu0  ;;  %7043 = vmatprep.subr.bf16.mxu1 %v7077_v0  ;;  %6638 = vmatprep.mubr.msk.f32.mxu0 %vm7078_vm0, %v7079_v1 }
 0x106   : > { %v7864_v3 = vpop.f32.mrb[6].mxu1  ;;  %v6046_v4 = vpop.f32.mrb[7].mxu0  ;;  %6649 = vmatprep.mubr.msk.f32.mxu1 %vm7078_vm0, %v7079_v1 }
 0x107   : > { %v6057_v5 = vpop.f32.mrb[7].mxu1  ;;  %7039 = vmatpush3.bf16.msra.mxu0 %v7038_v36 }
 0x108   : > { %7045 = vmatpush3.bf16.msra.mxu1 %v7044_v28  ;;  %7046 = vmatprep.subr.bf16.mxu0 %v7077_v0 }
 0x109   : > { %7052 = vmatprep.subr.bf16.mxu1 %v7077_v0 }
 0x10a   : > { %6639 = vmatmul.mubr.msk.f32.vlgmr.msra.gmra.mrb[60].mxu0 %vm425_vm1, %v7514_v17 }
 0x10b   : > { %6650 = vmatmul.mubr.msk.f32.vlgmr.msra.gmra.mrb[60].mxu1 %vm425_vm1, %v7517_v22  ;;  %7048 = vmatpush3.bf16.msra.mxu0 %v7047_v46  ;;  %v5323_v46 = vrot.slane %v7785_v8, 2 }
 0x10c   : > { %7054 = vmatpush3.bf16.msra.mxu1 %v7053_v6  ;;  %7049 = vmatprep.subr.bf16.mxu0 %v7077_v0  ;;  %v5324_v6 = vrot.slane %v7792_v9, 2 }
 0x10d   : > { %v7879_v47 = vpop.f32.mrb[8].mxu0  ;;  %7055 = vmatprep.subr.bf16.mxu1 %v7077_v0  ;;  %6660 = vmatprep.mubr.msk.f32.mxu0 %vm7078_vm0, %v7079_v1 }
 0x10e   : > { %v7884_v15 = vpop.f32.mrb[8].mxu1  ;;  %v6068_v21 = vpop.f32.mrb[9].mxu0  ;;  %6671 = vmatprep.mubr.msk.f32.mxu1 %vm7078_vm0, %v7079_v1 }
 0x10f   : > { %v6079_v17 = vpop.f32.mrb[9].mxu1  ;;  %7051 = vmatpush3.bf16.msra.mxu0 %v7050_v44 }
 0x110   : > { %7057 = vmatpush3.bf16.msra.mxu1 %v7056_v11 }
 0x112   : > { %6661 = vmatmul.mubr.msk.f32.vlgmr.msra.gmra.mrb[62].mxu0 %vm425_vm1, %v7547_v42 }
 0x113   : > { %6672 = vmatmul.mubr.msk.f32.vlgmr.msra.gmra.mrb[62].mxu1 %vm425_vm1, %v7550_v45 }
 0x115   : > { %v7892_v22 = vpop.f32.mrb[10].mxu0 }
 0x116   : > { %v7894_v0 = vpop.f32.mrb[10].mxu1  ;;  %v6090_v23 = vpop.f32.mrb[11].mxu0 }
 0x117   : > { %v6101_v24 = vpop.f32.mrb[11].mxu1 }
 0x11d   : > { %v7896_v25 = vpop.f32.mrb[12].mxu0 }
 0x11e   : > { %v7898_v60 = vpop.f32.mrb[12].mxu1  ;;  %v6112_v1 = vpop.f32.mrb[13].mxu0 }
 0x11f   : > { %v6123_v18 = vpop.f32.mrb[13].mxu1  ;;  %v5325_v1 = vrot.slane %v7809_v61, 2 }
 0x120   : > { %v5326_v18 = vrot.slane %v7816_v20, 2 }
 0x125   : > { %v7900_v62 = vpop.f32.mrb[14].mxu0 }
 0x126   : > { %v7902_v26 = vpop.f32.mrb[14].mxu1  ;;  %v6134_v42 = vpop.f32.mrb[15].mxu0 }
 0x127   : > { %v6145_v10 = vpop.f32.mrb[15].mxu1 }
 0x12d   : > { %v7904_v13 = vpop.f32.mrb[16].mxu0 }
 0x12e   : > { %v7906_v45 = vpop.f32.mrb[16].mxu1  ;;  %v6156_v2 = vpop.f32.mrb[17].mxu0 }
 0x12f   : > { %v6167_v27 = vpop.f32.mrb[17].mxu1 }
 0x135   : > { %v7908_v29 = vpop.f32.mrb[18].mxu0 }
 0x136   : > { %v7910_v31 = vpop.f32.mrb[18].mxu1  ;;  %v6178_v35 = vpop.f32.mrb[19].mxu0 }
 0x137   : > { %v6189_v39 = vpop.f32.mrb[19].mxu1 }
 0x13d   : > { %v7912_v40 = vpop.f32.mrb[20].mxu0 }
 0x13e   : > { %v7914_v41 = vpop.f32.mrb[20].mxu1  ;;  %v6200_v12 = vpop.f32.mrb[21].mxu0 }
 0x13f   : > { %v6211_v43 = vpop.f32.mrb[21].mxu1 }
 0x145   : > { %v7916_v16 = vpop.f32.mrb[22].mxu0 }
 0x146   : > { %v7918_v14 = vpop.f32.mrb[22].mxu1  ;;  %v6222_v33 = vpop.f32.mrb[23].mxu0 }
 0x147   : > { %v6233_v37 = vpop.f32.mrb[23].mxu1  ;;  %v5327_v33 = vrot.slane %v7833_v19, 2 }
 0x148   : > { %v5328_v37 = vrot.slane %v7840_v49, 2 }
 0x14d   : > { %v7920_v32 = vpop.f32.mrb[24].mxu0 }
 0x14e   : > { %v7922_v50 = vpop.f32.mrb[24].mxu1  ;;  %v6244_v34 = vpop.f32.mrb[25].mxu0 }
 0x14f   : > { %v6255_v51 = vpop.f32.mrb[25].mxu1 }
 0x155   : > { %v7924_v52 = vpop.f32.mrb[26].mxu0 }
 0x156   : > { %v7926_v53 = vpop.f32.mrb[26].mxu1  ;;  %v6266_v57 = vpop.f32.mrb[27].mxu0 }
 0x157   : > { %v6277_v59 = vpop.f32.mrb[27].mxu1 }
 0x15d   : > { %v7928_v36 = vpop.f32.mrb[28].mxu0 }
 0x15e   : > { %v7930_v28 = vpop.f32.mrb[28].mxu1  ;;  %v6288_v38 = vpop.f32.mrb[29].mxu0 }
 0x15f   : > { %v6299_v63 = vpop.f32.mrb[29].mxu1 }
 0x165   : > { %v7932_v55 = vpop.f32.mrb[30].mxu0 }
 0x166   : > { %v7934_v58 = vpop.f32.mrb[30].mxu1  ;;  %v6310_v4 = vpop.f32.mrb[31].mxu0 }
 0x167   : > { %v6321_v5 = vpop.f32.mrb[31].mxu1 }
 0x16d   : > { %v2956_v48 = vpop.f32.mrb[32].mxu0 }
 0x16e   : > { %v5162_v7 = vrot.slane %v2956_v48, 2  ;;  %v5387_v54 = vadd.f32 %v5323_v46, %v2956_v48  ;;  %v3026_v56 = vpop.f32.mrb[32].mxu1  ;;  %v6332_v44 = vpop.f32.mrb[33].mxu0  ;;  %v5329_v46 = vrot.slane %v7857_v30, 2 }
 0x16f   : > { %v5163_v11 = vrot.slane %v3026_v56, 2  ;;  %v5388_v21 = vadd.f32 %v5324_v6, %v3026_v56  ;;  %v6343_v17 = vpop.f32.mrb[33].mxu1  ;;  %v5330_v6 = vrot.slane %v7864_v3, 2 }
 0x170   : > { %v5226_v23 = vsub.f32 %v7785_v8, %v5162_v7  ;;  %5419 = vst.msk [vmem:[%s7942_s6] sm:$0x3] %vm5258_vm2, %v5387_v54 }
 0x171   : > { %v5227_v24 = vsub.f32 %v7792_v9, %v5163_v11  ;;  %5420 = vst.msk [vmem:[%s7942_s6 + $0x2] sm:$0x3] %vm5258_vm2, %v5388_v21 }
 0x172   : > { %5259 = vst.msk [vmem:[%s7947_s9] sm:$0x3] %vm5258_vm2, %v5226_v23  ;;  %v5331_v23 = vrot.slane %v7879_v47, 2 }
 0x173   : > { %5260 = vst.msk [vmem:[%s7947_s9 + $0x2] sm:$0x3] %vm5258_vm2, %v5227_v24  ;;  %v5332_v24 = vrot.slane %v7884_v15, 2 }
 0x175   : > { %v3096_v42 = vpop.f32.mrb[34].mxu0 }
 0x176   : > { %v5164_v8 = vrot.slane %v3096_v42, 2  ;;  %v5389_v10 = vadd.f32 %v5325_v1, %v3096_v42  ;;  %v3166_v2 = vpop.f32.mrb[34].mxu1  ;;  %v6354_v27 = vpop.f32.mrb[35].mxu0 }
 0x177   : > { %v5165_v35 = vrot.slane %v3166_v2, 2  ;;  %v5390_v9 = vadd.f32 %v5326_v18, %v3166_v2  ;;  %v6365_v39 = vpop.f32.mrb[35].mxu1 }
 0x178   : > { %v5228_v12 = vsub.f32 %v7809_v61, %v5164_v8  ;;  %5421 = vst.msk [vmem:[%s7942_s6 + $0x4] sm:$0x3] %vm5258_vm2, %v5389_v10  ;;  %v5334_v39 = vrot.slane %v7894_v0, 2 }
 0x179   : > { %v5229_v43 = vsub.f32 %v7816_v20, %v5165_v35  ;;  %5422 = vst.msk [vmem:[%s7942_s6 + $0x6] sm:$0x3] %vm5258_vm2, %v5390_v9  ;;  %v5333_v9 = vrot.slane %v7892_v22, 2 }
 0x17a   : > { %5261 = vst.msk [vmem:[%s7947_s9 + $0x4] sm:$0x3] %vm5258_vm2, %v5228_v12 }
 0x17b   : > { %5262 = vst.msk [vmem:[%s7947_s9 + $0x6] sm:$0x3] %vm5258_vm2, %v5229_v43 }
 0x17d   : > { %v3236_v34 = vpop.f32.mrb[36].mxu0 }
 0x17e   : > { %v5166_v61 = vrot.slane %v3236_v34, 2  ;;  %v5391_v51 = vadd.f32 %v5327_v33, %v3236_v34  ;;  %v3306_v57 = vpop.f32.mrb[36].mxu1  ;;  %v6376_v59 = vpop.f32.mrb[37].mxu0 }
 0x17f   : > { %v5167_v38 = vrot.slane %v3306_v57, 2  ;;  %v5392_v20 = vadd.f32 %v5328_v37, %v3306_v57  ;;  %v6387_v63 = vpop.f32.mrb[37].mxu1  ;;  %v5335_v59 = vrot.slane %v7896_v25, 2 }
 0x180   : > { %v5230_v4 = vsub.f32 %v7833_v19, %v5166_v61  ;;  %5423 = vst.msk [vmem:[%s7942_s6 + $0x8] sm:$0x3] %vm5258_vm2, %v5391_v51 }
 0x181   : > { %v5231_v5 = vsub.f32 %v7840_v49, %v5167_v38  ;;  %5424 = vst.msk [vmem:[%s7942_s6 + $0xa] sm:$0x3] %vm5258_vm2, %v5392_v20  ;;  %v5336_v38 = vrot.slane %v7898_v60, 2 }
 0x182   : > { %5263 = vst.msk [vmem:[%s7947_s9 + $0x8] sm:$0x3] %vm5258_vm2, %v5230_v4 }
 0x183   : > { %5264 = vst.msk [vmem:[%s7947_s9 + $0xa] sm:$0x3] %vm5258_vm2, %v5231_v5 }
 0x185   : > { %v3376_v48 = vpop.f32.mrb[38].mxu0 }
 0x186   : > { %v5168_v19 = vrot.slane %v3376_v48, 2  ;;  %v5393_v7 = vadd.f32 %v5329_v46, %v3376_v48  ;;  %v3446_v54 = vpop.f32.mrb[38].mxu1  ;;  %v6398_v56 = vpop.f32.mrb[39].mxu0 }
 0x187   : > { %v5169_v44 = vrot.slane %v3446_v54, 2  ;;  %v5394_v49 = vadd.f32 %v5330_v6, %v3446_v54  ;;  %v6409_v11 = vpop.f32.mrb[39].mxu1  ;;  %v5338_v54 = vrot.slane %v7902_v26, 2 }
 0x188   : > { %v5232_v21 = vsub.f32 %v7857_v30, %v5168_v19  ;;  %5425 = vst.msk [vmem:[%s7942_s6 + $0xc] sm:$0x3] %vm5258_vm2, %v5393_v7  ;;  %v5337_v7 = vrot.slane %v7900_v62, 2 }
 0x189   : > { %v5233_v17 = vsub.f32 %v7864_v3, %v5169_v44  ;;  %5426 = vst.msk [vmem:[%s7942_s6 + $0xe] sm:$0x3] %vm5258_vm2, %v5394_v49 }
 0x18a   : > { %5265 = vst.msk [vmem:[%s7947_s9 + $0xc] sm:$0x3] %vm5258_vm2, %v5232_v21 }
 0x18b   : > { %5266 = vst.msk [vmem:[%s7947_s9 + $0xe] sm:$0x3] %vm5258_vm2, %v5233_v17 }
 0x18d   : > { %v3516_v1 = vpop.f32.mrb[40].mxu0 }
 0x18e   : > { %v5170_v30 = vrot.slane %v3516_v1, 2  ;;  %v5395_v18 = vadd.f32 %v5331_v23, %v3516_v1  ;;  %v3586_v42 = vpop.f32.mrb[40].mxu1  ;;  %v6420_v8 = vpop.f32.mrb[41].mxu0  ;;  %v5339_v1 = vrot.slane %v7904_v13, 2 }
 0x18f   : > { %v5171_v10 = vrot.slane %v3586_v42, 2  ;;  %v5396_v3 = vadd.f32 %v5332_v24, %v3586_v42  ;;  %v6431_v2 = vpop.f32.mrb[41].mxu1 }
 0x190   : > { %v5234_v27 = vsub.f32 %v7879_v47, %v5170_v30  ;;  %5427 = vst.msk [vmem:[%s7942_s6 + $0x10] sm:$0x3] %vm5258_vm2, %v5395_v18  ;;  %v5340_v30 = vrot.slane %v7906_v45, 2 }
 0x191   : > { %v5235_v35 = vsub.f32 %v7884_v15, %v5171_v10  ;;  %5428 = vst.msk [vmem:[%s7942_s6 + $0x12] sm:$0x3] %vm5258_vm2, %v5396_v3 }
 0x192   : > { %5267 = vst.msk [vmem:[%s7947_s9 + $0x10] sm:$0x3] %vm5258_vm2, %v5234_v27 }
 0x193   : > { %5268 = vst.msk [vmem:[%s7947_s9 + $0x12] sm:$0x3] %vm5258_vm2, %v5235_v35 }
 0x195   : > { %v3656_v12 = vpop.f32.mrb[42].mxu0 }
 0x196   : > { %v5172_v47 = vrot.slane %v3656_v12, 2  ;;  %v5397_v43 = vadd.f32 %v5333_v9, %v3656_v12  ;;  %v3726_v33 = vpop.f32.mrb[42].mxu1  ;;  %v6442_v37 = vpop.f32.mrb[43].mxu0  ;;  %v5341_v9 = vrot.slane %v7908_v29, 2 }
 0x197   : > { %v5173_v34 = vrot.slane %v3726_v33, 2  ;;  %v5398_v15 = vadd.f32 %v5334_v39, %v3726_v33  ;;  %v6453_v61 = vpop.f32.mrb[43].mxu1  ;;  %v5342_v39 = vrot.slane %v7910_v31, 2 }
 0x198   : > { %v5236_v51 = vsub.f32 %v7892_v22, %v5172_v47  ;;  %5429 = vst.msk [vmem:[%s7942_s6 + $0x14] sm:$0x3] %vm5258_vm2, %v5397_v43 }
 0x199   : > { %v5237_v57 = vsub.f32 %v7894_v0, %v5173_v34  ;;  %5430 = vst.msk [vmem:[%s7942_s6 + $0x16] sm:$0x3] %vm5258_vm2, %v5398_v15 }
 0x19a   : > { %5269 = vst.msk [vmem:[%s7947_s9 + $0x14] sm:$0x3] %vm5258_vm2, %v5236_v51  ;;  %v5343_v51 = vrot.slane %v7912_v40, 2 }
 0x19b   : > { %5270 = vst.msk [vmem:[%s7947_s9 + $0x16] sm:$0x3] %vm5258_vm2, %v5237_v57  ;;  %v5344_v57 = vrot.slane %v7914_v41, 2 }
 0x19d   : > { %v3796_v20 = vpop.f32.mrb[44].mxu0 }
 0x19e   : > { %v5174_v22 = vrot.slane %v3796_v20, 2  ;;  %v5399_v63 = vadd.f32 %v5335_v59, %v3796_v20  ;;  %v3866_v4 = vpop.f32.mrb[44].mxu1  ;;  %v6464_v5 = vpop.f32.mrb[45].mxu0 }
 0x19f   : > { %v5175_v46 = vrot.slane %v3866_v4, 2  ;;  %v5400_v0 = vadd.f32 %v5336_v38, %v3866_v4  ;;  %v6475_v6 = vpop.f32.mrb[45].mxu1 }
 0x1a0   : > { %v5238_v48 = vsub.f32 %v7896_v25, %v5174_v22  ;;  %5431 = vst.msk [vmem:[%s7942_s6 + $0x18] sm:$0x3] %vm5258_vm2, %v5399_v63  ;;  %v5346_v6 = vrot.slane %v7918_v14, 2 }
 0x1a1   : > { %v5239_v19 = vsub.f32 %v7898_v60, %v5175_v46  ;;  %5432 = vst.msk [vmem:[%s7942_s6 + $0x1a] sm:$0x3] %vm5258_vm2, %v5400_v0  ;;  %v5345_v0 = vrot.slane %v7916_v16, 2 }
 0x1a2   : > { %5271 = vst.msk [vmem:[%s7947_s9 + $0x18] sm:$0x3] %vm5258_vm2, %v5238_v48 }
 0x1a3   : > { %5272 = vst.msk [vmem:[%s7947_s9 + $0x1a] sm:$0x3] %vm5258_vm2, %v5239_v19 }
 0x1a5   : > { %v3936_v56 = vpop.f32.mrb[46].mxu0 }
 0x1a6   : > { %v5176_v25 = vrot.slane %v3936_v56, 2  ;;  %v5401_v44 = vadd.f32 %v5337_v7, %v3936_v56  ;;  %v4006_v49 = vpop.f32.mrb[46].mxu1  ;;  %v6486_v11 = vpop.f32.mrb[47].mxu0 }
 0x1a7   : > { %v5177_v21 = vrot.slane %v4006_v49, 2  ;;  %v5402_v60 = vadd.f32 %v5338_v54, %v4006_v49  ;;  %v6497_v17 = vpop.f32.mrb[47].mxu1  ;;  %v5347_v11 = vrot.slane %v7920_v32, 2 }
 0x1a8   : > { %v5240_v23 = vsub.f32 %v7900_v62, %v5176_v25  ;;  %5433 = vst.msk [vmem:[%s7942_s6 + $0x1c] sm:$0x3] %vm5258_vm2, %v5401_v44 }
 0x1a9   : > { %v5241_v24 = vsub.f32 %v7902_v26, %v5177_v21  ;;  %5434 = vst.msk [vmem:[%s7942_s6 + $0x1e] sm:$0x3] %vm5258_vm2, %v5402_v60  ;;  %v5348_v21 = vrot.slane %v7922_v50, 2 }
 0x1aa   : > { %5273 = vst.msk [vmem:[%s7947_s9 + $0x1c] sm:$0x3] %vm5258_vm2, %v5240_v23 }
 0x1ab   : > { %5274 = vst.msk [vmem:[%s7947_s9 + $0x1e] sm:$0x3] %vm5258_vm2, %v5241_v24 }
 0x1ad   : > { %v4076_v18 = vpop.f32.mrb[48].mxu0 }
 0x1ae   : > { %v5178_v62 = vrot.slane %v4076_v18, 2  ;;  %v5403_v42 = vadd.f32 %v5339_v1, %v4076_v18  ;;  %v4146_v8 = vpop.f32.mrb[48].mxu1  ;;  %v6508_v10 = vpop.f32.mrb[49].mxu0 }
 0x1af   : > { %v5179_v3 = vrot.slane %v4146_v8, 2  ;;  %v5404_v26 = vadd.f32 %v5340_v30, %v4146_v8  ;;  %v6519_v2 = vpop.f32.mrb[49].mxu1  ;;  %v5350_v8 = vrot.slane %v7926_v53, 2 }
 0x1b0   : > { %v5242_v27 = vsub.f32 %v7904_v13, %v5178_v62  ;;  %5435 = vst.msk [vmem:[%s7942_s6 + $0x20] sm:$0x3] %vm5258_vm2, %v5403_v42  ;;  %v5349_v42 = vrot.slane %v7924_v52, 2 }
 0x1b1   : > { %v5243_v35 = vsub.f32 %v7906_v45, %v5179_v3  ;;  %5436 = vst.msk [vmem:[%s7942_s6 + $0x22] sm:$0x3] %vm5258_vm2, %v5404_v26 }
 0x1b2   : > { %5275 = vst.msk [vmem:[%s7947_s9 + $0x20] sm:$0x3] %vm5258_vm2, %v5242_v27 }
 0x1b3   : > { %5276 = vst.msk [vmem:[%s7947_s9 + $0x22] sm:$0x3] %vm5258_vm2, %v5243_v35 }
 0x1b5   : > { %v4216_v12 = vpop.f32.mrb[50].mxu0 }
 0x1b6   : > { %v5180_v13 = vrot.slane %v4216_v12, 2  ;;  %v5405_v47 = vadd.f32 %v5341_v9, %v4216_v12  ;;  %v4286_v43 = vpop.f32.mrb[50].mxu1  ;;  %v6530_v33 = vpop.f32.mrb[51].mxu0  ;;  %v5351_v12 = vrot.slane %v7928_v36, 2 }
 0x1b7   : > { %v5181_v37 = vrot.slane %v4286_v43, 2  ;;  %v5406_v45 = vadd.f32 %v5342_v39, %v4286_v43  ;;  %v6541_v34 = vpop.f32.mrb[51].mxu1 }
 0x1b8   : > { %v5244_v15 = vsub.f32 %v7908_v29, %v5180_v13  ;;  %5437 = vst.msk [vmem:[%s7942_s6 + $0x24] sm:$0x3] %vm5258_vm2, %v5405_v47  ;;  %v5352_v13 = vrot.slane %v7930_v28, 2 }
 0x1b9   : > { %v5245_v61 = vsub.f32 %v7910_v31, %v5181_v37  ;;  %5438 = vst.msk [vmem:[%s7942_s6 + $0x26] sm:$0x3] %vm5258_vm2, %v5406_v45 }
 0x1ba   : > { %5277 = vst.msk [vmem:[%s7947_s9 + $0x24] sm:$0x3] %vm5258_vm2, %v5244_v15 }
 0x1bb   : > { %5278 = vst.msk [vmem:[%s7947_s9 + $0x26] sm:$0x3] %vm5258_vm2, %v5245_v61 }
 0x1bd   : > { %v4356_v59 = vpop.f32.mrb[52].mxu0 }
 0x1be   : > { %v5182_v29 = vrot.slane %v4356_v59, 2  ;;  %v5407_v38 = vadd.f32 %v5343_v51, %v4356_v59  ;;  %v4426_v20 = vpop.f32.mrb[52].mxu1  ;;  %v6552_v22 = vpop.f32.mrb[53].mxu0  ;;  %v5353_v51 = vrot.slane %v7932_v55, 2 }
 0x1bf   : > { %v5183_v63 = vrot.slane %v4426_v20, 2  ;;  %v5408_v31 = vadd.f32 %v5344_v57, %v4426_v20  ;;  %v6563_v4 = vpop.f32.mrb[53].mxu1  ;;  %v5354_v57 = vrot.slane %v7934_v58, 2 }
 0x1c0   : > { %v5246_v5 = vsub.f32 %v7912_v40, %v5182_v29  ;;  %5439 = vst.msk [vmem:[%s7942_s6 + $0x28] sm:$0x3] %vm5258_vm2, %v5407_v38 }
 0x1c1   : > { %v5247_v46 = vsub.f32 %v7914_v41, %v5183_v63  ;;  %5440 = vst.msk [vmem:[%s7942_s6 + $0x2a] sm:$0x3] %vm5258_vm2, %v5408_v31 }
 0x1c2   : > { %5279 = vst.msk [vmem:[%s7947_s9 + $0x28] sm:$0x3] %vm5258_vm2, %v5246_v5 }
 0x1c3   : > { %5280 = vst.msk [vmem:[%s7947_s9 + $0x2a] sm:$0x3] %vm5258_vm2, %v5247_v46 }
 0x1c5   : > { %v4496_v48 = vpop.f32.mrb[54].mxu0 }
 0x1c6   : > { %v5184_v40 = vrot.slane %v4496_v48, 2  ;;  %v5409_v19 = vadd.f32 %v5345_v0, %v4496_v48  ;;  %v4566_v7 = vpop.f32.mrb[54].mxu1  ;;  %v6574_v54 = vpop.f32.mrb[55].mxu0 }
 0x1c7   : > { %v5185_v56 = vrot.slane %v4566_v7, 2  ;;  %v5410_v41 = vadd.f32 %v5346_v6, %v4566_v7  ;;  %v6585_v25 = vpop.f32.mrb[55].mxu1 }
 0x1c8   : > { %v5248_v44 = vsub.f32 %v7916_v16, %v5184_v40  ;;  %5441 = vst.msk [vmem:[%s7942_s6 + $0x2c] sm:$0x3] %vm5258_vm2, %v5409_v19 }
 0x1c9   : > { %v5249_v49 = vsub.f32 %v7918_v14, %v5185_v56  ;;  %5442 = vst.msk [vmem:[%s7942_s6 + $0x2e] sm:$0x3] %vm5258_vm2, %v5410_v41 }
 0x1ca   : > { %5281 = vst.msk [vmem:[%s7947_s9 + $0x2c] sm:$0x3] %vm5258_vm2, %v5248_v44 }
 0x1cb   : > { %5282 = vst.msk [vmem:[%s7947_s9 + $0x2e] sm:$0x3] %vm5258_vm2, %v5249_v49 }
 0x1cd   : > { %v4636_v60 = vpop.f32.mrb[56].mxu0 }
 0x1ce   : > { %v5186_v16 = vrot.slane %v4636_v60, 2  ;;  %v5411_v17 = vadd.f32 %v5347_v11, %v4636_v60  ;;  %v4706_v23 = vpop.f32.mrb[56].mxu1  ;;  %v6596_v24 = vpop.f32.mrb[57].mxu0 }
 0x1cf   : > { %v5187_v1 = vrot.slane %v4706_v23, 2  ;;  %v5412_v14 = vadd.f32 %v5348_v21, %v4706_v23  ;;  %v6607_v30 = vpop.f32.mrb[57].mxu1 }
 0x1d0   : > { %v5250_v18 = vsub.f32 %v7920_v32, %v5186_v16  ;;  %5443 = vst.msk [vmem:[%s7942_s6 + $0x30] sm:$0x3] %vm5258_vm2, %v5411_v17 }
 0x1d1   : > { %v5251_v62 = vsub.f32 %v7922_v50, %v5187_v1  ;;  %5444 = vst.msk [vmem:[%s7942_s6 + $0x32] sm:$0x3] %vm5258_vm2, %v5412_v14 }
 0x1d2   : > { %5283 = vst.msk [vmem:[%s7947_s9 + $0x30] sm:$0x3] %vm5258_vm2, %v5250_v18 }
 0x1d3   : > { %5284 = vst.msk [vmem:[%s7947_s9 + $0x32] sm:$0x3] %vm5258_vm2, %v5251_v62 }
 0x1d5   : > { %v4776_v10 = vpop.f32.mrb[58].mxu0 }
 0x1d6   : > { %v5188_v32 = vrot.slane %v4776_v10, 2  ;;  %v5413_v3 = vadd.f32 %v5349_v42, %v4776_v10  ;;  %v4846_v26 = vpop.f32.mrb[58].mxu1  ;;  %v6618_v2 = vpop.f32.mrb[59].mxu0 }
 0x1d7   : > { %v5189_v27 = vrot.slane %v4846_v26, 2  ;;  %v5414_v50 = vadd.f32 %v5350_v8, %v4846_v26  ;;  %v6629_v35 = vpop.f32.mrb[59].mxu1 }
 0x1d8   : > { %v5252_v9 = vsub.f32 %v7924_v52, %v5188_v32  ;;  %5445 = vst.msk [vmem:[%s7942_s6 + $0x34] sm:$0x3] %vm5258_vm2, %v5413_v3 }
 0x1d9   : > { %v5253_v39 = vsub.f32 %v7926_v53, %v5189_v27  ;;  %5446 = vst.msk [vmem:[%s7942_s6 + $0x36] sm:$0x3] %vm5258_vm2, %v5414_v50 }
 0x1da   : > { %5285 = vst.msk [vmem:[%s7947_s9 + $0x34] sm:$0x3] %vm5258_vm2, %v5252_v9 }
 0x1db   : > { %5286 = vst.msk [vmem:[%s7947_s9 + $0x36] sm:$0x3] %vm5258_vm2, %v5253_v39 }
 0x1dd   : > { %v4916_v47 = vpop.f32.mrb[60].mxu0 }
 0x1de   : > { %v5190_v52 = vrot.slane %v4916_v47, 2  ;;  %v5415_v43 = vadd.f32 %v5351_v12, %v4916_v47  ;;  %v4986_v33 = vpop.f32.mrb[60].mxu1  ;;  %v6640_v37 = vpop.f32.mrb[61].mxu0 }
 0x1df   : > { %v5191_v45 = vrot.slane %v4986_v33, 2  ;;  %v5416_v53 = vadd.f32 %v5352_v13, %v4986_v33  ;;  %v6651_v34 = vpop.f32.mrb[61].mxu1 }
 0x1e0   : > { %v5254_v15 = vsub.f32 %v7928_v36, %v5190_v52  ;;  %5447 = vst.msk [vmem:[%s7942_s6 + $0x38] sm:$0x3] %vm5258_vm2, %v5415_v43 }
 0x1e1   : > { %v5255_v61 = vsub.f32 %v7930_v28, %v5191_v45  ;;  %5448 = vst.msk [vmem:[%s7942_s6 + $0x3a] sm:$0x3] %vm5258_vm2, %v5416_v53 }
 0x1e2   : > { %5287 = vst.msk [vmem:[%s7947_s9 + $0x38] sm:$0x3] %vm5258_vm2, %v5254_v15 }
 0x1e3   : > { %5288 = vst.msk [vmem:[%s7947_s9 + $0x3a] sm:$0x3] %vm5258_vm2, %v5255_v61 }
 0x1e5   : > { %v5056_v59 = vpop.f32.mrb[62].mxu0 }
 0x1e6   : > { %v5192_v36 = vrot.slane %v5056_v59, 2  ;;  %v5417_v29 = vadd.f32 %v5353_v51, %v5056_v59  ;;  %v5126_v38 = vpop.f32.mrb[62].mxu1  ;;  %v6662_v20 = vpop.f32.mrb[63].mxu0 }
 0x1e7   : > { %v5193_v22 = vrot.slane %v5126_v38, 2  ;;  %v5418_v28 = vadd.f32 %v5354_v57, %v5126_v38  ;;  %v6673_v63 = vpop.f32.mrb[63].mxu1 }
 0x1e8   : > { %v5256_v31 = vsub.f32 %v7932_v55, %v5192_v36  ;;  %5449 = vst.msk [vmem:[%s7942_s6 + $0x3c] sm:$0x3] %vm5258_vm2, %v5417_v29 }
 0x1e9   : > { %v5257_v4 = vsub.f32 %v7934_v58, %v5193_v22  ;;  %5450 = vst.msk [vmem:[%s7942_s6 + $0x3e] sm:$0x3] %vm5258_vm2, %v5418_v28 }
 0x1ea   : > { %5289 = vst.msk [vmem:[%s7947_s9 + $0x3c] sm:$0x3] %vm5258_vm2, %v5256_v31 }
 0x1eb   : > { %5290 = vst.msk [vmem:[%s7947_s9 + $0x3e] sm:$0x3] %vm5258_vm2, %v5257_v4 }
 0x1ec PF: > { %s15_s15 = sadd.s32 1, %s7075_s15  }
 0x1ed   : > { %p12_p4 = scmp.ge.s32.totalorder %s15_s15, 6  }
 0x1ef   :  { %14 = sbr.rel (!%p12_p4) target bundleno = 1 (0x1), region = 80 }

// kernel: reverse.8
= control target key start
LH: loop header
LB: loop body
LE: loop exit
PB: predicated region body
PF: predicated region fallthrough
CT: control target
= control target key end

     0   :  { %s584_s0 = inlined_call_operand.vmem [shape: f32[2,32,18,8], index: 0, kind: input, shape index: {}]   ;;  %s585_s1 = inlined_call_operand.vmem [shape: f32[2,32,18,8], index: 1, kind: output, shape index: {}]  }
   0x1   :  { %v192_v0 = vld [vmem:[%s584_s0 + $0xa8] sm:$0xff]  ;;  %v195_v2 = vld [vmem:[%s584_s0 + $0x90] sm:$0xff]  ;;  %v199_v4 = vld [vmem:[%s584_s0 + $0x78] sm:$0xff] }
   0x2   :  { %v193_v1 = vld [vmem:[%s584_s0 + $0x168] sm:$0xff]  ;;  %4 = vst [vmem:[%s585_s1] sm:$0xff] %v192_v0  ;;  %196 = vst [vmem:[%s585_s1 + $0x18] sm:$0xff] %v195_v2  ;;  %v197_v3 = vld [vmem:[%s584_s0 + $0x150] sm:$0xff] }
   0x3   :  { %194 = vst [vmem:[%s585_s1 + $0xc0] sm:$0xff] %v193_v1  ;;  %v201_v5 = vld [vmem:[%s584_s0 + $0x138] sm:$0xff]  ;;  %198 = vst [vmem:[%s585_s1 + $0xd8] sm:$0xff] %v197_v3  ;;  %v203_v6 = vld [vmem:[%s584_s0 + $0x60] sm:$0xff] }
   0x4   :  { %200 = vst [vmem:[%s585_s1 + $0x30] sm:$0xff] %v199_v4  ;;  %202 = vst [vmem:[%s585_s1 + $0xf0] sm:$0xff] %v201_v5  ;;  %v205_v7 = vld [vmem:[%s584_s0 + $0x120] sm:$0xff]  ;;  %v207_v8 = vld [vmem:[%s584_s0 + $0x48] sm:$0xff] }
   0x5   :  { %204 = vst [vmem:[%s585_s1 + $0x48] sm:$0xff] %v203_v6  ;;  %206 = vst [vmem:[%s585_s1 + $0x108] sm:$0xff] %v205_v7  ;;  %v209_v9 = vld [vmem:[%s584_s0 + $0x108] sm:$0xff]  ;;  %v211_v10 = vld [vmem:[%s584_s0 + $0x30] sm:$0xff] }
   0x6   :  { %208 = vst [vmem:[%s585_s1 + $0x60] sm:$0xff] %v207_v8  ;;  %v213_v11 = vld [vmem:[%s584_s0 + $0xf0] sm:$0xff]  ;;  %210 = vst [vmem:[%s585_s1 + $0x120] sm:$0xff] %v209_v9  ;;  %v215_v12 = vld [vmem:[%s584_s0 + $0x18] sm:$0xff] }
   0x7   :  { %212 = vst [vmem:[%s585_s1 + $0x78] sm:$0xff] %v211_v10  ;;  %214 = vst [vmem:[%s585_s1 + $0x138] sm:$0xff] %v213_v11  ;;  %v217_v13 = vld [vmem:[%s584_s0 + $0xd8] sm:$0xff]  ;;  %v57_v14 = vld [vmem:[%s584_s0] sm:$0xff] }
   0x8   :  { %216 = vst [vmem:[%s585_s1 + $0x90] sm:$0xff] %v215_v12  ;;  %218 = vst [vmem:[%s585_s1 + $0x150] sm:$0xff] %v217_v13  ;;  %v220_v15 = vld [vmem:[%s584_s0 + $0xc0] sm:$0xff]  ;;  %v222_v16 = vld [vmem:[%s584_s0 + $0xb0] sm:$0xff] }
   0x9   :  { %219 = vst [vmem:[%s585_s1 + $0xa8] sm:$0xff] %v57_v14  ;;  %v224_v17 = vld [vmem:[%s584_s0 + $0x170] sm:$0xff]  ;;  %221 = vst [vmem:[%s585_s1 + $0x168] sm:$0xff] %v220_v15  ;;  %v226_v18 = vld [vmem:[%s584_s0 + $0x98] sm:$0xff] }
   0xa   :  { %223 = vst [vmem:[%s585_s1 + $0x8] sm:$0xff] %v222_v16  ;;  %225 = vst [vmem:[%s585_s1 + $0xc8] sm:$0xff] %v224_v17  ;;  %v228_v19 = vld [vmem:[%s584_s0 + $0x158] sm:$0xff]  ;;  %v230_v20 = vld [vmem:[%s584_s0 + $0x80] sm:$0xff] }
   0xb   :  { %227 = vst [vmem:[%s585_s1 + $0x20] sm:$0xff] %v226_v18  ;;  %229 = vst [vmem:[%s585_s1 + $0xe0] sm:$0xff] %v228_v19  ;;  %v232_v21 = vld [vmem:[%s584_s0 + $0x140] sm:$0xff]  ;;  %v234_v22 = vld [vmem:[%s584_s0 + $0x68] sm:$0xff] }
   0xc   :  { %231 = vst [vmem:[%s585_s1 + $0x38] sm:$0xff] %v230_v20  ;;  %v236_v23 = vld [vmem:[%s584_s0 + $0x128] sm:$0xff]  ;;  %233 = vst [vmem:[%s585_s1 + $0xf8] sm:$0xff] %v232_v21  ;;  %v238_v24 = vld [vmem:[%s584_s0 + $0x50] sm:$0xff] }
   0xd   :  { %235 = vst [vmem:[%s585_s1 + $0x50] sm:$0xff] %v234_v22  ;;  %237 = vst [vmem:[%s585_s1 + $0x110] sm:$0xff] %v236_v23  ;;  %v240_v25 = vld [vmem:[%s584_s0 + $0x110] sm:$0xff]  ;;  %v242_v26 = vld [vmem:[%s584_s0 + $0x38] sm:$0xff] }
   0xe   :  { %239 = vst [vmem:[%s585_s1 + $0x68] sm:$0xff] %v238_v24  ;;  %241 = vst [vmem:[%s585_s1 + $0x128] sm:$0xff] %v240_v25  ;;  %v244_v27 = vld [vmem:[%s584_s0 + $0xf8] sm:$0xff]  ;;  %v246_v28 = vld [vmem:[%s584_s0 + $0x20] sm:$0xff] }
   0xf   :  { %243 = vst [vmem:[%s585_s1 + $0x80] sm:$0xff] %v242_v26  ;;  %v248_v29 = vld [vmem:[%s584_s0 + $0xe0] sm:$0xff]  ;;  %245 = vst [vmem:[%s585_s1 + $0x140] sm:$0xff] %v244_v27  ;;  %v250_v30 = vld [vmem:[%s584_s0 + $0x8] sm:$0xff] }
  0x10   :  { %247 = vst [vmem:[%s585_s1 + $0x98] sm:$0xff] %v246_v28  ;;  %249 = vst [vmem:[%s585_s1 + $0x158] sm:$0xff] %v248_v29  ;;  %v252_v31 = vld [vmem:[%s584_s0 + $0xc8] sm:$0xff]  ;;  %v254_v32 = vld [vmem:[%s584_s0 + $0xb8] sm:$0xff] }
  0x11   :  { %251 = vst [vmem:[%s585_s1 + $0xb0] sm:$0xff] %v250_v30  ;;  %253 = vst [vmem:[%s585_s1 + $0x170] sm:$0xff] %v252_v31  ;;  %v256_v33 = vld [vmem:[%s584_s0 + $0x178] sm:$0xff]  ;;  %v258_v34 = vld [vmem:[%s584_s0 + $0xa0] sm:$0xff] }
  0x12   :  { %255 = vst [vmem:[%s585_s1 + $0x10] sm:$0xff] %v254_v32  ;;  %v260_v35 = vld [vmem:[%s584_s0 + $0x160] sm:$0xff]  ;;  %257 = vst [vmem:[%s585_s1 + $0xd0] sm:$0xff] %v256_v33  ;;  %v262_v36 = vld [vmem:[%s584_s0 + $0x88] sm:$0xff] }
  0x13   :  { %259 = vst [vmem:[%s585_s1 + $0x28] sm:$0xff] %v258_v34  ;;  %261 = vst [vmem:[%s585_s1 + $0xe8] sm:$0xff] %v260_v35  ;;  %v264_v37 = vld [vmem:[%s584_s0 + $0x148] sm:$0xff]  ;;  %v266_v38 = vld [vmem:[%s584_s0 + $0x70] sm:$0xff] }
  0x14   :  { %263 = vst [vmem:[%s585_s1 + $0x40] sm:$0xff] %v262_v36  ;;  %265 = vst [vmem:[%s585_s1 + $0x100] sm:$0xff] %v264_v37  ;;  %v268_v39 = vld [vmem:[%s584_s0 + $0x130] sm:$0xff]  ;;  %v270_v40 = vld [vmem:[%s584_s0 + $0x58] sm:$0xff] }
  0x15   :  { %267 = vst [vmem:[%s585_s1 + $0x58] sm:$0xff] %v266_v38  ;;  %v272_v41 = vld [vmem:[%s584_s0 + $0x118] sm:$0xff]  ;;  %269 = vst [vmem:[%s585_s1 + $0x118] sm:$0xff] %v268_v39  ;;  %v274_v42 = vld [vmem:[%s584_s0 + $0x40] sm:$0xff] }
  0x16   :  { %271 = vst [vmem:[%s585_s1 + $0x70] sm:$0xff] %v270_v40  ;;  %273 = vst [vmem:[%s585_s1 + $0x130] sm:$0xff] %v272_v41  ;;  %v276_v43 = vld [vmem:[%s584_s0 + $0x100] sm:$0xff]  ;;  %v278_v44 = vld [vmem:[%s584_s0 + $0x28] sm:$0xff] }
  0x17   :  { %275 = vst [vmem:[%s585_s1 + $0x88] sm:$0xff] %v274_v42  ;;  %277 = vst [vmem:[%s585_s1 + $0x148] sm:$0xff] %v276_v43  ;;  %v280_v45 = vld [vmem:[%s584_s0 + $0xe8] sm:$0xff]  ;;  %v282_v46 = vld [vmem:[%s584_s0 + $0x10] sm:$0xff] }
  0x18   :  { %279 = vst [vmem:[%s585_s1 + $0xa0] sm:$0xff] %v278_v44  ;;  %v284_v47 = vld [vmem:[%s584_s0 + $0xd0] sm:$0xff]  ;;  %281 = vst [vmem:[%s585_s1 + $0x160] sm:$0xff] %v280_v45 }
  0x19   :  { %283 = vst [vmem:[%s585_s1 + $0xb8] sm:$0xff] %v282_v46  ;;  %285 = vst [vmem:[%s585_s1 + $0x178] sm:$0xff] %v284_v47 }

// kernel: fno2d_forward.12
= control target key start
LH: loop header
LB: loop body
LE: loop exit
PB: predicated region body
PF: predicated region fallthrough
CT: control target
= control target key end

     0   :  { %s1425_s15 = smov 0   ;;  %s1427_s16 = smov 0   ;;  %s1856_s0 = inlined_call_operand.vmem [shape: f32[162,128], index: 0, kind: input, shape index: {}]   ;;  %s1857_s1 = inlined_call_operand.vmem [shape: f32[128,128], index: 1, kind: input, shape index: {}]   ;;  %s1858_s2 = inlined_call_operand.vmem [shape: f32[1,128], index: 2, kind: input, shape index: {}]   ;;  %s1859_s3 = inlined_call_operand.vmem [shape: f32[162,128], index: 3, kind: input, shape index: {}]   ;;  %s1860_s4 = inlined_call_operand.vmem [shape: f32[162,128], index: 4, kind: output, shape index: {}]  }
   0x1   :  { %s1429_s17 = smov 0  }
   0x2 LB: > { %s1438_s18 = sadd.s32 4294967295, %s1362_s17   ;;  %s1440_s19 = sadd.s32 1, %s1362_s17   ;;  %s1362_s17 = sphi %s1429_s17, %s1867_s17   ;;  %s1358_s16 = sphi %s1427_s16, %s1866_s16   ;;  %s1354_s15 = sphi %s1425_s15, %s1865_s15  }
   0x3   : > { %s112_s20 = ssub.s32 %s1362_s17, %s1440_s19  ;;  %s115_s21 = sadd.s32 1, %s1358_s16 }
   0x4   : > { %p113_p0 = scmp.eq.s32.totalorder %s112_s20, 0  ;;  %p125_p1 = scmp.ne.s32.totalorder %s1358_s16, %s1354_s15 }
   0x5   : > { %p126_p2 = scmp.eq.s32.totalorder %s1438_s18, 1  ;;  %p1017_p3 = scmp.ge.s32.totalorder %s1362_s17, 1 }
   0x6   : > { %s1448_s22 = scalar_select %p113_p0, %s1358_s16, %s115_s21  }
   0x7   : > { %p1450_p4 = por %p126_p2, %p125_p1  ;;  %p190_p5 = scmp.lt.s32.totalorder %s1362_s17, 3 }
   0x9   : > { %p191_p6 = pnand %p1017_p3, %p190_p5 }
   0xa   : > { %v272_v0 = vld [vmem:[%s1857_s1] sm:$0xff] (!%p191_p6)  ;;  %v273_v1 = vld [vmem:[%s1857_s1 + $0x8] sm:$0xff] (!%p191_p6)  ;;  %v274_v2 = vld [vmem:[%s1857_s1 + $0x10] sm:$0xff] (!%p191_p6)  ;;  %v1396_v3 = vmov (!%p191_p6), 0.0|0.0   ;;  %vm1397_vm0 = vmmov (!%p191_p6), 0   ;;  %v1398_v6 = vmov (!%p191_p6), 0.0  }
   0xb   : > { %194 = sbr.rel (%p191_p6) target bundleno = 424 (0x1a8), region = 36  ;;  %1126 = vmatprep.subr.bf16.mxu0 (!%p191_p6), %v1396_v3  ;;  %1150 = vmatprep.subr.bf16.mxu1 (!%p191_p6), %v1396_v3  ;;  %v1127_v4 = vpack.c.bf16 (!%p191_p6), %v273_v1, %v272_v0  ;;  %v275_v5 = vld [vmem:[%s1857_s1 + $0x18] sm:$0xff] (!%p191_p6)  ;;  %v276_v8 = vld [vmem:[%s1857_s1 + $0x20] sm:$0xff] (!%p191_p6)  ;;  %v277_v9 = vld [vmem:[%s1857_s1 + $0x28] sm:$0xff] (!%p191_p6)  ;;  %s225_s28 = sand.u32 (!%p191_p6), 1, %s1354_s15  }
   0xc   : > { %1093 = vmatprep.mubr.msk.f32.mxu0 (!%p191_p6), %vm1397_vm0, %v1398_v6  ;;  %1111 = vmatprep.mubr.msk.f32.mxu1 (!%p191_p6), %vm1397_vm0, %v1398_v6  ;;  %v1130_v7 = vpack.c.bf16 (!%p191_p6), %v275_v5, %v274_v2  ;;  %v1133_v10 = vpack.c.bf16 (!%p191_p6), %v277_v9, %v276_v8  ;;  %v278_v11 = vld [vmem:[%s1857_s1 + $0x30] sm:$0xff] (!%p191_p6)  ;;  %v279_v12 = vld [vmem:[%s1857_s1 + $0x38] sm:$0xff] (!%p191_p6)  ;;  %v280_v14 = vld [vmem:[%s1857_s1 + $0x40] sm:$0xff] (!%p191_p6)  ;;  %s1489_s24 = smul.u32 (!%p191_p6), 11, %s1438_s18 }
   0xd   : > { %1128 = vmatpush3.bf16.msra.mxu0 (!%p191_p6), %v1127_v4  ;;  %1158 = vmatpush3.bf16.msra.mxu1 (!%p191_p6), %v1127_v4  ;;  %v1136_v13 = vpack.c.bf16 (!%p191_p6), %v279_v12, %v278_v11  ;;  %v281_v15 = vld [vmem:[%s1857_s1 + $0x48] sm:$0xff] (!%p191_p6)  ;;  %v282_v17 = vld [vmem:[%s1857_s1 + $0x50] sm:$0xff] (!%p191_p6)  ;;  %v283_v18 = vld [vmem:[%s1857_s1 + $0x58] sm:$0xff] (!%p191_p6)  ;;  %s1705_s15 = smul.u32 (!%p191_p6), 88, %s225_s28 }
   0xe   : > { %1129 = vmatprep.subr.bf16.mxu0 (!%p191_p6), %v1396_v3  ;;  %1151 = vmatprep.subr.bf16.mxu1 (!%p191_p6), %v1396_v3  ;;  %v1139_v16 = vpack.c.bf16 (!%p191_p6), %v281_v15, %v280_v14  ;;  %p233_p7 = scmp.lt.s32.totalorder (!%p191_p6), %s1489_s24, 20  ;;  %v1142_v19 = vpack.c.bf16 (!%p191_p6), %v283_v18, %v282_v17  ;;  %v284_v20 = vld [vmem:[%s1857_s1 + $0x60] sm:$0xff] (!%p191_p6)  ;;  %v285_v21 = vld [vmem:[%s1857_s1 + $0x68] sm:$0xff] (!%p191_p6)  ;;  %v286_v23 = vld [vmem:[%s1857_s1 + $0x70] sm:$0xff] (!%p191_p6) }
   0xf   : > { %v1145_v22 = vpack.c.bf16 (!%p191_p6), %v285_v21, %v284_v20  ;;  %v287_v24 = vld [vmem:[%s1857_s1 + $0x78] sm:$0xff] (!%p191_p6)  ;;  %v1560_v37 = vld [vmem:[%s1858_s2] ss:$0 sm:$0xff] (!%p191_p6)  ;;  %s1729_s29 = scalar_lea.vmem (!%p191_p6), [#allocation2], %s1705_s15  }
  0x10   : > { %v1148_v25 = vpack.c.bf16 (!%p191_p6), %v287_v24, %v286_v23 }
  0x11   : > { %1131 = vmatpush3.bf16.msra.mxu0 (!%p191_p6), %v1130_v7  ;;  %1159 = vmatpush3.bf16.msra.mxu1 (!%p191_p6), %v1130_v7 }
  0x12   : > { %1132 = vmatprep.subr.bf16.mxu0 %v1396_v3  ;;  %1152 = vmatprep.subr.bf16.mxu1 %v1396_v3  ;;  %s1505_s7 = scalar_select %p233_p7, %s1489_s24, 20 }
  0x13   : > { %s753_s30 = ssub.s32 (%p1450_p4), 21, %s1489_s24  ;;  %s1033_s5 = smul.u32 (%p1450_p4), 88, %s1438_s18 }
  0x14   : > { %s1018_s12 = sshll.u32 %s1505_s7, 3  ;;  %p754_p8 = scmp.lt.s32.totalorder (%p1450_p4), %s753_s30, 11 }
  0x15   : > { %1134 = vmatpush3.bf16.msra.mxu0 %v1133_v10  ;;  %1160 = vmatpush3.bf16.msra.mxu1 %v1133_v10  ;;  %s1519_s17 = scalar_lea.vmem %s1856_s0, %s1018_s12  ;;  %s1555_s25 = scalar_lea.vmem %s1859_s3, %s1018_s12 }
  0x16   : > { %1135 = vmatprep.subr.bf16.mxu0 %v1396_v3  ;;  %1153 = vmatprep.subr.bf16.mxu1 %v1396_v3  ;;  %v261_v26 = vld [vmem:[%s1519_s17] sm:$0xff]  ;;  %v267_v27 = vld [vmem:[%s1519_s17 + $0x30] sm:$0xff]  ;;  %v262_v28 = vld [vmem:[%s1519_s17 + $0x8] sm:$0xff]  ;;  %s1804_s8 = scalar_lea.vmem (%p1450_p4), %s1860_s4, %s1033_s5  }
  0x17   : > { %v268_v29 = vld [vmem:[%s1519_s17 + $0x38] sm:$0xff]  ;;  %v263_v30 = vld [vmem:[%s1519_s17 + $0x10] sm:$0xff]  ;;  %v269_v31 = vld [vmem:[%s1519_s17 + $0x40] sm:$0xff] }
  0x18   : > { %v264_v32 = vld [vmem:[%s1519_s17 + $0x18] sm:$0xff]  ;;  %v270_v33 = vld [vmem:[%s1519_s17 + $0x48] sm:$0xff]  ;;  %v265_v34 = vld [vmem:[%s1519_s17 + $0x20] sm:$0xff] }
  0x19   : > { %1137 = vmatpush3.bf16.msra.mxu0 %v1136_v13  ;;  %1161 = vmatpush3.bf16.msra.mxu1 %v1136_v13  ;;  %v271_v35 = vld [vmem:[%s1519_s17 + $0x50] sm:$0xff]  ;;  %v266_v36 = vld [vmem:[%s1519_s17 + $0x28] sm:$0xff]  ;;  %v415_v39 = vld [vmem:[%s1555_s25] sm:$0xff] }
  0x1a   : > { %1138 = vmatprep.subr.bf16.mxu0 %v1396_v3  ;;  %1154 = vmatprep.subr.bf16.mxu1 %v1396_v3  ;;  %v421_v41 = vld [vmem:[%s1555_s25 + $0x30] sm:$0xff]  ;;  %v416_v52 = vld [vmem:[%s1555_s25 + $0x8] sm:$0xff]  ;;  %v422_v53 = vld [vmem:[%s1555_s25 + $0x38] sm:$0xff] }
  0x1b   : > { %v417_v14 = vld [vmem:[%s1555_s25 + $0x10] sm:$0xff]  ;;  %v423_v21 = vld [vmem:[%s1555_s25 + $0x40] sm:$0xff] }
  0x1d   : > { %1140 = vmatpush3.bf16.msra.mxu0 %v1139_v16  ;;  %1162 = vmatpush3.bf16.msra.mxu1 %v1139_v16 }
  0x1e   : > { %1141 = vmatprep.subr.bf16.mxu0 %v1396_v3  ;;  %1155 = vmatprep.subr.bf16.mxu1 %v1396_v3 }
  0x21   : > { %1143 = vmatpush3.bf16.msra.mxu0 %v1142_v19  ;;  %1163 = vmatpush3.bf16.msra.mxu1 %v1142_v19 }
  0x22   : > { %1144 = vmatprep.subr.bf16.mxu0 %v1396_v3  ;;  %1156 = vmatprep.subr.bf16.mxu1 %v1396_v3 }
  0x25   : > { %1146 = vmatpush3.bf16.msra.mxu0 %v1145_v22  ;;  %1164 = vmatpush3.bf16.msra.mxu1 %v1145_v22 }
  0x26   : > { %1147 = vmatprep.subr.bf16.mxu0 %v1396_v3  ;;  %1157 = vmatprep.subr.bf16.mxu1 %v1396_v3 }
  0x29   : > { %1149 = vmatpush3.bf16.msra.mxu0 %v1148_v25  ;;  %1165 = vmatpush3.bf16.msra.mxu1 %v1148_v25 }
  0x2c   : > { %1094 = vmatmul.mubr.f32.vlgmr.msra.gmra.mrb[0].mxu0 %v261_v26  ;;  %1112 = vmatmul.mubr.f32.vlgmr.msra.gmra.mrb[0].mxu1 %v267_v27 }
  0x2d   : > { %1096 = vmatprep.mubr.msk.f32.mxu0 %vm1397_vm0, %v1398_v6  ;;  %1114 = vmatprep.mubr.msk.f32.mxu1 %vm1397_vm0, %v1398_v6 }
  0x30   : > { %1097 = vmatmul.mubr.f32.gmra.mrb[2].mxu0 %v262_v28  ;;  %1115 = vmatmul.mubr.f32.gmra.mrb[2].mxu1 %v268_v29 }
  0x31   : > { %1099 = vmatprep.mubr.msk.f32.mxu0 %vm1397_vm0, %v1398_v6  ;;  %1117 = vmatprep.mubr.msk.f32.mxu1 %vm1397_vm0, %v1398_v6 }
  0x34   : > { %1100 = vmatmul.mubr.f32.gmra.mrb[4].mxu0 %v263_v30  ;;  %1118 = vmatmul.mubr.f32.gmra.mrb[4].mxu1 %v269_v31  ;;  %v418_v31 = vld [vmem:[%s1555_s25 + $0x18] sm:$0xff] }
  0x35   : > { %1102 = vmatprep.mubr.msk.f32.mxu0 %vm1397_vm0, %v1398_v6  ;;  %1120 = vmatprep.mubr.msk.f32.mxu1 %vm1397_vm0, %v1398_v6 }
  0x38   : > { %1103 = vmatmul.mubr.f32.gmra.mrb[6].mxu0 %v264_v32  ;;  %1121 = vmatmul.mubr.f32.gmra.mrb[6].mxu1 %v270_v33 }
  0x39   : > { %1105 = vmatprep.mubr.msk.f32.mxu0 %vm1397_vm0, %v1398_v6  ;;  %1123 = vmatprep.mubr.msk.f32.mxu1 %vm1397_vm0, %v1398_v6 }
  0x3c   : > { %1106 = vmatmul.mubr.f32.gmra.mrb[8].mxu0 %v265_v34  ;;  %1124 = vmatmul.mubr.f32.gmra.mrb[8].mxu1 %v271_v35 }
  0x3d   : > { %1108 = vmatprep.mubr.msk.f32.mxu0 %vm1397_vm0, %v1398_v6 }
  0x40   : > { %1109 = vmatmul.mubr.f32.gmra.mrb[10].mxu0 %v266_v36 }
  0xff   : > { %v361_v38 = vpop.f32.mrb[0].mxu0  ;;  %v391_v40 = vpop.f32.mrb[0].mxu1 }
 0x100   : > { %v362_v42 = vadd.f32 %v1560_v37, %v361_v38  ;;  %v392_v43 = vadd.f32 %v1560_v37, %v391_v40  ;;  %v1095_v44 = vpop.f32.mrb[1].mxu0  ;;  %v1113_v45 = vpop.f32.mrb[1].mxu1  ;;  %v424_v38 = vld [vmem:[%s1555_s25 + $0x48] sm:$0xff] }
 0x102   : > { %v426_v46 = vadd.f32 %v415_v39, %v362_v42  ;;  %v432_v47 = vadd.f32 %v421_v41, %v392_v43  ;;  %v1399_v42 = vmov -1.0  }
 0x103   : > { %v366_v48 = vpop.f32.mrb[2].mxu0  ;;  %v396_v49 = vpop.f32.mrb[2].mxu1 }
 0x104   : > { %v1566_v50 = vmul.f32 0.70710677, %v426_v46  ;;  %v1568_v51 = vmul.f32 0.70710677, %v432_v47  ;;  %v367_v54 = vadd.f32 %v1560_v37, %v366_v48  ;;  %v397_v55 = vadd.f32 %v1560_v37, %v396_v49  ;;  %v1098_v56 = vpop.f32.mrb[3].mxu0  ;;  %v1116_v57 = vpop.f32.mrb[3].mxu1 }
 0x105   : > { %v1585_v12 = vmul.f32 0.5, %v426_v46  ;;  %v1588_v17 = vmul.f32 0.5, %v432_v47 }
 0x106   : > { %v481_v58 = vand.u32 2147483647, %v1566_v50  ;;  %v487_v59 = vand.u32 2147483647, %v1568_v51  ;;  %v427_v60 = vadd.f32 %v416_v52, %v367_v54  ;;  %v1576_v61 = vadd.f32 %v422_v53, %v397_v55 }
 0x107   : > { %v371_v62 = vpop.f32.mrb[4].mxu0  ;;  %v401_v63 = vpop.f32.mrb[4].mxu1  ;;  %vm459_vm1 = vcmp.ge.f32.partialorder %v1566_v50, 0.0  ;;  %vm465_vm2 = vcmp.ge.f32.partialorder %v1568_v51, 0.0 }
 0x108   : > { %v492_v0 = vmul.f32 0.3275911, %v481_v58  ;;  %v498_v1 = vmul.f32 0.3275911, %v487_v59  ;;  %v1578_v2 = vmul.f32 0.70710677, %v427_v60  ;;  %v372_v20 = vadd.f32 %v1560_v37, %v371_v62 }
 0x109   : > { %v1581_v3 = vmul.f32 0.70710677, %v1576_v61  ;;  %v1101_v6 = vpop.f32.mrb[5].mxu0  ;;  %v1119_v7 = vpop.f32.mrb[5].mxu1  ;;  %v635_v10 = vsub.f32 0.0, %v481_v58  ;;  %v641_v18 = vsub.f32 0.0, %v487_v59  ;;  %v402_v24 = vadd.f32 %v1560_v37, %v401_v63 }
 0x10a   : > { %v503_v4 = vadd.f32 1.0, %v492_v0  ;;  %v509_v5 = vadd.f32 1.0, %v498_v1  ;;  %v482_v8 = vand.u32 2147483647, %v1578_v2  ;;  %v1599_v29 = vadd.f32 %v417_v14, %v372_v20 }
 0x10b   : > { %v488_v9 = vand.u32 2147483647, %v1581_v3  ;;  %v376_v11 = vpop.f32.mrb[6].mxu0  ;;  %v406_v15 = vpop.f32.mrb[6].mxu1  ;;  %v646_v27 = vmul.f32 %v635_v10, %v481_v58  ;;  %v1603_v35 = vadd.f32 %v423_v21, %v402_v24  ;;  %v652_v39 = vmul.f32 %v641_v18, %v487_v59 }
 0x10c   : > { %1260 = vrcp.f32 %v503_v4  ;;  %v493_v13 = vmul.f32 0.3275911, %v482_v8  ;;  %v1104_v16 = vpop.f32.mrb[7].mxu0  ;;  %v1122_v22 = vpop.f32.mrb[7].mxu1  ;;  %v377_v30 = vadd.f32 %v1560_v37, %v376_v11  ;;  %v636_v34 = vsub.f32 0.0, %v482_v8 }
 0x10d   : > { %1262 = vrcp.f32 %v509_v5  ;;  %v499_v19 = vmul.f32 0.3275911, %v488_v9  ;;  %v407_v36 = vadd.f32 %v1560_v37, %v406_v15  ;;  %v642_v40 = vsub.f32 0.0, %v488_v9 }
 0x10e   : > { %v504_v23 = vadd.f32 1.0, %v493_v13  ;;  %v1608_v41 = vmul.f32 0.70710677, %v1599_v29  ;;  %v1613_v43 = vsel %vm459_vm1, 1.0, %v1399_v42  ;;  %v1618_v44 = vsel %vm465_vm2, 1.0, %v1399_v42 }
 0x10f   : > { %v1595_v25 = vpop.f32.mrb[8].mxu0  ;;  %v1597_v26 = vpop.f32.mrb[8].mxu1  ;;  %v510_v28 = vadd.f32 1.0, %v499_v19  ;;  %v1621_v45 = vmul.f32 0.70710677, %v1603_v35  ;;  %v1623_v46 = vadd.f32 %v418_v31, %v377_v30  ;;  %v1627_v48 = vmul.f32 0.5, %v427_v60 }
 0x110   : > { %v1107_v32 = vpop.f32.mrb[9].mxu0  ;;  %v1125_v33 = vpop.f32.mrb[9].mxu1  ;;  %1264 = vrcp.f32 %v504_v23  ;;  %vm460_vm3 = vcmp.ge.f32.partialorder %v1578_v2, 0.0  ;;  %v483_v49 = vand.u32 2147483647, %v1608_v41  ;;  %v1631_v50 = vadd.f32 %v424_v38, %v407_v36 }
 0x111   : > { %1266 = vrcp.f32 %v510_v28  ;;  %v657_v53 = vmul.f32 1.442695, %v646_v27  ;;  %v647_v51 = vmul.f32 %v636_v34, %v482_v8  ;;  %vm466_vm4 = vcmp.ge.f32.partialorder %v1581_v3, 0.0 }
 0x112   : > { %v489_v54 = vand.u32 2147483647, %v1621_v45  ;;  %v669_v56 = vmul.f32 1.442695, %v652_v39  ;;  %v653_v57 = vmul.f32 %v642_v40, %v488_v9  ;;  %v494_v58 = vmul.f32 0.3275911, %v483_v49 }
 0x113   : > { %v1625_v47 = vpop.f32.mrb[10].mxu0  ;;  %v1638_v59 = vmul.f32 0.70710677, %v1623_v46  ;;  %v1644_v63 = vmul.f32 0.5, %v1576_v61  ;;  %v637_v0 = vsub.f32 0.0, %v483_v49  ;;  %v1650_v4 = vsel %vm460_vm3, 1.0, %v1399_v42 }
 0x114   : > { %v1110_v52 = vpop.f32.mrb[11].mxu0  ;;  %v500_v1 = vmul.f32 0.3275911, %v489_v54  ;;  %v1653_v5 = vsel %vm466_vm4, 1.0, %v1399_v42  ;;  %v505_v6 = vadd.f32 1.0, %v494_v58  ;;  %1268 = vpow2.f32 %v657_v53 }
 0x115   : > { %v659_v8 = vmul.f32 1.442695, %v647_v51  ;;  %v671_v61 = vmul.f32 1.442695, %v653_v57  ;;  %v484_v11 = vand.u32 2147483647, %v1638_v59  ;;  %v648_v2 = vmul.f32 %v637_v0, %v483_v49 }
 0x116   : > { %v1635_v55 = vpop.eup %1260  ;;  %v511_v9 = vadd.f32 1.0, %v500_v1  ;;  %1270 = vrcp.f32 %v505_v6  ;;  %v643_v15 = vsub.f32 0.0, %v489_v54  ;;  %v1664_v21 = vmul.f32 0.70710677, %v1631_v50  ;;  %v419_v51 = vld [vmem:[%s1555_s25 + $0x20] sm:$0xff] }
 0x117   : > { %v1640_v60 = vpop.eup %1262  ;;  %v536_v62 = vmul.f32 1.0614054, %v1635_v55  ;;  %v495_v20 = vmul.f32 0.3275911, %v484_v11  ;;  %v638_v24 = vsub.f32 0.0, %v484_v11  ;;  %v382_v53 = vadd.f32 %v1560_v37, %v1595_v25 }
 0x118   : > { %v542_v3 = vmul.f32 1.0614054, %v1640_v60  ;;  %1272 = vrcp.f32 %v511_v9  ;;  %v661_v33 = vmul.f32 1.442695, %v648_v2  ;;  %v654_v34 = vmul.f32 %v643_v15, %v489_v54 }
 0x119   : > { %v547_v7 = vadd.f32 -1.4531521, %v536_v62  ;;  %1274 = vpow2.f32 %v669_v56  ;;  %v506_v30 = vadd.f32 1.0, %v495_v20  ;;  %v1671_v39 = vand.u32 2147483647, %v1664_v21 }
 0x11a   : > { %v553_v10 = vadd.f32 -1.4531521, %v542_v3  ;;  %v1656_v13 = vpop.eup %1264  ;;  %1276 = vpow2.f32 %v659_v8  ;;  %v649_v52 = vmul.f32 %v638_v24, %v484_v11  ;;  %v673_v1 = vmul.f32 1.442695, %v654_v34 }
 0x11b   : > { %v558_v14 = vmul.f32 %v1635_v55, %v547_v7  ;;  %v1659_v16 = vpop.eup %1266  ;;  %v537_v19 = vmul.f32 1.0614054, %v1656_v13  ;;  %1278 = vrcp.f32 %v506_v30  ;;  %v501_v54 = vmul.f32 0.3275911, %v1671_v39 }
 0x11c   : > { %v564_v18 = vmul.f32 %v1640_v60, %v553_v10  ;;  %v543_v23 = vmul.f32 1.0614054, %v1659_v16  ;;  %1280 = vpow2.f32 %v671_v61  ;;  %v1683_v25 = vadd.f32 %v419_v51, %v382_v53 }
 0x11d   : > { %v569_v22 = vadd.f32 1.4214138, %v558_v14  ;;  %v548_v28 = vadd.f32 -1.4531521, %v537_v19  ;;  %1282 = vpow2.f32 %v661_v33  ;;  %v512_v8 = vadd.f32 1.0, %v501_v54 }
 0x11e   : > { %v575_v27 = vadd.f32 1.4214138, %v564_v18  ;;  %v554_v32 = vadd.f32 -1.4531521, %v543_v23  ;;  %v1269_v58 = vpop.eup %1268  ;;  %v663_v14 = vmul.f32 1.442695, %v649_v52  ;;  %v412_v24 = vadd.f32 %v1560_v37, %v1597_v26 }
 0x11f   : > { %v580_v31 = vmul.f32 %v1635_v55, %v569_v22  ;;  %v559_v38 = vmul.f32 %v1656_v13, %v548_v28  ;;  %1284 = vrcp.f32 %v512_v8  ;;  %vm461_vm5 = vcmp.ge.f32.partialorder %v1608_v41, 0.0 }
 0x120   : > { %v586_v36 = vmul.f32 %v1640_v60, %v575_v27  ;;  %v565_v49 = vmul.f32 %v1659_v16, %v554_v32  ;;  %v1679_v3 = vpop.eup %1270  ;;  %1286 = vpow2.f32 %v673_v1  ;;  %v425_v32 = vld [vmem:[%s1555_s25 + $0x50] sm:$0xff]  ;;  %vm467_vm6 = vcmp.ge.f32.partialorder %v1621_v45, 0.0 }
 0x121   : > { %v591_v40 = vadd.f32 -0.28449672, %v580_v31  ;;  %v570_v57 = vadd.f32 1.4214138, %v559_v38  ;;  %v538_v11 = vmul.f32 1.0614054, %v1679_v3  ;;  %1288 = vpow2.f32 %v663_v14 }
 0x122   : > { %v597_v56 = vadd.f32 -0.28449672, %v586_v36  ;;  %v576_v0 = vadd.f32 1.4214138, %v565_v49  ;;  %v1685_v9 = vpop.eup %1272  ;;  %v1703_v51 = vadd.f32 %v425_v32, %v412_v24  ;;  %vm462_vm7 = vcmp.ge.f32.partialorder %v1638_v59, 0.0 }
 0x123   : > { %v602_v62 = vmul.f32 %v1635_v55, %v591_v40  ;;  %v581_v7 = vmul.f32 %v1656_v13, %v570_v57  ;;  %v544_v18 = vmul.f32 1.0614054, %v1685_v9  ;;  %v1275_v19 = vpop.eup %1274  ;;  %v549_v23 = vadd.f32 -1.4531521, %v538_v11 }
 0x124   : > { %v608_v6 = vmul.f32 %v1640_v60, %v597_v56  ;;  %v587_v61 = vmul.f32 %v1659_v16, %v576_v0  ;;  %v1277_v27 = vpop.eup %1276  ;;  %vm468_vm8 = vcmp.ge.f32.partialorder %v1664_v21, 0.0 }
 0x125   : > { %v613_v10 = vadd.f32 0.2548296, %v602_v62  ;;  %v592_v15 = vadd.f32 -0.28449672, %v581_v7  ;;  %v555_v31 = vadd.f32 -1.4531521, %v544_v18  ;;  %v560_v36 = vmul.f32 %v1679_v3, %v549_v23  ;;  %v1700_v38 = vpop.eup %1278 }
 0x126   : > { %v619_v2 = vadd.f32 0.2548296, %v608_v6  ;;  %v598_v22 = vadd.f32 -0.28449672, %v587_v61  ;;  %v1281_v56 = vpop.eup %1280  ;;  %v539_v62 = vmul.f32 1.0614054, %v1700_v38 }
 0x127   : > { %v624_v20 = vmul.f32 %v1635_v55, %v613_v10  ;;  %v603_v30 = vmul.f32 %v1656_v13, %v592_v15  ;;  %v644_v55 = vsub.f32 0.0, %v1671_v39  ;;  %v566_v49 = vmul.f32 %v1685_v9, %v555_v31  ;;  %v1283_v0 = vpop.eup %1282 }
 0x128   : > { %v630_v28 = vmul.f32 %v1640_v60, %v619_v2  ;;  %v609_v34 = vmul.f32 %v1659_v16, %v598_v22  ;;  %v571_v53 = vadd.f32 1.4214138, %v560_v36  ;;  %v550_v14 = vadd.f32 -1.4531521, %v539_v62 }
 0x129   : > { %v679_v33 = vmul.f32 %v1269_v58, %v624_v20  ;;  %v614_v26 = vadd.f32 0.2548296, %v603_v30  ;;  %v577_v58 = vadd.f32 1.4214138, %v566_v49  ;;  %v655_v8 = vmul.f32 %v644_v55, %v1671_v39 }
 0x12a   : > { %v685_v40 = vmul.f32 %v1275_v19, %v630_v28  ;;  %v620_v52 = vadd.f32 0.2548296, %v609_v34  ;;  %v582_v7 = vmul.f32 %v1679_v3, %v571_v53 }
 0x12b   : > { %v690_v60 = vsub.f32 1.0, %v679_v33  ;;  %v625_v54 = vmul.f32 %v1656_v13, %v614_v26  ;;  %v588_v11 = vmul.f32 %v1685_v9, %v577_v58  ;;  %v675_v26 = vmul.f32 1.442695, %v655_v8 }
 0x12c   : > { %v696_v57 = vsub.f32 1.0, %v685_v40  ;;  %v631_v6 = vmul.f32 %v1659_v16, %v620_v52  ;;  %v593_v15 = vadd.f32 -0.28449672, %v582_v7  ;;  %v1719_v16 = vpop.eup %1284  ;;  %v1748_v7 = vmul.f32 0.70710677, %v1703_v51 }
 0x12d   : > { %v701_v1 = vmul.f32 %v690_v60, %v1613_v43  ;;  %v680_v61 = vmul.f32 %v1277_v27, %v625_v54  ;;  %v1717_v43 = vmul.f32 0.70710677, %v1683_v25  ;;  %v599_v39 = vadd.f32 -0.28449672, %v588_v11  ;;  %v1287_v27 = vpop.eup %1286 }
 0x12e   : > { %v707_v10 = vmul.f32 %v696_v57, %v1618_v44  ;;  %v686_v13 = vmul.f32 %v1281_v56, %v631_v6  ;;  %v561_v44 = vmul.f32 %v1700_v38, %v550_v14  ;;  %v604_v23 = vmul.f32 %v1679_v3, %v593_v15  ;;  %v1289_v55 = vpop.eup %1288 }
 0x12f   : > { %v712_v2 = vadd.f32 1.0, %v701_v1  ;;  %v691_v19 = vsub.f32 1.0, %v680_v61  ;;  %v545_v24 = vmul.f32 1.0614054, %v1719_v16  ;;  %v610_v31 = vmul.f32 %v1685_v9, %v599_v39 }
 0x130   : > { %v718_v18 = vadd.f32 1.0, %v707_v10  ;;  %v697_v22 = vsub.f32 1.0, %v686_v13  ;;  %v572_v32 = vadd.f32 1.4214138, %v561_v44  ;;  %v615_v33 = vadd.f32 0.2548296, %v604_v23 }
 0x131   : > { %v723_v20 = vmul.f32 %v712_v2, %v1585_v12  ;;  %v702_v30 = vmul.f32 %v691_v19, %v1650_v4  ;;  %v556_v34 = vadd.f32 -1.4531521, %v545_v24  ;;  %v1734_v36 = vand.u32 2147483647, %v1717_v43 }
 0x132   : > { %v729_v28 = vmul.f32 %v718_v18, %v1588_v17  ;;  %v708_v12 = vmul.f32 %v697_v22, %v1653_v5  ;;  %v621_v4 = vadd.f32 0.2548296, %v610_v31  ;;  %v583_v40 = vmul.f32 %v1700_v38, %v572_v32 }
 0x133   : > { %734 = vst [vmem:[%s1729_s29] sm:$0xff] %v723_v20  ;;  %v713_v17 = vadd.f32 1.0, %v702_v30  ;;  %v626_v60 = vmul.f32 %v1679_v3, %v615_v33  ;;  %v567_v52 = vmul.f32 %v1719_v16, %v556_v34  ;;  %v496_v5 = vmul.f32 0.3275911, %v1734_v36 }
 0x134   : > { %740 = vst [vmem:[%s1729_s29 + $0x30] sm:$0xff] %v729_v28  ;;  %v719_v49 = vadd.f32 1.0, %v708_v12  ;;  %v632_v56 = vmul.f32 %v1685_v9, %v621_v4  ;;  %v594_v57 = vadd.f32 -0.28449672, %v583_v40  ;;  %1290 = vpow2.f32 %v675_v26 }
 0x135   : > { %v724_v53 = vmul.f32 %v713_v17, %v1627_v48  ;;  %v681_v58 = vmul.f32 %v1283_v0, %v626_v60  ;;  %v578_v62 = vadd.f32 1.4214138, %v567_v52  ;;  %v507_v1 = vadd.f32 1.0, %v496_v5 }
 0x136   : > { %v730_v54 = vmul.f32 %v719_v49, %v1644_v63  ;;  %v687_v3 = vmul.f32 %v1287_v27, %v632_v56  ;;  %v605_v6 = vmul.f32 %v1700_v38, %v594_v57  ;;  %v387_v9 = vadd.f32 %v1560_v37, %v1625_v47  ;;  %v420_v63 = vld [vmem:[%s1555_s25 + $0x28] sm:$0xff] }
 0x137   : > { %735 = vst [vmem:[%s1729_s29 + $0x8] sm:$0xff] %v724_v53  ;;  %v692_v48 = vsub.f32 1.0, %v681_v58  ;;  %v589_v8 = vmul.f32 %v1719_v16, %v578_v62  ;;  %1292 = vrcp.f32 %v507_v1  ;;  %v472_v0 = vsel %vm461_vm5, 1.0, %v1399_v42 }
 0x138   : > { %741 = vst [vmem:[%s1729_s29 + $0x38] sm:$0xff] %v730_v54  ;;  %v698_v10 = vsub.f32 1.0, %v687_v3  ;;  %v616_v61 = vadd.f32 0.2548296, %v605_v6  ;;  %v478_v14 = vsel %vm467_vm6, 1.0, %v1399_v42  ;;  %v439_v15 = vmul.f32 0.5, %v1599_v29 }
 0x139   : > { %v703_v11 = vmul.f32 %v692_v48, %v472_v0  ;;  %v600_v2 = vadd.f32 -0.28449672, %v589_v8  ;;  %v491_v13 = vand.u32 2147483647, %v1748_v7  ;;  %v1764_v47 = vadd.f32 %v420_v63, %v387_v9 }
 0x13a   : > { %v709_v18 = vmul.f32 %v698_v10, %v478_v14  ;;  %v627_v37 = vmul.f32 %v1700_v38, %v616_v61  ;;  %v445_v19 = vmul.f32 0.5, %v1603_v35  ;;  %v639_v38 = vsub.f32 0.0, %v1734_v36 }
 0x13b   : > { %v714_v41 = vadd.f32 1.0, %v703_v11  ;;  %v611_v39 = vmul.f32 %v1719_v16, %v600_v2  ;;  %v502_v44 = vmul.f32 0.3275911, %v491_v13  ;;  %v1770_v22 = vmul.f32 0.70710677, %v1764_v47 }
 0x13c   : > { %v720_v20 = vadd.f32 1.0, %v709_v18  ;;  %v682_v45 = vmul.f32 %v1289_v55, %v627_v37  ;;  %v473_v30 = vsel %vm462_vm7, 1.0, %v1399_v42  ;;  %v650_v55 = vmul.f32 %v639_v38, %v1734_v36 }
 0x13d   : > { %v725_v29 = vmul.f32 %v714_v41, %v439_v15  ;;  %v622_v23 = vadd.f32 0.2548296, %v611_v39  ;;  %v513_v24 = vadd.f32 1.0, %v502_v44  ;;  %v486_v35 = vand.u32 2147483647, %v1770_v22 }
 0x13e   : > { %v731_v27 = vmul.f32 %v720_v20, %v445_v19  ;;  %v693_v28 = vsub.f32 1.0, %v682_v45  ;;  %v1291_v59 = vpop.eup %1290  ;;  %v440_v17 = vmul.f32 0.5, %v1623_v46  ;;  %v665_v53 = vmul.f32 1.442695, %v650_v55 }
 0x13f   : > { %736 = vst [vmem:[%s1729_s29 + $0x10] sm:$0xff] %v725_v29  ;;  %v633_v31 = vmul.f32 %v1719_v16, %v622_v23  ;;  %1294 = vrcp.f32 %v513_v24  ;;  %v497_v12 = vmul.f32 0.3275911, %v486_v35  ;;  %v479_v16 = vsel %vm468_vm8, 1.0, %v1399_v42 }
 0x140   : > { %742 = vst [vmem:[%s1729_s29 + $0x40] sm:$0xff] %v731_v27  ;;  %v704_v32 = vmul.f32 %v693_v28, %v473_v30  ;;  %v645_v56 = vsub.f32 0.0, %v491_v13  ;;  %v446_v57 = vmul.f32 0.5, %v1631_v50  ;;  %v640_v6 = vsub.f32 0.0, %v486_v35 }
 0x141   : > { %v1293_v33 = vpop.eup %1292  ;;  %v688_v34 = vmul.f32 %v1291_v59, %v633_v31  ;;  %v508_v26 = vadd.f32 1.0, %v497_v12  ;;  %vm463_vm9 = vcmp.ge.f32.partialorder %v1717_v43, 0.0  ;;  %v441_v28 = vmul.f32 0.5, %v1683_v25 }
 0x142   : > { %v715_v4 = vadd.f32 1.0, %v704_v32  ;;  %v540_v40 = vmul.f32 1.0614054, %v1293_v33  ;;  %v656_v62 = vmul.f32 %v645_v56, %v491_v13  ;;  %v651_v61 = vmul.f32 %v640_v6, %v486_v35 }
 0x143   : > { %v699_v49 = vsub.f32 1.0, %v688_v34  ;;  %1296 = vrcp.f32 %v508_v26  ;;  %v474_v29 = vsel %vm463_vm9, 1.0, %v1399_v42  ;;  %vm469_vm10 = vcmp.ge.f32.partialorder %v1748_v7, 0.0 }
 0x144   : > { %v726_v60 = vmul.f32 %v715_v4, %v440_v17  ;;  %v551_v52 = vadd.f32 -1.4531521, %v540_v40  ;;  %1298 = vpow2.f32 %v665_v53  ;;  %v677_v9 = vmul.f32 1.442695, %v656_v62 }
 0x145   : > { %v710_v5 = vmul.f32 %v699_v49, %v479_v16  ;;  %v667_v37 = vmul.f32 1.442695, %v651_v61  ;;  %v480_v34 = vsel %vm469_vm10, 1.0, %v1399_v42  ;;  %vm464_vm11 = vcmp.ge.f32.partialorder %v1770_v22, 0.0 }
 0x146   : > { %737 = vst [vmem:[%s1729_s29 + $0x18] sm:$0xff] %v726_v60  ;;  %v562_v21 = vmul.f32 %v1293_v33, %v551_v52  ;;  %1300 = vpow2.f32 %v677_v9  ;;  %v447_v40 = vmul.f32 0.5, %v1703_v51  ;;  %v475_v7 = vsel %vm464_vm11, 1.0, %v1399_v42 }
 0x147   : > { %v721_v36 = vadd.f32 1.0, %v710_v5  ;;  %1302 = vpow2.f32 %v667_v37  ;;  %v442_v52 = vmul.f32 0.5, %v1764_v47 }
 0x148   : > { %v573_v54 = vadd.f32 1.4214138, %v562_v21 }
 0x149   : > { %v1295_v46 = vpop.eup %1294  ;;  %v732_v58 = vmul.f32 %v721_v36, %v446_v57 }
 0x14a   : > { %v584_v1 = vmul.f32 %v1293_v33, %v573_v54  ;;  %v546_v3 = vmul.f32 1.0614054, %v1295_v46 }
 0x14b   : > { %743 = vst [vmem:[%s1729_s29 + $0x48] sm:$0xff] %v732_v58 }
 0x14c   : > { %v595_v48 = vadd.f32 -0.28449672, %v584_v1  ;;  %v557_v8 = vadd.f32 -1.4531521, %v546_v3 }
 0x14d   : > { %v1297_v63 = vpop.eup %1296 }
 0x14e   : > { %v606_v0 = vmul.f32 %v1293_v33, %v595_v48  ;;  %v568_v10 = vmul.f32 %v1295_v46, %v557_v8  ;;  %v541_v11 = vmul.f32 1.0614054, %v1297_v63  ;;  %v1299_v13 = vpop.eup %1298 }
 0x150   : > { %v617_v14 = vadd.f32 0.2548296, %v606_v0  ;;  %v579_v50 = vadd.f32 1.4214138, %v568_v10  ;;  %v552_v2 = vadd.f32 -1.4531521, %v541_v11  ;;  %v1301_v31 = vpop.eup %1300 }
 0x151   : > { %v1303_v17 = vpop.eup %1302 }
 0x152   : > { %v628_v15 = vmul.f32 %v1293_v33, %v617_v14  ;;  %v590_v18 = vmul.f32 %v1295_v46, %v579_v50  ;;  %v563_v41 = vmul.f32 %v1297_v63, %v552_v2 }
 0x154   : > { %v683_v19 = vmul.f32 %v1299_v13, %v628_v15  ;;  %v601_v39 = vadd.f32 -0.28449672, %v590_v18  ;;  %v574_v44 = vadd.f32 1.4214138, %v563_v41 }
 0x156   : > { %v694_v20 = vsub.f32 1.0, %v683_v19  ;;  %v612_v45 = vmul.f32 %v1295_v46, %v601_v39  ;;  %v585_v23 = vmul.f32 %v1297_v63, %v574_v44 }
 0x158   : > { %v705_v38 = vmul.f32 %v694_v20, %v474_v29  ;;  %v623_v24 = vadd.f32 0.2548296, %v612_v45  ;;  %v596_v27 = vadd.f32 -0.28449672, %v585_v23 }
 0x15a   : > { %v716_v35 = vadd.f32 1.0, %v705_v38  ;;  %v634_v30 = vmul.f32 %v1295_v46, %v623_v24  ;;  %v607_v59 = vmul.f32 %v1297_v63, %v596_v27 }
 0x15c   : > { %v727_v43 = vmul.f32 %v716_v35, %v441_v28  ;;  %v689_v32 = vmul.f32 %v1301_v31, %v634_v30  ;;  %v618_v12 = vadd.f32 0.2548296, %v607_v59 }
 0x15e   : > { %738 = vst [vmem:[%s1729_s29 + $0x20] sm:$0xff] %v727_v43  ;;  %v700_v33 = vsub.f32 1.0, %v689_v32  ;;  %v629_v55 = vmul.f32 %v1297_v63, %v618_v12 }
 0x160   : > { %v711_v4 = vmul.f32 %v700_v33, %v480_v34  ;;  %v684_v25 = vmul.f32 %v1303_v17, %v629_v55 }
 0x162   : > { %v722_v26 = vadd.f32 1.0, %v711_v4  ;;  %v695_v49 = vsub.f32 1.0, %v684_v25 }
 0x164   : > { %v733_v60 = vmul.f32 %v722_v26, %v447_v40  ;;  %v706_v16 = vmul.f32 %v695_v49, %v475_v7  ;;  %751 = sbr.rel (!%p1450_p4) target bundleno = 424 (0x1a8), region = 40 }
 0x166   : > { %744 = vst [vmem:[%s1729_s29 + $0x50] sm:$0xff] %v733_v60  ;;  %v717_v5 = vadd.f32 1.0, %v706_v16 }
 0x168   : > { %v728_v53 = vmul.f32 %v717_v5, %v442_v52 }
 0x16a   : > { %739 = vst [vmem:[%s1729_s29 + $0x28] sm:$0xff] %v728_v53 }
 0x16b   : > { %s1869_s30 = smov (!%p754_p8, %s753_s30), 11 }
 0x16c   : > { %s1021_s9 = sshll.u32 %s1869_s30, 7 }
 0x16d   : > { %p1024_p9 = scmp.eq.s32.totalorder %s1021_s9, 0 }
 0x16e   : > { %1304 = sdivrem.u32 (!%p1024_p9), %s1869_s30, 11 }
 0x16f   : > { %762 = sbr.rel (%p1024_p9) target bundleno = 424 (0x1a8), region = 44 }
 0x177   : > { %s1810_s23 = spop.drf %1304 }
 0x178   : > { %p1025_p10 = scmp.le.s32.totalorder %s1810_s23, 0 }
 0x179   : > { %s1862_s18 = smov (!%p1025_p10), %s1804_s8  ;;  %s1863_s24 = smov (!%p1025_p10), %s1729_s29 }
 0x17a   : > { %964 = sbr.rel (%p1025_p10) target bundleno = 395 (0x18b), region = 123  ;;  %s1819_s10 = smov (!%p1025_p10), 0  }
 0x17b   : > { %s1821_s11 = smov (!%p1025_p10), 0  }
 0x181 LB: >> { %v846_v42 = vld [vmem:[%s1370_s24] sm:$0xff]  ;;  %v848_v51 = vld [vmem:[%s1370_s24 + $0x8] sm:$0xff]  ;;  %v850_v47 = vld [vmem:[%s1370_s24 + $0x10] sm:$0xff]  ;;  %s868_s12 = sadd.s32 1, %s1374_s10  ;;  %s840_s11 = sadd.s32 1, %s1378_s11   ;;  %s1378_s11 = sphi %s1821_s11, %s840_s11   ;;  %s1374_s10 = sphi %s1819_s10, %s1864_s10   ;;  %s1370_s24 = sphi %s1863_s24, %s873_s24   ;;  %s1366_s18 = sphi %s1862_s18, %s874_s18  }
 0x182   : >> { %847 = vst [vmem:[%s1366_s18] sm:$0xff] %v846_v42  ;;  %849 = vst [vmem:[%s1366_s18 + $0x8] sm:$0xff] %v848_v51  ;;  %v852_v22 = vld [vmem:[%s1370_s24 + $0x18] sm:$0xff]  ;;  %v854_v56 = vld [vmem:[%s1370_s24 + $0x20] sm:$0xff]  ;;  %p869_p11 = scmp.ge.s32.totalorder %s868_s12, %s1810_s23  ;;  %p839_p12 = scmp.ge.s32.totalorder %s840_s11, %s1810_s23 }
 0x183   : >> { %851 = vst [vmem:[%s1366_s18 + $0x10] sm:$0xff] %v850_v47  ;;  %v856_v21 = vld [vmem:[%s1370_s24 + $0x28] sm:$0xff]  ;;  %853 = vst [vmem:[%s1366_s18 + $0x18] sm:$0xff] %v852_v22  ;;  %v858_v57 = vld [vmem:[%s1370_s24 + $0x30] sm:$0xff] }
 0x184   : >> { %855 = vst [vmem:[%s1366_s18 + $0x20] sm:$0xff] %v854_v56  ;;  %857 = vst [vmem:[%s1366_s18 + $0x28] sm:$0xff] %v856_v21  ;;  %v860_v36 = vld [vmem:[%s1370_s24 + $0x38] sm:$0xff]  ;;  %v862_v54 = vld [vmem:[%s1370_s24 + $0x40] sm:$0xff]  ;;  %s1871_s12 = smov (%p869_p11, %s868_s12), 0  ;;  %842 = sbr.rel (!%p839_p12) target bundleno = 385 (0x181), region = 129 }
 0x185   : >> { %859 = vst [vmem:[%s1366_s18 + $0x30] sm:$0xff] %v858_v57  ;;  %861 = vst [vmem:[%s1366_s18 + $0x38] sm:$0xff] %v860_v36  ;;  %v864_v46 = vld [vmem:[%s1370_s24 + $0x48] sm:$0xff]  ;;  %v866_v58 = vld [vmem:[%s1370_s24 + $0x50] sm:$0xff]  ;;  %s871_s13 = smul.u32 88, %s1871_s12  ;;  %s1864_s10 = smov %s1871_s12 }
 0x186   : >> { %863 = vst [vmem:[%s1366_s18 + $0x40] sm:$0xff] %v862_v54  ;;  %865 = vst [vmem:[%s1366_s18 + $0x48] sm:$0xff] %v864_v46 }
 0x187   : >> { %867 = vst [vmem:[%s1366_s18 + $0x50] sm:$0xff] %v866_v58  ;;  %s873_s24 = scalar_lea.vmem %s1729_s29, %s871_s13 [#allocation2]   ;;  %s874_s18 = scalar_lea.vmem %s1804_s8, %s871_s13  }
 0x18b PF: > { %1306 = sdivrem.u32 %s1869_s30, 11 }
 0x18c   : > { %s1026_s14 = smul.u32 88, %s1810_s23 }
 0x18e   : > { %s879_s17 = scalar_lea.vmem %s1729_s29, %s1026_s14 [#allocation2]   ;;  %s881_s20 = scalar_lea.vmem %s1804_s8, %s1026_s14  }
 0x194   : > { %s1307_s21 = spop.drf %1306 }
 0x195   : > { %p1028_p13 = scmp.le.s32.totalorder %s1307_s21, 0 }
 0x196   : > { %s1380_s25 = smov (!%p1028_p13), %s881_s20   ;;  %s1384_s26 = smov (!%p1028_p13), %s879_s17  }
 0x197   : > { %978 = sbr.rel (%p1028_p13) target bundleno = 424 (0x1a8), region = 134  ;;  %s1388_s27 = smov (!%p1028_p13), 0  }
 0x198   : > { %s1392_s28 = smov (!%p1028_p13), 0  }
 0x19e LB: >> { %v891_v62 = vld [vmem:[%s1386_s26] sm:$0xff]  ;;  %s893_s15 = sadd.s32 1, %s1390_s27  ;;  %s885_s28 = sadd.s32 1, %s1394_s28   ;;  %s1394_s28 = sphi %s1392_s28, %s885_s28   ;;  %s1390_s27 = sphi %s1388_s27, %s1389_s27   ;;  %s1386_s26 = sphi %s1384_s26, %s898_s26   ;;  %s1382_s25 = sphi %s1380_s25, %s899_s25  }
 0x19f   : >> { %892 = vst [vmem:[%s1382_s25] sm:$0xff] %v891_v62  ;;  %p894_p0 = scmp.ge.s32.totalorder %s893_s15, %s1307_s21  ;;  %p884_p1 = scmp.ge.s32.totalorder %s885_s28, %s1307_s21 }
 0x1a1   : >> { %s1873_s15 = smov (%p894_p0, %s893_s15), 0  ;;  %887 = sbr.rel (!%p884_p1) target bundleno = 414 (0x19e), region = 140 }
 0x1a2   : >> { %s1029_s29 = sshll.u32 %s1873_s15, 3  ;;  %s1389_s27 = smov %s1873_s15  }
 0x1a3   : >> { %s898_s26 = scalar_lea.vmem %s879_s17, %s1029_s29 [#allocation2]   ;;  %s899_s25 = scalar_lea.vmem %s881_s20, %s1029_s29  }
 0x1a8 PF: > { %p11_p2 = scmp.ge.s32.totalorder %s1440_s19, 4   ;;  %s1865_s15 = smov %s1358_s16 }
 0x1a9   : > { %s1866_s16 = smov %s1448_s22  ;;  %s1867_s17 = smov %s1440_s19 }
 0x1aa   :  { %13 = sbr.rel (!%p11_p2) target bundleno = 2 (0x2), region = 151 }

// kernel: fno2d_forward.19
= control target key start
LH: loop header
LB: loop body
LE: loop exit
PB: predicated region body
PF: predicated region fallthrough
CT: control target
= control target key end

     0   :  { %s2188_s18 = smov 0   ;;  %s3501_s0 = inlined_call_operand.vmem [shape: f32[128,128], index: 0, kind: input, shape index: {}]   ;;  %s3502_s1 = inlined_call_operand.vmem [shape: f32[128,512], index: 1, kind: input, shape index: {}]   ;;  %s3503_s2 = inlined_call_operand.vmem [shape: f32[1,512], index: 2, kind: input, shape index: {}]   ;;  %s3504_s3 = inlined_call_operand.vmem [shape: f32[512,4], index: 3, kind: input, shape index: {}]   ;;  %s3505_s4 = inlined_call_operand.vmem [shape: f32[1,4], index: 4, kind: input, shape index: {}]   ;;  %s3506_s5 = inlined_call_operand.vmem [shape: f32[128,4], index: 5, kind: output, shape index: {}]  }
   0x1 LB: > { %s1758_s19 = sadd.s32 4294967295, %s2154_s18   ;;  %p1762_p0 = scmp.ge.s32.totalorder %s2154_s18, 1  ;;  %s2154_s18 = sphi %s2188_s18, %s15_s18  }
   0x2   : > { %p188_p1 = scmp.lt.s32.totalorder %s2154_s18, 3 }
   0x4   : > { %p189_p2 = pnand %p1762_p0, %p188_p1 }
   0x6   : > { %192 = sbr.rel (%p189_p2) target bundleno = 709 (0x2c5), region = 40 }
   0xd   : > { %v237_v0 = vld [vmem:[%s3502_s1 + $0x8] sm:$0xff]  ;;  %v239_v2 = vld [vmem:[%s3502_s1 + $0x18] sm:$0xff]  ;;  %v236_v5 = vld [vmem:[%s3502_s1] sm:$0xff]  ;;  %v2156_v7 = vmov 0.0   ;;  %s2332_s14 = sshll.u32 %s1758_s19, 3 }
   0xe   : > { %v241_v1 = vld [vmem:[%s3502_s1 + $0x28] sm:$0xff]  ;;  %v243_v4 = vld [vmem:[%s3502_s1 + $0x38] sm:$0xff]  ;;  %v240_v6 = vld [vmem:[%s3502_s1 + $0x20] sm:$0xff]  ;;  %386 = vmatprep.mubr.f32.mxu0 %v2156_v7  ;;  %499 = vmatprep.mubr.f32.mxu1 %v2156_v7  ;;  %p217_p3 = scmp.lt.s32.totalorder %s2332_s14, 15 }
   0xf   : > { %v1882_v3 = vpack.c.bf16 %v241_v1, %v237_v0  ;;  %v1914_v8 = vpack.c.bf16 %v243_v4, %v239_v2  ;;  %v1884_v9 = vpack.c.bf16 %v240_v6, %v236_v5  ;;  %v238_v10 = vld [vmem:[%s3502_s1 + $0x10] sm:$0xff]  ;;  %v245_v12 = vld [vmem:[%s3502_s1 + $0x48] sm:$0xff]  ;;  %v247_v15 = vld [vmem:[%s3502_s1 + $0x58] sm:$0xff] }
  0x10   : > { %v242_v11 = vld [vmem:[%s3502_s1 + $0x30] sm:$0xff]  ;;  %v249_v14 = vld [vmem:[%s3502_s1 + $0x68] sm:$0xff]  ;;  %v251_v16 = vld [vmem:[%s3502_s1 + $0x78] sm:$0xff]  ;;  %s3682_s14 = smov (!%p217_p3, %s2332_s14), 15 }
  0x11   : > { %1883 = vmatprep.subr.bf16.mxu0 %v1882_v3  ;;  %v1916_v13 = vpack.c.bf16 %v242_v11, %v238_v10  ;;  %1915 = vmatprep.subr.bf16.mxu1 %v1914_v8  ;;  %v1886_v17 = vpack.c.bf16 %v249_v14, %v245_v12  ;;  %v1918_v18 = vpack.c.bf16 %v251_v16, %v247_v15  ;;  %v244_v19 = vld [vmem:[%s3502_s1 + $0x40] sm:$0xff]  ;;  %v246_v21 = vld [vmem:[%s3502_s1 + $0x50] sm:$0xff]  ;;  %v253_v24 = vld [vmem:[%s3502_s1 + $0x88] sm:$0xff]  ;;  %s1764_s8 = sshll.u32 %s3682_s14, 3 }
  0x12   : > { %1885 = vmatpush1.bf16.msra.mxu0 %v1884_v9  ;;  %v248_v20 = vld [vmem:[%s3502_s1 + $0x60] sm:$0xff]  ;;  %v250_v23 = vld [vmem:[%s3502_s1 + $0x70] sm:$0xff]  ;;  %v257_v25 = vld [vmem:[%s3502_s1 + $0xa8] sm:$0xff]  ;;  %s2406_s11 = scalar_lea.vmem %s3501_s0, %s1764_s8  ;;  %s3473_s15 = scalar_lea.vmem %s3506_s5, %s1764_s8 }
  0x13   : > { %1917 = vmatpush1.bf16.msra.mxu1 %v1916_v13  ;;  %v1888_v22 = vpack.c.bf16 %v248_v20, %v244_v19  ;;  %1887 = vmatprep.subr.bf16.mxu0 %v1886_v17  ;;  %v1920_v26 = vpack.c.bf16 %v250_v23, %v246_v21  ;;  %v1890_v27 = vpack.c.bf16 %v257_v25, %v253_v24  ;;  %v255_v28 = vld [vmem:[%s3502_s1 + $0x98] sm:$0xff]  ;;  %v252_v30 = vld [vmem:[%s3502_s1 + $0x80] sm:$0xff]  ;;  %v254_v33 = vld [vmem:[%s3502_s1 + $0x90] sm:$0xff] }
  0x14   : > { %1919 = vmatprep.subr.bf16.mxu1 %v1918_v18  ;;  %v259_v29 = vld [vmem:[%s3502_s1 + $0xb8] sm:$0xff]  ;;  %v256_v32 = vld [vmem:[%s3502_s1 + $0xa0] sm:$0xff]  ;;  %v258_v34 = vld [vmem:[%s3502_s1 + $0xb0] sm:$0xff] }
  0x15   : > { %v1922_v31 = vpack.c.bf16 %v259_v29, %v255_v28  ;;  %v1892_v35 = vpack.c.bf16 %v256_v32, %v252_v30  ;;  %v261_v36 = vld [vmem:[%s3502_s1 + $0xc8] sm:$0xff]  ;;  %v263_v38 = vld [vmem:[%s3502_s1 + $0xd8] sm:$0xff]  ;;  %v1924_v39 = vpack.c.bf16 %v258_v34, %v254_v33  ;;  %v260_v42 = vld [vmem:[%s3502_s1 + $0xc0] sm:$0xff] }
  0x16   : > { %1889 = vmatpush1.bf16.msra.mxu0 %v1888_v22  ;;  %v265_v37 = vld [vmem:[%s3502_s1 + $0xe8] sm:$0xff]  ;;  %v267_v41 = vld [vmem:[%s3502_s1 + $0xf8] sm:$0xff]  ;;  %v264_v43 = vld [vmem:[%s3502_s1 + $0xe0] sm:$0xff] }
  0x17   : > { %1921 = vmatpush1.bf16.msra.mxu1 %v1920_v26  ;;  %1891 = vmatprep.subr.bf16.mxu0 %v1890_v27  ;;  %v1894_v40 = vpack.c.bf16 %v265_v37, %v261_v36  ;;  %v1926_v44 = vpack.c.bf16 %v267_v41, %v263_v38  ;;  %v262_v45 = vld [vmem:[%s3502_s1 + $0xd0] sm:$0xff]  ;;  %v269_v47 = vld [vmem:[%s3502_s1 + $0x108] sm:$0xff]  ;;  %v271_v49 = vld [vmem:[%s3502_s1 + $0x118] sm:$0xff]  ;;  %v1896_v51 = vpack.c.bf16 %v264_v43, %v260_v42 }
  0x18   : > { %1923 = vmatprep.subr.bf16.mxu1 %v1922_v31  ;;  %v266_v46 = vld [vmem:[%s3502_s1 + $0xf0] sm:$0xff]  ;;  %v273_v48 = vld [vmem:[%s3502_s1 + $0x128] sm:$0xff]  ;;  %v275_v50 = vld [vmem:[%s3502_s1 + $0x138] sm:$0xff] }
  0x19   : > { %v1928_v52 = vpack.c.bf16 %v266_v46, %v262_v45  ;;  %v1898_v53 = vpack.c.bf16 %v273_v48, %v269_v47  ;;  %v268_v54 = vld [vmem:[%s3502_s1 + $0x100] sm:$0xff]  ;;  %v270_v56 = vld [vmem:[%s3502_s1 + $0x110] sm:$0xff]  ;;  %v1930_v57 = vpack.c.bf16 %v275_v50, %v271_v49  ;;  %v277_v59 = vld [vmem:[%s3502_s1 + $0x148] sm:$0xff] }
  0x1a   : > { %1893 = vmatpush1.bf16.msra.mxu0 %v1892_v35  ;;  %v272_v55 = vld [vmem:[%s3502_s1 + $0x120] sm:$0xff]  ;;  %v274_v58 = vld [vmem:[%s3502_s1 + $0x130] sm:$0xff]  ;;  %v281_v60 = vld [vmem:[%s3502_s1 + $0x168] sm:$0xff] }
  0x1b   : > { %1925 = vmatpush1.bf16.msra.mxu1 %v1924_v39  ;;  %1895 = vmatprep.subr.bf16.mxu0 %v1894_v40  ;;  %v279_v61 = vld [vmem:[%s3502_s1 + $0x158] sm:$0xff]  ;;  %v1900_v63 = vpack.c.bf16 %v272_v55, %v268_v54  ;;  %v1932_v0 = vpack.c.bf16 %v274_v58, %v270_v56  ;;  %v1902_v1 = vpack.c.bf16 %v281_v60, %v277_v59  ;;  %v276_v2 = vld [vmem:[%s3502_s1 + $0x140] sm:$0xff]  ;;  %v278_v4 = vld [vmem:[%s3502_s1 + $0x150] sm:$0xff] }
  0x1c   : > { %1927 = vmatprep.subr.bf16.mxu1 %v1926_v44  ;;  %v283_v62 = vld [vmem:[%s3502_s1 + $0x178] sm:$0xff]  ;;  %v280_v3 = vld [vmem:[%s3502_s1 + $0x160] sm:$0xff]  ;;  %v282_v6 = vld [vmem:[%s3502_s1 + $0x170] sm:$0xff] }
  0x1d   : > { %v1934_v5 = vpack.c.bf16 %v283_v62, %v279_v61  ;;  %v285_v8 = vld [vmem:[%s3502_s1 + $0x188] sm:$0xff]  ;;  %v287_v10 = vld [vmem:[%s3502_s1 + $0x198] sm:$0xff]  ;;  %v1904_v12 = vpack.c.bf16 %v280_v3, %v276_v2  ;;  %v1936_v13 = vpack.c.bf16 %v282_v6, %v278_v4  ;;  %v284_v15 = vld [vmem:[%s3502_s1 + $0x180] sm:$0xff] }
  0x1e   : > { %1897 = vmatpush1.bf16.msra.mxu0 %v1896_v51  ;;  %v289_v9 = vld [vmem:[%s3502_s1 + $0x1a8] sm:$0xff]  ;;  %v291_v11 = vld [vmem:[%s3502_s1 + $0x1b8] sm:$0xff]  ;;  %v288_v16 = vld [vmem:[%s3502_s1 + $0x1a0] sm:$0xff] }
  0x1f   : > { %1929 = vmatpush1.bf16.msra.mxu1 %v1928_v52  ;;  %1899 = vmatprep.subr.bf16.mxu0 %v1898_v53  ;;  %v1906_v14 = vpack.c.bf16 %v289_v9, %v285_v8  ;;  %v286_v17 = vld [vmem:[%s3502_s1 + $0x190] sm:$0xff]  ;;  %v1938_v18 = vpack.c.bf16 %v291_v11, %v287_v10  ;;  %v293_v20 = vld [vmem:[%s3502_s1 + $0x1c8] sm:$0xff]  ;;  %v295_v22 = vld [vmem:[%s3502_s1 + $0x1d8] sm:$0xff]  ;;  %v1908_v24 = vpack.c.bf16 %v288_v16, %v284_v15 }
  0x20   : > { %1931 = vmatprep.subr.bf16.mxu1 %v1930_v57  ;;  %v290_v19 = vld [vmem:[%s3502_s1 + $0x1b0] sm:$0xff]  ;;  %v297_v21 = vld [vmem:[%s3502_s1 + $0x1e8] sm:$0xff]  ;;  %v299_v23 = vld [vmem:[%s3502_s1 + $0x1f8] sm:$0xff] }
  0x21   : > { %v1940_v25 = vpack.c.bf16 %v290_v19, %v286_v17  ;;  %v1910_v26 = vpack.c.bf16 %v297_v21, %v293_v20  ;;  %v292_v27 = vld [vmem:[%s3502_s1 + $0x1c0] sm:$0xff]  ;;  %v1942_v29 = vpack.c.bf16 %v299_v23, %v295_v22  ;;  %v294_v30 = vld [vmem:[%s3502_s1 + $0x1d0] sm:$0xff]  ;;  %v229_v35 = vld [vmem:[%s2406_s11 + $0x8] sm:$0xff] }
  0x22   : > { %1901 = vmatpush1.bf16.msra.mxu0 %v1900_v63  ;;  %v296_v28 = vld [vmem:[%s3502_s1 + $0x1e0] sm:$0xff]  ;;  %v298_v31 = vld [vmem:[%s3502_s1 + $0x1f0] sm:$0xff]  ;;  %v231_v37 = vld [vmem:[%s2406_s11 + $0x18] sm:$0xff] }
  0x23   : > { %1933 = vmatpush1.bf16.msra.mxu1 %v1932_v0  ;;  %1903 = vmatprep.subr.bf16.mxu0 %v1902_v1  ;;  %v1912_v32 = vpack.c.bf16 %v296_v28, %v292_v27  ;;  %v1944_v33 = vpack.c.bf16 %v298_v31, %v294_v30  ;;  %v228_v34 = vld [vmem:[%s2406_s11] sm:$0xff]  ;;  %v230_v36 = vld [vmem:[%s2406_s11 + $0x10] sm:$0xff]  ;;  %v233_v39 = vld [vmem:[%s2406_s11 + $0x28] sm:$0xff] }
  0x24   : > { %1935 = vmatprep.subr.bf16.mxu1 %v1934_v5  ;;  %v232_v38 = vld [vmem:[%s2406_s11 + $0x20] sm:$0xff]  ;;  %v234_v40 = vld [vmem:[%s2406_s11 + $0x30] sm:$0xff]  ;;  %v235_v41 = vld [vmem:[%s2406_s11 + $0x38] sm:$0xff] }
  0x25   : > { %v1428_v42 = vld [vmem:[%s3504_s3 + $0x80] sm:$0xff]  ;;  %v1429_v43 = vld [vmem:[%s3504_s3 + $0x88] sm:$0xff]  ;;  %v1430_v53 = vld [vmem:[%s3504_s3 + $0x90] sm:$0xff] }
  0x26   : > { %1905 = vmatpush1.bf16.msra.mxu0 %v1904_v12  ;;  %v1946_v44 = vpack.c.bf16 %v1429_v43, %v1428_v42  ;;  %v1460_v45 = vld [vmem:[%s3504_s3 + $0x180] sm:$0xff]  ;;  %v1461_v46 = vld [vmem:[%s3504_s3 + $0x188] sm:$0xff]  ;;  %v1431_v54 = vld [vmem:[%s3504_s3 + $0x98] sm:$0xff] }
  0x27   : > { %1937 = vmatpush1.bf16.msra.mxu1 %v1936_v13  ;;  %1907 = vmatprep.subr.bf16.mxu0 %v1906_v14  ;;  %v1413_v47 = vld [vmem:[%s3504_s3 + $0x8] sm:$0xff]  ;;  %v1978_v48 = vpack.c.bf16 %v1461_v46, %v1460_v45  ;;  %v1444_v50 = vld [vmem:[%s3504_s3 + $0x100] sm:$0xff]  ;;  %v1950_v55 = vpack.c.bf16 %v1431_v54, %v1430_v53  ;;  %v1462_v56 = vld [vmem:[%s3504_s3 + $0x190] sm:$0xff] }
  0x28   : > { %1939 = vmatprep.subr.bf16.mxu1 %v1938_v18  ;;  %v1445_v51 = vld [vmem:[%s3504_s3 + $0x108] sm:$0xff]  ;;  %v1463_v57 = vld [vmem:[%s3504_s3 + $0x198] sm:$0xff]  ;;  %v1414_v58 = vld [vmem:[%s3504_s3 + $0x10] sm:$0xff] }
  0x29   : > { %v1980_v52 = vpack.c.bf16 %v1445_v51, %v1444_v50  ;;  %v1415_v59 = vld [vmem:[%s3504_s3 + $0x18] sm:$0xff]  ;;  %v1982_v60 = vpack.c.bf16 %v1463_v57, %v1462_v56  ;;  %v1446_v62 = vld [vmem:[%s3504_s3 + $0x110] sm:$0xff]  ;;  %v1432_v1 = vld [vmem:[%s3504_s3 + $0xa0] sm:$0xff] }
  0x2a   : > { %1909 = vmatpush1.bf16.msra.mxu0 %v1908_v24  ;;  %v1952_v61 = vpack.c.bf16 %v1415_v59, %v1414_v58  ;;  %v1447_v63 = vld [vmem:[%s3504_s3 + $0x118] sm:$0xff]  ;;  %v1433_v2 = vld [vmem:[%s3504_s3 + $0xa8] sm:$0xff]  ;;  %v1464_v4 = vld [vmem:[%s3504_s3 + $0x1a0] sm:$0xff] }
  0x2b   : > { %1941 = vmatpush1.bf16.msra.mxu1 %v1940_v25  ;;  %1911 = vmatprep.subr.bf16.mxu0 %v1910_v26  ;;  %v1984_v0 = vpack.c.bf16 %v1447_v63, %v1446_v62  ;;  %v1954_v3 = vpack.c.bf16 %v1433_v2, %v1432_v1  ;;  %v1465_v5 = vld [vmem:[%s3504_s3 + $0x1a8] sm:$0xff]  ;;  %v1416_v6 = vld [vmem:[%s3504_s3 + $0x20] sm:$0xff]  ;;  %v1434_v14 = vld [vmem:[%s3504_s3 + $0xb0] sm:$0xff] }
  0x2c   : > { %1943 = vmatprep.subr.bf16.mxu1 %v1942_v29  ;;  %v1417_v8 = vld [vmem:[%s3504_s3 + $0x28] sm:$0xff]  ;;  %v1986_v9 = vpack.c.bf16 %v1465_v5, %v1464_v4  ;;  %v1448_v11 = vld [vmem:[%s3504_s3 + $0x120] sm:$0xff]  ;;  %v1435_v15 = vld [vmem:[%s3504_s3 + $0xb8] sm:$0xff] }
  0x2d   : > { %v1956_v10 = vpack.c.bf16 %v1417_v8, %v1416_v6  ;;  %v1449_v12 = vld [vmem:[%s3504_s3 + $0x128] sm:$0xff]  ;;  %v1466_v16 = vld [vmem:[%s3504_s3 + $0x1b0] sm:$0xff]  ;;  %v1958_v17 = vpack.c.bf16 %v1435_v15, %v1434_v14  ;;  %v1419_v19 = vld [vmem:[%s3504_s3 + $0x38] sm:$0xff] }
  0x2e   : > { %1913 = vmatpush1.bf16.msra.mxu0 %v1912_v32  ;;  %v1988_v13 = vpack.c.bf16 %v1449_v12, %v1448_v11  ;;  %v1418_v18 = vld [vmem:[%s3504_s3 + $0x30] sm:$0xff]  ;;  %v1467_v20 = vld [vmem:[%s3504_s3 + $0x1b8] sm:$0xff]  ;;  %v1436_v26 = vld [vmem:[%s3504_s3 + $0xc0] sm:$0xff] }
  0x2f   : > { %1945 = vmatpush1.bf16.msra.mxu1 %v1944_v33  ;;  %1947 = vmatprep.subr.bf16.mxu0 %v1946_v44  ;;  %v1960_v21 = vpack.c.bf16 %v1419_v19, %v1418_v18  ;;  %v1990_v22 = vpack.c.bf16 %v1467_v20, %v1466_v16  ;;  %v1450_v23 = vld [vmem:[%s3504_s3 + $0x130] sm:$0xff]  ;;  %v1451_v24 = vld [vmem:[%s3504_s3 + $0x138] sm:$0xff]  ;;  %v1437_v27 = vld [vmem:[%s3504_s3 + $0xc8] sm:$0xff] }
  0x30   : > { %1979 = vmatprep.subr.bf16.mxu1 %v1978_v48  ;;  %v1992_v25 = vpack.c.bf16 %v1451_v24, %v1450_v23  ;;  %v1468_v28 = vld [vmem:[%s3504_s3 + $0x1c0] sm:$0xff]  ;;  %v1962_v29 = vpack.c.bf16 %v1437_v27, %v1436_v26  ;;  %v1421_v31 = vld [vmem:[%s3504_s3 + $0x48] sm:$0xff]  ;;  %v1422_v43 = vld [vmem:[%s3504_s3 + $0x50] sm:$0xff] }
  0x31   : > { %387 = vmatmul.mubr.f32.vlgmr.msra.gmra.mrb[0].mxu0 %v228_v34  ;;  %v1420_v30 = vld [vmem:[%s3504_s3 + $0x40] sm:$0xff]  ;;  %v1469_v32 = vld [vmem:[%s3504_s3 + $0x1c8] sm:$0xff]  ;;  %v1423_v44 = vld [vmem:[%s3504_s3 + $0x58] sm:$0xff] }
  0x32   : > { %500 = vmatmul.mubr.f32.vlgmr.msra.gmra.mrb[0].mxu1 %v228_v34  ;;  %392 = vmatprep.mubr.f32.mxu0 %v2156_v7  ;;  %v1964_v33 = vpack.c.bf16 %v1421_v31, %v1420_v30  ;;  %v1994_v34 = vpack.c.bf16 %v1469_v32, %v1468_v28  ;;  %v1471_v45 = vld [vmem:[%s3504_s3 + $0x1d8] sm:$0xff]  ;;  %v1968_v46 = vpack.c.bf16 %v1423_v44, %v1422_v43  ;;  %v1440_v51 = vld [vmem:[%s3504_s3 + $0xe0] sm:$0xff]  ;;  %v1425_v56 = vld [vmem:[%s3504_s3 + $0x68] sm:$0xff] }
  0x33   : > { %505 = vmatprep.mubr.f32.mxu1 %v2156_v7  ;;  %1981 = vmatpush3.bf16.msra.mxu1 %v1980_v52  ;;  %v1455_v48 = vld [vmem:[%s3504_s3 + $0x158] sm:$0xff]  ;;  %v1441_v52 = vld [vmem:[%s3504_s3 + $0xe8] sm:$0xff]  ;;  %v1472_v53 = vld [vmem:[%s3504_s3 + $0x1e0] sm:$0xff] }
  0x34   : > { %1983 = vmatprep.subr.bf16.mxu1 %v1982_v60  ;;  %v1970_v54 = vpack.c.bf16 %v1441_v52, %v1440_v51  ;;  %v1473_v57 = vld [vmem:[%s3504_s3 + $0x1e8] sm:$0xff]  ;;  %v1456_v60 = vld [vmem:[%s3504_s3 + $0x160] sm:$0xff]  ;;  %v1442_v62 = vld [vmem:[%s3504_s3 + $0xf0] sm:$0xff] }
  0x35   : > { %393 = vmatmul.mubr.f32.gmra.mrb[2].mxu0 %v229_v35  ;;  %v2002_v59 = vpack.c.bf16 %v1473_v57, %v1472_v53  ;;  %v1426_v1 = vld [vmem:[%s3504_s3 + $0x70] sm:$0xff]  ;;  %v1427_v2 = vld [vmem:[%s3504_s3 + $0x78] sm:$0xff] }
  0x36   : > { %506 = vmatmul.mubr.f32.gmra.mrb[2].mxu1 %v229_v35  ;;  %398 = vmatprep.mubr.f32.mxu0 %v2156_v7  ;;  %v1452_v35 = vld [vmem:[%s3504_s3 + $0x140] sm:$0xff]  ;;  %v1976_v5 = vpack.c.bf16 %v1427_v2, %v1426_v1  ;;  %v1474_v6 = vld [vmem:[%s3504_s3 + $0x1f0] sm:$0xff]  ;;  %v1475_v8 = vld [vmem:[%s3504_s3 + $0x1f8] sm:$0xff] }
  0x37   : > { %511 = vmatprep.mubr.f32.mxu1 %v2156_v7  ;;  %1985 = vmatpush3.bf16.msra.mxu1 %v1984_v0  ;;  %v1443_v0 = vld [vmem:[%s3504_s3 + $0xf8] sm:$0xff] }
  0x38   : > { %1987 = vmatprep.subr.bf16.mxu1 %v1986_v9  ;;  %v1974_v4 = vpack.c.bf16 %v1443_v0, %v1442_v62  ;;  %v1458_v9 = vld [vmem:[%s3504_s3 + $0x170] sm:$0xff]  ;;  %v1459_v14 = vld [vmem:[%s3504_s3 + $0x178] sm:$0xff] }
  0x39   : > { %399 = vmatmul.mubr.f32.gmra.mrb[4].mxu0 %v230_v36  ;;  %v2008_v16 = vpack.c.bf16 %v1459_v14, %v1458_v9 }
  0x3a   : > { %512 = vmatmul.mubr.f32.gmra.mrb[4].mxu1 %v230_v36  ;;  %404 = vmatprep.mubr.f32.mxu0 %v2156_v7  ;;  %v1453_v36 = vld [vmem:[%s3504_s3 + $0x148] sm:$0xff] }
  0x3b   : > { %517 = vmatprep.mubr.f32.mxu1 %v2156_v7  ;;  %1989 = vmatpush3.bf16.msra.mxu1 %v1988_v13  ;;  %v2006_v13 = vpack.c.bf16 %v1475_v8, %v1474_v6 }
  0x3c   : > { %1991 = vmatprep.subr.bf16.mxu1 %v1990_v22 }
  0x3d   : > { %405 = vmatmul.mubr.f32.gmra.mrb[6].mxu0 %v231_v37 }
  0x3e   : > { %518 = vmatmul.mubr.f32.gmra.mrb[6].mxu1 %v231_v37  ;;  %410 = vmatprep.mubr.f32.mxu0 %v2156_v7  ;;  %v1996_v37 = vpack.c.bf16 %v1453_v36, %v1452_v35 }
  0x3f   : > { %523 = vmatprep.mubr.f32.mxu1 %v2156_v7  ;;  %1993 = vmatpush3.bf16.msra.mxu1 %v1992_v25 }
  0x40   : > { %1995 = vmatprep.subr.bf16.mxu1 %v1994_v34 }
  0x41   : > { %411 = vmatmul.mubr.f32.gmra.mrb[8].mxu0 %v232_v38 }
  0x42   : > { %524 = vmatmul.mubr.f32.gmra.mrb[8].mxu1 %v232_v38  ;;  %416 = vmatprep.mubr.f32.mxu0 %v2156_v7  ;;  %v302_v38 = vlaneseq }
  0x43   : > { %529 = vmatprep.mubr.f32.mxu1 %v2156_v7  ;;  %1997 = vmatpush3.bf16.msra.mxu1 %v1996_v37 }
  0x44   : > { %v303_v50 = vshrl.u32 %v302_v38, 7 }
  0x45   : > { %417 = vmatmul.mubr.f32.gmra.mrb[10].mxu0 %v233_v39 }
  0x46   : > { %530 = vmatmul.mubr.f32.gmra.mrb[10].mxu1 %v233_v39  ;;  %422 = vmatprep.mubr.f32.mxu0 %v2156_v7  ;;  %v1438_v39 = vld [vmem:[%s3504_s3 + $0xd0] sm:$0xff]  ;;  %v312_v11 = vsub.s32 2, %v303_v50  ;;  %v308_v12 = vsub.s32 1, %v303_v50  ;;  %v316_v15 = vsub.s32 3, %v303_v50 }
  0x47   : > { %535 = vmatprep.mubr.f32.mxu1 %v2156_v7 }
  0x49   : > { %423 = vmatmul.mubr.f32.gmra.mrb[12].mxu0 %v234_v40 }
  0x4a   : > { %536 = vmatmul.mubr.f32.gmra.mrb[12].mxu1 %v234_v40  ;;  %428 = vmatprep.mubr.f32.mxu0 %v2156_v7  ;;  %v1439_v40 = vld [vmem:[%s3504_s3 + $0xd8] sm:$0xff] }
  0x4b   : > { %541 = vmatprep.mubr.f32.mxu1 %v2156_v7  ;;  %v1412_v7 = vld [vmem:[%s3504_s3] sm:$0xff]  ;;  %v1966_v42 = vpack.c.bf16 %v1439_v40, %v1438_v39 }
  0x4c   : > { %v1948_v49 = vpack.c.bf16 %v1413_v47, %v1412_v7  ;;  %v1454_v47 = vld [vmem:[%s3504_s3 + $0x150] sm:$0xff] }
  0x4d   : > { %429 = vmatmul.mubr.f32.gmra.mrb[14].mxu0 %v235_v41 }
  0x4e   : > { %542 = vmatmul.mubr.f32.gmra.mrb[14].mxu1 %v235_v41  ;;  %1949 = vmatpush3.bf16.msra.mxu0 %v1948_v49  ;;  %v1470_v41 = vld [vmem:[%s3504_s3 + $0x1d0] sm:$0xff]  ;;  %v2000_v49 = vpack.c.bf16 %v1455_v48, %v1454_v47 }
  0x4f   : > { %1951 = vmatprep.subr.bf16.mxu0 %v1950_v55  ;;  %v1998_v7 = vpack.c.bf16 %v1471_v45, %v1470_v41  ;;  %v1424_v55 = vld [vmem:[%s3504_s3 + $0x60] sm:$0xff] }
  0x50   : > { %v1972_v58 = vpack.c.bf16 %v1425_v56, %v1424_v55 }
  0x51   : > { %1999 = vmatprep.subr.bf16.mxu1 %v1998_v7 }
  0x52   : > { %1953 = vmatpush3.bf16.msra.mxu0 %v1952_v61  ;;  %2001 = vmatpush3.bf16.msra.mxu1 %v2000_v49  ;;  %v1457_v61 = vld [vmem:[%s3504_s3 + $0x168] sm:$0xff] }
  0x53   : > { %1955 = vmatprep.subr.bf16.mxu0 %v1954_v3  ;;  %v2004_v63 = vpack.c.bf16 %v1457_v61, %v1456_v60  ;;  %v304_v3 = vsub.s32 0, %v303_v50  ;;  %2003 = vmatprep.subr.bf16.mxu1 %v2002_v59 }
  0x56   : > { %1957 = vmatpush3.bf16.msra.mxu0 %v1956_v10  ;;  %v300_v10 = vld [vmem:[%s3503_s2] sm:$0xf]  ;;  %2005 = vmatpush3.bf16.msra.mxu1 %v2004_v63 }
  0x57   : > { %1959 = vmatprep.subr.bf16.mxu0 %v1958_v17  ;;  %2007 = vmatprep.subr.bf16.mxu1 %v2006_v13  ;;  %v2625_v17 = vrot.slane %v300_v10, %v304_v3  ;;  %v2627_v18 = vrot.slane %v300_v10, %v312_v11  ;;  %v2629_v19 = vrot.slane %v300_v10, %v308_v12 }
  0x58   : > { %v2631_v20 = vrot.slane %v300_v10, %v316_v15 }
  0x5a   : > { %1961 = vmatpush3.bf16.msra.mxu0 %v1960_v21  ;;  %2009 = vmatpush3.bf16.msra.mxu1 %v2008_v16 }
  0x5b   : > { %1963 = vmatprep.subr.bf16.mxu0 %v1962_v29 }
  0x5e   : > { %1965 = vmatpush3.bf16.msra.mxu0 %v1964_v33 }
  0x5f   : > { %1967 = vmatprep.subr.bf16.mxu0 %v1966_v42 }
  0x62   : > { %1969 = vmatpush3.bf16.msra.mxu0 %v1968_v46 }
  0x63   : > { %1971 = vmatprep.subr.bf16.mxu0 %v1970_v54 }
  0x66   : > { %1973 = vmatpush3.bf16.msra.mxu0 %v1972_v58 }
  0x67   : > { %1975 = vmatprep.subr.bf16.mxu0 %v1974_v4 }
  0x6a   : > { %1977 = vmatpush3.bf16.msra.mxu0 %v1976_v5  ;;  %v3507_v5 = vmov -1.0  }
 0x104   : > { %v388_v21 = vpop.f32.mrb[0].mxu0 }
 0x105   : > { %v389_v22 = vadd.f32 %v388_v21, %v2625_v17  ;;  %v501_v23 = vpop.f32.mrb[0].mxu1  ;;  %v390_v24 = vpop.f32.mrb[1].mxu0 }
 0x106   : > { %v502_v25 = vadd.f32 %v501_v23, %v2627_v18  ;;  %v391_v26 = vadd.f32 %v390_v24, %v2629_v19  ;;  %v503_v27 = vpop.f32.mrb[1].mxu1 }
 0x107   : > { %v580_v28 = vmul.f32 0.70710677, %v389_v22  ;;  %v504_v29 = vadd.f32 %v503_v27, %v2631_v20  ;;  %v2662_v57 = vmul.f32 0.5, %v389_v22 }
 0x108   : > { %v582_v30 = vmul.f32 0.70710677, %v502_v25  ;;  %v2637_v31 = vmul.f32 0.70710677, %v391_v26  ;;  %v394_v35 = vpop.f32.mrb[2].mxu0  ;;  %v2664_v59 = vmul.f32 0.5, %v502_v25 }
 0x109   : > { %v676_v32 = vand.u32 2147483647, %v580_v28  ;;  %v2639_v33 = vmul.f32 0.70710677, %v504_v29  ;;  %v507_v37 = vpop.f32.mrb[2].mxu1  ;;  %v396_v42 = vpop.f32.mrb[3].mxu0  ;;  %v395_v55 = vadd.f32 %v394_v35, %v2625_v17 }
 0x10a   : > { %v678_v34 = vand.u32 2147483647, %v582_v30  ;;  %v677_v39 = vand.u32 2147483647, %v2637_v31  ;;  %v2643_v43 = vpop.f32.mrb[3].mxu1  ;;  %vm612_vm0 = vcmp.ge.f32.partialorder %v580_v28, 0.0  ;;  %v508_v62 = vadd.f32 %v507_v37, %v2627_v18 }
 0x10b   : > { %v708_v36 = vmul.f32 0.3275911, %v676_v32  ;;  %v679_v41 = vand.u32 2147483647, %v2639_v33  ;;  %v1124_v7 = vsub.f32 0.0, %v676_v32  ;;  %vm614_vm1 = vcmp.ge.f32.partialorder %v582_v30, 0.0 }
 0x10c   : > { %v710_v38 = vmul.f32 0.3275911, %v678_v34  ;;  %v2645_v45 = vpop.f32.mrb[4].mxu0  ;;  %v1126_v48 = vsub.f32 0.0, %v678_v34  ;;  %v1125_v51 = vsub.f32 0.0, %v677_v39  ;;  %v2669_v0 = vmul.f32 0.5, %v391_v26 }
 0x10d   : > { %v740_v40 = vadd.f32 1.0, %v708_v36  ;;  %v2647_v46 = vpop.f32.mrb[4].mxu1  ;;  %v2649_v47 = vpop.f32.mrb[5].mxu0  ;;  %v1127_v52 = vsub.f32 0.0, %v679_v41  ;;  %v1156_v58 = vmul.f32 %v1124_v7, %v676_v32  ;;  %v709_v61 = vmul.f32 0.3275911, %v677_v39 }
 0x10e   : > { %v742_v44 = vadd.f32 1.0, %v710_v38  ;;  %v2651_v49 = vpop.f32.mrb[5].mxu1  ;;  %v1158_v60 = vmul.f32 %v1126_v48, %v678_v34  ;;  %3528 = vst [vmem:[#allocation2_spill] sm:$0xff] %v2669_v0  ;;  %v1157_v1 = vmul.f32 %v1125_v51, %v677_v39  ;;  %v2671_v2 = vmul.f32 0.5, %v504_v29 }
 0x10f   : > { %2020 = vrcp.f32 %v740_v40  ;;  %v1159_v3 = vmul.f32 %v1127_v52, %v679_v41  ;;  %v2676_v6 = vsel %vm612_vm0, 1.0, %v3507_v5  ;;  %vm613_vm2 = vcmp.ge.f32.partialorder %v2637_v31, 0.0 }
 0x110   : > { %2022 = vrcp.f32 %v742_v44  ;;  %v2653_v50 = vpop.f32.mrb[6].mxu0  ;;  %3529 = vst [vmem:[#allocation3_spill] sm:$0xff] %v2671_v2  ;;  %v2679_v8 = vmul.f32 0.70710677, %v395_v55  ;;  %v1188_v11 = vmul.f32 1.442695, %v1156_v58  ;;  %v397_v14 = vadd.f32 %v396_v42, %v2629_v19 }
 0x111   : > { %v2655_v53 = vpop.f32.mrb[6].mxu1  ;;  %v2657_v54 = vpop.f32.mrb[7].mxu0  ;;  %v2687_v12 = vsel %vm614_vm1, 1.0, %v3507_v5  ;;  %v711_v13 = vmul.f32 0.3275911, %v679_v41  ;;  %v741_v16 = vadd.f32 1.0, %v709_v61  ;;  %v2721_v38 = vadd.f32 %v2643_v43, %v2631_v20 }
 0x112   : > { %v2660_v56 = vpop.f32.mrb[7].mxu1  ;;  %v1192_v15 = vmul.f32 1.442695, %v1158_v60  ;;  %vm615_vm3 = vcmp.ge.f32.partialorder %v2639_v33, 0.0  ;;  %v2691_v21 = vmul.f32 0.70710677, %v508_v62  ;;  %2024 = vpow2.f32 %v1188_v11 }
 0x113   : > { %v1190_v23 = vmul.f32 1.442695, %v1157_v1  ;;  %v1194_v24 = vmul.f32 1.442695, %v1159_v3  ;;  %v2705_v29 = vsel %vm613_vm2, 1.0, %v3507_v5  ;;  %v2712_v34 = vsel %vm615_vm3, 1.0, %v3507_v5 }
 0x114   : > { %v2667_v63 = vpop.f32.mrb[8].mxu0  ;;  %3530 = vst [vmem:[#allocation4_spill] sm:$0xff] %v2705_v29  ;;  %v680_v30 = vand.u32 2147483647, %v2679_v8  ;;  %3531 = vst [vmem:[#allocation5_spill] sm:$0xff] %v2712_v34  ;;  %2026 = vpow2.f32 %v1192_v15  ;;  %v743_v41 = vadd.f32 1.0, %v711_v13 }
 0x115   : > { %v2673_v4 = vpop.f32.mrb[8].mxu1  ;;  %v2681_v9 = vpop.f32.mrb[9].mxu0  ;;  %v2714_v35 = vmul.f32 0.70710677, %v397_v14  ;;  %v682_v31 = vand.u32 2147483647, %v2691_v21  ;;  %2028 = vrcp.f32 %v741_v16 }
 0x116   : > { %v2683_v10 = vpop.f32.mrb[9].mxu1  ;;  %v2725_v42 = vmul.f32 0.5, %v395_v55  ;;  %v712_v51 = vmul.f32 0.3275911, %v680_v30  ;;  %v1128_v52 = vsub.f32 0.0, %v680_v30  ;;  %v2732_v58 = vmul.f32 0.5, %v508_v62 }
 0x117   : > { %v2737_v61 = vmul.f32 0.5, %v397_v14  ;;  %v681_v1 = vand.u32 2147483647, %v2714_v35  ;;  %v2742_v55 = vadd.f32 %v2645_v45, %v2625_v17  ;;  %2030 = vpow2.f32 %v1190_v23 }
 0x118   : > { %v2695_v25 = vpop.f32.mrb[10].mxu0  ;;  %3532 = vst [vmem:[#allocation6_spill] sm:$0xff] %v2725_v42  ;;  %3533 = vst [vmem:[#allocation7_spill] sm:$0xff] %v2732_v58  ;;  %v1130_v11 = vsub.f32 0.0, %v682_v31  ;;  %v2745_v13 = vmul.f32 0.70710677, %v2721_v38  ;;  %2032 = vrcp.f32 %v743_v41  ;;  %v2763_v41 = vadd.f32 %v2647_v46, %v2627_v18 }
 0x119   : > { %v2693_v22 = vpop.eup %2020  ;;  %v2697_v26 = vpop.f32.mrb[10].mxu1  ;;  %3534 = vst [vmem:[#allocation8_spill] sm:$0xff] %v2737_v61  ;;  %v714_v16 = vmul.f32 0.3275911, %v682_v31  ;;  %vm616_vm4 = vcmp.ge.f32.partialorder %v2679_v8, 0.0  ;;  %v744_v45 = vadd.f32 1.0, %v712_v51  ;;  %2034 = vpow2.f32 %v1194_v24 }
 0x11a   : > { %v2699_v27 = vpop.eup %2022  ;;  %v836_v28 = vmul.f32 1.0614054, %v2693_v22  ;;  %v2708_v32 = vpop.f32.mrb[11].mxu0  ;;  %v1162_v5 = vmul.f32 %v1130_v11, %v682_v31  ;;  %v1129_v58 = vsub.f32 0.0, %v681_v1  ;;  %vm618_vm5 = vcmp.ge.f32.partialorder %v2691_v21, 0.0 }
 0x11b   : > { %v838_v33 = vmul.f32 1.0614054, %v2699_v27  ;;  %v2716_v36 = vpop.f32.mrb[11].mxu1  ;;  %2036 = vrcp.f32 %v744_v45  ;;  %vm617_vm6 = vcmp.ge.f32.partialorder %v2714_v35, 0.0  ;;  %v3535_v0 = vmov -1.0  }
 0x11c   : > { %v868_v37 = vadd.f32 -1.4531521, %v836_v28  ;;  %v2723_v39 = vpop.f32.mrb[12].mxu0  ;;  %v2025_v42 = vpop.eup %2024  ;;  %v1200_v2 = vmul.f32 1.442695, %v1162_v5  ;;  %v2783_v34 = vsel %vm616_vm4, 1.0, %v3535_v0 }
 0x11d   : > { %v870_v40 = vadd.f32 -1.4531521, %v838_v33  ;;  %v2727_v44 = vpop.f32.mrb[12].mxu1  ;;  %v2729_v7 = vpop.f32.mrb[13].mxu0  ;;  %3536 = vst [vmem:[#allocation9_spill] sm:$0xff] %v2783_v34  ;;  %v2795_v5 = vsel %vm617_vm6, 1.0, %v3535_v0 }
 0x11e   : > { %v900_v48 = vmul.f32 %v2693_v22, %v868_v37  ;;  %v2734_v60 = vpop.f32.mrb[13].mxu1  ;;  %v1160_v37 = vmul.f32 %v1128_v52, %v680_v30  ;;  %v746_v30 = vadd.f32 1.0, %v714_v16  ;;  %v713_v52 = vmul.f32 0.3275911, %v681_v1 }
 0x11f   : > { %v902_v43 = vmul.f32 %v2699_v27, %v870_v40  ;;  %v2778_v16 = vadd.f32 %v2649_v47, %v2629_v19  ;;  %v2790_v47 = vsel %vm618_vm5, 1.0, %v3535_v0  ;;  %v2803_v21 = vmul.f32 0.5, %v2721_v38 }
 0x120   : > { %v932_v3 = vadd.f32 1.4214138, %v900_v48  ;;  %v2747_v62 = vpop.f32.mrb[14].mxu0  ;;  %v2759_v48 = vmul.f32 0.70710677, %v2742_v55  ;;  %2038 = vrcp.f32 %v746_v30  ;;  %3537 = vst [vmem:[#allocation10_spill] sm:$0xff] %v2790_v47 }
 0x121   : > { %v934_v15 = vadd.f32 1.4214138, %v902_v43  ;;  %v2749_v28 = vpop.f32.mrb[14].mxu1  ;;  %v2751_v14 = vpop.f32.mrb[15].mxu0  ;;  %v1196_v61 = vmul.f32 1.442695, %v1160_v37 }
 0x122   : > { %v964_v33 = vmul.f32 %v2693_v22, %v932_v3  ;;  %v2755_v23 = vpop.f32.mrb[15].mxu1  ;;  %v683_v3 = vand.u32 2147483647, %v2745_v13  ;;  %v684_v11 = vand.u32 2147483647, %v2759_v48  ;;  %3538 = vst [vmem:[#allocation11_spill] sm:$0xff] %v2803_v21 }
 0x123   : > { %v966_v40 = vmul.f32 %v2699_v27, %v934_v15  ;;  %v2027_v15 = vpop.eup %2026  ;;  %2040 = vpow2.f32 %v1196_v61  ;;  %v589_v61 = vmul.f32 0.70710677, %v2778_v16  ;;  %v2809_v34 = vmul.f32 0.5, %v2742_v55 }
 0x124   : > { %v996_v43 = vadd.f32 -0.28449672, %v964_v33  ;;  %v2769_v46 = vpop.eup %2028  ;;  %v2774_v33 = vmul.f32 0.70710677, %v2763_v41  ;;  %v1131_v45 = vsub.f32 0.0, %v683_v3  ;;  %v1132_v30 = vsub.f32 0.0, %v684_v11 }
 0x125   : > { %v998_v51 = vadd.f32 -0.28449672, %v966_v40  ;;  %v2785_v29 = vpop.eup %2030  ;;  %2042 = vpow2.f32 %v1200_v2  ;;  %3539 = vst [vmem:[#allocation12_spill] sm:$0xff] %v2809_v34  ;;  %vm619_vm7 = vcmp.ge.f32.partialorder %v2745_v13, 0.0  ;;  %vm620_vm8 = vcmp.ge.f32.partialorder %v2759_v48, 0.0 }
 0x126   : > { %v1028_v24 = vmul.f32 %v2693_v22, %v996_v43  ;;  %v1161_v43 = vmul.f32 %v1129_v58, %v681_v1  ;;  %v715_v58 = vmul.f32 0.3275911, %v683_v3  ;;  %v2797_v1 = vpop.eup %2032  ;;  %v716_v2 = vmul.f32 0.3275911, %v684_v11 }
 0x127   : > { %v1030_v31 = vmul.f32 %v2699_v27, %v998_v51  ;;  %v745_v51 = vadd.f32 1.0, %v713_v52  ;;  %v686_v52 = vand.u32 2147483647, %v2774_v33  ;;  %v2805_v47 = vpop.eup %2034  ;;  %v407_v55 = vadd.f32 %v2653_v50, %v2625_v17 }
 0x128   : > { %v1060_v40 = vadd.f32 0.2548296, %v1028_v24  ;;  %v1198_v24 = vmul.f32 1.442695, %v1161_v43  ;;  %v1164_v43 = vmul.f32 %v1132_v30, %v684_v11  ;;  %v2815_v21 = vpop.eup %2036  ;;  %v2822_v13 = vsel %vm619_vm7, 1.0, %v3535_v0 }
 0x129   : > { %v1062_v37 = vadd.f32 0.2548296, %v1030_v31  ;;  %v1163_v31 = vmul.f32 %v1131_v45, %v683_v3  ;;  %2044 = vrcp.f32 %v745_v51  ;;  %v1134_v3 = vsub.f32 0.0, %v686_v52 }
 0x12a   : > { %v1092_v8 = vmul.f32 %v2693_v22, %v1060_v40  ;;  %v516_v22 = vadd.f32 %v2651_v49, %v2631_v20  ;;  %v747_v40 = vadd.f32 1.0, %v715_v58  ;;  %v685_v45 = vand.u32 2147483647, %v589_v61  ;;  %v2831_v58 = vpop.eup %2038 }
 0x12b   : > { %v1094_v35 = vmul.f32 %v2699_v27, %v1062_v37  ;;  %2046 = vpow2.f32 %v1198_v24  ;;  %v1202_v27 = vmul.f32 1.442695, %v1163_v31  ;;  %v2825_v48 = vsel %vm620_vm8, 1.0, %v3535_v0 }
 0x12c   : > { %v1252_v38 = vmul.f32 %v2025_v42, %v1092_v8  ;;  %v2817_v37 = vmul.f32 0.70710677, %v516_v22  ;;  %3540 = vst [vmem:[#allocation13_spill] sm:$0xff] %v2825_v48  ;;  %v718_v42 = vmul.f32 0.3275911, %v686_v52  ;;  %2048 = vrcp.f32 %v747_v40 }
 0x12d   : > { %v1254_v49 = vmul.f32 %v2027_v15, %v1094_v35  ;;  %v748_v11 = vadd.f32 1.0, %v716_v2  ;;  %v2828_v51 = vmul.f32 0.5, %v2763_v41  ;;  %vm622_vm9 = vcmp.ge.f32.partialorder %v2774_v33, 0.0  ;;  %v2833_v24 = vpop.eup %2040 }
 0x12e   : > { %v1284_v8 = vsub.f32 1.0, %v1252_v38  ;;  %v1204_v30 = vmul.f32 1.442695, %v1164_v43  ;;  %v1166_v50 = vmul.f32 %v1134_v3, %v686_v52  ;;  %v1133_v15 = vsub.f32 0.0, %v685_v45 }
 0x12f   : > { %3541 = vst [vmem:[#allocation14_spill] sm:$0xff] %v2828_v51  ;;  %2050 = vpow2.f32 %v1202_v27  ;;  %v687_v31 = vand.u32 2147483647, %v2817_v37  ;;  %v592_v35 = vmul.f32 0.70710677, %v407_v55  ;;  %v520_v40 = vadd.f32 %v2655_v53, %v2627_v18  ;;  %v2838_v34 = vpop.eup %2042 }
 0x130   : > { %v1286_v2 = vsub.f32 1.0, %v1254_v49  ;;  %v750_v41 = vadd.f32 1.0, %v718_v42  ;;  %vm621_vm10 = vcmp.ge.f32.partialorder %v589_v61, 0.0  ;;  %v717_v51 = vmul.f32 0.3275911, %v685_v45 }
 0x131   : > { %2052 = vrcp.f32 %v748_v11  ;;  %v2843_v52 = vsel %vm622_vm9, 1.0, %v3535_v0  ;;  %v2846_v38 = vmul.f32 0.5, %v2778_v16  ;;  %v409_v43 = vadd.f32 %v2657_v54, %v2629_v19 }
 0x132   : > { %3542 = vst [vmem:[#allocation15_spill] sm:$0xff] %v2843_v52  ;;  %v1316_v53 = vmul.f32 %v1284_v8, %v2676_v6  ;;  %2054 = vpow2.f32 %v1204_v30  ;;  %v1208_v61 = vmul.f32 1.442695, %v1166_v50  ;;  %v1165_v27 = vmul.f32 %v1133_v15, %v685_v45 }
 0x133   : > { %3543 = vst [vmem:[#allocation16_spill] sm:$0xff] %v2846_v38  ;;  %v2850_v3 = vpop.eup %2044  ;;  %v2854_v49 = vsel %vm621_vm10, 1.0, %v3535_v0  ;;  %v1135_v42 = vsub.f32 0.0, %v687_v31  ;;  %v688_v33 = vand.u32 2147483647, %v592_v35  ;;  %v1318_v52 = vmul.f32 %v1286_v2, %v2687_v12 }
 0x134   : > { %3544 = vst [vmem:[#allocation17_spill] sm:$0xff] %v2854_v49  ;;  %v594_v11 = vmul.f32 0.70710677, %v520_v40  ;;  %2056 = vrcp.f32 %v750_v41  ;;  %v749_v16 = vadd.f32 1.0, %v717_v51  ;;  %v2859_v54 = vadd.f32 %v2660_v56, %v2631_v20 }
 0x135   : > { %v2861_v48 = vpop.eup %2046  ;;  %v2863_v6 = vmul.f32 0.5, %v516_v22  ;;  %v719_v8 = vmul.f32 0.3275911, %v687_v31  ;;  %v2865_v45 = vmul.f32 0.5, %v407_v55  ;;  %v593_v30 = vmul.f32 0.70710677, %v409_v43 }
 0x136   : > { %v1348_v50 = vadd.f32 1.0, %v1316_v53  ;;  %2058 = vpow2.f32 %v1208_v61  ;;  %v1206_v15 = vmul.f32 1.442695, %v1165_v27  ;;  %vm623_vm11 = vcmp.ge.f32.partialorder %v2817_v37, 0.0  ;;  %v2868_v12 = vpop.eup %2048 }
 0x137   : > { %3545 = vst [vmem:[#allocation18_spill] sm:$0xff] %v2863_v6  ;;  %3546 = vst [vmem:[#allocation19_spill] sm:$0xff] %v2865_v45  ;;  %v1167_v51 = vmul.f32 %v1135_v42, %v687_v31  ;;  %vm624_vm12 = vcmp.ge.f32.partialorder %v592_v35, 0.0  ;;  %v1136_v2 = vsub.f32 0.0, %v688_v33  ;;  %v690_v56 = vand.u32 2147483647, %v594_v11 }
 0x138   : > { %v1350_v41 = vadd.f32 1.0, %v1318_v52  ;;  %v595_v38 = vmul.f32 0.70710677, %v2859_v54  ;;  %v2873_v22 = vadd.f32 %v2667_v63, %v2625_v17  ;;  %v2877_v55 = vadd.f32 %v2673_v4, %v2627_v18 }
 0x139   : > { %v2879_v53 = vpop.eup %2050  ;;  %2060 = vrcp.f32 %v749_v16  ;;  %v751_v61 = vadd.f32 1.0, %v719_v8  ;;  %v720_v27 = vmul.f32 0.3275911, %v688_v33  ;;  %v689_v31 = vand.u32 2147483647, %v593_v30 }
 0x13a   : > { %v2882_v35 = vmul.f32 %v1348_v50, %v2662_v57  ;;  %2062 = vpow2.f32 %v1206_v15  ;;  %v2887_v52 = vsel %vm623_vm11, 1.0, %v3535_v0  ;;  %v2890_v63 = vsel %vm624_vm12, 1.0, %v3535_v0 }
 0x13b   : > { %3547 = vst [vmem:[#allocation20_spill] sm:$0xff] %v2887_v52  ;;  %3548 = vst [vmem:[#allocation21_spill] sm:$0xff] %v2890_v63  ;;  %v2892_v4 = vpop.eup %2052  ;;  %v1210_v42 = vmul.f32 1.442695, %v1167_v51  ;;  %v1168_v45 = vmul.f32 %v1136_v2, %v688_v33  ;;  %v722_v16 = vmul.f32 0.3275911, %v690_v56  ;;  %v2900_v57 = vmul.f32 %v1350_v41, %v2664_v59 }
 0x13c   : > { %v2895_v8 = vmul.f32 0.70710677, %v2873_v22  ;;  %v2897_v6 = vpop.eup %2054  ;;  %v1138_v50 = vsub.f32 0.0, %v690_v56  ;;  %v691_v37 = vand.u32 2147483647, %v595_v38  ;;  %2064 = vrcp.f32 %v751_v61 }
 0x13d   : > { %3549 = vst [vmem:[#allocation22_spill] sm:$0xff] %v2897_v6  ;;  %3550 = vst [vmem:[#allocation23_spill] sm:$0xff] %v2900_v57  ;;  %v2903_v15 = vmul.f32 0.70710677, %v2877_v55  ;;  %v752_v63 = vadd.f32 1.0, %v720_v27  ;;  %v2905_v52 = vmul.f32 0.5, %v520_v40  ;;  %v2911_v6 = vadd.f32 %v2681_v9, %v2629_v19 }
 0x13e   : > { %v1137_v51 = vsub.f32 0.0, %v689_v31  ;;  %v2907_v33 = vpop.eup %2056  ;;  %vm626_vm13 = vcmp.ge.f32.partialorder %v594_v11, 0.0  ;;  %vm625_vm14 = vcmp.ge.f32.partialorder %v593_v30, 0.0  ;;  %v721_v2 = vmul.f32 0.3275911, %v689_v31 }
 0x13f   : > { %3551 = vst [vmem:[#allocation24_spill] sm:$0xff] %v2905_v52  ;;  %3552 = vst [vmem:[#allocation25_spill] sm:$0xff] %v2907_v33  ;;  %2066 = vpow2.f32 %v1210_v42  ;;  %v1212_v59 = vmul.f32 1.442695, %v1168_v45  ;;  %v2913_v41 = vmul.f32 0.5, %v409_v43  ;;  %v754_v40 = vadd.f32 1.0, %v722_v16 }
 0x140   : > { %v692_v49 = vand.u32 2147483647, %v2895_v8  ;;  %v2916_v61 = vpop.eup %2058  ;;  %v1170_v27 = vmul.f32 %v1138_v50, %v690_v56  ;;  %v1139_v52 = vsub.f32 0.0, %v691_v37  ;;  %v694_v57 = vand.u32 2147483647, %v2903_v15 }
 0x141   : > { %3553 = vst [vmem:[#allocation26_spill] sm:$0xff] %v2913_v41  ;;  %3554 = vst [vmem:[#allocation27_spill] sm:$0xff] %v2916_v61  ;;  %2068 = vrcp.f32 %v752_v63  ;;  %v2920_v11 = vsel %vm626_vm13, 1.0, %v3535_v0  ;;  %v2923_v9 = vsel %vm625_vm14, 1.0, %v3535_v0  ;;  %v1169_v30 = vmul.f32 %v1137_v51, %v689_v31 }
 0x142   : > { %3555 = vst [vmem:[#allocation28_spill] sm:$0xff] %v2920_v11  ;;  %3556 = vst [vmem:[#allocation29_spill] sm:$0xff] %v2923_v9  ;;  %v753_v45 = vadd.f32 1.0, %v721_v2  ;;  %vm627_vm15 = vcmp.ge.f32.partialorder %v595_v38, 0.0  ;;  %v2926_v43 = vmul.f32 0.70710677, %v2911_v6  ;;  %v2930_v42 = vadd.f32 %v2683_v10, %v2631_v20 }
 0x143   : > { %v2932_v56 = vpop.eup %2060  ;;  %2070 = vpow2.f32 %v1212_v59  ;;  %v2935_v63 = vmul.f32 0.5, %v2859_v54  ;;  %v723_v16 = vmul.f32 0.3275911, %v691_v37  ;;  %v1140_v50 = vsub.f32 0.0, %v692_v49 }
 0x144   : > { %v2937_v11 = vpop.eup %2062  ;;  %2072 = vrcp.f32 %v754_v40  ;;  %v1216_v31 = vmul.f32 1.442695, %v1170_v27  ;;  %v1171_v38 = vmul.f32 %v1139_v52, %v691_v37  ;;  %v1142_v51 = vsub.f32 0.0, %v694_v57 }
 0x145   : > { %3557 = vst [vmem:[#allocation30_spill] sm:$0xff] %v2935_v63  ;;  %v1214_v2 = vmul.f32 1.442695, %v1169_v30  ;;  %v2940_v41 = vsel %vm627_vm15, 1.0, %v3535_v0  ;;  %v724_v10 = vmul.f32 0.3275911, %v692_v49  ;;  %v419_v9 = vadd.f32 %v2695_v25, %v2625_v17 }
 0x146   : > { %3558 = vst [vmem:[#allocation31_spill] sm:$0xff] %v2940_v41  ;;  %2074 = vrcp.f32 %v753_v45  ;;  %v726_v59 = vmul.f32 0.3275911, %v694_v57  ;;  %v693_v54 = vand.u32 2147483647, %v2926_v43  ;;  %v2948_v61 = vpop.eup %2064  ;;  %v755_v40 = vadd.f32 1.0, %v723_v16 }
 0x147   : > { %v2946_v63 = vmul.f32 0.70710677, %v2930_v42  ;;  %v2951_v52 = vmul.f32 0.5, %v2873_v22  ;;  %v1172_v37 = vmul.f32 %v1140_v50, %v692_v49  ;;  %v2955_v27 = vadd.f32 %v2697_v26, %v2627_v18 }
 0x148   : > { %2076 = vpow2.f32 %v1216_v31  ;;  %v1218_v25 = vmul.f32 1.442695, %v1171_v38  ;;  %vm628_vm0 = vcmp.ge.f32.partialorder %v2895_v8, 0.0  ;;  %v1174_v30 = vmul.f32 %v1142_v51, %v694_v57 }
 0x149   : > { %3559 = vst [vmem:[#allocation32_spill] sm:$0xff] %v2951_v52  ;;  %v2958_v45 = vpop.eup %2066  ;;  %2078 = vpow2.f32 %v1214_v2  ;;  %v756_v41 = vadd.f32 1.0, %v724_v10  ;;  %v2961_v33 = vmul.f32 0.5, %v2877_v55  ;;  %v2963_v16 = vmul.f32 0.70710677, %v419_v9 }
 0x14a   : > { %v758_v22 = vadd.f32 1.0, %v726_v59  ;;  %v1141_v49 = vsub.f32 0.0, %v693_v54  ;;  %v695_v50 = vand.u32 2147483647, %v2946_v63  ;;  %v421_v26 = vadd.f32 %v2708_v32, %v2629_v19 }
 0x14b   : > { %3560 = vst [vmem:[#allocation33_spill] sm:$0xff] %v2961_v33  ;;  %v2968_v31 = vpop.eup %2068  ;;  %2080 = vrcp.f32 %v755_v40  ;;  %v2971_v8 = vsel %vm628_vm0, 1.0, %v3535_v0  ;;  %v1220_v57 = vmul.f32 1.442695, %v1172_v37  ;;  %v2974_v38 = vmul.f32 0.70710677, %v2955_v27 }
 0x14c   : > { %3561 = vst [vmem:[#allocation34_spill] sm:$0xff] %v2968_v31  ;;  %3562 = vst [vmem:[#allocation35_spill] sm:$0xff] %v2971_v8  ;;  %2082 = vpow2.f32 %v1218_v25  ;;  %vm630_vm1 = vcmp.ge.f32.partialorder %v2903_v15, 0.0  ;;  %v1224_v55 = vmul.f32 1.442695, %v1174_v30  ;;  %vm629_vm2 = vcmp.ge.f32.partialorder %v2926_v43, 0.0 }
 0x14d   : > { %v725_v51 = vmul.f32 0.3275911, %v693_v54  ;;  %v2977_v2 = vpop.eup %2070  ;;  %2084 = vrcp.f32 %v756_v41  ;;  %v696_v32 = vand.u32 2147483647, %v2963_v16  ;;  %v2983_v10 = vadd.f32 %v2716_v36, %v2631_v20 }
 0x14e   : > { %3563 = vst [vmem:[#allocation36_spill] sm:$0xff] %v2977_v2  ;;  %v2985_v59 = vpop.eup %2072  ;;  %2086 = vrcp.f32 %v758_v22  ;;  %v1173_v40 = vmul.f32 %v1141_v49, %v693_v54  ;;  %v1143_v37 = vsub.f32 0.0, %v695_v50  ;;  %v2987_v25 = vmul.f32 0.70710677, %v421_v26 }
 0x14f   : > { %3564 = vst [vmem:[#allocation37_spill] sm:$0xff] %v2985_v59  ;;  %2088 = vpow2.f32 %v1220_v57  ;;  %v2990_v15 = vsel %vm630_vm1, 1.0, %v3535_v0  ;;  %v2993_v41 = vmul.f32 0.5, %v2911_v6  ;;  %v698_v43 = vand.u32 2147483647, %v2974_v38 }
 0x150   : > { %3565 = vst [vmem:[#allocation38_spill] sm:$0xff] %v2990_v15  ;;  %v2996_v30 = vpop.eup %2074  ;;  %2090 = vpow2.f32 %v1224_v55  ;;  %v2999_v36 = vsel %vm629_vm2, 1.0, %v3535_v0  ;;  %v757_v22 = vadd.f32 1.0, %v725_v51  ;;  %v3002_v54 = vmul.f32 0.5, %v2930_v42 }
 0x151   : > { %3566 = vst [vmem:[#allocation39_spill] sm:$0xff] %v2993_v41  ;;  %3567 = vst [vmem:[#allocation40_spill] sm:$0xff] %v2999_v36  ;;  %vm631_vm3 = vcmp.ge.f32.partialorder %v2946_v63, 0.0  ;;  %v727_v49 = vmul.f32 0.3275911, %v695_v50  ;;  %v1144_v57 = vsub.f32 0.0, %v696_v32  ;;  %v1175_v15 = vmul.f32 %v1143_v37, %v695_v50 }
 0x152   : > { %3568 = vst [vmem:[#allocation41_spill] sm:$0xff] %v3002_v54  ;;  %v3006_v33 = vmul.f32 0.70710677, %v2983_v10  ;;  %v3008_v6 = vpop.eup %2076  ;;  %v1222_v52 = vmul.f32 1.442695, %v1173_v40  ;;  %v3013_v8 = vadd.f32 %v2723_v39, %v2625_v17  ;;  %v3017_v42 = vmul.f32 0.5, %v419_v9 }
 0x153   : > { %3569 = vst [vmem:[#allocation42_spill] sm:$0xff] %v3008_v6  ;;  %v697_v55 = vand.u32 2147483647, %v2987_v25  ;;  %v3015_v51 = vpop.eup %2078  ;;  %vm632_vm4 = vcmp.ge.f32.partialorder %v2963_v16, 0.0  ;;  %v1146_v54 = vsub.f32 0.0, %v698_v43  ;;  %v3022_v41 = vadd.f32 %v2727_v44, %v2627_v18 }
 0x154   : > { %3570 = vst [vmem:[#allocation43_spill] sm:$0xff] %v3015_v51  ;;  %3571 = vst [vmem:[#allocation44_spill] sm:$0xff] %v3017_v42  ;;  %2092 = vrcp.f32 %v757_v22  ;;  %v728_v40 = vmul.f32 0.3275911, %v696_v32  ;;  %v699_v50 = vand.u32 2147483647, %v3006_v33  ;;  %v1176_v36 = vmul.f32 %v1144_v57, %v696_v32 }
 0x155   : > { %3572 = vst [vmem:[#allocation45_spill] sm:$0xff] %v3022_v41  ;;  %v3026_v37 = vmul.f32 0.70710677, %v3013_v8  ;;  %v3028_v39 = vpop.eup %2080  ;;  %v3033_v9 = vsel %vm631_vm3, 1.0, %v3535_v0  ;;  %v759_v42 = vadd.f32 1.0, %v727_v49  ;;  %v3036_v6 = vmul.f32 0.5, %v2955_v27 }
 0x156   : > { %3574 = vst [vmem:[#allocation47_spill] sm:$0xff] %v3033_v9  ;;  %v3038_v44 = vpop.eup %2082  ;;  %2094 = vpow2.f32 %v1222_v52  ;;  %v1226_v22 = vmul.f32 1.442695, %v1175_v15  ;;  %v730_v2 = vmul.f32 0.3275911, %v698_v43  ;;  %v1145_v51 = vsub.f32 0.0, %v697_v55 }
 0x157   : > { %3573 = vst [vmem:[#allocation46_spill] sm:$0xff] %v3026_v37  ;;  %3575 = vst [vmem:[#allocation48_spill] sm:$0xff] %v3036_v6  ;;  %v3040_v59 = vpop.eup %2084  ;;  %v3045_v31 = vsel %vm632_vm4, 1.0, %v3535_v0  ;;  %v1178_v63 = vmul.f32 %v1146_v54, %v698_v43  ;;  %v3047_v9 = vmul.f32 0.5, %v421_v26  ;;  %v3050_v32 = vmul.f32 0.70710677, %v3022_v41 }
 0x158   : > { %3576 = vst [vmem:[#allocation49_spill] sm:$0xff] %v3040_v59  ;;  %3577 = vst [vmem:[#allocation50_spill] sm:$0xff] %v3045_v31  ;;  %v3052_v27 = vpop.eup %2086  ;;  %v760_v49 = vadd.f32 1.0, %v728_v40  ;;  %v729_v52 = vmul.f32 0.3275911, %v697_v55  ;;  %v1147_v15 = vsub.f32 0.0, %v699_v50  ;;  %2096 = vrcp.f32 %v759_v42 }
 0x159   : > { %3578 = vst [vmem:[#allocation51_spill] sm:$0xff] %v3047_v9  ;;  %3579 = vst [vmem:[#allocation52_spill] sm:$0xff] %v3050_v32  ;;  %v700_v57 = vand.u32 2147483647, %v3026_v37  ;;  %v3055_v6 = vpop.eup %2088  ;;  %v1228_v59 = vmul.f32 1.442695, %v1176_v36  ;;  %v427_v16 = vadd.f32 %v2729_v7, %v2629_v19  ;;  %2098 = vpow2.f32 %v1226_v22 }
 0x15a   : > { %vm634_vm5 = vcmp.ge.f32.partialorder %v2974_v38, 0.0  ;;  %v3060_v26 = vpop.eup %2090  ;;  %v762_v43 = vadd.f32 1.0, %v730_v2  ;;  %vm633_vm6 = vcmp.ge.f32.partialorder %v2987_v25, 0.0  ;;  %v1177_v54 = vmul.f32 %v1145_v51, %v697_v55 }
 0x15b   : > { %v1232_v40 = vmul.f32 1.442695, %v1178_v63  ;;  %v731_v41 = vmul.f32 0.3275911, %v699_v50  ;;  %v702_v37 = vand.u32 2147483647, %v3050_v32  ;;  %v540_v42 = vadd.f32 %v2734_v60, %v2631_v20 }
 0x15c   : > { %2100 = vrcp.f32 %v760_v49  ;;  %v761_v36 = vadd.f32 1.0, %v729_v52  ;;  %v1179_v31 = vmul.f32 %v1147_v15, %v699_v50  ;;  %v1148_v9 = vsub.f32 0.0, %v700_v57 }
 0x15d   : > { %2102 = vpow2.f32 %v1228_v59  ;;  %v3069_v7 = vsel %vm634_vm5, 1.0, %v3535_v0  ;;  %v605_v2 = vmul.f32 0.70710677, %v427_v16  ;;  %v3071_v22 = vmul.f32 0.70710677, %v540_v42 }
 0x15e   : > { %3580 = vst [vmem:[#allocation53_spill] sm:$0xff] %v3069_v7  ;;  %v3073_v55 = vpop.eup %2092  ;;  %2104 = vrcp.f32 %v762_v43  ;;  %v1230_v51 = vmul.f32 1.442695, %v1177_v54  ;;  %v732_v63 = vmul.f32 0.3275911, %v700_v57  ;;  %v3077_v60 = vadd.f32 %v2747_v62, %v2625_v17 }
 0x15f   : > { %2106 = vpow2.f32 %v1232_v40  ;;  %v3082_v59 = vsel %vm633_vm6, 1.0, %v3535_v0  ;;  %v763_v38 = vadd.f32 1.0, %v731_v41  ;;  %v1150_v50 = vsub.f32 0.0, %v702_v37 }
 0x160   : > { %3581 = vst [vmem:[#allocation54_spill] sm:$0xff] %v3077_v60  ;;  %3582 = vst [vmem:[#allocation55_spill] sm:$0xff] %v3082_v59  ;;  %v3084_v49 = vpop.eup %2094  ;;  %2108 = vrcp.f32 %v761_v36  ;;  %vm635_vm7 = vcmp.ge.f32.partialorder %v3006_v33, 0.0  ;;  %v1234_v52 = vmul.f32 1.442695, %v1179_v31  ;;  %v1180_v15 = vmul.f32 %v1148_v9, %v700_v57 }
 0x161   : > { %v701_v43 = vand.u32 2147483647, %v605_v2  ;;  %v703_v54 = vand.u32 2147483647, %v3071_v22  ;;  %v3089_v17 = vmul.f32 0.70710677, %v3077_v60  ;;  %v3093_v62 = vadd.f32 %v2749_v28, %v2627_v18 }
 0x162   : > { %2110 = vpow2.f32 %v1230_v51  ;;  %v3096_v25 = vmul.f32 0.5, %v2983_v10  ;;  %v764_v41 = vadd.f32 1.0, %v732_v63  ;;  %v3100_v40 = vadd.f32 %v2751_v14, %v2629_v19  ;;  %v3102_v31 = vpop.eup %2096 }
 0x163   : > { %3583 = vst [vmem:[#allocation56_spill] sm:$0xff] %v3089_v17  ;;  %3584 = vst [vmem:[#allocation57_spill] sm:$0xff] %v3093_v62  ;;  %2112 = vrcp.f32 %v763_v38  ;;  %v734_v9 = vmul.f32 0.3275911, %v702_v37  ;;  %v1182_v57 = vmul.f32 %v1150_v50, %v702_v37  ;;  %v704_v36 = vand.u32 2147483647, %v3089_v17  ;;  %v3105_v60 = vpop.eup %2098 }
 0x164   : > { %3585 = vst [vmem:[#allocation58_spill] sm:$0xff] %v3096_v25  ;;  %3586 = vst [vmem:[#allocation59_spill] sm:$0xff] %v3100_v40  ;;  %v3110_v18 = vsel %vm635_vm7, 1.0, %v3535_v0  ;;  %2114 = vpow2.f32 %v1234_v52  ;;  %v3113_v28 = vmul.f32 0.5, %v3013_v8  ;;  %v3115_v19 = vmul.f32 0.5, %v427_v16 }
 0x165   : > { %3587 = vst [vmem:[#allocation60_spill] sm:$0xff] %v3110_v18  ;;  %v1236_v14 = vmul.f32 1.442695, %v1180_v15  ;;  %v1149_v10 = vsub.f32 0.0, %v701_v43  ;;  %v1151_v51 = vsub.f32 0.0, %v703_v54  ;;  %2116 = vrcp.f32 %v764_v41 }
 0x166   : > { %3588 = vst [vmem:[#allocation61_spill] sm:$0xff] %v3113_v28  ;;  %3589 = vst [vmem:[#allocation62_spill] sm:$0xff] %v3115_v19  ;;  %v3118_v37 = vmul.f32 0.70710677, %v3093_v62  ;;  %v3120_v63 = vpop.eup %2100  ;;  %vm637_vm8 = vcmp.ge.f32.partialorder %v605_v2, 0.0  ;;  %v1152_v38 = vsub.f32 0.0, %v704_v36  ;;  %v3129_v15 = vadd.f32 %v2755_v23, %v2631_v20 }
 0x167   : > { %v3123_v33 = vmul.f32 0.70710677, %v3100_v40  ;;  %v3125_v50 = vpop.eup %2102  ;;  %v766_v8 = vadd.f32 1.0, %v734_v9  ;;  %v1240_v52 = vmul.f32 1.442695, %v1182_v57  ;;  %v3133_v62 = vmul.f32 0.5, %v540_v42 }
 0x168   : > { %3590 = vst [vmem:[#allocation63_spill] sm:$0xff] %v3118_v37  ;;  %3592 = vst [vmem:[#allocation65_spill] sm:$0xff] %v3125_v50  ;;  %v733_v16 = vmul.f32 0.3275911, %v701_v43  ;;  %v3131_v17 = vpop.eup %2104  ;;  %vm639_vm9 = vcmp.ge.f32.partialorder %v3071_v22, 0.0  ;;  %2118 = vpow2.f32 %v1236_v14  ;;  %v3143_v9 = vsel %vm637_vm8, 1.0, %v3535_v0 }
 0x169   : > { %3591 = vst [vmem:[#allocation64_spill] sm:$0xff] %v3123_v33  ;;  %3593 = vst [vmem:[#allocation66_spill] sm:$0xff] %v3129_v15  ;;  %v3137_v2 = vand.u32 2147483647, %v3118_v37  ;;  %v705_v41 = vand.u32 2147483647, %v3123_v33  ;;  %v3140_v40 = vpop.eup %2106  ;;  %v1181_v57 = vmul.f32 %v1149_v10, %v701_v43  ;;  %v1183_v20 = vmul.f32 %v1151_v51, %v703_v54 }
 0x16a   : > { %3594 = vst [vmem:[#allocation67_spill] sm:$0xff] %v3133_v62  ;;  %3595 = vst [vmem:[#allocation68_spill] sm:$0xff] %v3140_v40  ;;  %v3145_v23 = vpop.eup %2108  ;;  %v735_v28 = vmul.f32 0.3275911, %v703_v54  ;;  %v736_v42 = vmul.f32 0.3275911, %v704_v36  ;;  %v1184_v32 = vmul.f32 %v1152_v38, %v704_v36  ;;  %2120 = vrcp.f32 %v766_v8 }
 0x16b   : > { %3596 = vst [vmem:[#allocation69_spill] sm:$0xff] %v3143_v9  ;;  %v1153_v62 = vsub.f32 0.0, %v705_v41  ;;  %v765_v22 = vadd.f32 1.0, %v733_v16  ;;  %v3148_v37 = vsel %vm639_vm9, 1.0, %v3535_v0  ;;  %v3151_v33 = vmul.f32 0.70710677, %v3129_v15 }
 0x16c   : > { %3597 = vst [vmem:[#allocation70_spill] sm:$0xff] %v3148_v37  ;;  %v3153_v14 = vpop.eup %2110  ;;  %2122 = vpow2.f32 %v1240_v52  ;;  %v738_v43 = vmul.f32 0.3275911, %v3137_v2  ;;  %v837_v10 = vmul.f32 1.0614054, %v2769_v46  ;;  %v767_v15 = vadd.f32 1.0, %v735_v28 }
 0x16d   : > { %3598 = vst [vmem:[#allocation71_spill] sm:$0xff] %v3151_v33  ;;  %v839_v54 = vmul.f32 1.0614054, %v2797_v1  ;;  %v3158_v51 = vpop.eup %2112  ;;  %v1238_v36 = vmul.f32 1.442695, %v1181_v57  ;;  %v1185_v8 = vmul.f32 %v1153_v62, %v705_v41  ;;  %v768_v19 = vadd.f32 1.0, %v736_v42 }
 0x16e   : > { %v1242_v38 = vmul.f32 1.442695, %v1183_v20  ;;  %v707_v16 = vand.u32 2147483647, %v3151_v33  ;;  %v3161_v0 = vpop.eup %2114  ;;  %v3163_v37 = vmul.f32 1.442695, %v1184_v32  ;;  %2124 = vrcp.f32 %v765_v22 }
 0x16f   : > { %v869_v52 = vadd.f32 -1.4531521, %v837_v10  ;;  %v3166_v7 = vmul.f32 0.3275911, %v705_v41  ;;  %v871_v25 = vadd.f32 -1.4531521, %v839_v54  ;;  %v3168_v18 = vpop.eup %2116  ;;  %2126 = vpow2.f32 %v1238_v36 }
 0x170   : > { %3599 = vst [vmem:[#allocation72_spill] sm:$0xff] %v3163_v37  ;;  %v1155_v40 = vsub.f32 0.0, %v707_v16  ;;  %3600 = vst [vmem:[#allocation73_spill] sm:$0xff] %v3168_v18  ;;  %v3170_v57 = vadd.f32 1.0, %v738_v43  ;;  %v841_v20 = vmul.f32 1.0614054, %v2850_v3  ;;  %2128 = vrcp.f32 %v767_v15 }
 0x171   : > { %v901_v62 = vmul.f32 %v2769_v46, %v869_v52  ;;  %v843_v28 = vmul.f32 1.0614054, %v2868_v12  ;;  %v3175_v42 = vmul.f32 1.442695, %v1185_v8  ;;  %v903_v10 = vmul.f32 %v2797_v1, %v871_v25 }
 0x172   : > { %v1187_v32 = vmul.f32 %v1155_v40, %v707_v16  ;;  %v840_v41 = vmul.f32 1.0614054, %v2815_v21  ;;  %v873_v54 = vadd.f32 -1.4531521, %v841_v20  ;;  %v3179_v37 = vpop.eup %2118  ;;  %v3181_v43 = vmul.f32 0.3275911, %v707_v16 }
 0x173   : > { %v933_v9 = vadd.f32 1.4214138, %v901_v62  ;;  %v875_v33 = vadd.f32 -1.4531521, %v843_v28  ;;  %3601 = vst [vmem:[#allocation74_spill] sm:$0xff] %v3179_v37  ;;  %2130 = vpow2.f32 %v1242_v38  ;;  %vm1693_vm0 = vcmask 31744  }
 0x174   : > { %v935_v52 = vadd.f32 1.4214138, %v903_v10  ;;  %v872_v18 = vadd.f32 -1.4531521, %v840_v41  ;;  %v905_v8 = vmul.f32 %v2850_v3, %v873_v54  ;;  %v842_v25 = vmul.f32 1.0614054, %v2831_v58  ;;  %v3187_v59 = vpop.eup %2120 }
 0x175   : > { %v965_v50 = vmul.f32 %v2769_v46, %v933_v9  ;;  %v907_v40 = vmul.f32 %v2868_v12, %v875_v33  ;;  %3602 = vst [vmem:[#allocation75_spill] sm:$0xff] %v3187_v59  ;;  %v3189_v22 = vmul.f32 1.442695, %v1187_v32  ;;  %v845_v16 = vmul.f32 1.0614054, %v2932_v56 }
 0x176   : > { %v967_v62 = vmul.f32 %v2797_v1, %v935_v52  ;;  %v904_v36 = vmul.f32 %v2815_v21, %v872_v18  ;;  %v3194_v20 = vpop.eup %2122  ;;  %v937_v28 = vadd.f32 1.4214138, %v905_v8  ;;  %v874_v54 = vadd.f32 -1.4531521, %v842_v25 }
 0x177   : > { %3603 = vst [vmem:[#allocation76_spill] sm:$0xff] %v3189_v22  ;;  %v997_v9 = vadd.f32 -0.28449672, %v965_v50  ;;  %v939_v10 = vadd.f32 1.4214138, %v907_v40  ;;  %2132 = vrcp.f32 %v768_v19 }
 0x178   : > { %v999_v33 = vadd.f32 -0.28449672, %v967_v62  ;;  %v936_v41 = vadd.f32 1.4214138, %v904_v36  ;;  %v969_v32 = vmul.f32 %v2850_v3, %v937_v28  ;;  %v877_v22 = vadd.f32 -1.4531521, %v845_v16  ;;  %v3204_v28 = vpop.eup %2124 }
 0x179   : > { %v1029_v37 = vmul.f32 %v2769_v46, %v997_v9  ;;  %v971_v52 = vmul.f32 %v2868_v12, %v939_v10  ;;  %v906_v15 = vmul.f32 %v2831_v58, %v874_v54  ;;  %v847_v50 = vmul.f32 1.0614054, %v2948_v61  ;;  %v3209_v54 = vpop.eup %2126 }
 0x17a   : > { %v1031_v18 = vmul.f32 %v2797_v1, %v999_v33  ;;  %v968_v59 = vmul.f32 %v2815_v21, %v936_v41  ;;  %v1001_v38 = vadd.f32 -0.28449672, %v969_v32  ;;  %v909_v25 = vmul.f32 %v2932_v56, %v877_v22 }
 0x17b   : > { %v1061_v8 = vadd.f32 0.2548296, %v1029_v37  ;;  %v1003_v40 = vadd.f32 -0.28449672, %v971_v52  ;;  %v938_v9 = vadd.f32 1.4214138, %v906_v15  ;;  %2134 = vrcp.f32 %v3170_v57 }
 0x17c   : > { %v1063_v62 = vadd.f32 0.2548296, %v1031_v18  ;;  %v1000_v36 = vadd.f32 -0.28449672, %v968_v59  ;;  %v1033_v10 = vmul.f32 %v2850_v3, %v1001_v38  ;;  %v941_v41 = vadd.f32 1.4214138, %v909_v25  ;;  %v3218_v25 = vpop.eup %2128 }
 0x17d   : > { %v1093_v16 = vmul.f32 %v2769_v46, %v1061_v8  ;;  %v1035_v33 = vmul.f32 %v2868_v12, %v1003_v40  ;;  %v970_v19 = vmul.f32 %v2831_v58, %v938_v9  ;;  %v879_v22 = vadd.f32 -1.4531521, %v847_v50  ;;  %v3222_v9 = vpop.eup %2130 }
 0x17e   : > { %v1095_v37 = vmul.f32 %v2797_v1, %v1063_v62  ;;  %v1032_v32 = vmul.f32 %v2815_v21, %v1000_v36  ;;  %v1065_v52 = vadd.f32 0.2548296, %v1033_v10  ;;  %v973_v46 = vmul.f32 %v2932_v56, %v941_v41 }
 0x17f   : > { %v1253_v59 = vmul.f32 %v2785_v29, %v1093_v16  ;;  %v1067_v18 = vadd.f32 0.2548296, %v1035_v33  ;;  %v1002_v38 = vadd.f32 -0.28449672, %v970_v19  ;;  %v911_v40 = vmul.f32 %v2948_v61, %v879_v22  ;;  %v3604_v33 = vld [vmem:[#allocation4_spill] sm:$0xff] }
 0x180   : > { %v1255_v15 = vmul.f32 %v2805_v47, %v1095_v37  ;;  %v1064_v8 = vadd.f32 0.2548296, %v1032_v32  ;;  %v1097_v62 = vmul.f32 %v2850_v3, %v1065_v52  ;;  %v1005_v50 = vadd.f32 -0.28449672, %v973_v46  ;;  %v3605_v3 = vld [vmem:[#allocation5_spill] sm:$0xff] }
 0x181   : > { %v1285_v1 = vsub.f32 1.0, %v1253_v59  ;;  %v1099_v36 = vmul.f32 %v2868_v12, %v1067_v18  ;;  %v1034_v10 = vmul.f32 %v2831_v58, %v1002_v38  ;;  %v943_v47 = vadd.f32 1.4214138, %v911_v40 }
 0x182   : > { %v1287_v29 = vsub.f32 1.0, %v1255_v15  ;;  %v1096_v16 = vmul.f32 %v2815_v21, %v1064_v8  ;;  %v1257_v37 = vmul.f32 %v2861_v48, %v1097_v62  ;;  %v1037_v19 = vmul.f32 %v2932_v56, %v1005_v50  ;;  %v3233_v8 = vpop.eup %2132 }
 0x183   : > { %v1317_v41 = vmul.f32 %v1285_v1, %v3604_v33  ;;  %v1259_v32 = vmul.f32 %v2879_v53, %v1099_v36  ;;  %v1066_v59 = vadd.f32 0.2548296, %v1034_v10  ;;  %v975_v52 = vmul.f32 %v2948_v61, %v943_v47  ;;  %v3606_v1 = vld [vmem:[#allocation2_spill] sm:$0xff]  ;;  %v3608_v10 = vld [vmem:[#allocation9_spill] sm:$0xff] }
 0x184   : > { %v1319_v22 = vmul.f32 %v1287_v29, %v3605_v3  ;;  %v1256_v12 = vmul.f32 %v2833_v24, %v1096_v16  ;;  %v1289_v21 = vsub.f32 1.0, %v1257_v37  ;;  %v1069_v15 = vadd.f32 0.2548296, %v1037_v19  ;;  %v3607_v29 = vld [vmem:[#allocation3_spill] sm:$0xff]  ;;  %v3609_v3 = vld [vmem:[#allocation25_spill] sm:$0xff] }
 0x185   : > { %v1349_v18 = vadd.f32 1.0, %v1317_v41  ;;  %v1291_v46 = vsub.f32 1.0, %v1259_v32  ;;  %v1098_v48 = vmul.f32 %v2831_v58, %v1066_v59  ;;  %v1007_v53 = vadd.f32 -0.28449672, %v975_v52  ;;  %v3612_v52 = vld [vmem:[#allocation11_spill] sm:$0xff] }
 0x186   : > { %v1351_v38 = vadd.f32 1.0, %v1319_v22  ;;  %v1288_v40 = vsub.f32 1.0, %v1256_v12  ;;  %v1321_v36 = vmul.f32 %v1289_v21, %v2795_v5  ;;  %v1101_v50 = vmul.f32 %v2932_v56, %v1069_v15  ;;  %v3610_v12 = vld [vmem:[#allocation23_spill] sm:$0xff]  ;;  %v3613_v15 = vld [vmem:[#allocation6_spill] sm:$0xff] }
 0x187   : > { %v1381_v62 = vmul.f32 %v1349_v18, %v3606_v1  ;;  %v1323_v24 = vmul.f32 %v1291_v46, %v2822_v13  ;;  %v1258_v33 = vmul.f32 %v2838_v34, %v1098_v48  ;;  %v1039_v41 = vmul.f32 %v2948_v61, %v1007_v53  ;;  %v3611_v34 = vld [vmem:[#allocation8_spill] sm:$0xff]  ;;  %v3615_v53 = vld [vmem:[#allocation17_spill] sm:$0xff] }
 0x188   : > { %v1383_v16 = vmul.f32 %v1351_v38, %v3607_v29  ;;  %v1320_v47 = vmul.f32 %v1288_v40, %v3608_v10  ;;  %v1353_v37 = vadd.f32 1.0, %v1321_v36  ;;  %v1261_v32 = vmul.f32 %v2937_v11, %v1101_v50  ;;  %v3614_v38 = vld [vmem:[#allocation10_spill] sm:$0xff] }
 0x189   : > { %1547 = vmatprep.mubr.f32.mxu0 %v1381_v62  ;;  %v1355_v58 = vadd.f32 1.0, %v1323_v24  ;;  %v844_v19 = vmul.f32 1.0614054, %v2892_v4  ;;  %v1290_v13 = vsub.f32 1.0, %v1258_v33  ;;  %v1071_v56 = vadd.f32 0.2548296, %v1039_v41 }
 0x18a   : > { %1652 = vmatprep.mubr.f32.mxu1 %v1383_v16  ;;  %1548 = vmatmul.mubr.f32.vlgmr.msra.gmra.mrb[16].mxu0 %v2882_v35  ;;  %v1352_v5 = vadd.f32 1.0, %v1320_v47  ;;  %v846_v22 = vmul.f32 1.0614054, %v3609_v3  ;;  %v1385_v59 = vmul.f32 %v1353_v37, %v3611_v34  ;;  %v1293_v21 = vsub.f32 1.0, %v1261_v32  ;;  %v3616_v10 = vld [vmem:[#allocation34_spill] sm:$0xff]  ;;  %v3618_v32 = vld [vmem:[#allocation7_spill] sm:$0xff] }
 0x18b   : > { %1653 = vmatmul.mubr.f32.vlgmr.msra.gmra.mrb[16].mxu1 %v3610_v12  ;;  %v1387_v18 = vmul.f32 %v1355_v58, %v3612_v52  ;;  %v876_v46 = vadd.f32 -1.4531521, %v844_v19  ;;  %v1322_v40 = vmul.f32 %v1290_v13, %v3614_v38  ;;  %v1103_v48 = vmul.f32 %v2948_v61, %v1071_v56  ;;  %v3620_v52 = vld [vmem:[#allocation20_spill] sm:$0xff] }
 0x18c   : > { %v1384_v11 = vmul.f32 %v1352_v5, %v3613_v15  ;;  %v878_v35 = vadd.f32 -1.4531521, %v846_v22  ;;  %1552 = vmatprep.mubr.f32.mxu0 %v1385_v59  ;;  %v1325_v1 = vmul.f32 %v1293_v21, %v3615_v53  ;;  %v849_v36 = vmul.f32 1.0614054, %v2996_v30  ;;  %v3619_v22 = vld [vmem:[#allocation16_spill] sm:$0xff] }
 0x18d   : > { %1657 = vmatprep.mubr.f32.mxu1 %v1387_v18  ;;  %v908_v62 = vmul.f32 %v2892_v4, %v876_v46  ;;  %v851_v24 = vmul.f32 1.0614054, %v3028_v39  ;;  %v1354_v50 = vadd.f32 1.0, %v1322_v40  ;;  %v1263_v29 = vmul.f32 %v2958_v45, %v1103_v48  ;;  %v3621_v46 = vld [vmem:[#allocation37_spill] sm:$0xff] }
 0x18e   : > { %1553 = vmatmul.mubr.f32.gmra.mrb[18].mxu0 %v1384_v11  ;;  %v910_v16 = vmul.f32 %v3609_v3, %v878_v35  ;;  %v848_v47 = vmul.f32 1.0614054, %v3616_v10  ;;  %v3617_v61 = vsub.f32 0.0, %v3137_v2  ;;  %v1357_v41 = vadd.f32 1.0, %v1325_v1 }
 0x18f   : > { %v940_v37 = vadd.f32 1.4214138, %v908_v62  ;;  %v881_v58 = vadd.f32 -1.4531521, %v849_v36  ;;  %v1386_v19 = vmul.f32 %v1354_v50, %v3618_v32  ;;  %v1295_v5 = vsub.f32 1.0, %v1263_v29 }
 0x190   : > { %v3264_v33 = vmul.f32 %v3617_v61, %v3137_v2  ;;  %v942_v13 = vadd.f32 1.4214138, %v910_v16  ;;  %v883_v56 = vadd.f32 -1.4531521, %v851_v24  ;;  %v1389_v12 = vmul.f32 %v1357_v41, %v3619_v22  ;;  %v3622_v16 = vld [vmem:[#allocation18_spill] sm:$0xff] }
 0x191   : > { %v972_v45 = vmul.f32 %v2892_v4, %v940_v37  ;;  %v913_v34 = vmul.f32 %v2996_v30, %v881_v58  ;;  %v880_v59 = vadd.f32 -1.4531521, %v848_v47  ;;  %1658 = vmatmul.mubr.f32.gmra.mrb[18].mxu1 %v1386_v19  ;;  %v1327_v18 = vmul.f32 %v1295_v5, %v3620_v52 }
 0x192   : > { %v974_v2 = vmul.f32 %v3609_v3, %v942_v13  ;;  %v915_v21 = vmul.f32 %v3028_v39, %v883_v56  ;;  %v850_v15 = vmul.f32 1.0614054, %v3621_v46  ;;  %1557 = vmatprep.mubr.f32.mxu0 %v1389_v12  ;;  %v853_v48 = vmul.f32 1.0614054, %v3073_v55 }
 0x193   : > { %v1004_v11 = vadd.f32 -0.28449672, %v972_v45  ;;  %v945_v38 = vadd.f32 1.4214138, %v913_v34  ;;  %v912_v40 = vmul.f32 %v3616_v10, %v880_v59  ;;  %v3277_v35 = vadd.f32 1.0, %v3166_v7 }
 0x194   : > { %v1359_v53 = vadd.f32 1.0, %v1327_v18  ;;  %v1006_v1 = vadd.f32 -0.28449672, %v974_v2  ;;  %v947_v62 = vadd.f32 1.4214138, %v915_v21 }
 0x195   : > { %v1036_v36 = vmul.f32 %v2892_v4, %v1004_v11  ;;  %v977_v24 = vmul.f32 %v2996_v30, %v945_v38  ;;  %v944_v50 = vadd.f32 1.4214138, %v912_v40  ;;  %v882_v29 = vadd.f32 -1.4531521, %v850_v15  ;;  %v3623_v15 = vld [vmem:[#allocation22_spill] sm:$0xff] }
 0x196   : > { %v1391_v47 = vmul.f32 %v1359_v53, %v3622_v16  ;;  %v1038_v61 = vmul.f32 %v3609_v3, %v1006_v1  ;;  %v979_v41 = vmul.f32 %v3028_v39, %v947_v62  ;;  %v885_v37 = vadd.f32 -1.4531521, %v853_v48  ;;  %v3624_v53 = vld [vmem:[#allocation27_spill] sm:$0xff] }
 0x197   : > { %v1068_v58 = vadd.f32 0.2548296, %v1036_v36  ;;  %v1009_v32 = vadd.f32 -0.28449672, %v977_v24  ;;  %v976_v7 = vmul.f32 %v3616_v10, %v944_v50  ;;  %v914_v19 = vmul.f32 %v3621_v46, %v882_v29 }
 0x198   : > { %1662 = vmatprep.mubr.f32.mxu1 %v1391_v47  ;;  %v1070_v5 = vadd.f32 0.2548296, %v1038_v61  ;;  %v1011_v13 = vadd.f32 -0.28449672, %v979_v41  ;;  %v917_v56 = vmul.f32 %v3073_v55, %v885_v37  ;;  %v855_v22 = vmul.f32 1.0614054, %v3102_v31 }
 0x199   : > { %v1100_v12 = vmul.f32 %v2892_v4, %v1068_v58  ;;  %v1041_v45 = vmul.f32 %v2996_v30, %v1009_v32  ;;  %v1008_v34 = vadd.f32 -0.28449672, %v976_v7  ;;  %v946_v59 = vadd.f32 1.4214138, %v914_v19  ;;  %v3625_v37 = vld [vmem:[#allocation13_spill] sm:$0xff]  ;;  %v3626_v32 = vld [vmem:[#allocation43_spill] sm:$0xff] }
 0x19a   : > { %v1102_v52 = vmul.f32 %v3609_v3, %v1070_v5  ;;  %v1043_v18 = vmul.f32 %v3028_v39, %v1011_v13  ;;  %v949_v2 = vadd.f32 1.4214138, %v917_v56  ;;  %v887_v21 = vadd.f32 -1.4531521, %v855_v22  ;;  %v3627_v13 = vld [vmem:[#allocation15_spill] sm:$0xff] }
 0x19b   : > { %v1260_v11 = vmul.f32 %v3623_v15, %v1100_v12  ;;  %v1073_v38 = vadd.f32 0.2548296, %v1041_v45  ;;  %v1040_v40 = vmul.f32 %v3616_v10, %v1008_v34  ;;  %v978_v48 = vmul.f32 %v3621_v46, %v946_v59  ;;  %v3628_v34 = vld [vmem:[#allocation36_spill] sm:$0xff] }
 0x19c   : > { %v1262_v1 = vmul.f32 %v3624_v53, %v1102_v52  ;;  %v1075_v4 = vadd.f32 0.2548296, %v1043_v18  ;;  %v981_v62 = vmul.f32 %v3073_v55, %v949_v2  ;;  %v919_v36 = vmul.f32 %v3102_v31, %v887_v21  ;;  %v3631_v53 = vld [vmem:[#allocation14_spill] sm:$0xff] }
 0x19d   : > { %v1292_v24 = vsub.f32 1.0, %v1260_v11  ;;  %v1105_v3 = vmul.f32 %v2996_v30, %v1073_v38  ;;  %v1072_v50 = vadd.f32 0.2548296, %v1040_v40  ;;  %v1010_v29 = vadd.f32 -0.28449672, %v978_v48  ;;  %v3630_v38 = vld [vmem:[#allocation29_spill] sm:$0xff] }
 0x19e   : > { %v1294_v16 = vsub.f32 1.0, %v1262_v1  ;;  %v1107_v47 = vmul.f32 %v3028_v39, %v1075_v4  ;;  %v1013_v61 = vadd.f32 -0.28449672, %v981_v62  ;;  %v951_v41 = vadd.f32 1.4214138, %v919_v36  ;;  %v3632_v4 = vld [vmem:[#allocation31_spill] sm:$0xff] }
 0x19f   : > { %v1324_v58 = vmul.f32 %v1292_v24, %v3625_v37  ;;  %v1265_v7 = vmul.f32 %v3626_v32, %v1105_v3  ;;  %v1104_v19 = vmul.f32 %v3616_v10, %v1072_v50  ;;  %v1042_v5 = vmul.f32 %v3621_v46, %v1010_v29  ;;  %v3629_v10 = vld [vmem:[#allocation12_spill] sm:$0xff]  ;;  %v3633_v50 = vld [vmem:[#allocation21_spill] sm:$0xff] }
 0x1a0   : > { %v1326_v56 = vmul.f32 %v1294_v16, %v3627_v13  ;;  %v1267_v22 = vmul.f32 %v3038_v44, %v1107_v47  ;;  %v1045_v30 = vmul.f32 %v3073_v55, %v1013_v61  ;;  %v983_v12 = vmul.f32 %v3102_v31, %v951_v41  ;;  %v3634_v16 = vld [vmem:[#allocation42_spill] sm:$0xff]  ;;  %v3635_v61 = vld [vmem:[#allocation49_spill] sm:$0xff] }
 0x1a1   : > { %v1356_v45 = vadd.f32 1.0, %v1324_v58  ;;  %v1297_v39 = vsub.f32 1.0, %v1265_v7  ;;  %v1264_v59 = vmul.f32 %v3628_v34, %v1104_v19  ;;  %v1074_v52 = vadd.f32 0.2548296, %v1042_v5  ;;  %v3636_v7 = vld [vmem:[#allocation26_spill] sm:$0xff] }
 0x1a2   : > { %v1358_v18 = vadd.f32 1.0, %v1326_v56  ;;  %v1299_v2 = vsub.f32 1.0, %v1267_v22  ;;  %v1077_v21 = vadd.f32 0.2548296, %v1045_v30  ;;  %v1015_v15 = vadd.f32 -0.28449672, %v983_v12 }
 0x1a3   : > { %v1388_v11 = vmul.f32 %v1356_v45, %v3629_v10  ;;  %v1329_v40 = vmul.f32 %v1297_v39, %v3630_v38  ;;  %v1296_v48 = vsub.f32 1.0, %v1264_v59  ;;  %v1106_v44 = vmul.f32 %v3621_v46, %v1074_v52  ;;  %v3637_v56 = vld [vmem:[#allocation30_spill] sm:$0xff]  ;;  %v3638_v39 = vld [vmem:[#allocation19_spill] sm:$0xff]  ;;  %v3639_v59 = vld [vmem:[#allocation28_spill] sm:$0xff] }
 0x1a4   : > { %v1390_v1 = vmul.f32 %v1358_v18, %v3631_v53  ;;  %v1331_v62 = vmul.f32 %v1299_v2, %v3632_v4  ;;  %v1109_v36 = vmul.f32 %v3073_v55, %v1077_v21  ;;  %v1047_v24 = vmul.f32 %v3102_v31, %v1015_v15  ;;  %v3640_v2 = vld [vmem:[#allocation40_spill] sm:$0xff] }
 0x1a5   : > { %1558 = vmatmul.mubr.f32.gmra.mrb[20].mxu0 %v1388_v11  ;;  %v1361_v3 = vadd.f32 1.0, %v1329_v40  ;;  %v1328_v29 = vmul.f32 %v1296_v48, %v3633_v50  ;;  %v1266_v47 = vmul.f32 %v3634_v16, %v1106_v44  ;;  %v852_v41 = vmul.f32 1.0614054, %v3635_v61  ;;  %v3641_v4 = vld [vmem:[#allocation24_spill] sm:$0xff] }
 0x1a6   : > { %1663 = vmatmul.mubr.f32.gmra.mrb[20].mxu1 %v1390_v1  ;;  %v1363_v37 = vadd.f32 1.0, %v1331_v62  ;;  %v1269_v46 = vmul.f32 %v3084_v49, %v1109_v36  ;;  %v1079_v58 = vadd.f32 0.2548296, %v1047_v24  ;;  %v854_v32 = vmul.f32 1.0614054, %v3052_v27 }
 0x1a7   : > { %v1393_v19 = vmul.f32 %v1361_v3, %v3636_v7  ;;  %v1360_v55 = vadd.f32 1.0, %v1328_v29  ;;  %v1298_v5 = vsub.f32 1.0, %v1266_v47  ;;  %v884_v13 = vadd.f32 -1.4531521, %v852_v41  ;;  %v3642_v3 = vld [vmem:[#allocation39_spill] sm:$0xff] }
 0x1a8   : > { %v1395_v22 = vmul.f32 %v1363_v37, %v3637_v56  ;;  %v1301_v30 = vsub.f32 1.0, %v1269_v46  ;;  %v1111_v12 = vmul.f32 %v3102_v31, %v1079_v58  ;;  %v886_v45 = vadd.f32 -1.4531521, %v854_v32  ;;  %v3643_v29 = vld [vmem:[#allocation47_spill] sm:$0xff] }
 0x1a9   : > { %1562 = vmatprep.mubr.f32.mxu0 %v1393_v19  ;;  %v1392_v34 = vmul.f32 %v1360_v55, %v3638_v39  ;;  %v1330_v52 = vmul.f32 %v1298_v5, %v3639_v59  ;;  %v916_v49 = vmul.f32 %v3635_v61, %v884_v13  ;;  %v857_v18 = vmul.f32 1.0614054, %v3145_v23 }
 0x1aa   : > { %1667 = vmatprep.mubr.f32.mxu1 %v1395_v22  ;;  %v1333_v21 = vmul.f32 %v1301_v30, %v3640_v2  ;;  %v1271_v15 = vmul.f32 %v3105_v60, %v1111_v12  ;;  %v918_v10 = vmul.f32 %v3052_v27, %v886_v45  ;;  %v859_v11 = vmul.f32 1.0614054, %v3158_v51  ;;  %v3644_v22 = vld [vmem:[#allocation41_spill] sm:$0xff] }
 0x1ab   : > { %1563 = vmatmul.mubr.f32.gmra.mrb[22].mxu0 %v1392_v34  ;;  %v1362_v31 = vadd.f32 1.0, %v1330_v52  ;;  %v948_v38 = vadd.f32 1.4214138, %v916_v49  ;;  %v889_v40 = vadd.f32 -1.4531521, %v857_v18  ;;  %2136 = vrcp.f32 %v3277_v35  ;;  %v3352_v18 = vpop.eup %2134 }
 0x1ac   : > { %v1365_v48 = vadd.f32 1.0, %v1333_v21  ;;  %v1303_v44 = vsub.f32 1.0, %v1271_v15  ;;  %v950_v53 = vadd.f32 1.4214138, %v918_v10  ;;  %v891_v1 = vadd.f32 -1.4531521, %v859_v11 }
 0x1ad   : > { %v1394_v62 = vmul.f32 %v1362_v31, %v3641_v4  ;;  %v980_v36 = vmul.f32 %v3635_v61, %v948_v38  ;;  %v921_v60 = vmul.f32 %v3145_v23, %v889_v40  ;;  %v856_v24 = vmul.f32 1.0614054, %v3120_v63 }
 0x1ae   : > { %v1397_v50 = vmul.f32 %v1365_v48, %v3642_v3  ;;  %v1335_v57 = vmul.f32 %v1303_v44, %v3643_v29  ;;  %v982_v16 = vmul.f32 %v3052_v27, %v950_v53  ;;  %v923_v47 = vmul.f32 %v3158_v51, %v891_v1 }
 0x1af   : > { %1668 = vmatmul.mubr.f32.gmra.mrb[22].mxu1 %v1394_v62  ;;  %v1012_v41 = vadd.f32 -0.28449672, %v980_v36  ;;  %v953_v37 = vadd.f32 1.4214138, %v921_v60  ;;  %v888_v46 = vadd.f32 -1.4531521, %v856_v24  ;;  %2138 = vpow2.f32 %v3175_v42 }
 0x1b0   : > { %v771_v58 = vadd.f32 1.0, %v3181_v43  ;;  %1567 = vmatprep.mubr.f32.mxu0 %v1397_v50  ;;  %v1367_v32 = vadd.f32 1.0, %v1335_v57  ;;  %v1014_v7 = vadd.f32 -0.28449672, %v982_v16  ;;  %v955_v19 = vadd.f32 1.4214138, %v923_v47 }
 0x1b1   : > { %v1044_v55 = vmul.f32 %v3635_v61, %v1012_v41  ;;  %v985_v5 = vmul.f32 %v3145_v23, %v953_v37  ;;  %v920_v13 = vmul.f32 %v3120_v63, %v888_v46  ;;  %v858_v56 = vmul.f32 1.0614054, %v3131_v17  ;;  %v3645_v16 = vld [vmem:[#allocation35_spill] sm:$0xff]  ;;  %v3646_v46 = vld [vmem:[#allocation38_spill] sm:$0xff] }
 0x1b2   : > { %v1399_v35 = vmul.f32 %v1367_v32, %v3644_v22  ;;  %v1046_v30 = vmul.f32 %v3052_v27, %v1014_v7  ;;  %v987_v12 = vmul.f32 %v3158_v51, %v955_v19  ;;  %v861_v43 = vmul.f32 1.0614054, %v3204_v28 }
 0x1b3   : > { %v1076_v45 = vadd.f32 0.2548296, %v1044_v55  ;;  %v1017_v39 = vadd.f32 -0.28449672, %v985_v5  ;;  %v952_v34 = vadd.f32 1.4214138, %v920_v13  ;;  %2140 = vrcp.f32 %v771_v58 }
 0x1b4   : > { %1672 = vmatprep.mubr.f32.mxu1 %v1399_v35  ;;  %v1078_v59 = vadd.f32 0.2548296, %v1046_v30  ;;  %v1019_v52 = vadd.f32 -0.28449672, %v987_v12  ;;  %v890_v49 = vadd.f32 -1.4531521, %v858_v56 }
 0x1b5   : > { %v1108_v2 = vmul.f32 %v3635_v61, %v1076_v45  ;;  %v1049_v21 = vmul.f32 %v3145_v23, %v1017_v39  ;;  %v984_v15 = vmul.f32 %v3120_v63, %v952_v34  ;;  %v893_v10 = vadd.f32 -1.4531521, %v861_v43  ;;  %v3364_v36 = vpop.eup %2136  ;;  %v3647_v12 = vld [vmem:[#allocation32_spill] sm:$0xff]  ;;  %v3649_v39 = vld [vmem:[#allocation65_spill] sm:$0xff] }
 0x1b6   : > { %v1110_v11 = vmul.f32 %v3052_v27, %v1078_v59  ;;  %v1051_v42 = vmul.f32 %v3158_v51, %v1019_v52  ;;  %v922_v31 = vmul.f32 %v3131_v17, %v890_v49  ;;  %v863_v38 = vmul.f32 1.0614054, %v3218_v25  ;;  %v3650_v52 = vld [vmem:[#allocation33_spill] sm:$0xff] }
 0x1b7   : > { %v1268_v40 = vmul.f32 %v3055_v6, %v1108_v2  ;;  %v1081_v48 = vadd.f32 0.2548296, %v1049_v21  ;;  %v1016_v44 = vadd.f32 -0.28449672, %v984_v15  ;;  %v925_v53 = vmul.f32 %v3204_v28, %v893_v10 }
 0x1b8   : > { %v1270_v61 = vmul.f32 %v3060_v26, %v1110_v11  ;;  %v1083_v1 = vadd.f32 0.2548296, %v1051_v42  ;;  %v954_v4 = vadd.f32 1.4214138, %v922_v31  ;;  %v895_v62 = vadd.f32 -1.4531521, %v863_v38 }
 0x1b9   : > { %v1300_v27 = vsub.f32 1.0, %v1268_v40  ;;  %v1113_v60 = vmul.f32 %v3145_v23, %v1081_v48  ;;  %v1048_v24 = vmul.f32 %v3120_v63, %v1016_v44  ;;  %v957_v3 = vadd.f32 1.4214138, %v925_v53  ;;  %v3376_v19 = vpop.eup %2138  ;;  %v3652_v31 = vld [vmem:[#allocation73_spill] sm:$0xff]  ;;  %v3653_v53 = vld [vmem:[#allocation75_spill] sm:$0xff] }
 0x1ba   : > { %v1302_v50 = vsub.f32 1.0, %v1270_v61  ;;  %v1115_v6 = vmul.f32 %v3158_v51, %v1083_v1  ;;  %v986_v29 = vmul.f32 %v3131_v17, %v954_v4  ;;  %v927_v57 = vmul.f32 %v3218_v25, %v895_v62  ;;  %v3654_v1 = vld [vmem:[#allocation51_spill] sm:$0xff]  ;;  %v3655_v62 = vld [vmem:[#allocation50_spill] sm:$0xff] }
 0x1bb   : > { %v1332_v26 = vmul.f32 %v1300_v27, %v3645_v16  ;;  %v1273_v47 = vmul.f32 %v3153_v14, %v1113_v60  ;;  %v1080_v41 = vadd.f32 0.2548296, %v1048_v24  ;;  %v989_v37 = vmul.f32 %v3204_v28, %v957_v3  ;;  %v3656_v3 = vld [vmem:[#allocation58_spill] sm:$0xff] }
 0x1bc   : > { %v1334_v58 = vmul.f32 %v1302_v50, %v3646_v46  ;;  %v1275_v23 = vmul.f32 %v3161_v0, %v1115_v6  ;;  %v1018_v32 = vadd.f32 -0.28449672, %v986_v29  ;;  %v959_v7 = vadd.f32 1.4214138, %v927_v57  ;;  %v3648_v0 = vld [vmem:[#allocation55_spill] sm:$0xff]  ;;  %v3657_v6 = vld [vmem:[#allocation68_spill] sm:$0xff] }
 0x1bd   : > { %v1364_v51 = vadd.f32 1.0, %v1332_v26  ;;  %v1305_v55 = vsub.f32 1.0, %v1273_v47  ;;  %v1112_v5 = vmul.f32 %v3120_v63, %v1080_v41  ;;  %v1021_v13 = vadd.f32 -0.28449672, %v989_v37  ;;  %v3379_v56 = vpop.eup %2140  ;;  %v3651_v63 = vld [vmem:[#allocation60_spill] sm:$0xff] }
 0x1be   : > { %v1366_v22 = vadd.f32 1.0, %v1334_v58  ;;  %v1307_v14 = vsub.f32 1.0, %v1275_v23  ;;  %v1050_v35 = vmul.f32 %v3131_v17, %v1018_v32  ;;  %v991_v30 = vmul.f32 %v3218_v25, %v959_v7  ;;  %v3658_v23 = vld [vmem:[#allocation44_spill] sm:$0xff] }
 0x1bf   : > { %v1396_v43 = vmul.f32 %v1364_v51, %v3647_v12  ;;  %v1337_v45 = vmul.f32 %v1305_v55, %v3648_v0  ;;  %v1272_v34 = vmul.f32 %v3649_v39, %v1112_v5  ;;  %v1053_v59 = vmul.f32 %v3204_v28, %v1021_v13  ;;  %v3659_v5 = vld [vmem:[#allocation53_spill] sm:$0xff] }
 0x1c0   : > { %v1398_v49 = vmul.f32 %v1366_v22, %v3650_v52  ;;  %v1339_v2 = vmul.f32 %v1307_v14, %v3651_v63  ;;  %v1082_v21 = vadd.f32 0.2548296, %v1050_v35  ;;  %v1023_v15 = vadd.f32 -0.28449672, %v991_v30  ;;  %v3660_v35 = vld [vmem:[#allocation69_spill] sm:$0xff]  ;;  %v3662_v63 = vld [vmem:[#allocation48_spill] sm:$0xff] }
 0x1c1   : > { %1568 = vmatmul.mubr.f32.gmra.mrb[24].mxu0 %v1396_v43  ;;  %v1369_v10 = vadd.f32 1.0, %v1337_v45  ;;  %v1304_v11 = vsub.f32 1.0, %v1272_v34  ;;  %v1085_v42 = vadd.f32 0.2548296, %v1053_v59  ;;  %v860_v38 = vmul.f32 1.0614054, %v3652_v31 }
 0x1c2   : > { %1673 = vmatmul.mubr.f32.gmra.mrb[24].mxu1 %v1398_v49  ;;  %v1371_v40 = vadd.f32 1.0, %v1339_v2  ;;  %v1114_v48 = vmul.f32 %v3131_v17, %v1082_v21  ;;  %v1055_v44 = vmul.f32 %v3218_v25, %v1023_v15  ;;  %v862_v61 = vmul.f32 1.0614054, %v3653_v53  ;;  %v3661_v59 = vld [vmem:[#allocation76_spill] sm:$0xff]  ;;  %v3663_v21 = vld [vmem:[#allocation70_spill] sm:$0xff] }
 0x1c3   : > { %v1401_v4 = vmul.f32 %v1369_v10, %v3654_v1  ;;  %v1336_v27 = vmul.f32 %v1304_v11, %v3655_v62  ;;  %v1117_v60 = vmul.f32 %v3204_v28, %v1085_v42  ;;  %v892_v24 = vadd.f32 -1.4531521, %v860_v38  ;;  %v3664_v42 = vld [vmem:[#allocation62_spill] sm:$0xff] }
 0x1c4   : > { %v1403_v50 = vmul.f32 %v1371_v40, %v3656_v3  ;;  %v1274_v29 = vmul.f32 %v3657_v6, %v1114_v48  ;;  %v1087_v57 = vadd.f32 0.2548296, %v1055_v44  ;;  %v894_v16 = vadd.f32 -1.4531521, %v862_v61 }
 0x1c5   : > { %1572 = vmatprep.mubr.f32.mxu0 %v1401_v4  ;;  %v1368_v26 = vadd.f32 1.0, %v1336_v27  ;;  %v1277_v17 = vmul.f32 %v3209_v54, %v1117_v60  ;;  %v924_v47 = vmul.f32 %v3652_v31, %v892_v24  ;;  %v865_v41 = vmul.f32 1.0614054, %v3364_v36  ;;  %v3665_v27 = vld [vmem:[#allocation46_spill] sm:$0xff] }
 0x1c6   : > { %1677 = vmatprep.mubr.f32.mxu1 %v1403_v50  ;;  %v1306_v37 = vsub.f32 1.0, %v1274_v29  ;;  %v1119_v46 = vmul.f32 %v3218_v25, %v1087_v57  ;;  %v926_v28 = vmul.f32 %v3653_v53, %v894_v16  ;;  %v867_v58 = vmul.f32 1.0614054, %v3379_v56  ;;  %v3666_v50 = vld [vmem:[#allocation67_spill] sm:$0xff] }
 0x1c7   : > { %v1400_v32 = vmul.f32 %v1368_v26, %v3658_v23  ;;  %v1309_v7 = vsub.f32 1.0, %v1277_v17  ;;  %v956_v51 = vadd.f32 1.4214138, %v924_v47  ;;  %v897_v55 = vadd.f32 -1.4531521, %v865_v41  ;;  %v3668_v23 = vld [vmem:[#allocation52_spill] sm:$0xff] }
 0x1c8   : > { %v1338_v13 = vmul.f32 %v1306_v37, %v3659_v5  ;;  %v1279_v54 = vmul.f32 %v3222_v9, %v1119_v46  ;;  %v958_v22 = vadd.f32 1.4214138, %v926_v28  ;;  %v899_v14 = vadd.f32 -1.4531521, %v867_v58  ;;  %v3667_v37 = vld [vmem:[#allocation72_spill] sm:$0xff] }
 0x1c9   : > { %1573 = vmatmul.mubr.f32.gmra.mrb[26].mxu0 %v1400_v32  ;;  %v1341_v30 = vmul.f32 %v1309_v7, %v3660_v35  ;;  %v988_v25 = vmul.f32 %v3652_v31, %v956_v51  ;;  %v929_v12 = vmul.f32 %v3364_v36, %v897_v55  ;;  %v864_v43 = vmul.f32 1.0614054, %v3233_v8  ;;  %v3669_v32 = vld [vmem:[#allocation74_spill] sm:$0xff] }
 0x1ca   : > { %v1370_v0 = vadd.f32 1.0, %v1338_v13  ;;  %v1311_v45 = vsub.f32 1.0, %v1279_v54  ;;  %v990_v39 = vmul.f32 %v3653_v53, %v958_v22  ;;  %v931_v34 = vmul.f32 %v3379_v56, %v899_v14 }
 0x1cb   : > { %2142 = vpow2.f32 %v3661_v59  ;;  %v1373_v9 = vadd.f32 1.0, %v1341_v30  ;;  %v1020_v52 = vadd.f32 -0.28449672, %v988_v25  ;;  %v961_v49 = vadd.f32 1.4214138, %v929_v12 }
 0x1cc   : > { %v1402_v2 = vmul.f32 %v1370_v0, %v3662_v63  ;;  %v1343_v15 = vmul.f32 %v1311_v45, %v3663_v21  ;;  %v1022_v10 = vadd.f32 -0.28449672, %v990_v39  ;;  %v963_v11 = vadd.f32 1.4214138, %v931_v34  ;;  %v3671_v0 = vld [vmem:[#allocation64_spill] sm:$0xff]  ;;  %v3672_v34 = vld [vmem:[#allocation71_spill] sm:$0xff] }
 0x1cd   : > { %v1405_v38 = vmul.f32 %v1373_v9, %v3664_v42  ;;  %v1052_v40 = vmul.f32 %v3652_v31, %v1020_v52  ;;  %v993_v48 = vmul.f32 %v3364_v36, %v961_v49  ;;  %v896_v44 = vadd.f32 -1.4531521, %v864_v43  ;;  %v3673_v52 = vld [vmem:[#allocation45_spill] sm:$0xff] }
 0x1ce   : > { %1678 = vmatmul.mubr.f32.gmra.mrb[26].mxu1 %v1402_v2  ;;  %v1375_v61 = vadd.f32 1.0, %v1343_v15  ;;  %v1054_v1 = vmul.f32 %v3653_v53, %v1022_v10  ;;  %v995_v4 = vmul.f32 %v3379_v56, %v963_v11  ;;  %v866_v62 = vmul.f32 1.0614054, %v3352_v18  ;;  %v3674_v42 = vld [vmem:[#allocation61_spill] sm:$0xff] }
 0x1cf   : > { %vm636_vm10 = vcmp.ge.f32.partialorder %v3665_v27, 0.0  ;;  %1577 = vmatprep.mubr.f32.mxu0 %v1405_v38  ;;  %v1084_v60 = vadd.f32 0.2548296, %v1052_v40  ;;  %v1025_v24 = vadd.f32 -0.28449672, %v993_v48  ;;  %v928_v3 = vmul.f32 %v3233_v8, %v896_v44  ;;  %v3676_v27 = vld [vmem:[#allocation59_spill] sm:$0xff] }
 0x1d0   : > { %v1407_v6 = vmul.f32 %v1375_v61, %v3666_v50  ;;  %v1086_v29 = vadd.f32 0.2548296, %v1054_v1  ;;  %v1027_v57 = vadd.f32 -0.28449672, %v995_v4  ;;  %v898_v16 = vadd.f32 -1.4531521, %v866_v62 }
 0x1d1   : > { %v1248_v26 = vmul.f32 1.442695, %v3264_v33  ;;  %v1116_v17 = vmul.f32 %v3652_v31, %v1084_v60  ;;  %v1057_v47 = vmul.f32 %v3364_v36, %v1025_v24  ;;  %v960_v41 = vadd.f32 1.4214138, %v928_v3  ;;  %v3675_v62 = vld [vmem:[#allocation56_spill] sm:$0xff]  ;;  %v3677_v50 = vld [vmem:[#allocation66_spill] sm:$0xff] }
 0x1d2   : > { %2144 = vpow2.f32 %v3667_v37  ;;  %1682 = vmatprep.mubr.f32.mxu1 %v1407_v6  ;;  %v1118_v46 = vmul.f32 %v3653_v53, %v1086_v29  ;;  %v1059_v28 = vmul.f32 %v3379_v56, %v1027_v57  ;;  %v930_v58 = vmul.f32 %v3352_v18, %v898_v16 }
 0x1d3   : > { %vm638_vm11 = vcmp.ge.f32.partialorder %v3668_v23, 0.0  ;;  %v1276_v7 = vmul.f32 %v3669_v32, %v1116_v17  ;;  %v1089_v51 = vadd.f32 0.2548296, %v1057_v47  ;;  %v992_v33 = vmul.f32 %v3233_v8, %v960_v41  ;;  %v3678_v47 = vld [vmem:[#allocation63_spill] sm:$0xff] }
 0x1d4   : > { %v3670_v31 = vmov -1.0   ;;  %v1278_v5 = vmul.f32 %v3194_v20, %v1118_v46  ;;  %v1091_v13 = vadd.f32 0.2548296, %v1059_v28  ;;  %v962_v54 = vadd.f32 1.4214138, %v930_v58  ;;  %v3679_v58 = vld [vmem:[#allocation54_spill] sm:$0xff] }
 0x1d5   : > { %v668_v55 = vsel %vm636_vm10, 1.0, %v3670_v31  ;;  %v2143_v53 = vpop.eup %2142  ;;  %2146 = vpow2.f32 %v1248_v26  ;;  %v1308_v22 = vsub.f32 1.0, %v1276_v7  ;;  %v1121_v14 = vmul.f32 %v3364_v36, %v1089_v51 }
 0x1d6   : > { %v1024_v35 = vadd.f32 -0.28449672, %v992_v33  ;;  %v670_v30 = vsel %vm638_vm11, 1.0, %v3670_v31  ;;  %v1310_v25 = vsub.f32 1.0, %v1278_v5  ;;  %v1123_v12 = vmul.f32 %v3379_v56, %v1091_v13  ;;  %v3680_v33 = vld [vmem:[#allocation57_spill] sm:$0xff] }
 0x1d7   : > { %v994_v43 = vmul.f32 %v3352_v18, %v962_v54  ;;  %vm641_vm12 = vcmp.ge.f32.partialorder %v3671_v0, 0.0  ;;  %v1340_v45 = vmul.f32 %v1308_v22, %v668_v55  ;;  %v1281_v20 = vmul.f32 %v3376_v19, %v1121_v14  ;;  %v3465_v22 = vld [vmem:[%s3505_s4] ss:$0 sm:$0xff] }
 0x1d8   : > { %v1056_v39 = vmul.f32 %v3233_v8, %v1024_v35  ;;  %vm643_vm13 = vcmp.ge.f32.partialorder %v3672_v34, 0.0  ;;  %v1342_v59 = vmul.f32 %v1310_v25, %v670_v30  ;;  %v1283_v9 = vmul.f32 %v2143_v53, %v1123_v12 }
 0x1d9   : > { %v1026_v36 = vadd.f32 -0.28449672, %v994_v43  ;;  %v574_v49 = vmul.f32 0.5, %v3673_v52  ;;  %v1372_v63 = vadd.f32 1.0, %v1340_v45  ;;  %v1313_v2 = vsub.f32 1.0, %v1281_v20 }
 0x1da   : > { %v1088_v21 = vadd.f32 0.2548296, %v1056_v39  ;;  %v673_v56 = vsel %vm641_vm12, 1.0, %v3670_v31  ;;  %v1374_v15 = vadd.f32 1.0, %v1342_v59  ;;  %v1315_v10 = vsub.f32 1.0, %v1283_v9 }
 0x1db   : > { %v1058_v11 = vmul.f32 %v3352_v18, %v1026_v36  ;;  %v675_v19 = vsel %vm643_vm13, 1.0, %v3670_v31  ;;  %v1404_v38 = vmul.f32 %v1372_v63, %v3674_v42  ;;  %v1345_v40 = vmul.f32 %v1313_v2, %v673_v56 }
 0x1dc   : > { %v1120_v48 = vmul.f32 %v3233_v8, %v1088_v21  ;;  %v2145_v44 = vpop.eup %2144  ;;  %v1406_v61 = vmul.f32 %v1374_v15, %v574_v49  ;;  %v1347_v1 = vmul.f32 %v1315_v10, %v675_v19  ;;  %vm640_vm14 = vcmp.ge.f32.partialorder %v3675_v62, 0.0 }
 0x1dd   : > { %v1090_v4 = vadd.f32 0.2548296, %v1058_v11  ;;  %v577_v60 = vmul.f32 0.5, %v3676_v27  ;;  %1578 = vmatmul.mubr.f32.gmra.mrb[28].mxu0 %v1404_v38  ;;  %v1377_v24 = vadd.f32 1.0, %v1345_v40  ;;  %v579_v6 = vmul.f32 0.5, %v3677_v50 }
 0x1de   : > { %v1280_v3 = vmul.f32 %v2145_v44, %v1120_v48  ;;  %1683 = vmatmul.mubr.f32.gmra.mrb[28].mxu1 %v1406_v61  ;;  %v1379_v29 = vadd.f32 1.0, %v1347_v1  ;;  %v672_v17 = vsel %vm640_vm14, 1.0, %v3670_v31  ;;  %vm642_vm15 = vcmp.ge.f32.partialorder %v3678_v47, 0.0 }
 0x1df   : > { %v1122_v57 = vmul.f32 %v3352_v18, %v1090_v4  ;;  %v2147_v16 = vpop.eup %2146  ;;  %v1409_v26 = vmul.f32 %v1377_v24, %v577_v60  ;;  %v576_v23 = vmul.f32 0.5, %v3679_v58  ;;  %v674_v32 = vsel %vm642_vm15, 1.0, %v3670_v31 }
 0x1e0   : > { %v1312_v8 = vsub.f32 1.0, %v1280_v3  ;;  %v1411_v41 = vmul.f32 %v1379_v29, %v579_v6  ;;  %v578_v55 = vmul.f32 0.5, %v3680_v33 }
 0x1e1   : > { %v1282_v37 = vmul.f32 %v2147_v16, %v1122_v57  ;;  %1582 = vmatprep.mubr.f32.mxu0 %v1409_v26 }
 0x1e2   : > { %v1344_v46 = vmul.f32 %v1312_v8, %v672_v17  ;;  %1687 = vmatprep.mubr.f32.mxu1 %v1411_v41 }
 0x1e3   : > { %v1314_v28 = vsub.f32 1.0, %v1282_v37 }
 0x1e4   : > { %v1376_v7 = vadd.f32 1.0, %v1344_v46 }
 0x1e5   : > { %v1346_v51 = vmul.f32 %v1314_v28, %v674_v32 }
 0x1e6   : > { %v1408_v18 = vmul.f32 %v1376_v7, %v576_v23 }
 0x1e7   : > { %v1378_v5 = vadd.f32 1.0, %v1346_v51 }
 0x1e8   : > { %1583 = vmatmul.mubr.f32.gmra.mrb[30].mxu0 %v1408_v18 }
 0x1e9   : > { %v1410_v13 = vmul.f32 %v1378_v5, %v578_v55 }
 0x1eb   : > { %1688 = vmatmul.mubr.f32.gmra.mrb[30].mxu1 %v1410_v13 }
 0x25d   : > { %v1802_v54 = vpop.f32.mrb[16].mxu0 }
 0x25e   : > { %v1858_v53 = vpop.f32.mrb[16].mxu1  ;;  %v1803_v14 = vpop.f32.mrb[17].mxu0 }
 0x25f   : > { %v1804_v35 = vadd.f32 %v1803_v14, %v1802_v54  ;;  %v1859_v31 = vpop.f32.mrb[17].mxu1 }
 0x260   : > { %v1860_v30 = vadd.f32 %v1859_v31, %v1858_v53 }
 0x261   : > { %v1550_v25 = vadd.f32 %v1804_v35, %v3465_v22  ;;  %v1805_v12 = vpop.f32.mrb[18].mxu0 }
 0x262   : > { %v1806_v43 = vpop.f32.mrb[19].mxu0 }
 0x263   : > { %v1655_v0 = vadd.f32 %v1860_v30, %v1550_v25  ;;  %v1807_v45 = vadd.f32 %v1806_v43, %v1805_v12 }
 0x264   : > { %v1861_v20 = vpop.f32.mrb[18].mxu1 }
 0x265   : > { %1694 = vst.msk [vmem:[%s3473_s15] sm:$0xff] %vm1693_vm0, %v1655_v0  ;;  %v1555_v39 = vadd.f32 %v1807_v45, %v3465_v22  ;;  %v1862_v34 = vpop.f32.mrb[19].mxu1 }
 0x266   : > { %v1863_v59 = vadd.f32 %v1862_v34, %v1861_v20 }
 0x268   : > { %v1660_v9 = vadd.f32 %v1863_v59, %v1555_v39 }
 0x26a   : > { %1695 = vst.msk [vmem:[%s3473_s15 + $0x8] sm:$0xff] %vm1693_vm0, %v1660_v9 }
 0x278   : > { %v1808_v36 = vpop.f32.mrb[20].mxu0 }
 0x279   : > { %v1864_v52 = vpop.f32.mrb[20].mxu1  ;;  %v1809_v49 = vpop.f32.mrb[21].mxu0 }
 0x27a   : > { %v1810_v63 = vadd.f32 %v1809_v49, %v1808_v36  ;;  %v1865_v2 = vpop.f32.mrb[21].mxu1 }
 0x27b   : > { %v1866_v21 = vadd.f32 %v1865_v2, %v1864_v52 }
 0x27c   : > { %v1560_v56 = vadd.f32 %v1810_v63, %v3465_v22 }
 0x27e   : > { %v1665_v15 = vadd.f32 %v1866_v21, %v1560_v56  ;;  %v1811_v10 = vpop.f32.mrb[22].mxu0 }
 0x27f   : > { %v1812_v11 = vpop.f32.mrb[23].mxu0 }
 0x280   : > { %1696 = vst.msk [vmem:[%s3473_s15 + $0x10] sm:$0xff] %vm1693_vm0, %v1665_v15  ;;  %v1813_v19 = vadd.f32 %v1812_v11, %v1811_v10 }
 0x282   : > { %v1867_v42 = vpop.f32.mrb[22].mxu1  ;;  %v1565_v38 = vadd.f32 %v1813_v19, %v3465_v22 }
 0x283   : > { %v1868_v40 = vpop.f32.mrb[23].mxu1 }
 0x284   : > { %v1869_v48 = vadd.f32 %v1868_v40, %v1867_v42 }
 0x286   : > { %v1670_v44 = vadd.f32 %v1869_v48, %v1565_v38 }
 0x288   : > { %1697 = vst.msk [vmem:[%s3473_s15 + $0x18] sm:$0xff] %vm1693_vm0, %v1670_v44 }
 0x294   : > { %v1814_v61 = vpop.f32.mrb[24].mxu0 }
 0x295   : > { %v1870_v1 = vpop.f32.mrb[24].mxu1  ;;  %v1815_v4 = vpop.f32.mrb[25].mxu0 }
 0x296   : > { %v1816_v62 = vadd.f32 %v1815_v4, %v1814_v61  ;;  %v1871_v27 = vpop.f32.mrb[25].mxu1 }
 0x297   : > { %v1872_v60 = vadd.f32 %v1871_v27, %v1870_v1 }
 0x298   : > { %v1570_v24 = vadd.f32 %v1816_v62, %v3465_v22 }
 0x29a   : > { %v1675_v3 = vadd.f32 %v1872_v60, %v1570_v24 }
 0x29c   : > { %1698 = vst.msk [vmem:[%s3473_s15 + $0x20] sm:$0xff] %vm1693_vm0, %v1675_v3  ;;  %v1817_v50 = vpop.f32.mrb[26].mxu0 }
 0x29d   : > { %v1818_v6 = vpop.f32.mrb[27].mxu0 }
 0x29e   : > { %v1819_v29 = vadd.f32 %v1818_v6, %v1817_v50 }
 0x2a0   : > { %v1575_v16 = vadd.f32 %v1819_v29, %v3465_v22 }
 0x2a1   : > { %v1873_v57 = vpop.f32.mrb[26].mxu1 }
 0x2a2   : > { %v1874_v26 = vpop.f32.mrb[27].mxu1 }
 0x2a3   : > { %v1875_v8 = vadd.f32 %v1874_v26, %v1873_v57 }
 0x2a5   : > { %v1680_v17 = vadd.f32 %v1875_v8, %v1575_v16 }
 0x2a7   : > { %1699 = vst.msk [vmem:[%s3473_s15 + $0x28] sm:$0xff] %vm1693_vm0, %v1680_v17 }
 0x2b0   : > { %v1820_v47 = vpop.f32.mrb[28].mxu0 }
 0x2b1   : > { %v1876_v41 = vpop.f32.mrb[28].mxu1  ;;  %v1821_v37 = vpop.f32.mrb[29].mxu0 }
 0x2b2   : > { %v1822_v46 = vadd.f32 %v1821_v37, %v1820_v47  ;;  %v1877_v28 = vpop.f32.mrb[29].mxu1 }
 0x2b3   : > { %v1878_v58 = vadd.f32 %v1877_v28, %v1876_v41 }
 0x2b4   : > { %v1580_v23 = vadd.f32 %v1822_v46, %v3465_v22 }
 0x2b6   : > { %v1685_v32 = vadd.f32 %v1878_v58, %v1580_v23 }
 0x2b8   : > { %1700 = vst.msk [vmem:[%s3473_s15 + $0x30] sm:$0xff] %vm1693_vm0, %v1685_v32 }
 0x2bb   : > { %v1823_v7 = vpop.f32.mrb[30].mxu0 }
 0x2bc   : > { %v1824_v51 = vpop.f32.mrb[31].mxu0 }
 0x2bd   : > { %v1825_v18 = vadd.f32 %v1824_v51, %v1823_v7 }
 0x2be   : > { %v1879_v33 = vpop.f32.mrb[30].mxu1 }
 0x2bf   : > { %v1585_v55 = vadd.f32 %v1825_v18, %v3465_v22  ;;  %v1880_v5 = vpop.f32.mrb[31].mxu1 }
 0x2c0   : > { %v1881_v13 = vadd.f32 %v1880_v5, %v1879_v33 }
 0x2c2   : > { %v1690_v54 = vadd.f32 %v1881_v13, %v1585_v55 }
 0x2c4   : > { %1701 = vst.msk [vmem:[%s3473_s15 + $0x38] sm:$0xff] %vm1693_vm0, %v1690_v54 }
 0x2c5 PF: > { %s15_s18 = sadd.s32 1, %s2154_s18  }
 0x2c6   : > { %p12_p4 = scmp.ge.s32.totalorder %s15_s18, 4  }
 0x2c8   :  { %14 = sbr.rel (!%p12_p4) target bundleno = 1 (0x1), region = 70 }

</bundles_post_ra>
